<compile_context>
chip_gen: v7x
topology: tpu7x:2x2x1
jax: 0.10.0
libtpu: 0.0.40
codegen_flags: <defaults>
</compile_context>

<pallas_src>
import math
import jax
import jax.numpy as jnp
from jax import lax
from jax.experimental import pallas as pl
from jax.experimental.pallas import tpu as pltpu


# ----------------------------- config ("args") -------------------------------
class Args:
    input_dim = 2
    rnn_units = 32          # hidden_dim
    cheb_k = 2              # supports = [I, learned_tilde]
    embed_dim = 8           # == mem_num; We1 is used as the node embedding
    num_layers = 1          # TODO(synk): multi-layer AVWDCRNN stacking not implemented
    horizon = 4
    output_dim = 2
    mem_num = 8
    mem_dim = 16
    num_nodes = 8
    cheby = False           # TODO(synk): chebyshev-polynomial (args.cheby) branch not implemented


args = Args()
CO_PAD = 128                # lane-dense (multiple-of-128) padded end_conv width


# ------------------------------ Pallas kernel ---------------------------------
def _lane_tile(x, reps):
    """Tile a 2-D value `reps` times along the lane (last) axis."""
    return jnp.concatenate([x] * reps, axis=-1)


def meta_kernel(x_ref, tilde_ref, btilde_ref, we1e_ref, we1xe_ref,
                wx_ref, wh_ref, b_ref, wc_ref, bc_ref,
                o_ref, zx_s, rx_s, cx_s):
    """Full encoder (adaptive-graph-conv GRU over T steps) + fused end_conv
    for one batch element (grid axis = batch, 'parallel')."""
    f32 = jnp.float32
    T, N, H = zx_s.shape
    E = we1e_ref.shape[1] // H

    x_all = x_ref[0]                       # (T*N, Din)  inputs of all time steps
    tilde = tilde_ref[...]                 # (N, N)      learned scaled laplacian
    we1e = we1e_ref[...]                   # (N, E*H)    We1 repeated along lanes
    we1xe = we1xe_ref[...]                 # (T*N, E*Din)

    # ---- input-side gate contributions for ALL time steps (hoisted out of the
    # recurrence): one block-diag graph matmul + 6 MXU dots over T*N rows -----
    gx_all = jnp.dot(btilde_ref[...], x_all, preferred_element_type=f32)  # (T*N, Din)
    xe = _lane_tile(x_all, E) * we1xe       # (T*N, E*Din)  We1 folded into x
    gxe = _lane_tile(gx_all, E) * we1xe

    def xproj(i):
        return (jnp.dot(xe, wx_ref[2 * i], preferred_element_type=f32)
                + jnp.dot(gxe, wx_ref[2 * i + 1], preferred_element_type=f32))

    zx_s[...] = xproj(0).reshape(T, N, H)   # z-gate  x-contribution
    rx_s[...] = xproj(1).reshape(T, N, H)   # r-gate  x-contribution
    cx_s[...] = xproj(2).reshape(T, N, H)   # candidate x-contribution

    # recurrent weights (z / r / candidate, for [h] and [tilde @ h]) + biases
    wzh0, wzh1 = wh_ref[0], wh_ref[1]
    wrh0, wrh1 = wh_ref[2], wh_ref[3]
    wch0, wch1 = wh_ref[4], wh_ref[5]
    bz, br, bc = b_ref[0], b_ref[1], b_ref[2]

    def step(t, h):
        gh = jnp.dot(tilde, h, preferred_element_type=f32)        # (N, H)
        he = _lane_tile(h, E) * we1e                              # (N, E*H)
        ghe = _lane_tile(gh, E) * we1e
        z = jax.nn.sigmoid(zx_s[t] + bz
                           + jnp.dot(he, wzh0, preferred_element_type=f32)
                           + jnp.dot(ghe, wzh1, preferred_element_type=f32))
        r = jax.nn.sigmoid(rx_s[t] + br
                           + jnp.dot(he, wrh0, preferred_element_type=f32)
                           + jnp.dot(ghe, wrh1, preferred_element_type=f32))
        rh = r * h
        grh = jnp.dot(tilde, rh, preferred_element_type=f32)
        rhe = _lane_tile(rh, E) * we1e
        grhe = _lane_tile(grh, E) * we1e
        hc = jnp.tanh(cx_s[t] + bc
                      + jnp.dot(rhe, wch0, preferred_element_type=f32)
                      + jnp.dot(grhe, wch1, preferred_element_type=f32))
        return z * h + (1.0 - z) * hc

    h_last = lax.fori_loop(0, T, step, jnp.zeros((N, H), f32), unroll=True)

    # fused end_conv: Conv2d(1, CO, kernel=(1, H)) == dense projection over H.
    # Output width is padded to 128 lanes (unmasked stores); wrapper slices it.
    o_ref[0] = (jnp.dot(h_last, wc_ref[...], preferred_element_type=f32)
                + bc_ref[...])


def run_meta_kernel(x_btn, tilde, btilde, we1e, we1xe, wx_stack, wh_stack,
                    b_stack, wc_pad, bc_pad):
    B, TN, Din = x_btn.shape
    N = tilde.shape[0]
    H = wh_stack.shape[-1]
    T = TN // N

    def full(arr):
        shape = arr.shape
        return pl.BlockSpec(shape, lambda b, _n=len(shape): (0,) * _n)

    grid_spec = pltpu.PrefetchScalarGridSpec(
        num_scalar_prefetch=0,
        grid=(B,),                                   # batch axis -> 2nd TC on v7x
        in_specs=[
            pl.BlockSpec((1, TN, Din), lambda b: (b, 0, 0)),
            full(tilde), full(btilde), full(we1e), full(we1xe),
            full(wx_stack), full(wh_stack), full(b_stack),
            full(wc_pad), full(bc_pad),
        ],
        out_specs=pl.BlockSpec((1, N, CO_PAD), lambda b: (b, 0, 0)),
        scratch_shapes=[pltpu.VMEM((T, N, H), jnp.float32) for _ in range(3)],
    )
    return pl.pallas_call(
        meta_kernel,
        out_shape=jax.ShapeDtypeStruct((B, N, CO_PAD), jnp.float32),
        grid_spec=grid_spec,
        compiler_params=pltpu.CompilerParams(dimension_semantics=("parallel",)),
    )(x_btn, tilde, btilde, we1e, we1xe, wx_stack, wh_stack, b_stack, wc_pad, bc_pad)


# ----------------------------- glue (plain JAX) -------------------------------
def xavier_normal(key, shape):
    fan_in, fan_out = shape[-2], shape[-1]
    std = math.sqrt(2.0 / (fan_in + fan_out))
    return std * jax.random.normal(key, shape, dtype=jnp.float32)


def gumbel_softmax(key, logits, tau=1.0, hard=True):
    u = jax.random.uniform(key, logits.shape, minval=1e-20, maxval=1.0)
    g = -jnp.log(-jnp.log(u))
    y = jax.nn.softmax((logits + g) / tau, axis=-1)
    if hard:
        idx = jnp.argmax(y, axis=-1)
        y = jax.nn.one_hot(idx, logits.shape[-1], dtype=y.dtype)
    return y


def scaled_laplacian(key, node_emb, n):
    # follows the PyTorch reference (incl. lambda_max = L.max() - L.min())
    lg = node_emb @ node_emb.T
    norm = jnp.linalg.norm(node_emb, axis=1, keepdims=True)
    lg = lg / (norm @ norm.T)
    lg = (lg + 1.0) / 2.0
    lg = jnp.stack([lg, 1.0 - lg], axis=-1)
    adj = gumbel_softmax(key, lg, tau=1.0, hard=True)[:, :, 0]
    adj = jnp.where(jnp.eye(n, dtype=bool), 0.0, adj)
    d = jnp.sum(adj, axis=1)
    L = -adj
    L = L.at[jnp.arange(n), jnp.arange(n)].set(d)
    lambda_max = L.max() - L.min()
    tilde = 2.0 * L / lambda_max - jnp.eye(n, dtype=jnp.float32)
    return adj, tilde


def init_params(key):
    N, H, Din = args.num_nodes, args.rnn_units, args.input_dim
    E, K = args.embed_dim, args.cheb_k
    C = Din + H
    CO = args.horizon * args.output_dim
    ks = jax.random.split(key, 8)
    return {
        "Memory": xavier_normal(ks[0], (args.mem_num, args.mem_dim)),
        "We1": xavier_normal(ks[1], (N, args.mem_num)),
        "Wz_pool": 0.1 * jax.random.normal(ks[2], (E, K, C, 2 * H), dtype=jnp.float32),
        "bz_pool": 0.1 * jax.random.normal(ks[3], (E, 2 * H), dtype=jnp.float32),
        "Wh_pool": 0.1 * jax.random.normal(ks[4], (E, K, C, H), dtype=jnp.float32),
        "bh_pool": 0.1 * jax.random.normal(ks[5], (E, H), dtype=jnp.float32),
        "W_conv": xavier_normal(ks[6], (CO, H)),
        "b_conv": 0.01 * jax.random.normal(ks[7], (CO,), dtype=jnp.float32),
    }


def meta_model_forward(params, feat, adj_inp, gumbel_key):
    B, T, N, Din = feat.shape
    H, E, K = args.rnn_units, args.embed_dim, args.cheb_k
    CO = args.horizon * args.output_dim
    assert K == 2 and args.num_layers == 1   # supports = [I, learned_tilde], 1 GRU layer

    # node_embeddings1 = We1 @ Memory; learned graph / scaled laplacian
    node_emb1 = params["We1"] @ params["Memory"]
    _, learned_tilde = scaled_laplacian(gumbel_key, node_emb1, N)
    tilde = learned_tilde.astype(jnp.float32)

    num_nodes = adj_inp.shape[1] if args.cheby else adj_inp.shape[0]
    assert num_nodes == N

    # ----- host-side weight restructuring (pure parameter prep) -----
    We1 = params["We1"].astype(jnp.float32)

    def split_pool(pool, O):
        # pool: (E, K, Din+H, O) -> x/h blocks for support k=0 (identity), k=1 (tilde)
        x0 = pool[:, 0, :Din, :].reshape(E * Din, O)
        h0 = pool[:, 0, Din:, :].reshape(E * H, O)
        x1 = pool[:, 1, :Din, :].reshape(E * Din, O)
        h1 = pool[:, 1, Din:, :].reshape(E * H, O)
        return x0, h0, x1, h1

    zx0, zh0, zx1, zh1 = split_pool(params["Wz_pool"], 2 * H)
    cx0, ch0, cx1, ch1 = split_pool(params["Wh_pool"], H)
    # split the fused z|r gate so the kernel never slices lanes at offset H
    wx_stack = jnp.stack([zx0[:, :H], zx1[:, :H], zx0[:, H:], zx1[:, H:], cx0, cx1])
    wh_stack = jnp.stack([zh0[:, :H], zh1[:, :H], zh0[:, H:], zh1[:, H:], ch0, ch1])

    bz = We1 @ params["bz_pool"]                       # (N, 2H)
    bh = We1 @ params["bh_pool"]                       # (N, H)
    b_stack = jnp.stack([bz[:, :H], bz[:, H:], bh])    # (3, N, H)

    we1e = jnp.repeat(We1, H, axis=1)                                  # (N, E*H)
    we1xe = jnp.repeat(jnp.tile(We1, (T, 1)), Din, axis=1)             # (T*N, E*Din)
    btilde = jnp.kron(jnp.eye(T, dtype=jnp.float32), tilde)            # (T*N, T*N)

    # end_conv weights, padded to a lane-dense output width (sliced back below)
    wc_pad = jnp.zeros((H, CO_PAD), jnp.float32).at[:, :CO].set(params["W_conv"].T)
    bc_pad = jnp.zeros((1, CO_PAD), jnp.float32).at[0, :CO].set(params["b_conv"])

    x_btn = feat.astype(jnp.float32).reshape(B, T * N, Din)            # rows = t*N + n

    out_pad = run_meta_kernel(x_btn, tilde, btilde, we1e, we1xe,
                              wx_stack, wh_stack, b_stack, wc_pad, bc_pad)
    out = out_pad[:, :, :CO]                           # (B, N, CO)
    out = jnp.transpose(out, (0, 2, 1))                # (B, CO, N)  == conv NCHW squeezed
    out = out.reshape(B, args.horizon, args.output_dim, N)
    out = jnp.transpose(out, (0, 1, 3, 2))             # (B, horizon, N, out_dim)
    return out


if __name__ == "__main__":
    key = jax.random.PRNGKey(0)
    k_param, k_feat, k_gumbel = jax.random.split(key, 3)
    params = init_params(k_param)

    B, T, N, Din = 2, 8, args.num_nodes, args.input_dim
    feat = jax.random.normal(k_feat, (B, T, N, Din), dtype=jnp.float32)
    adj_inp = jnp.ones((N, N), dtype=jnp.float32)

    fwd = jax.jit(meta_model_forward)
    out = fwd(params, feat, adj_inp, k_gumbel)
    out = jax.block_until_ready(out)
    assert out.shape == (B, args.horizon, N, args.output_dim), out.shape
    assert bool(jnp.all(jnp.isfinite(out)))
    print("KERNEL_OK")
</pallas_src>

<mosaic_0001>
module attributes {stable_mosaic.version = 11 : i64} {
  func.func @meta_kernel(%arg0: i32, %arg1: memref<1x64x2xf32, #tpu.memory_space<vmem>>, %arg2: memref<8x8xf32, #tpu.memory_space<vmem>>, %arg3: memref<64x64xf32, #tpu.memory_space<vmem>>, %arg4: memref<8x256xf32, #tpu.memory_space<vmem>>, %arg5: memref<64x16xf32, #tpu.memory_space<vmem>>, %arg6: memref<6x16x32xf32, #tpu.memory_space<vmem>>, %arg7: memref<6x256x32xf32, #tpu.memory_space<vmem>>, %arg8: memref<3x8x32xf32, #tpu.memory_space<vmem>>, %arg9: memref<32x128xf32, #tpu.memory_space<vmem>>, %arg10: memref<1x128xf32, #tpu.memory_space<vmem>>, %arg11: memref<1x8x128xf32, #tpu.memory_space<vmem>>, %arg12: memref<8x8x32xf32, #tpu.memory_space<vmem>>, %arg13: memref<8x8x32xf32, #tpu.memory_space<vmem>>, %arg14: memref<8x8x32xf32, #tpu.memory_space<vmem>>) attributes {dimension_semantics = [#tpu.dimension_semantics<parallel>], iteration_bounds = array<i64: 2>, scalar_prefetch = 0 : i64, scratch_operands = 3 : i64, tpu.core_type = #tpu.core_type<tc>, window_params = [{transform_indices = @transform_0, window_bounds = array<i64: 1, 64, 2>}, {pipeline_mode = #tpu.pipeline_mode<synchronous>, transform_indices = @transform_1, window_bounds = array<i64: 8, 8>}, {pipeline_mode = #tpu.pipeline_mode<synchronous>, transform_indices = @transform_2, window_bounds = array<i64: 64, 64>}, {pipeline_mode = #tpu.pipeline_mode<synchronous>, transform_indices = @transform_3, window_bounds = array<i64: 8, 256>}, {pipeline_mode = #tpu.pipeline_mode<synchronous>, transform_indices = @transform_4, window_bounds = array<i64: 64, 16>}, {pipeline_mode = #tpu.pipeline_mode<synchronous>, transform_indices = @transform_5, window_bounds = array<i64: 6, 16, 32>}, {pipeline_mode = #tpu.pipeline_mode<synchronous>, transform_indices = @transform_6, window_bounds = array<i64: 6, 256, 32>}, {pipeline_mode = #tpu.pipeline_mode<synchronous>, transform_indices = @transform_7, window_bounds = array<i64: 3, 8, 32>}, {pipeline_mode = #tpu.pipeline_mode<synchronous>, transform_indices = @transform_8, window_bounds = array<i64: 32, 128>}, {pipeline_mode = #tpu.pipeline_mode<synchronous>, transform_indices = @transform_9, window_bounds = array<i64: 1, 128>}, {transform_indices = @transform_10, window_bounds = array<i64: 1, 8, 128>}]} {
    %c0 = arith.constant 0 : index
    %c0_0 = arith.constant 0 : index
    %c0_1 = arith.constant 0 : index
    %0 = vector.load %arg1[%c0, %c0_0, %c0_1] : memref<1x64x2xf32, #tpu.memory_space<vmem>>, vector<1x64x2xf32>
    %1 = vector.shape_cast %0 : vector<1x64x2xf32> to vector<64x2xf32>
    %c0_2 = arith.constant 0 : index
    %c0_3 = arith.constant 0 : index
    %2 = vector.load %arg2[%c0_2, %c0_3] : memref<8x8xf32, #tpu.memory_space<vmem>>, vector<8x8xf32>
    %c0_4 = arith.constant 0 : index
    %c0_5 = arith.constant 0 : index
    %3 = vector.load %arg4[%c0_4, %c0_5] : memref<8x256xf32, #tpu.memory_space<vmem>>, vector<8x256xf32>
    %c0_6 = arith.constant 0 : index
    %c0_7 = arith.constant 0 : index
    %4 = vector.load %arg5[%c0_6, %c0_7] : memref<64x16xf32, #tpu.memory_space<vmem>>, vector<64x16xf32>
    %c0_8 = arith.constant 0 : index
    %c0_9 = arith.constant 0 : index
    %5 = vector.load %arg3[%c0_8, %c0_9] : memref<64x64xf32, #tpu.memory_space<vmem>>, vector<64x64xf32>
    %cst = arith.constant dense<0.000000e+00> : vector<64x2xf32>
    %6 = tpu.matmul %5, %1, %cst {dimension_numbers = #tpu.dot_dimension_numbers<[1], [0], [0], [1], [0, 0, 1, 1], [], []>} : vector<64x64xf32>, vector<64x2xf32>, vector<64x2xf32> -> vector<64x2xf32>
    %7 = tpu.concatenate %1, %1, %1, %1, %1, %1, %1, %1 in 1 : vector<64x2xf32>, vector<64x2xf32>, vector<64x2xf32>, vector<64x2xf32>, vector<64x2xf32>, vector<64x2xf32>, vector<64x2xf32>, vector<64x2xf32> -> vector<64x16xf32>
    %8 = arith.mulf %7, %4 : vector<64x16xf32>
    %9 = tpu.concatenate %6, %6, %6, %6, %6, %6, %6, %6 in 1 : vector<64x2xf32>, vector<64x2xf32>, vector<64x2xf32>, vector<64x2xf32>, vector<64x2xf32>, vector<64x2xf32>, vector<64x2xf32>, vector<64x2xf32> -> vector<64x16xf32>
    %10 = arith.mulf %9, %4 : vector<64x16xf32>
    %c0_10 = arith.constant 0 : index
    %c0_11 = arith.constant 0 : index
    %c0_12 = arith.constant 0 : index
    %11 = vector.load %arg6[%c0_10, %c0_11, %c0_12] : memref<6x16x32xf32, #tpu.memory_space<vmem>>, vector<1x16x32xf32>
    %12 = vector.shape_cast %11 : vector<1x16x32xf32> to vector<16x32xf32>
    %cst_13 = arith.constant dense<0.000000e+00> : vector<64x32xf32>
    %13 = tpu.matmul %8, %12, %cst_13 {dimension_numbers = #tpu.dot_dimension_numbers<[1], [0], [0], [1], [0, 0, 1, 1], [], []>} : vector<64x16xf32>, vector<16x32xf32>, vector<64x32xf32> -> vector<64x32xf32>
    %c1 = arith.constant 1 : index
    %c0_14 = arith.constant 0 : index
    %c0_15 = arith.constant 0 : index
    %14 = vector.load %arg6[%c1, %c0_14, %c0_15] : memref<6x16x32xf32, #tpu.memory_space<vmem>>, vector<1x16x32xf32>
    %15 = vector.shape_cast %14 : vector<1x16x32xf32> to vector<16x32xf32>
    %cst_16 = arith.constant dense<0.000000e+00> : vector<64x32xf32>
    %16 = tpu.matmul %10, %15, %cst_16 {dimension_numbers = #tpu.dot_dimension_numbers<[1], [0], [0], [1], [0, 0, 1, 1], [], []>} : vector<64x16xf32>, vector<16x32xf32>, vector<64x32xf32> -> vector<64x32xf32>
    %17 = arith.addf %13, %16 : vector<64x32xf32>
    %18 = vector.shape_cast %17 : vector<64x32xf32> to vector<8x8x32xf32>
    %c0_17 = arith.constant 0 : index
    %c0_18 = arith.constant 0 : index
    %c0_19 = arith.constant 0 : index
    %19 = vector.load %arg12[%c0_17, %c0_18, %c0_19] : memref<8x8x32xf32, #tpu.memory_space<vmem>>, vector<8x8x32xf32>
    tpu.vector_store %arg12[%c0_17, %c0_18, %c0_19], %18 {strides = array<i32>} : memref<8x8x32xf32, #tpu.memory_space<vmem>>, vector<8x8x32xf32>,
    %c2 = arith.constant 2 : index
    %c0_20 = arith.constant 0 : index
    %c0_21 = arith.constant 0 : index
    %20 = vector.load %arg6[%c2, %c0_20, %c0_21] : memref<6x16x32xf32, #tpu.memory_space<vmem>>, vector<1x16x32xf32>
    %21 = vector.shape_cast %20 : vector<1x16x32xf32> to vector<16x32xf32>
    %cst_22 = arith.constant dense<0.000000e+00> : vector<64x32xf32>
    %22 = tpu.matmul %8, %21, %cst_22 {dimension_numbers = #tpu.dot_dimension_numbers<[1], [0], [0], [1], [0, 0, 1, 1], [], []>} : vector<64x16xf32>, vector<16x32xf32>, vector<64x32xf32> -> vector<64x32xf32>
    %c3 = arith.constant 3 : index
    %c0_23 = arith.constant 0 : index
    %c0_24 = arith.constant 0 : index
    %23 = vector.load %arg6[%c3, %c0_23, %c0_24] : memref<6x16x32xf32, #tpu.memory_space<vmem>>, vector<1x16x32xf32>
    %24 = vector.shape_cast %23 : vector<1x16x32xf32> to vector<16x32xf32>
    %cst_25 = arith.constant dense<0.000000e+00> : vector<64x32xf32>
    %25 = tpu.matmul %10, %24, %cst_25 {dimension_numbers = #tpu.dot_dimension_numbers<[1], [0], [0], [1], [0, 0, 1, 1], [], []>} : vector<64x16xf32>, vector<16x32xf32>, vector<64x32xf32> -> vector<64x32xf32>
    %26 = arith.addf %22, %25 : vector<64x32xf32>
    %27 = vector.shape_cast %26 : vector<64x32xf32> to vector<8x8x32xf32>
    %c0_26 = arith.constant 0 : index
    %c0_27 = arith.constant 0 : index
    %c0_28 = arith.constant 0 : index
    %28 = vector.load %arg13[%c0_26, %c0_27, %c0_28] : memref<8x8x32xf32, #tpu.memory_space<vmem>>, vector<8x8x32xf32>
    tpu.vector_store %arg13[%c0_26, %c0_27, %c0_28], %27 {strides = array<i32>} : memref<8x8x32xf32, #tpu.memory_space<vmem>>, vector<8x8x32xf32>,
    %c4 = arith.constant 4 : index
    %c0_29 = arith.constant 0 : index
    %c0_30 = arith.constant 0 : index
    %29 = vector.load %arg6[%c4, %c0_29, %c0_30] : memref<6x16x32xf32, #tpu.memory_space<vmem>>, vector<1x16x32xf32>
    %30 = vector.shape_cast %29 : vector<1x16x32xf32> to vector<16x32xf32>
    %cst_31 = arith.constant dense<0.000000e+00> : vector<64x32xf32>
    %31 = tpu.matmul %8, %30, %cst_31 {dimension_numbers = #tpu.dot_dimension_numbers<[1], [0], [0], [1], [0, 0, 1, 1], [], []>} : vector<64x16xf32>, vector<16x32xf32>, vector<64x32xf32> -> vector<64x32xf32>
    %c5 = arith.constant 5 : index
    %c0_32 = arith.constant 0 : index
    %c0_33 = arith.constant 0 : index
    %32 = vector.load %arg6[%c5, %c0_32, %c0_33] : memref<6x16x32xf32, #tpu.memory_space<vmem>>, vector<1x16x32xf32>
    %33 = vector.shape_cast %32 : vector<1x16x32xf32> to vector<16x32xf32>
    %cst_34 = arith.constant dense<0.000000e+00> : vector<64x32xf32>
    %34 = tpu.matmul %10, %33, %cst_34 {dimension_numbers = #tpu.dot_dimension_numbers<[1], [0], [0], [1], [0, 0, 1, 1], [], []>} : vector<64x16xf32>, vector<16x32xf32>, vector<64x32xf32> -> vector<64x32xf32>
    %35 = arith.addf %31, %34 : vector<64x32xf32>
    %36 = vector.shape_cast %35 : vector<64x32xf32> to vector<8x8x32xf32>
    %c0_35 = arith.constant 0 : index
    %c0_36 = arith.constant 0 : index
    %c0_37 = arith.constant 0 : index
    %37 = vector.load %arg14[%c0_35, %c0_36, %c0_37] : memref<8x8x32xf32, #tpu.memory_space<vmem>>, vector<8x8x32xf32>
    tpu.vector_store %arg14[%c0_35, %c0_36, %c0_37], %36 {strides = array<i32>} : memref<8x8x32xf32, #tpu.memory_space<vmem>>, vector<8x8x32xf32>,
    %c0_38 = arith.constant 0 : index
    %c0_39 = arith.constant 0 : index
    %c0_40 = arith.constant 0 : index
    %38 = vector.load %arg7[%c0_38, %c0_39, %c0_40] : memref<6x256x32xf32, #tpu.memory_space<vmem>>, vector<1x256x32xf32>
    %39 = vector.shape_cast %38 : vector<1x256x32xf32> to vector<256x32xf32>
    %c1_41 = arith.constant 1 : index
    %c0_42 = arith.constant 0 : index
    %c0_43 = arith.constant 0 : index
    %40 = vector.load %arg7[%c1_41, %c0_42, %c0_43] : memref<6x256x32xf32, #tpu.memory_space<vmem>>, vector<1x256x32xf32>
    %41 = vector.shape_cast %40 : vector<1x256x32xf32> to vector<256x32xf32>
    %c2_44 = arith.constant 2 : index
    %c0_45 = arith.constant 0 : index
    %c0_46 = arith.constant 0 : index
    %42 = vector.load %arg7[%c2_44, %c0_45, %c0_46] : memref<6x256x32xf32, #tpu.memory_space<vmem>>, vector<1x256x32xf32>
    %43 = vector.shape_cast %42 : vector<1x256x32xf32> to vector<256x32xf32>
    %c3_47 = arith.constant 3 : index
    %c0_48 = arith.constant 0 : index
    %c0_49 = arith.constant 0 : index
    %44 = vector.load %arg7[%c3_47, %c0_48, %c0_49] : memref<6x256x32xf32, #tpu.memory_space<vmem>>, vector<1x256x32xf32>
    %45 = vector.shape_cast %44 : vector<1x256x32xf32> to vector<256x32xf32>
    %c4_50 = arith.constant 4 : index
    %c0_51 = arith.constant 0 : index
    %c0_52 = arith.constant 0 : index
    %46 = vector.load %arg7[%c4_50, %c0_51, %c0_52] : memref<6x256x32xf32, #tpu.memory_space<vmem>>, vector<1x256x32xf32>
    %47 = vector.shape_cast %46 : vector<1x256x32xf32> to vector<256x32xf32>
    %c5_53 = arith.constant 5 : index
    %c0_54 = arith.constant 0 : index
    %c0_55 = arith.constant 0 : index
    %48 = vector.load %arg7[%c5_53, %c0_54, %c0_55] : memref<6x256x32xf32, #tpu.memory_space<vmem>>, vector<1x256x32xf32>
    %49 = vector.shape_cast %48 : vector<1x256x32xf32> to vector<256x32xf32>
    %c0_56 = arith.constant 0 : index
    %c0_57 = arith.constant 0 : index
    %c0_58 = arith.constant 0 : index
    %50 = vector.load %arg8[%c0_56, %c0_57, %c0_58] : memref<3x8x32xf32, #tpu.memory_space<vmem>>, vector<1x8x32xf32>
    %51 = vector.shape_cast %50 : vector<1x8x32xf32> to vector<8x32xf32>
    %c1_59 = arith.constant 1 : index
    %c0_60 = arith.constant 0 : index
    %c0_61 = arith.constant 0 : index
    %52 = vector.load %arg8[%c1_59, %c0_60, %c0_61] : memref<3x8x32xf32, #tpu.memory_space<vmem>>, vector<1x8x32xf32>
    %53 = vector.shape_cast %52 : vector<1x8x32xf32> to vector<8x32xf32>
    %c2_62 = arith.constant 2 : index
    %c0_63 = arith.constant 0 : index
    %c0_64 = arith.constant 0 : index
    %54 = vector.load %arg8[%c2_62, %c0_63, %c0_64] : memref<3x8x32xf32, #tpu.memory_space<vmem>>, vector<1x8x32xf32>
    %55 = vector.shape_cast %54 : vector<1x8x32xf32> to vector<8x32xf32>
    %cst_65 = arith.constant 0.000000e+00 : f32
    %56 = vector.broadcast %cst_65 : f32 to vector<8x32xf32>
    %c0_i32 = arith.constant 0 : i32
    %cst_66 = arith.constant dense<0.000000e+00> : vector<8x32xf32>
    %57 = tpu.matmul %2, %56, %cst_66 {dimension_numbers = #tpu.dot_dimension_numbers<[1], [0], [0], [1], [0, 0, 1, 1], [], []>} : vector<8x8xf32>, vector<8x32xf32>, vector<8x32xf32> -> vector<8x32xf32>
    %58 = tpu.concatenate %56, %56, %56, %56, %56, %56, %56, %56 in 1 : vector<8x32xf32>, vector<8x32xf32>, vector<8x32xf32>, vector<8x32xf32>, vector<8x32xf32>, vector<8x32xf32>, vector<8x32xf32>, vector<8x32xf32> -> vector<8x256xf32>
    %59 = arith.mulf %58, %3 : vector<8x256xf32>
    %60 = tpu.concatenate %57, %57, %57, %57, %57, %57, %57, %57 in 1 : vector<8x32xf32>, vector<8x32xf32>, vector<8x32xf32>, vector<8x32xf32>, vector<8x32xf32>, vector<8x32xf32>, vector<8x32xf32>, vector<8x32xf32> -> vector<8x256xf32>
    %61 = arith.mulf %60, %3 : vector<8x256xf32>
    %62 = arith.index_cast %c0_i32 : i32 to index
    %c0_67 = arith.constant 0 : index
    %c0_68 = arith.constant 0 : index
    %63 = vector.load %arg12[%62, %c0_67, %c0_68] : memref<8x8x32xf32, #tpu.memory_space<vmem>>, vector<1x8x32xf32>
    %64 = vector.shape_cast %63 : vector<1x8x32xf32> to vector<8x32xf32>
    %65 = arith.addf %64, %51 : vector<8x32xf32>
    %cst_69 = arith.constant dense<0.000000e+00> : vector<8x32xf32>
    %66 = tpu.matmul %59, %39, %cst_69 {dimension_numbers = #tpu.dot_dimension_numbers<[1], [0], [0], [1], [0, 0, 1, 1], [], []>} : vector<8x256xf32>, vector<256x32xf32>, vector<8x32xf32> -> vector<8x32xf32>
    %67 = arith.addf %65, %66 : vector<8x32xf32>
    %cst_70 = arith.constant dense<0.000000e+00> : vector<8x32xf32>
    %68 = tpu.matmul %61, %41, %cst_70 {dimension_numbers = #tpu.dot_dimension_numbers<[1], [0], [0], [1], [0, 0, 1, 1], [], []>} : vector<8x256xf32>, vector<256x32xf32>, vector<8x32xf32> -> vector<8x32xf32>
    %69 = arith.addf %67, %68 : vector<8x32xf32>
    %70 = arith.negf %69 : vector<8x32xf32>
    %71 = math.exp %70 : vector<8x32xf32>
    %cst_71 = arith.constant 1.000000e+00 : f32
    %72 = vector.broadcast %cst_71 : f32 to vector<8x32xf32>
    %73 = arith.addf %72, %71 : vector<8x32xf32>
    %74 = arith.divf %72, %73 : vector<8x32xf32>
    %75 = arith.index_cast %c0_i32 : i32 to index
    %c0_72 = arith.constant 0 : index
    %c0_73 = arith.constant 0 : index
    %76 = vector.load %arg13[%75, %c0_72, %c0_73] : memref<8x8x32xf32, #tpu.memory_space<vmem>>, vector<1x8x32xf32>
    %77 = vector.shape_cast %76 : vector<1x8x32xf32> to vector<8x32xf32>
    %78 = arith.addf %77, %53 : vector<8x32xf32>
    %cst_74 = arith.constant dense<0.000000e+00> : vector<8x32xf32>
    %79 = tpu.matmul %59, %43, %cst_74 {dimension_numbers = #tpu.dot_dimension_numbers<[1], [0], [0], [1], [0, 0, 1, 1], [], []>} : vector<8x256xf32>, vector<256x32xf32>, vector<8x32xf32> -> vector<8x32xf32>
    %80 = arith.addf %78, %79 : vector<8x32xf32>
    %cst_75 = arith.constant dense<0.000000e+00> : vector<8x32xf32>
    %81 = tpu.matmul %61, %45, %cst_75 {dimension_numbers = #tpu.dot_dimension_numbers<[1], [0], [0], [1], [0, 0, 1, 1], [], []>} : vector<8x256xf32>, vector<256x32xf32>, vector<8x32xf32> -> vector<8x32xf32>
    %82 = arith.addf %80, %81 : vector<8x32xf32>
    %83 = arith.negf %82 : vector<8x32xf32>
    %84 = math.exp %83 : vector<8x32xf32>
    %cst_76 = arith.constant 1.000000e+00 : f32
    %85 = vector.broadcast %cst_76 : f32 to vector<8x32xf32>
    %86 = arith.addf %85, %84 : vector<8x32xf32>
    %87 = arith.divf %85, %86 : vector<8x32xf32>
    %88 = arith.mulf %87, %56 : vector<8x32xf32>
    %cst_77 = arith.constant dense<0.000000e+00> : vector<8x32xf32>
    %89 = tpu.matmul %2, %88, %cst_77 {dimension_numbers = #tpu.dot_dimension_numbers<[1], [0], [0], [1], [0, 0, 1, 1], [], []>} : vector<8x8xf32>, vector<8x32xf32>, vector<8x32xf32> -> vector<8x32xf32>
    %90 = tpu.concatenate %88, %88, %88, %88, %88, %88, %88, %88 in 1 : vector<8x32xf32>, vector<8x32xf32>, vector<8x32xf32>, vector<8x32xf32>, vector<8x32xf32>, vector<8x32xf32>, vector<8x32xf32>, vector<8x32xf32> -> vector<8x256xf32>
    %91 = arith.mulf %90, %3 : vector<8x256xf32>
    %92 = tpu.concatenate %89, %89, %89, %89, %89, %89, %89, %89 in 1 : vector<8x32xf32>, vector<8x32xf32>, vector<8x32xf32>, vector<8x32xf32>, vector<8x32xf32>, vector<8x32xf32>, vector<8x32xf32>, vector<8x32xf32> -> vector<8x256xf32>
    %93 = arith.mulf %92, %3 : vector<8x256xf32>
    %94 = arith.index_cast %c0_i32 : i32 to index
    %c0_78 = arith.constant 0 : index
    %c0_79 = arith.constant 0 : index
    %95 = vector.load %arg14[%94, %c0_78, %c0_79] : memref<8x8x32xf32, #tpu.memory_space<vmem>>, vector<1x8x32xf32>
    %96 = vector.shape_cast %95 : vector<1x8x32xf32> to vector<8x32xf32>
    %97 = arith.addf %96, %55 : vector<8x32xf32>
    %cst_80 = arith.constant dense<0.000000e+00> : vector<8x32xf32>
    %98 = tpu.matmul %91, %47, %cst_80 {dimension_numbers = #tpu.dot_dimension_numbers<[1], [0], [0], [1], [0, 0, 1, 1], [], []>} : vector<8x256xf32>, vector<256x32xf32>, vector<8x32xf32> -> vector<8x32xf32>
    %99 = arith.addf %97, %98 : vector<8x32xf32>
    %cst_81 = arith.constant dense<0.000000e+00> : vector<8x32xf32>
    %100 = tpu.matmul %93, %49, %cst_81 {dimension_numbers = #tpu.dot_dimension_numbers<[1], [0], [0], [1], [0, 0, 1, 1], [], []>} : vector<8x256xf32>, vector<256x32xf32>, vector<8x32xf32> -> vector<8x32xf32>
    %101 = arith.addf %99, %100 : vector<8x32xf32>
    %102 = math.tanh %101 : vector<8x32xf32>
    %103 = arith.mulf %74, %56 : vector<8x32xf32>
    %cst_82 = arith.constant 1.000000e+00 : f32
    %104 = vector.broadcast %cst_82 : f32 to vector<8x32xf32>
    %105 = arith.subf %104, %74 : vector<8x32xf32>
    %106 = arith.mulf %105, %102 : vector<8x32xf32>
    %107 = arith.addf %103, %106 : vector<8x32xf32>
    %c1_i32 = arith.constant 1 : i32
    %cst_83 = arith.constant dense<0.000000e+00> : vector<8x32xf32>
    %108 = tpu.matmul %2, %107, %cst_83 {dimension_numbers = #tpu.dot_dimension_numbers<[1], [0], [0], [1], [0, 0, 1, 1], [], []>} : vector<8x8xf32>, vector<8x32xf32>, vector<8x32xf32> -> vector<8x32xf32>
    %109 = tpu.concatenate %107, %107, %107, %107, %107, %107, %107, %107 in 1 : vector<8x32xf32>, vector<8x32xf32>, vector<8x32xf32>, vector<8x32xf32>, vector<8x32xf32>, vector<8x32xf32>, vector<8x32xf32>, vector<8x32xf32> -> vector<8x256xf32>
    %110 = arith.mulf %109, %3 : vector<8x256xf32>
    %111 = tpu.concatenate %108, %108, %108, %108, %108, %108, %108, %108 in 1 : vector<8x32xf32>, vector<8x32xf32>, vector<8x32xf32>, vector<8x32xf32>, vector<8x32xf32>, vector<8x32xf32>, vector<8x32xf32>, vector<8x32xf32> -> vector<8x256xf32>
    %112 = arith.mulf %111, %3 : vector<8x256xf32>
    %113 = arith.index_cast %c1_i32 : i32 to index
    %c0_84 = arith.constant 0 : index
    %c0_85 = arith.constant 0 : index
    %114 = vector.load %arg12[%113, %c0_84, %c0_85] : memref<8x8x32xf32, #tpu.memory_space<vmem>>, vector<1x8x32xf32>
    %115 = vector.shape_cast %114 : vector<1x8x32xf32> to vector<8x32xf32>
    %116 = arith.addf %115, %51 : vector<8x32xf32>
    %cst_86 = arith.constant dense<0.000000e+00> : vector<8x32xf32>
    %117 = tpu.matmul %110, %39, %cst_86 {dimension_numbers = #tpu.dot_dimension_numbers<[1], [0], [0], [1], [0, 0, 1, 1], [], []>} : vector<8x256xf32>, vector<256x32xf32>, vector<8x32xf32> -> vector<8x32xf32>
    %118 = arith.addf %116, %117 : vector<8x32xf32>
    %cst_87 = arith.constant dense<0.000000e+00> : vector<8x32xf32>
    %119 = tpu.matmul %112, %41, %cst_87 {dimension_numbers = #tpu.dot_dimension_numbers<[1], [0], [0], [1], [0, 0, 1, 1], [], []>} : vector<8x256xf32>, vector<256x32xf32>, vector<8x32xf32> -> vector<8x32xf32>
    %120 = arith.addf %118, %119 : vector<8x32xf32>
    %121 = arith.negf %120 : vector<8x32xf32>
    %122 = math.exp %121 : vector<8x32xf32>
    %cst_88 = arith.constant 1.000000e+00 : f32
    %123 = vector.broadcast %cst_88 : f32 to vector<8x32xf32>
    %124 = arith.addf %123, %122 : vector<8x32xf32>
    %125 = arith.divf %123, %124 : vector<8x32xf32>
    %126 = arith.index_cast %c1_i32 : i32 to index
    %c0_89 = arith.constant 0 : index
    %c0_90 = arith.constant 0 : index
    %127 = vector.load %arg13[%126, %c0_89, %c0_90] : memref<8x8x32xf32, #tpu.memory_space<vmem>>, vector<1x8x32xf32>
    %128 = vector.shape_cast %127 : vector<1x8x32xf32> to vector<8x32xf32>
    %129 = arith.addf %128, %53 : vector<8x32xf32>
    %cst_91 = arith.constant dense<0.000000e+00> : vector<8x32xf32>
    %130 = tpu.matmul %110, %43, %cst_91 {dimension_numbers = #tpu.dot_dimension_numbers<[1], [0], [0], [1], [0, 0, 1, 1], [], []>} : vector<8x256xf32>, vector<256x32xf32>, vector<8x32xf32> -> vector<8x32xf32>
    %131 = arith.addf %129, %130 : vector<8x32xf32>
    %cst_92 = arith.constant dense<0.000000e+00> : vector<8x32xf32>
    %132 = tpu.matmul %112, %45, %cst_92 {dimension_numbers = #tpu.dot_dimension_numbers<[1], [0], [0], [1], [0, 0, 1, 1], [], []>} : vector<8x256xf32>, vector<256x32xf32>, vector<8x32xf32> -> vector<8x32xf32>
    %133 = arith.addf %131, %132 : vector<8x32xf32>
    %134 = arith.negf %133 : vector<8x32xf32>
    %135 = math.exp %134 : vector<8x32xf32>
    %cst_93 = arith.constant 1.000000e+00 : f32
    %136 = vector.broadcast %cst_93 : f32 to vector<8x32xf32>
    %137 = arith.addf %136, %135 : vector<8x32xf32>
    %138 = arith.divf %136, %137 : vector<8x32xf32>
    %139 = arith.mulf %138, %107 : vector<8x32xf32>
    %cst_94 = arith.constant dense<0.000000e+00> : vector<8x32xf32>
    %140 = tpu.matmul %2, %139, %cst_94 {dimension_numbers = #tpu.dot_dimension_numbers<[1], [0], [0], [1], [0, 0, 1, 1], [], []>} : vector<8x8xf32>, vector<8x32xf32>, vector<8x32xf32> -> vector<8x32xf32>
    %141 = tpu.concatenate %139, %139, %139, %139, %139, %139, %139, %139 in 1 : vector<8x32xf32>, vector<8x32xf32>, vector<8x32xf32>, vector<8x32xf32>, vector<8x32xf32>, vector<8x32xf32>, vector<8x32xf32>, vector<8x32xf32> -> vector<8x256xf32>
    %142 = arith.mulf %141, %3 : vector<8x256xf32>
    %143 = tpu.concatenate %140, %140, %140, %140, %140, %140, %140, %140 in 1 : vector<8x32xf32>, vector<8x32xf32>, vector<8x32xf32>, vector<8x32xf32>, vector<8x32xf32>, vector<8x32xf32>, vector<8x32xf32>, vector<8x32xf32> -> vector<8x256xf32>
    %144 = arith.mulf %143, %3 : vector<8x256xf32>
    %145 = arith.index_cast %c1_i32 : i32 to index
    %c0_95 = arith.constant 0 : index
    %c0_96 = arith.constant 0 : index
    %146 = vector.load %arg14[%145, %c0_95, %c0_96] : memref<8x8x32xf32, #tpu.memory_space<vmem>>, vector<1x8x32xf32>
    %147 = vector.shape_cast %146 : vector<1x8x32xf32> to vector<8x32xf32>
    %148 = arith.addf %147, %55 : vector<8x32xf32>
    %cst_97 = arith.constant dense<0.000000e+00> : vector<8x32xf32>
    %149 = tpu.matmul %142, %47, %cst_97 {dimension_numbers = #tpu.dot_dimension_numbers<[1], [0], [0], [1], [0, 0, 1, 1], [], []>} : vector<8x256xf32>, vector<256x32xf32>, vector<8x32xf32> -> vector<8x32xf32>
    %150 = arith.addf %148, %149 : vector<8x32xf32>
    %cst_98 = arith.constant dense<0.000000e+00> : vector<8x32xf32>
    %151 = tpu.matmul %144, %49, %cst_98 {dimension_numbers = #tpu.dot_dimension_numbers<[1], [0], [0], [1], [0, 0, 1, 1], [], []>} : vector<8x256xf32>, vector<256x32xf32>, vector<8x32xf32> -> vector<8x32xf32>
    %152 = arith.addf %150, %151 : vector<8x32xf32>
    %153 = math.tanh %152 : vector<8x32xf32>
    %154 = arith.mulf %125, %107 : vector<8x32xf32>
    %cst_99 = arith.constant 1.000000e+00 : f32
    %155 = vector.broadcast %cst_99 : f32 to vector<8x32xf32>
    %156 = arith.subf %155, %125 : vector<8x32xf32>
    %157 = arith.mulf %156, %153 : vector<8x32xf32>
    %158 = arith.addf %154, %157 : vector<8x32xf32>
    %c2_i32 = arith.constant 2 : i32
    %cst_100 = arith.constant dense<0.000000e+00> : vector<8x32xf32>
    %159 = tpu.matmul %2, %158, %cst_100 {dimension_numbers = #tpu.dot_dimension_numbers<[1], [0], [0], [1], [0, 0, 1, 1], [], []>} : vector<8x8xf32>, vector<8x32xf32>, vector<8x32xf32> -> vector<8x32xf32>
    %160 = tpu.concatenate %158, %158, %158, %158, %158, %158, %158, %158 in 1 : vector<8x32xf32>, vector<8x32xf32>, vector<8x32xf32>, vector<8x32xf32>, vector<8x32xf32>, vector<8x32xf32>, vector<8x32xf32>, vector<8x32xf32> -> vector<8x256xf32>
    %161 = arith.mulf %160, %3 : vector<8x256xf32>
    %162 = tpu.concatenate %159, %159, %159, %159, %159, %159, %159, %159 in 1 : vector<8x32xf32>, vector<8x32xf32>, vector<8x32xf32>, vector<8x32xf32>, vector<8x32xf32>, vector<8x32xf32>, vector<8x32xf32>, vector<8x32xf32> -> vector<8x256xf32>
    %163 = arith.mulf %162, %3 : vector<8x256xf32>
    %164 = arith.index_cast %c2_i32 : i32 to index
    %c0_101 = arith.constant 0 : index
    %c0_102 = arith.constant 0 : index
    %165 = vector.load %arg12[%164, %c0_101, %c0_102] : memref<8x8x32xf32, #tpu.memory_space<vmem>>, vector<1x8x32xf32>
    %166 = vector.shape_cast %165 : vector<1x8x32xf32> to vector<8x32xf32>
    %167 = arith.addf %166, %51 : vector<8x32xf32>
    %cst_103 = arith.constant dense<0.000000e+00> : vector<8x32xf32>
    %168 = tpu.matmul %161, %39, %cst_103 {dimension_numbers = #tpu.dot_dimension_numbers<[1], [0], [0], [1], [0, 0, 1, 1], [], []>} : vector<8x256xf32>, vector<256x32xf32>, vector<8x32xf32> -> vector<8x32xf32>
    %169 = arith.addf %167, %168 : vector<8x32xf32>
    %cst_104 = arith.constant dense<0.000000e+00> : vector<8x32xf32>
    %170 = tpu.matmul %163, %41, %cst_104 {dimension_numbers = #tpu.dot_dimension_numbers<[1], [0], [0], [1], [0, 0, 1, 1], [], []>} : vector<8x256xf32>, vector<256x32xf32>, vector<8x32xf32> -> vector<8x32xf32>
    %171 = arith.addf %169, %170 : vector<8x32xf32>
    %172 = arith.negf %171 : vector<8x32xf32>
    %173 = math.exp %172 : vector<8x32xf32>
    %cst_105 = arith.constant 1.000000e+00 : f32
    %174 = vector.broadcast %cst_105 : f32 to vector<8x32xf32>
    %175 = arith.addf %174, %173 : vector<8x32xf32>
    %176 = arith.divf %174, %175 : vector<8x32xf32>
    %177 = arith.index_cast %c2_i32 : i32 to index
    %c0_106 = arith.constant 0 : index
    %c0_107 = arith.constant 0 : index
    %178 = vector.load %arg13[%177, %c0_106, %c0_107] : memref<8x8x32xf32, #tpu.memory_space<vmem>>, vector<1x8x32xf32>
    %179 = vector.shape_cast %178 : vector<1x8x32xf32> to vector<8x32xf32>
    %180 = arith.addf %179, %53 : vector<8x32xf32>
    %cst_108 = arith.constant dense<0.000000e+00> : vector<8x32xf32>
    %181 = tpu.matmul %161, %43, %cst_108 {dimension_numbers = #tpu.dot_dimension_numbers<[1], [0], [0], [1], [0, 0, 1, 1], [], []>} : vector<8x256xf32>, vector<256x32xf32>, vector<8x32xf32> -> vector<8x32xf32>
    %182 = arith.addf %180, %181 : vector<8x32xf32>
    %cst_109 = arith.constant dense<0.000000e+00> : vector<8x32xf32>
    %183 = tpu.matmul %163, %45, %cst_109 {dimension_numbers = #tpu.dot_dimension_numbers<[1], [0], [0], [1], [0, 0, 1, 1], [], []>} : vector<8x256xf32>, vector<256x32xf32>, vector<8x32xf32> -> vector<8x32xf32>
    %184 = arith.addf %182, %183 : vector<8x32xf32>
    %185 = arith.negf %184 : vector<8x32xf32>
    %186 = math.exp %185 : vector<8x32xf32>
    %cst_110 = arith.constant 1.000000e+00 : f32
    %187 = vector.broadcast %cst_110 : f32 to vector<8x32xf32>
    %188 = arith.addf %187, %186 : vector<8x32xf32>
    %189 = arith.divf %187, %188 : vector<8x32xf32>
    %190 = arith.mulf %189, %158 : vector<8x32xf32>
    %cst_111 = arith.constant dense<0.000000e+00> : vector<8x32xf32>
    %191 = tpu.matmul %2, %190, %cst_111 {dimension_numbers = #tpu.dot_dimension_numbers<[1], [0], [0], [1], [0, 0, 1, 1], [], []>} : vector<8x8xf32>, vector<8x32xf32>, vector<8x32xf32> -> vector<8x32xf32>
    %192 = tpu.concatenate %190, %190, %190, %190, %190, %190, %190, %190 in 1 : vector<8x32xf32>, vector<8x32xf32>, vector<8x32xf32>, vector<8x32xf32>, vector<8x32xf32>, vector<8x32xf32>, vector<8x32xf32>, vector<8x32xf32> -> vector<8x256xf32>
    %193 = arith.mulf %192, %3 : vector<8x256xf32>
    %194 = tpu.concatenate %191, %191, %191, %191, %191, %191, %191, %191 in 1 : vector<8x32xf32>, vector<8x32xf32>, vector<8x32xf32>, vector<8x32xf32>, vector<8x32xf32>, vector<8x32xf32>, vector<8x32xf32>, vector<8x32xf32> -> vector<8x256xf32>
    %195 = arith.mulf %194, %3 : vector<8x256xf32>
    %196 = arith.index_cast %c2_i32 : i32 to index
    %c0_112 = arith.constant 0 : index
    %c0_113 = arith.constant 0 : index
    %197 = vector.load %arg14[%196, %c0_112, %c0_113] : memref<8x8x32xf32, #tpu.memory_space<vmem>>, vector<1x8x32xf32>
    %198 = vector.shape_cast %197 : vector<1x8x32xf32> to vector<8x32xf32>
    %199 = arith.addf %198, %55 : vector<8x32xf32>
    %cst_114 = arith.constant dense<0.000000e+00> : vector<8x32xf32>
    %200 = tpu.matmul %193, %47, %cst_114 {dimension_numbers = #tpu.dot_dimension_numbers<[1], [0], [0], [1], [0, 0, 1, 1], [], []>} : vector<8x256xf32>, vector<256x32xf32>, vector<8x32xf32> -> vector<8x32xf32>
    %201 = arith.addf %199, %200 : vector<8x32xf32>
    %cst_115 = arith.constant dense<0.000000e+00> : vector<8x32xf32>
    %202 = tpu.matmul %195, %49, %cst_115 {dimension_numbers = #tpu.dot_dimension_numbers<[1], [0], [0], [1], [0, 0, 1, 1], [], []>} : vector<8x256xf32>, vector<256x32xf32>, vector<8x32xf32> -> vector<8x32xf32>
    %203 = arith.addf %201, %202 : vector<8x32xf32>
    %204 = math.tanh %203 : vector<8x32xf32>
    %205 = arith.mulf %176, %158 : vector<8x32xf32>
    %cst_116 = arith.constant 1.000000e+00 : f32
    %206 = vector.broadcast %cst_116 : f32 to vector<8x32xf32>
    %207 = arith.subf %206, %176 : vector<8x32xf32>
    %208 = arith.mulf %207, %204 : vector<8x32xf32>
    %209 = arith.addf %205, %208 : vector<8x32xf32>
    %c3_i32 = arith.constant 3 : i32
    %cst_117 = arith.constant dense<0.000000e+00> : vector<8x32xf32>
    %210 = tpu.matmul %2, %209, %cst_117 {dimension_numbers = #tpu.dot_dimension_numbers<[1], [0], [0], [1], [0, 0, 1, 1], [], []>} : vector<8x8xf32>, vector<8x32xf32>, vector<8x32xf32> -> vector<8x32xf32>
    %211 = tpu.concatenate %209, %209, %209, %209, %209, %209, %209, %209 in 1 : vector<8x32xf32>, vector<8x32xf32>, vector<8x32xf32>, vector<8x32xf32>, vector<8x32xf32>, vector<8x32xf32>, vector<8x32xf32>, vector<8x32xf32> -> vector<8x256xf32>
    %212 = arith.mulf %211, %3 : vector<8x256xf32>
    %213 = tpu.concatenate %210, %210, %210, %210, %210, %210, %210, %210 in 1 : vector<8x32xf32>, vector<8x32xf32>, vector<8x32xf32>, vector<8x32xf32>, vector<8x32xf32>, vector<8x32xf32>, vector<8x32xf32>, vector<8x32xf32> -> vector<8x256xf32>
    %214 = arith.mulf %213, %3 : vector<8x256xf32>
    %215 = arith.index_cast %c3_i32 : i32 to index
    %c0_118 = arith.constant 0 : index
    %c0_119 = arith.constant 0 : index
    %216 = vector.load %arg12[%215, %c0_118, %c0_119] : memref<8x8x32xf32, #tpu.memory_space<vmem>>, vector<1x8x32xf32>
    %217 = vector.shape_cast %216 : vector<1x8x32xf32> to vector<8x32xf32>
    %218 = arith.addf %217, %51 : vector<8x32xf32>
    %cst_120 = arith.constant dense<0.000000e+00> : vector<8x32xf32>
    %219 = tpu.matmul %212, %39, %cst_120 {dimension_numbers = #tpu.dot_dimension_numbers<[1], [0], [0], [1], [0, 0, 1, 1], [], []>} : vector<8x256xf32>, vector<256x32xf32>, vector<8x32xf32> -> vector<8x32xf32>
    %220 = arith.addf %218, %219 : vector<8x32xf32>
    %cst_121 = arith.constant dense<0.000000e+00> : vector<8x32xf32>
    %221 = tpu.matmul %214, %41, %cst_121 {dimension_numbers = #tpu.dot_dimension_numbers<[1], [0], [0], [1], [0, 0, 1, 1], [], []>} : vector<8x256xf32>, vector<256x32xf32>, vector<8x32xf32> -> vector<8x32xf32>
    %222 = arith.addf %220, %221 : vector<8x32xf32>
    %223 = arith.negf %222 : vector<8x32xf32>
    %224 = math.exp %223 : vector<8x32xf32>
    %cst_122 = arith.constant 1.000000e+00 : f32
    %225 = vector.broadcast %cst_122 : f32 to vector<8x32xf32>
    %226 = arith.addf %225, %224 : vector<8x32xf32>
    %227 = arith.divf %225, %226 : vector<8x32xf32>
    %228 = arith.index_cast %c3_i32 : i32 to index
    %c0_123 = arith.constant 0 : index
    %c0_124 = arith.constant 0 : index
    %229 = vector.load %arg13[%228, %c0_123, %c0_124] : memref<8x8x32xf32, #tpu.memory_space<vmem>>, vector<1x8x32xf32>
    %230 = vector.shape_cast %229 : vector<1x8x32xf32> to vector<8x32xf32>
    %231 = arith.addf %230, %53 : vector<8x32xf32>
    %cst_125 = arith.constant dense<0.000000e+00> : vector<8x32xf32>
    %232 = tpu.matmul %212, %43, %cst_125 {dimension_numbers = #tpu.dot_dimension_numbers<[1], [0], [0], [1], [0, 0, 1, 1], [], []>} : vector<8x256xf32>, vector<256x32xf32>, vector<8x32xf32> -> vector<8x32xf32>
    %233 = arith.addf %231, %232 : vector<8x32xf32>
    %cst_126 = arith.constant dense<0.000000e+00> : vector<8x32xf32>
    %234 = tpu.matmul %214, %45, %cst_126 {dimension_numbers = #tpu.dot_dimension_numbers<[1], [0], [0], [1], [0, 0, 1, 1], [], []>} : vector<8x256xf32>, vector<256x32xf32>, vector<8x32xf32> -> vector<8x32xf32>
    %235 = arith.addf %233, %234 : vector<8x32xf32>
    %236 = arith.negf %235 : vector<8x32xf32>
    %237 = math.exp %236 : vector<8x32xf32>
    %cst_127 = arith.constant 1.000000e+00 : f32
    %238 = vector.broadcast %cst_127 : f32 to vector<8x32xf32>
    %239 = arith.addf %238, %237 : vector<8x32xf32>
    %240 = arith.divf %238, %239 : vector<8x32xf32>
    %241 = arith.mulf %240, %209 : vector<8x32xf32>
    %cst_128 = arith.constant dense<0.000000e+00> : vector<8x32xf32>
    %242 = tpu.matmul %2, %241, %cst_128 {dimension_numbers = #tpu.dot_dimension_numbers<[1], [0], [0], [1], [0, 0, 1, 1], [], []>} : vector<8x8xf32>, vector<8x32xf32>, vector<8x32xf32> -> vector<8x32xf32>
    %243 = tpu.concatenate %241, %241, %241, %241, %241, %241, %241, %241 in 1 : vector<8x32xf32>, vector<8x32xf32>, vector<8x32xf32>, vector<8x32xf32>, vector<8x32xf32>, vector<8x32xf32>, vector<8x32xf32>, vector<8x32xf32> -> vector<8x256xf32>
    %244 = arith.mulf %243, %3 : vector<8x256xf32>
    %245 = tpu.concatenate %242, %242, %242, %242, %242, %242, %242, %242 in 1 : vector<8x32xf32>, vector<8x32xf32>, vector<8x32xf32>, vector<8x32xf32>, vector<8x32xf32>, vector<8x32xf32>, vector<8x32xf32>, vector<8x32xf32> -> vector<8x256xf32>
    %246 = arith.mulf %245, %3 : vector<8x256xf32>
    %247 = arith.index_cast %c3_i32 : i32 to index
    %c0_129 = arith.constant 0 : index
    %c0_130 = arith.constant 0 : index
    %248 = vector.load %arg14[%247, %c0_129, %c0_130] : memref<8x8x32xf32, #tpu.memory_space<vmem>>, vector<1x8x32xf32>
    %249 = vector.shape_cast %248 : vector<1x8x32xf32> to vector<8x32xf32>
    %250 = arith.addf %249, %55 : vector<8x32xf32>
    %cst_131 = arith.constant dense<0.000000e+00> : vector<8x32xf32>
    %251 = tpu.matmul %244, %47, %cst_131 {dimension_numbers = #tpu.dot_dimension_numbers<[1], [0], [0], [1], [0, 0, 1, 1], [], []>} : vector<8x256xf32>, vector<256x32xf32>, vector<8x32xf32> -> vector<8x32xf32>
    %252 = arith.addf %250, %251 : vector<8x32xf32>
    %cst_132 = arith.constant dense<0.000000e+00> : vector<8x32xf32>
    %253 = tpu.matmul %246, %49, %cst_132 {dimension_numbers = #tpu.dot_dimension_numbers<[1], [0], [0], [1], [0, 0, 1, 1], [], []>} : vector<8x256xf32>, vector<256x32xf32>, vector<8x32xf32> -> vector<8x32xf32>
    %254 = arith.addf %252, %253 : vector<8x32xf32>
    %255 = math.tanh %254 : vector<8x32xf32>
    %256 = arith.mulf %227, %209 : vector<8x32xf32>
    %cst_133 = arith.constant 1.000000e+00 : f32
    %257 = vector.broadcast %cst_133 : f32 to vector<8x32xf32>
    %258 = arith.subf %257, %227 : vector<8x32xf32>
    %259 = arith.mulf %258, %255 : vector<8x32xf32>
    %260 = arith.addf %256, %259 : vector<8x32xf32>
    %c4_i32 = arith.constant 4 : i32
    %cst_134 = arith.constant dense<0.000000e+00> : vector<8x32xf32>
    %261 = tpu.matmul %2, %260, %cst_134 {dimension_numbers = #tpu.dot_dimension_numbers<[1], [0], [0], [1], [0, 0, 1, 1], [], []>} : vector<8x8xf32>, vector<8x32xf32>, vector<8x32xf32> -> vector<8x32xf32>
    %262 = tpu.concatenate %260, %260, %260, %260, %260, %260, %260, %260 in 1 : vector<8x32xf32>, vector<8x32xf32>, vector<8x32xf32>, vector<8x32xf32>, vector<8x32xf32>, vector<8x32xf32>, vector<8x32xf32>, vector<8x32xf32> -> vector<8x256xf32>
    %263 = arith.mulf %262, %3 : vector<8x256xf32>
    %264 = tpu.concatenate %261, %261, %261, %261, %261, %261, %261, %261 in 1 : vector<8x32xf32>, vector<8x32xf32>, vector<8x32xf32>, vector<8x32xf32>, vector<8x32xf32>, vector<8x32xf32>, vector<8x32xf32>, vector<8x32xf32> -> vector<8x256xf32>
    %265 = arith.mulf %264, %3 : vector<8x256xf32>
    %266 = arith.index_cast %c4_i32 : i32 to index
    %c0_135 = arith.constant 0 : index
    %c0_136 = arith.constant 0 : index
    %267 = vector.load %arg12[%266, %c0_135, %c0_136] : memref<8x8x32xf32, #tpu.memory_space<vmem>>, vector<1x8x32xf32>
    %268 = vector.shape_cast %267 : vector<1x8x32xf32> to vector<8x32xf32>
    %269 = arith.addf %268, %51 : vector<8x32xf32>
    %cst_137 = arith.constant dense<0.000000e+00> : vector<8x32xf32>
    %270 = tpu.matmul %263, %39, %cst_137 {dimension_numbers = #tpu.dot_dimension_numbers<[1], [0], [0], [1], [0, 0, 1, 1], [], []>} : vector<8x256xf32>, vector<256x32xf32>, vector<8x32xf32> -> vector<8x32xf32>
    %271 = arith.addf %269, %270 : vector<8x32xf32>
    %cst_138 = arith.constant dense<0.000000e+00> : vector<8x32xf32>
    %272 = tpu.matmul %265, %41, %cst_138 {dimension_numbers = #tpu.dot_dimension_numbers<[1], [0], [0], [1], [0, 0, 1, 1], [], []>} : vector<8x256xf32>, vector<256x32xf32>, vector<8x32xf32> -> vector<8x32xf32>
    %273 = arith.addf %271, %272 : vector<8x32xf32>
    %274 = arith.negf %273 : vector<8x32xf32>
    %275 = math.exp %274 : vector<8x32xf32>
    %cst_139 = arith.constant 1.000000e+00 : f32
    %276 = vector.broadcast %cst_139 : f32 to vector<8x32xf32>
    %277 = arith.addf %276, %275 : vector<8x32xf32>
    %278 = arith.divf %276, %277 : vector<8x32xf32>
    %279 = arith.index_cast %c4_i32 : i32 to index
    %c0_140 = arith.constant 0 : index
    %c0_141 = arith.constant 0 : index
    %280 = vector.load %arg13[%279, %c0_140, %c0_141] : memref<8x8x32xf32, #tpu.memory_space<vmem>>, vector<1x8x32xf32>
    %281 = vector.shape_cast %280 : vector<1x8x32xf32> to vector<8x32xf32>
    %282 = arith.addf %281, %53 : vector<8x32xf32>
    %cst_142 = arith.constant dense<0.000000e+00> : vector<8x32xf32>
    %283 = tpu.matmul %263, %43, %cst_142 {dimension_numbers = #tpu.dot_dimension_numbers<[1], [0], [0], [1], [0, 0, 1, 1], [], []>} : vector<8x256xf32>, vector<256x32xf32>, vector<8x32xf32> -> vector<8x32xf32>
    %284 = arith.addf %282, %283 : vector<8x32xf32>
    %cst_143 = arith.constant dense<0.000000e+00> : vector<8x32xf32>
    %285 = tpu.matmul %265, %45, %cst_143 {dimension_numbers = #tpu.dot_dimension_numbers<[1], [0], [0], [1], [0, 0, 1, 1], [], []>} : vector<8x256xf32>, vector<256x32xf32>, vector<8x32xf32> -> vector<8x32xf32>
    %286 = arith.addf %284, %285 : vector<8x32xf32>
    %287 = arith.negf %286 : vector<8x32xf32>
    %288 = math.exp %287 : vector<8x32xf32>
    %cst_144 = arith.constant 1.000000e+00 : f32
    %289 = vector.broadcast %cst_144 : f32 to vector<8x32xf32>
    %290 = arith.addf %289, %288 : vector<8x32xf32>
    %291 = arith.divf %289, %290 : vector<8x32xf32>
    %292 = arith.mulf %291, %260 : vector<8x32xf32>
    %cst_145 = arith.constant dense<0.000000e+00> : vector<8x32xf32>
    %293 = tpu.matmul %2, %292, %cst_145 {dimension_numbers = #tpu.dot_dimension_numbers<[1], [0], [0], [1], [0, 0, 1, 1], [], []>} : vector<8x8xf32>, vector<8x32xf32>, vector<8x32xf32> -> vector<8x32xf32>
    %294 = tpu.concatenate %292, %292, %292, %292, %292, %292, %292, %292 in 1 : vector<8x32xf32>, vector<8x32xf32>, vector<8x32xf32>, vector<8x32xf32>, vector<8x32xf32>, vector<8x32xf32>, vector<8x32xf32>, vector<8x32xf32> -> vector<8x256xf32>
    %295 = arith.mulf %294, %3 : vector<8x256xf32>
    %296 = tpu.concatenate %293, %293, %293, %293, %293, %293, %293, %293 in 1 : vector<8x32xf32>, vector<8x32xf32>, vector<8x32xf32>, vector<8x32xf32>, vector<8x32xf32>, vector<8x32xf32>, vector<8x32xf32>, vector<8x32xf32> -> vector<8x256xf32>
    %297 = arith.mulf %296, %3 : vector<8x256xf32>
    %298 = arith.index_cast %c4_i32 : i32 to index
    %c0_146 = arith.constant 0 : index
    %c0_147 = arith.constant 0 : index
    %299 = vector.load %arg14[%298, %c0_146, %c0_147] : memref<8x8x32xf32, #tpu.memory_space<vmem>>, vector<1x8x32xf32>
    %300 = vector.shape_cast %299 : vector<1x8x32xf32> to vector<8x32xf32>
    %301 = arith.addf %300, %55 : vector<8x32xf32>
    %cst_148 = arith.constant dense<0.000000e+00> : vector<8x32xf32>
    %302 = tpu.matmul %295, %47, %cst_148 {dimension_numbers = #tpu.dot_dimension_numbers<[1], [0], [0], [1], [0, 0, 1, 1], [], []>} : vector<8x256xf32>, vector<256x32xf32>, vector<8x32xf32> -> vector<8x32xf32>
    %303 = arith.addf %301, %302 : vector<8x32xf32>
    %cst_149 = arith.constant dense<0.000000e+00> : vector<8x32xf32>
    %304 = tpu.matmul %297, %49, %cst_149 {dimension_numbers = #tpu.dot_dimension_numbers<[1], [0], [0], [1], [0, 0, 1, 1], [], []>} : vector<8x256xf32>, vector<256x32xf32>, vector<8x32xf32> -> vector<8x32xf32>
    %305 = arith.addf %303, %304 : vector<8x32xf32>
    %306 = math.tanh %305 : vector<8x32xf32>
    %307 = arith.mulf %278, %260 : vector<8x32xf32>
    %cst_150 = arith.constant 1.000000e+00 : f32
    %308 = vector.broadcast %cst_150 : f32 to vector<8x32xf32>
    %309 = arith.subf %308, %278 : vector<8x32xf32>
    %310 = arith.mulf %309, %306 : vector<8x32xf32>
    %311 = arith.addf %307, %310 : vector<8x32xf32>
    %c5_i32 = arith.constant 5 : i32
    %cst_151 = arith.constant dense<0.000000e+00> : vector<8x32xf32>
    %312 = tpu.matmul %2, %311, %cst_151 {dimension_numbers = #tpu.dot_dimension_numbers<[1], [0], [0], [1], [0, 0, 1, 1], [], []>} : vector<8x8xf32>, vector<8x32xf32>, vector<8x32xf32> -> vector<8x32xf32>
    %313 = tpu.concatenate %311, %311, %311, %311, %311, %311, %311, %311 in 1 : vector<8x32xf32>, vector<8x32xf32>, vector<8x32xf32>, vector<8x32xf32>, vector<8x32xf32>, vector<8x32xf32>, vector<8x32xf32>, vector<8x32xf32> -> vector<8x256xf32>
    %314 = arith.mulf %313, %3 : vector<8x256xf32>
    %315 = tpu.concatenate %312, %312, %312, %312, %312, %312, %312, %312 in 1 : vector<8x32xf32>, vector<8x32xf32>, vector<8x32xf32>, vector<8x32xf32>, vector<8x32xf32>, vector<8x32xf32>, vector<8x32xf32>, vector<8x32xf32> -> vector<8x256xf32>
    %316 = arith.mulf %315, %3 : vector<8x256xf32>
    %317 = arith.index_cast %c5_i32 : i32 to index
    %c0_152 = arith.constant 0 : index
    %c0_153 = arith.constant 0 : index
    %318 = vector.load %arg12[%317, %c0_152, %c0_153] : memref<8x8x32xf32, #tpu.memory_space<vmem>>, vector<1x8x32xf32>
    %319 = vector.shape_cast %318 : vector<1x8x32xf32> to vector<8x32xf32>
    %320 = arith.addf %319, %51 : vector<8x32xf32>
    %cst_154 = arith.constant dense<0.000000e+00> : vector<8x32xf32>
    %321 = tpu.matmul %314, %39, %cst_154 {dimension_numbers = #tpu.dot_dimension_numbers<[1], [0], [0], [1], [0, 0, 1, 1], [], []>} : vector<8x256xf32>, vector<256x32xf32>, vector<8x32xf32> -> vector<8x32xf32>
    %322 = arith.addf %320, %321 : vector<8x32xf32>
    %cst_155 = arith.constant dense<0.000000e+00> : vector<8x32xf32>
    %323 = tpu.matmul %316, %41, %cst_155 {dimension_numbers = #tpu.dot_dimension_numbers<[1], [0], [0], [1], [0, 0, 1, 1], [], []>} : vector<8x256xf32>, vector<256x32xf32>, vector<8x32xf32> -> vector<8x32xf32>
    %324 = arith.addf %322, %323 : vector<8x32xf32>
    %325 = arith.negf %324 : vector<8x32xf32>
    %326 = math.exp %325 : vector<8x32xf32>
    %cst_156 = arith.constant 1.000000e+00 : f32
    %327 = vector.broadcast %cst_156 : f32 to vector<8x32xf32>
    %328 = arith.addf %327, %326 : vector<8x32xf32>
    %329 = arith.divf %327, %328 : vector<8x32xf32>
    %330 = arith.index_cast %c5_i32 : i32 to index
    %c0_157 = arith.constant 0 : index
    %c0_158 = arith.constant 0 : index
    %331 = vector.load %arg13[%330, %c0_157, %c0_158] : memref<8x8x32xf32, #tpu.memory_space<vmem>>, vector<1x8x32xf32>
    %332 = vector.shape_cast %331 : vector<1x8x32xf32> to vector<8x32xf32>
    %333 = arith.addf %332, %53 : vector<8x32xf32>
    %cst_159 = arith.constant dense<0.000000e+00> : vector<8x32xf32>
    %334 = tpu.matmul %314, %43, %cst_159 {dimension_numbers = #tpu.dot_dimension_numbers<[1], [0], [0], [1], [0, 0, 1, 1], [], []>} : vector<8x256xf32>, vector<256x32xf32>, vector<8x32xf32> -> vector<8x32xf32>
    %335 = arith.addf %333, %334 : vector<8x32xf32>
    %cst_160 = arith.constant dense<0.000000e+00> : vector<8x32xf32>
    %336 = tpu.matmul %316, %45, %cst_160 {dimension_numbers = #tpu.dot_dimension_numbers<[1], [0], [0], [1], [0, 0, 1, 1], [], []>} : vector<8x256xf32>, vector<256x32xf32>, vector<8x32xf32> -> vector<8x32xf32>
    %337 = arith.addf %335, %336 : vector<8x32xf32>
    %338 = arith.negf %337 : vector<8x32xf32>
    %339 = math.exp %338 : vector<8x32xf32>
    %cst_161 = arith.constant 1.000000e+00 : f32
    %340 = vector.broadcast %cst_161 : f32 to vector<8x32xf32>
    %341 = arith.addf %340, %339 : vector<8x32xf32>
    %342 = arith.divf %340, %341 : vector<8x32xf32>
    %343 = arith.mulf %342, %311 : vector<8x32xf32>
    %cst_162 = arith.constant dense<0.000000e+00> : vector<8x32xf32>
    %344 = tpu.matmul %2, %343, %cst_162 {dimension_numbers = #tpu.dot_dimension_numbers<[1], [0], [0], [1], [0, 0, 1, 1], [], []>} : vector<8x8xf32>, vector<8x32xf32>, vector<8x32xf32> -> vector<8x32xf32>
    %345 = tpu.concatenate %343, %343, %343, %343, %343, %343, %343, %343 in 1 : vector<8x32xf32>, vector<8x32xf32>, vector<8x32xf32>, vector<8x32xf32>, vector<8x32xf32>, vector<8x32xf32>, vector<8x32xf32>, vector<8x32xf32> -> vector<8x256xf32>
    %346 = arith.mulf %345, %3 : vector<8x256xf32>
    %347 = tpu.concatenate %344, %344, %344, %344, %344, %344, %344, %344 in 1 : vector<8x32xf32>, vector<8x32xf32>, vector<8x32xf32>, vector<8x32xf32>, vector<8x32xf32>, vector<8x32xf32>, vector<8x32xf32>, vector<8x32xf32> -> vector<8x256xf32>
    %348 = arith.mulf %347, %3 : vector<8x256xf32>
    %349 = arith.index_cast %c5_i32 : i32 to index
    %c0_163 = arith.constant 0 : index
    %c0_164 = arith.constant 0 : index
    %350 = vector.load %arg14[%349, %c0_163, %c0_164] : memref<8x8x32xf32, #tpu.memory_space<vmem>>, vector<1x8x32xf32>
    %351 = vector.shape_cast %350 : vector<1x8x32xf32> to vector<8x32xf32>
    %352 = arith.addf %351, %55 : vector<8x32xf32>
    %cst_165 = arith.constant dense<0.000000e+00> : vector<8x32xf32>
    %353 = tpu.matmul %346, %47, %cst_165 {dimension_numbers = #tpu.dot_dimension_numbers<[1], [0], [0], [1], [0, 0, 1, 1], [], []>} : vector<8x256xf32>, vector<256x32xf32>, vector<8x32xf32> -> vector<8x32xf32>
    %354 = arith.addf %352, %353 : vector<8x32xf32>
    %cst_166 = arith.constant dense<0.000000e+00> : vector<8x32xf32>
    %355 = tpu.matmul %348, %49, %cst_166 {dimension_numbers = #tpu.dot_dimension_numbers<[1], [0], [0], [1], [0, 0, 1, 1], [], []>} : vector<8x256xf32>, vector<256x32xf32>, vector<8x32xf32> -> vector<8x32xf32>
    %356 = arith.addf %354, %355 : vector<8x32xf32>
    %357 = math.tanh %356 : vector<8x32xf32>
    %358 = arith.mulf %329, %311 : vector<8x32xf32>
    %cst_167 = arith.constant 1.000000e+00 : f32
    %359 = vector.broadcast %cst_167 : f32 to vector<8x32xf32>
    %360 = arith.subf %359, %329 : vector<8x32xf32>
    %361 = arith.mulf %360, %357 : vector<8x32xf32>
    %362 = arith.addf %358, %361 : vector<8x32xf32>
    %c6_i32 = arith.constant 6 : i32
    %cst_168 = arith.constant dense<0.000000e+00> : vector<8x32xf32>
    %363 = tpu.matmul %2, %362, %cst_168 {dimension_numbers = #tpu.dot_dimension_numbers<[1], [0], [0], [1], [0, 0, 1, 1], [], []>} : vector<8x8xf32>, vector<8x32xf32>, vector<8x32xf32> -> vector<8x32xf32>
    %364 = tpu.concatenate %362, %362, %362, %362, %362, %362, %362, %362 in 1 : vector<8x32xf32>, vector<8x32xf32>, vector<8x32xf32>, vector<8x32xf32>, vector<8x32xf32>, vector<8x32xf32>, vector<8x32xf32>, vector<8x32xf32> -> vector<8x256xf32>
    %365 = arith.mulf %364, %3 : vector<8x256xf32>
    %366 = tpu.concatenate %363, %363, %363, %363, %363, %363, %363, %363 in 1 : vector<8x32xf32>, vector<8x32xf32>, vector<8x32xf32>, vector<8x32xf32>, vector<8x32xf32>, vector<8x32xf32>, vector<8x32xf32>, vector<8x32xf32> -> vector<8x256xf32>
    %367 = arith.mulf %366, %3 : vector<8x256xf32>
    %368 = arith.index_cast %c6_i32 : i32 to index
    %c0_169 = arith.constant 0 : index
    %c0_170 = arith.constant 0 : index
    %369 = vector.load %arg12[%368, %c0_169, %c0_170] : memref<8x8x32xf32, #tpu.memory_space<vmem>>, vector<1x8x32xf32>
    %370 = vector.shape_cast %369 : vector<1x8x32xf32> to vector<8x32xf32>
    %371 = arith.addf %370, %51 : vector<8x32xf32>
    %cst_171 = arith.constant dense<0.000000e+00> : vector<8x32xf32>
    %372 = tpu.matmul %365, %39, %cst_171 {dimension_numbers = #tpu.dot_dimension_numbers<[1], [0], [0], [1], [0, 0, 1, 1], [], []>} : vector<8x256xf32>, vector<256x32xf32>, vector<8x32xf32> -> vector<8x32xf32>
    %373 = arith.addf %371, %372 : vector<8x32xf32>
    %cst_172 = arith.constant dense<0.000000e+00> : vector<8x32xf32>
    %374 = tpu.matmul %367, %41, %cst_172 {dimension_numbers = #tpu.dot_dimension_numbers<[1], [0], [0], [1], [0, 0, 1, 1], [], []>} : vector<8x256xf32>, vector<256x32xf32>, vector<8x32xf32> -> vector<8x32xf32>
    %375 = arith.addf %373, %374 : vector<8x32xf32>
    %376 = arith.negf %375 : vector<8x32xf32>
    %377 = math.exp %376 : vector<8x32xf32>
    %cst_173 = arith.constant 1.000000e+00 : f32
    %378 = vector.broadcast %cst_173 : f32 to vector<8x32xf32>
    %379 = arith.addf %378, %377 : vector<8x32xf32>
    %380 = arith.divf %378, %379 : vector<8x32xf32>
    %381 = arith.index_cast %c6_i32 : i32 to index
    %c0_174 = arith.constant 0 : index
    %c0_175 = arith.constant 0 : index
    %382 = vector.load %arg13[%381, %c0_174, %c0_175] : memref<8x8x32xf32, #tpu.memory_space<vmem>>, vector<1x8x32xf32>
    %383 = vector.shape_cast %382 : vector<1x8x32xf32> to vector<8x32xf32>
    %384 = arith.addf %383, %53 : vector<8x32xf32>
    %cst_176 = arith.constant dense<0.000000e+00> : vector<8x32xf32>
    %385 = tpu.matmul %365, %43, %cst_176 {dimension_numbers = #tpu.dot_dimension_numbers<[1], [0], [0], [1], [0, 0, 1, 1], [], []>} : vector<8x256xf32>, vector<256x32xf32>, vector<8x32xf32> -> vector<8x32xf32>
    %386 = arith.addf %384, %385 : vector<8x32xf32>
    %cst_177 = arith.constant dense<0.000000e+00> : vector<8x32xf32>
    %387 = tpu.matmul %367, %45, %cst_177 {dimension_numbers = #tpu.dot_dimension_numbers<[1], [0], [0], [1], [0, 0, 1, 1], [], []>} : vector<8x256xf32>, vector<256x32xf32>, vector<8x32xf32> -> vector<8x32xf32>
    %388 = arith.addf %386, %387 : vector<8x32xf32>
    %389 = arith.negf %388 : vector<8x32xf32>
    %390 = math.exp %389 : vector<8x32xf32>
    %cst_178 = arith.constant 1.000000e+00 : f32
    %391 = vector.broadcast %cst_178 : f32 to vector<8x32xf32>
    %392 = arith.addf %391, %390 : vector<8x32xf32>
    %393 = arith.divf %391, %392 : vector<8x32xf32>
    %394 = arith.mulf %393, %362 : vector<8x32xf32>
    %cst_179 = arith.constant dense<0.000000e+00> : vector<8x32xf32>
    %395 = tpu.matmul %2, %394, %cst_179 {dimension_numbers = #tpu.dot_dimension_numbers<[1], [0], [0], [1], [0, 0, 1, 1], [], []>} : vector<8x8xf32>, vector<8x32xf32>, vector<8x32xf32> -> vector<8x32xf32>
    %396 = tpu.concatenate %394, %394, %394, %394, %394, %394, %394, %394 in 1 : vector<8x32xf32>, vector<8x32xf32>, vector<8x32xf32>, vector<8x32xf32>, vector<8x32xf32>, vector<8x32xf32>, vector<8x32xf32>, vector<8x32xf32> -> vector<8x256xf32>
    %397 = arith.mulf %396, %3 : vector<8x256xf32>
    %398 = tpu.concatenate %395, %395, %395, %395, %395, %395, %395, %395 in 1 : vector<8x32xf32>, vector<8x32xf32>, vector<8x32xf32>, vector<8x32xf32>, vector<8x32xf32>, vector<8x32xf32>, vector<8x32xf32>, vector<8x32xf32> -> vector<8x256xf32>
    %399 = arith.mulf %398, %3 : vector<8x256xf32>
    %400 = arith.index_cast %c6_i32 : i32 to index
    %c0_180 = arith.constant 0 : index
    %c0_181 = arith.constant 0 : index
    %401 = vector.load %arg14[%400, %c0_180, %c0_181] : memref<8x8x32xf32, #tpu.memory_space<vmem>>, vector<1x8x32xf32>
    %402 = vector.shape_cast %401 : vector<1x8x32xf32> to vector<8x32xf32>
    %403 = arith.addf %402, %55 : vector<8x32xf32>
    %cst_182 = arith.constant dense<0.000000e+00> : vector<8x32xf32>
    %404 = tpu.matmul %397, %47, %cst_182 {dimension_numbers = #tpu.dot_dimension_numbers<[1], [0], [0], [1], [0, 0, 1, 1], [], []>} : vector<8x256xf32>, vector<256x32xf32>, vector<8x32xf32> -> vector<8x32xf32>
    %405 = arith.addf %403, %404 : vector<8x32xf32>
    %cst_183 = arith.constant dense<0.000000e+00> : vector<8x32xf32>
    %406 = tpu.matmul %399, %49, %cst_183 {dimension_numbers = #tpu.dot_dimension_numbers<[1], [0], [0], [1], [0, 0, 1, 1], [], []>} : vector<8x256xf32>, vector<256x32xf32>, vector<8x32xf32> -> vector<8x32xf32>
    %407 = arith.addf %405, %406 : vector<8x32xf32>
    %408 = math.tanh %407 : vector<8x32xf32>
    %409 = arith.mulf %380, %362 : vector<8x32xf32>
    %cst_184 = arith.constant 1.000000e+00 : f32
    %410 = vector.broadcast %cst_184 : f32 to vector<8x32xf32>
    %411 = arith.subf %410, %380 : vector<8x32xf32>
    %412 = arith.mulf %411, %408 : vector<8x32xf32>
    %413 = arith.addf %409, %412 : vector<8x32xf32>
    %c7_i32 = arith.constant 7 : i32
    %cst_185 = arith.constant dense<0.000000e+00> : vector<8x32xf32>
    %414 = tpu.matmul %2, %413, %cst_185 {dimension_numbers = #tpu.dot_dimension_numbers<[1], [0], [0], [1], [0, 0, 1, 1], [], []>} : vector<8x8xf32>, vector<8x32xf32>, vector<8x32xf32> -> vector<8x32xf32>
    %415 = tpu.concatenate %413, %413, %413, %413, %413, %413, %413, %413 in 1 : vector<8x32xf32>, vector<8x32xf32>, vector<8x32xf32>, vector<8x32xf32>, vector<8x32xf32>, vector<8x32xf32>, vector<8x32xf32>, vector<8x32xf32> -> vector<8x256xf32>
    %416 = arith.mulf %415, %3 : vector<8x256xf32>
    %417 = tpu.concatenate %414, %414, %414, %414, %414, %414, %414, %414 in 1 : vector<8x32xf32>, vector<8x32xf32>, vector<8x32xf32>, vector<8x32xf32>, vector<8x32xf32>, vector<8x32xf32>, vector<8x32xf32>, vector<8x32xf32> -> vector<8x256xf32>
    %418 = arith.mulf %417, %3 : vector<8x256xf32>
    %419 = arith.index_cast %c7_i32 : i32 to index
    %c0_186 = arith.constant 0 : index
    %c0_187 = arith.constant 0 : index
    %420 = vector.load %arg12[%419, %c0_186, %c0_187] : memref<8x8x32xf32, #tpu.memory_space<vmem>>, vector<1x8x32xf32>
    %421 = vector.shape_cast %420 : vector<1x8x32xf32> to vector<8x32xf32>
    %422 = arith.addf %421, %51 : vector<8x32xf32>
    %cst_188 = arith.constant dense<0.000000e+00> : vector<8x32xf32>
    %423 = tpu.matmul %416, %39, %cst_188 {dimension_numbers = #tpu.dot_dimension_numbers<[1], [0], [0], [1], [0, 0, 1, 1], [], []>} : vector<8x256xf32>, vector<256x32xf32>, vector<8x32xf32> -> vector<8x32xf32>
    %424 = arith.addf %422, %423 : vector<8x32xf32>
    %cst_189 = arith.constant dense<0.000000e+00> : vector<8x32xf32>
    %425 = tpu.matmul %418, %41, %cst_189 {dimension_numbers = #tpu.dot_dimension_numbers<[1], [0], [0], [1], [0, 0, 1, 1], [], []>} : vector<8x256xf32>, vector<256x32xf32>, vector<8x32xf32> -> vector<8x32xf32>
    %426 = arith.addf %424, %425 : vector<8x32xf32>
    %427 = arith.negf %426 : vector<8x32xf32>
    %428 = math.exp %427 : vector<8x32xf32>
    %cst_190 = arith.constant 1.000000e+00 : f32
    %429 = vector.broadcast %cst_190 : f32 to vector<8x32xf32>
    %430 = arith.addf %429, %428 : vector<8x32xf32>
    %431 = arith.divf %429, %430 : vector<8x32xf32>
    %432 = arith.index_cast %c7_i32 : i32 to index
    %c0_191 = arith.constant 0 : index
    %c0_192 = arith.constant 0 : index
    %433 = vector.load %arg13[%432, %c0_191, %c0_192] : memref<8x8x32xf32, #tpu.memory_space<vmem>>, vector<1x8x32xf32>
    %434 = vector.shape_cast %433 : vector<1x8x32xf32> to vector<8x32xf32>
    %435 = arith.addf %434, %53 : vector<8x32xf32>
    %cst_193 = arith.constant dense<0.000000e+00> : vector<8x32xf32>
    %436 = tpu.matmul %416, %43, %cst_193 {dimension_numbers = #tpu.dot_dimension_numbers<[1], [0], [0], [1], [0, 0, 1, 1], [], []>} : vector<8x256xf32>, vector<256x32xf32>, vector<8x32xf32> -> vector<8x32xf32>
    %437 = arith.addf %435, %436 : vector<8x32xf32>
    %cst_194 = arith.constant dense<0.000000e+00> : vector<8x32xf32>
    %438 = tpu.matmul %418, %45, %cst_194 {dimension_numbers = #tpu.dot_dimension_numbers<[1], [0], [0], [1], [0, 0, 1, 1], [], []>} : vector<8x256xf32>, vector<256x32xf32>, vector<8x32xf32> -> vector<8x32xf32>
    %439 = arith.addf %437, %438 : vector<8x32xf32>
    %440 = arith.negf %439 : vector<8x32xf32>
    %441 = math.exp %440 : vector<8x32xf32>
    %cst_195 = arith.constant 1.000000e+00 : f32
    %442 = vector.broadcast %cst_195 : f32 to vector<8x32xf32>
    %443 = arith.addf %442, %441 : vector<8x32xf32>
    %444 = arith.divf %442, %443 : vector<8x32xf32>
    %445 = arith.mulf %444, %413 : vector<8x32xf32>
    %cst_196 = arith.constant dense<0.000000e+00> : vector<8x32xf32>
    %446 = tpu.matmul %2, %445, %cst_196 {dimension_numbers = #tpu.dot_dimension_numbers<[1], [0], [0], [1], [0, 0, 1, 1], [], []>} : vector<8x8xf32>, vector<8x32xf32>, vector<8x32xf32> -> vector<8x32xf32>
    %447 = tpu.concatenate %445, %445, %445, %445, %445, %445, %445, %445 in 1 : vector<8x32xf32>, vector<8x32xf32>, vector<8x32xf32>, vector<8x32xf32>, vector<8x32xf32>, vector<8x32xf32>, vector<8x32xf32>, vector<8x32xf32> -> vector<8x256xf32>
    %448 = arith.mulf %447, %3 : vector<8x256xf32>
    %449 = tpu.concatenate %446, %446, %446, %446, %446, %446, %446, %446 in 1 : vector<8x32xf32>, vector<8x32xf32>, vector<8x32xf32>, vector<8x32xf32>, vector<8x32xf32>, vector<8x32xf32>, vector<8x32xf32>, vector<8x32xf32> -> vector<8x256xf32>
    %450 = arith.mulf %449, %3 : vector<8x256xf32>
    %451 = arith.index_cast %c7_i32 : i32 to index
    %c0_197 = arith.constant 0 : index
    %c0_198 = arith.constant 0 : index
    %452 = vector.load %arg14[%451, %c0_197, %c0_198] : memref<8x8x32xf32, #tpu.memory_space<vmem>>, vector<1x8x32xf32>
    %453 = vector.shape_cast %452 : vector<1x8x32xf32> to vector<8x32xf32>
    %454 = arith.addf %453, %55 : vector<8x32xf32>
    %cst_199 = arith.constant dense<0.000000e+00> : vector<8x32xf32>
    %455 = tpu.matmul %448, %47, %cst_199 {dimension_numbers = #tpu.dot_dimension_numbers<[1], [0], [0], [1], [0, 0, 1, 1], [], []>} : vector<8x256xf32>, vector<256x32xf32>, vector<8x32xf32> -> vector<8x32xf32>
    %456 = arith.addf %454, %455 : vector<8x32xf32>
    %cst_200 = arith.constant dense<0.000000e+00> : vector<8x32xf32>
    %457 = tpu.matmul %450, %49, %cst_200 {dimension_numbers = #tpu.dot_dimension_numbers<[1], [0], [0], [1], [0, 0, 1, 1], [], []>} : vector<8x256xf32>, vector<256x32xf32>, vector<8x32xf32> -> vector<8x32xf32>
    %458 = arith.addf %456, %457 : vector<8x32xf32>
    %459 = math.tanh %458 : vector<8x32xf32>
    %460 = arith.mulf %431, %413 : vector<8x32xf32>
    %cst_201 = arith.constant 1.000000e+00 : f32
    %461 = vector.broadcast %cst_201 : f32 to vector<8x32xf32>
    %462 = arith.subf %461, %431 : vector<8x32xf32>
    %463 = arith.mulf %462, %459 : vector<8x32xf32>
    %464 = arith.addf %460, %463 : vector<8x32xf32>
    %c8_i32 = arith.constant 8 : i32
    %c0_202 = arith.constant 0 : index
    %c0_203 = arith.constant 0 : index
    %465 = vector.load %arg9[%c0_202, %c0_203] : memref<32x128xf32, #tpu.memory_space<vmem>>, vector<32x128xf32>
    %cst_204 = arith.constant dense<0.000000e+00> : vector<8x128xf32>
    %466 = tpu.matmul %464, %465, %cst_204 {dimension_numbers = #tpu.dot_dimension_numbers<[1], [0], [0], [1], [0, 0, 1, 1], [], []>} : vector<8x32xf32>, vector<32x128xf32>, vector<8x128xf32> -> vector<8x128xf32>
    %c0_205 = arith.constant 0 : index
    %c0_206 = arith.constant 0 : index
    %467 = vector.load %arg10[%c0_205, %c0_206] : memref<1x128xf32, #tpu.memory_space<vmem>>, vector<1x128xf32>
    %468 = vector.broadcast %467 : vector<1x128xf32> to vector<8x128xf32>
    %469 = arith.addf %466, %468 : vector<8x128xf32>
    %c0_207 = arith.constant 0 : index
    %c0_208 = arith.constant 0 : index
    %c0_209 = arith.constant 0 : index
    %470 = vector.load %arg11[%c0_207, %c0_208, %c0_209] : memref<1x8x128xf32, #tpu.memory_space<vmem>>, vector<1x8x128xf32>
    %471 = vector.shape_cast %470 : vector<1x8x128xf32> to vector<8x128xf32>
    %472 = vector.shape_cast %469 : vector<8x128xf32> to vector<1x8x128xf32>
    tpu.vector_store %arg11[%c0_207, %c0_208, %c0_209], %472 {strides = array<i32>} : memref<1x8x128xf32, #tpu.memory_space<vmem>>, vector<1x8x128xf32>,
    return
  }
  func.func @transform_0(%arg0: i32) -> (i32, i32, i32) {
    %c0_i32 = arith.constant 0 : i32
    %c0_i32_0 = arith.constant 0 : i32
    %c0_i32_1 = arith.constant 0 : i32
    return %arg0, %c0_i32, %c0_i32_0 : i32, i32, i32
  }
  func.func @transform_1(%arg0: i32) -> (i32, i32) {
    %c0_i32 = arith.constant 0 : i32
    %c0_i32_0 = arith.constant 0 : i32
    %c0_i32_1 = arith.constant 0 : i32
    return %c0_i32, %c0_i32_0 : i32, i32
  }
  func.func @transform_2(%arg0: i32) -> (i32, i32) {
    %c0_i32 = arith.constant 0 : i32
    %c0_i32_0 = arith.constant 0 : i32
    %c0_i32_1 = arith.constant 0 : i32
    return %c0_i32, %c0_i32_0 : i32, i32
  }
  func.func @transform_3(%arg0: i32) -> (i32, i32) {
    %c0_i32 = arith.constant 0 : i32
    %c0_i32_0 = arith.constant 0 : i32
    %c0_i32_1 = arith.constant 0 : i32
    return %c0_i32, %c0_i32_0 : i32, i32
  }
  func.func @transform_4(%arg0: i32) -> (i32, i32) {
    %c0_i32 = arith.constant 0 : i32
    %c0_i32_0 = arith.constant 0 : i32
    %c0_i32_1 = arith.constant 0 : i32
    return %c0_i32, %c0_i32_0 : i32, i32
  }
  func.func @transform_5(%arg0: i32) -> (i32, i32, i32) {
    %c0_i32 = arith.constant 0 : i32
    %c0_i32_0 = arith.constant 0 : i32
    %c0_i32_1 = arith.constant 0 : i32
    %c0_i32_2 = arith.constant 0 : i32
    return %c0_i32, %c0_i32_0, %c0_i32_1 : i32, i32, i32
  }
  func.func @transform_6(%arg0: i32) -> (i32, i32, i32) {
    %c0_i32 = arith.constant 0 : i32
    %c0_i32_0 = arith.constant 0 : i32
    %c0_i32_1 = arith.constant 0 : i32
    %c0_i32_2 = arith.constant 0 : i32
    return %c0_i32, %c0_i32_0, %c0_i32_1 : i32, i32, i32
  }
  func.func @transform_7(%arg0: i32) -> (i32, i32, i32) {
    %c0_i32 = arith.constant 0 : i32
    %c0_i32_0 = arith.constant 0 : i32
    %c0_i32_1 = arith.constant 0 : i32
    %c0_i32_2 = arith.constant 0 : i32
    return %c0_i32, %c0_i32_0, %c0_i32_1 : i32, i32, i32
  }
  func.func @transform_8(%arg0: i32) -> (i32, i32) {
    %c0_i32 = arith.constant 0 : i32
    %c0_i32_0 = arith.constant 0 : i32
    %c0_i32_1 = arith.constant 0 : i32
    return %c0_i32, %c0_i32_0 : i32, i32
  }
  func.func @transform_9(%arg0: i32) -> (i32, i32) {
    %c0_i32 = arith.constant 0 : i32
    %c0_i32_0 = arith.constant 0 : i32
    %c0_i32_1 = arith.constant 0 : i32
    return %c0_i32, %c0_i32_0 : i32, i32
  }
  func.func @transform_10(%arg0: i32) -> (i32, i32, i32) {
    %c0_i32 = arith.constant 0 : i32
    %c0_i32_0 = arith.constant 0 : i32
    %c0_i32_1 = arith.constant 0 : i32
    return %arg0, %c0_i32, %c0_i32_0 : i32, i32, i32
  }
}

</mosaic_0001>

<bundles_post_ra>
// kernel: tile.9
= control target key start
LH: loop header
LB: loop body
LE: loop exit
PB: predicated region body
PF: predicated region fallthrough
CT: control target
= control target key end

     0   :  { %vm4_vm0 = vcmask 1047556   ;;  %s99_s14 = smov 56   ;;  %s100_s19 = smov 40   ;;  %vm6_vm1 = vcmask 64512   ;;  %vm16_vm2 = vcmask 523712   ;;  %vm26_vm3 = vcmask 458112   ;;  %s196_s0 = inlined_call_operand.vmem [shape: f32[8,8,8], index: 0, kind: input, shape index: {}]   ;;  %s197_s1 = inlined_call_operand.vmem [shape: f32[64,8], index: 1, kind: output, shape index: {}]  }
   0x1   :  { %v78_v0 = vld [vmem:[%s196_s0 + $0x7] ss:$8 sm:$0xf]   ;;  %v82_v3 = vld [vmem:[%s196_s0 + $0x5] ss:$8 sm:$0xf]  }
   0x2   :  { %v79_v1 = vld [vmem:[%s196_s0 + $0x7] ss:$8 sm:$0xf0]   ;;  %v83_v4 = vld [vmem:[%s196_s0 + $0x5] ss:$8 sm:$0xf0]  }
   0x3   :  { %v13_v2 = vsel %vm4_vm0, %v79_v1, %v78_v0  ;;  %v33_v5 = vsel %vm4_vm0, %v83_v4, %v82_v3  ;;  %v80_v6 = vld [vmem:[%s196_s0 + $0x6] ss:$8 sm:$0xf]   ;;  %v84_v9 = vld [vmem:[%s196_s0 + $0x4] ss:$8 sm:$0xf]  }
   0x4   :  { %14 = vrot.lane.b32.xlu0 %v13_v2, %s99_s14  ;;  %v81_v7 = vld [vmem:[%s196_s0 + $0x6] ss:$8 sm:$0xf0]   ;;  %34 = vrot.lane.b32.xlu1 %v33_v5, %s100_s19  ;;  %v85_v10 = vld [vmem:[%s196_s0 + $0x4] ss:$8 sm:$0xf0]  }
   0x5   :  { %v23_v8 = vsel %vm4_vm0, %v81_v7, %v80_v6  ;;  %v86_v11 = vld [vmem:[%s196_s0 + $0x3] ss:$8 sm:$0xf]   ;;  %v43_v12 = vsel %vm4_vm0, %v85_v10, %v84_v9  ;;  %s101_s28 = smov 48   ;;  %s102_s4 = smov 32   ;;  %vm36_vm4 = vcmask 392512  }
   0x6   :  { %v87_v13 = vld [vmem:[%s196_s0 + $0x3] ss:$8 sm:$0xf0]   ;;  %v88_v14 = vld [vmem:[%s196_s0 + $0x2] ss:$8 sm:$0xf]  }
   0x7   :  { %v89_v15 = vld [vmem:[%s196_s0 + $0x2] ss:$8 sm:$0xf0]   ;;  %v53_v16 = vsel %vm4_vm0, %v87_v13, %v86_v11  ;;  %v90_v17 = vld [vmem:[%s196_s0 + $0x1] ss:$8 sm:$0xf]  }
   0x8   :  { %24 = vrot.lane.b32.xlu0 %v23_v8, %s101_s28  ;;  %44 = vrot.lane.b32.xlu1 %v43_v12, %s102_s4  ;;  %v63_v18 = vsel %vm4_vm0, %v89_v15, %v88_v14  ;;  %v91_v19 = vld [vmem:[%s196_s0 + $0x1] ss:$8 sm:$0xf0]   ;;  %v2_v20 = vld [vmem:[%s196_s0] ss:$8 sm:$0xf]  }
   0x9   :  { %v3_v21 = vld [vmem:[%s196_s0] ss:$8 sm:$0xf0]   ;;  %s103_s0 = smov 24   ;;  %s104_s13 = smov 16   ;;  %v73_v23 = vsel %vm4_vm0, %v91_v19, %v90_v17  ;;  %vm46_vm5 = vcmask 326912  }
   0xa   :  { %v5_v22 = vsel %vm4_vm0, %v3_v21, %v2_v20  ;;  %s105_s16 = smov 8   ;;  %vm56_vm6 = vcmask 261312   ;;  %vm66_vm7 = vcmask 195712   ;;  %vm76_vm8 = vcmask 130112  }
   0xb   :  { %7 = vst.msk [vmem:[%s197_s1] sm:$0xff] %vm6_vm1, %v5_v22  }
   0xc   :  { %54 = vrot.lane.b32.xlu0 %v53_v16, %s103_s0  ;;  %64 = vrot.lane.b32.xlu1 %v63_v18, %s104_s13 }
  0x10   :  { %74 = vrot.lane.b32.xlu0 %v73_v23, %s105_s16 }
  0x76   :  { %v15_v24 = vpop.permute.xlu0 %14   ;;  %v35_v25 = vpop.permute.xlu1 %34  }
  0x77   :  { %17 = vst.msk [vmem:[%s197_s1] sm:$0xff] %vm16_vm2, %v15_v24  }
  0x7a   :  { %v25_v26 = vpop.permute.xlu0 %24   ;;  %v45_v27 = vpop.permute.xlu1 %44  }
  0x7b   :  { %27 = vst.msk [vmem:[%s197_s1] sm:$0xff] %vm26_vm3, %v25_v26  }
  0x7c   :  { %37 = vst.msk [vmem:[%s197_s1] sm:$0xff] %vm36_vm4, %v35_v25  }
  0x7d   :  { %47 = vst.msk [vmem:[%s197_s1] sm:$0xff] %vm46_vm5, %v45_v27  }
  0x7e   :  { %v55_v28 = vpop.permute.xlu0 %54   ;;  %v65_v29 = vpop.permute.xlu1 %64  }
  0x7f   :  { %57 = vst.msk [vmem:[%s197_s1] sm:$0xff] %vm56_vm6, %v55_v28  }
  0x80   :  { %67 = vst.msk [vmem:[%s197_s1] sm:$0xff] %vm66_vm7, %v65_v29  }
  0x82   :  { %v75_v30 = vpop.permute.xlu0 %74  }
  0x83   :  { %77 = vst.msk [vmem:[%s197_s1] sm:$0xff] %vm76_vm8, %v75_v30  }

// kernel: meta_model_forward.1
= control target key start
LH: loop header
LB: loop body
LE: loop exit
PB: predicated region body
PF: predicated region fallthrough
CT: control target
= control target key end

     0   :  { %s11356_s13 = smov 0   ;;  %s14289_s0 = inlined_call_operand.vmem [shape: f32[2,64,2], index: 0, kind: input, shape index: {}]   ;;  %s14290_s1 = inlined_call_operand.vmem [shape: f32[8,8], index: 1, kind: input, shape index: {}]   ;;  %s14291_s2 = inlined_call_operand.vmem [shape: f32[64,64], index: 2, kind: input, shape index: {}]   ;;  %s14292_s3 = inlined_call_operand.vmem [shape: f32[8,256], index: 3, kind: input, shape index: {}]   ;;  %s14293_s4 = inlined_call_operand.vmem [shape: f32[64,16], index: 4, kind: input, shape index: {}]   ;;  %s14294_s5 = inlined_call_operand.vmem [shape: f32[6,16,32], index: 5, kind: input, shape index: {}]   ;;  %s14295_s6 = inlined_call_operand.vmem [shape: f32[6,256,32], index: 6, kind: input, shape index: {}]   ;;  %s14296_s7 = inlined_call_operand.vmem [shape: f32[3,8,32], index: 7, kind: input, shape index: {}]   ;;  %s14297_s8 = inlined_call_operand.vmem [shape: f32[32,128], index: 8, kind: input, shape index: {}]   ;;  %s14298_s9 = inlined_call_operand.vmem [shape: f32[1,128], index: 9, kind: input, shape index: {}]   ;;  %s14299_s10 = inlined_call_operand.vmem [shape: f32[2,8,128], index: 10, kind: output, shape index: {}]  }
   0x1 LB: > { %s7275_s14 = sadd.s32 4294967295, %s11286_s13   ;;  %p7279_p0 = scmp.ge.s32.totalorder %s11286_s13, 1  ;;  %s11286_s13 = sphi %s11356_s13, %s20_s13  }
   0x2   : > { %p312_p1 = scmp.lt.s32.totalorder %s11286_s13, 3 }
   0x4   : > { %p313_p2 = pnand %p7279_p0, %p312_p1 }
   0x6   : > { %316 = sbr.rel (%p313_p2) target bundleno = 10149 (0x27a5), region = 60 }
   0xd   : > { %p349_p3 = scmp.lt.s32.totalorder %s7275_s14, 1  ;;  %v377_v0 = vld [vmem:[%s14291_s2] sm:$0xff]  ;;  %vm385_vm0 = vcmask 523264   ;;  %s11288_s21 = smov 2   ;;  %v378_v13 = vld [vmem:[%s14291_s2 + $0x8] sm:$0xff]  ;;  %v379_v14 = vld [vmem:[%s14291_s2 + $0x10] sm:$0xff] }
   0xe   : > { %9357 = vmatprep.mubr.msk.f32.mxu0 %vm385_vm0, %v377_v0  ;;  %s11289_s22 = smov 4   ;;  %s11290_s23 = smov 6   ;;  %v380_v15 = vld [vmem:[%s14291_s2 + $0x18] sm:$0xff]  ;;  %v381_v16 = vld [vmem:[%s14291_s2 + $0x20] sm:$0xff]  ;;  %v382_v17 = vld [vmem:[%s14291_s2 + $0x28] sm:$0xff]  ;;  %vm691_vm1 = vcmask 15360  }
   0xf   : > { %s14933_s14 = smov (!%p349_p3, %s7275_s14), 1  ;;  %s11291_s24 = smov 8   ;;  %v383_v18 = vld [vmem:[%s14291_s2 + $0x30] sm:$0xff]  ;;  %v384_v19 = vld [vmem:[%s14291_s2 + $0x38] sm:$0xff]  ;;  %vm700_vm2 = vcmask 31744   ;;  %vm709_vm3 = vcmask 48128  }
  0x10   : > { %s7547_s17 = sshll.u32 %s14933_s14, 6  ;;  %s11292_s15 = smov 10   ;;  %v7291_v42 = vld [vmem:[%s14294_s5 + $0x10] sm:$0xff]  ;;  %v7292_v43 = vld [vmem:[%s14294_s5 + $0x18] sm:$0xff]  ;;  %vm718_vm4 = vcmask 64512   ;;  %vm727_vm5 = vcmask 80896  }
  0x11   : > { %s353_s20 = scalar_lea.vmem %s14289_s0, %s7547_s17  ;;  %s11293_s26 = smov 12   ;;  %v7311_v44 = vld [vmem:[%s14294_s5 + $0x30] sm:$0xff]  ;;  %v9572_v45 = vpack.c.bf16 %v7292_v43, %v7291_v42  ;;  %v7312_v46 = vld [vmem:[%s14294_s5 + $0x38] sm:$0xff]  ;;  %vm736_vm6 = vcmask 97280   ;;  %vm745_vm7 = vcmask 113664   ;;  %vm1007_vm8 = vcmask 130048  }
  0x12   : > { %v11374_v1 = vld [vmem:[%s353_s20] sm:$0xff]  ;;  %v11376_v2 = vld [vmem:[%s353_s20 + $0x8] sm:$0xff]  ;;  %v11378_v3 = vld [vmem:[%s353_s20 + $0x10] sm:$0xff]  ;;  %s11294_s27 = smov 14   ;;  %v11596_v47 = vpack.c.bf16 %v7312_v46, %v7311_v44  ;;  %vm11296_vm9 = vmmov 0   ;;  %vm1266_vm10 = vcmask 261120  }
  0x13   : > { %v9556_v4 = vpack.c.bf16 %v11376_v2, %v11374_v1  ;;  %v11382_v5 = vld [vmem:[%s353_s20 + $0x18] sm:$0xff]  ;;  %525 = vrot.lane.b32.xlu0 %v11376_v2, %s11288_s21  ;;  %v11388_v7 = vld [vmem:[%s353_s20 + $0x20] sm:$0xff]  ;;  %v11390_v8 = vld [vmem:[%s353_s20 + $0x28] sm:$0xff]  ;;  %9573 = vmatprep.subr.bf16.mxu1 %v9572_v45  ;;  %s11297_s19 = smov 64   ;;  %s11299_s25 = smov 96   ;;  %vm2012_vm11 = vcmask 785408  }
  0x14   : > { %v9560_v6 = vpack.c.bf16 %v11382_v5, %v11378_v3  ;;  %523 = vrot.lane.b32.xlu1 %v11374_v1, %s11288_s21  ;;  %v9564_v9 = vpack.c.bf16 %v11390_v8, %v11388_v7  ;;  %v11398_v10 = vld [vmem:[%s353_s20 + $0x30] sm:$0xff]  ;;  %v11400_v11 = vld [vmem:[%s353_s20 + $0x38] sm:$0xff]  ;;  %9575 = vmatpush3.bf16.msra.mxu1 %v9572_v45  ;;  %s11298_s20 = smov 32   ;;  %s7282_s30 = sshll.u32 %s14933_s14, 3 }
  0x15   : > { %9557 = vmatprep.subr.bf16.mxu0 %v9556_v4  ;;  %14443 = vst [vmem:[#allocation5_spill] sm:$0xff] %v11398_v10  ;;  %14444 = vst [vmem:[#allocation6_spill] sm:$0xff] %v11400_v11  ;;  %v9568_v12 = vpack.c.bf16 %v11400_v11, %v11398_v10 }
  0x16   : > { %9559 = vmatpush3.bf16.msra.mxu0 %v9556_v4  ;;  %v7309_v4 = vld [vmem:[%s14294_s5 + $0x20] sm:$0xff] }
  0x17   : > { %9561 = vmatprep.subr.bf16.mxu0 %v9560_v6  ;;  %549 = vrot.lane.b32.xlu0 %v11376_v2, %s11289_s22 }
  0x18   : > { %547 = vrot.lane.b32.xlu1 %v11374_v1, %s11289_s22 }
  0x1a   : > { %9563 = vmatpush3.bf16.msra.mxu0 %v9560_v6  ;;  %v7310_v6 = vld [vmem:[%s14294_s5 + $0x28] sm:$0xff] }
  0x1b   : > { %9565 = vmatprep.subr.bf16.mxu0 %v9564_v9  ;;  %573 = vrot.lane.b32.xlu0 %v11376_v2, %s11290_s23 }
  0x1c   : > { %571 = vrot.lane.b32.xlu1 %v11374_v1, %s11290_s23 }
  0x1e   : > { %9567 = vmatpush3.bf16.msra.mxu0 %v9564_v9 }
  0x1f   : > { %9569 = vmatprep.subr.bf16.mxu0 %v9568_v12  ;;  %597 = vrot.lane.b32.xlu0 %v11376_v2, %s11291_s24 }
  0x20   : > { %595 = vrot.lane.b32.xlu1 %v11374_v1, %s11291_s24 }
  0x22   : > { %9571 = vmatpush3.bf16.msra.mxu0 %v9568_v12  ;;  %v11694_v12 = vpack.c.bf16 %v7310_v6, %v7309_v4 }
  0x23   : > { %529 = vrot.lane.b32.xlu0 %v11382_v5, %s11288_s21  ;;  %9581 = vmatprep.subr.bf16.mxu0 %v11596_v47 }
  0x24   : > { %527 = vrot.lane.b32.xlu1 %v11378_v3, %s11288_s21 }
  0x25   : > { %9358 = vmatmul.mubr.msk.f32.vlgmr.msra.gmra.mrb[0].mxu0 %vm385_vm0, %v378_v13 }
  0x26   : > { %9360 = vmatprep.mubr.msk.f32.mxu0 %vm385_vm0, %v379_v14  ;;  %9583 = vmatpush3.bf16.msra.mxu0 %v11596_v47 }
  0x27   : > { %621 = vrot.lane.b32.xlu0 %v11376_v2, %s11292_s15  ;;  %9585 = vmatprep.subr.bf16.mxu0 %v11694_v12 }
  0x28   : > { %619 = vrot.lane.b32.xlu1 %v11374_v1, %s11292_s15 }
  0x29   : > { %9361 = vmatmul.mubr.msk.f32.gmra.mrb[2].mxu0 %vm385_vm0, %v380_v15 }
  0x2a   : > { %9363 = vmatprep.mubr.msk.f32.mxu0 %vm385_vm0, %v381_v16 }
  0x2b   : > { %553 = vrot.lane.b32.xlu0 %v11382_v5, %s11289_s22 }
  0x2c   : > { %551 = vrot.lane.b32.xlu1 %v11378_v3, %s11289_s22 }
  0x2d   : > { %9364 = vmatmul.mubr.msk.f32.gmra.mrb[4].mxu0 %vm385_vm0, %v382_v17 }
  0x2e   : > { %9366 = vmatprep.mubr.msk.f32.mxu0 %vm385_vm0, %v383_v18 }
  0x2f   : > { %645 = vrot.lane.b32.xlu0 %v11376_v2, %s11293_s26 }
  0x30   : > { %643 = vrot.lane.b32.xlu1 %v11374_v1, %s11293_s26 }
  0x31   : > { %9367 = vmatmul.mubr.msk.f32.gmra.mrb[6].mxu0 %vm385_vm0, %v384_v19 }
  0x33   : > { %577 = vrot.lane.b32.xlu0 %v11382_v5, %s11290_s23 }
  0x34   : > { %575 = vrot.lane.b32.xlu1 %v11378_v3, %s11290_s23 }
  0x37   : > { %669 = vrot.lane.b32.xlu0 %v11376_v2, %s11294_s27 }
  0x38   : > { %667 = vrot.lane.b32.xlu1 %v11374_v1, %s11294_s27 }
  0x3b   : > { %601 = vrot.lane.b32.xlu0 %v11382_v5, %s11291_s24 }
  0x3c   : > { %599 = vrot.lane.b32.xlu1 %v11378_v3, %s11291_s24 }
  0x3f   : > { %533 = vrot.lane.b32.xlu0 %v11390_v8, %s11288_s21 }
  0x40   : > { %531 = vrot.lane.b32.xlu1 %v11388_v7, %s11288_s21 }
  0x43   : > { %625 = vrot.lane.b32.xlu0 %v11382_v5, %s11292_s15 }
  0x44   : > { %623 = vrot.lane.b32.xlu1 %v11378_v3, %s11292_s15 }
  0x47   : > { %557 = vrot.lane.b32.xlu0 %v11390_v8, %s11289_s22 }
  0x48   : > { %555 = vrot.lane.b32.xlu1 %v11388_v7, %s11289_s22 }
  0x4b   : > { %649 = vrot.lane.b32.xlu0 %v11382_v5, %s11293_s26 }
  0x4c   : > { %647 = vrot.lane.b32.xlu1 %v11378_v3, %s11293_s26 }
  0x4f   : > { %581 = vrot.lane.b32.xlu0 %v11390_v8, %s11290_s23 }
  0x50   : > { %579 = vrot.lane.b32.xlu1 %v11388_v7, %s11290_s23 }
  0x53   : > { %673 = vrot.lane.b32.xlu0 %v11382_v5, %s11294_s27 }
  0x54   : > { %671 = vrot.lane.b32.xlu1 %v11378_v3, %s11294_s27 }
  0x57   : > { %605 = vrot.lane.b32.xlu0 %v11390_v8, %s11291_s24 }
  0x58   : > { %603 = vrot.lane.b32.xlu1 %v11388_v7, %s11291_s24 }
  0x5b   : > { %537 = vrot.lane.b32.xlu0 %v11400_v11, %s11288_s21 }
  0x5c   : > { %535 = vrot.lane.b32.xlu1 %v11398_v10, %s11288_s21 }
  0x5f   : > { %629 = vrot.lane.b32.xlu0 %v11390_v8, %s11292_s15 }
  0x60   : > { %627 = vrot.lane.b32.xlu1 %v11388_v7, %s11292_s15 }
  0x63   : > { %561 = vrot.lane.b32.xlu0 %v11400_v11, %s11289_s22 }
  0x64   : > { %559 = vrot.lane.b32.xlu1 %v11398_v10, %s11289_s22 }
  0x67   : > { %653 = vrot.lane.b32.xlu0 %v11390_v8, %s11293_s26 }
  0x68   : > { %651 = vrot.lane.b32.xlu1 %v11388_v7, %s11293_s26 }
  0x6b   : > { %585 = vrot.lane.b32.xlu0 %v11400_v11, %s11290_s23 }
  0x6c   : > { %583 = vrot.lane.b32.xlu1 %v11398_v10, %s11290_s23 }
  0x70   : > { %675 = vrot.lane.b32.xlu1 %v11388_v7, %s11294_s27 }
  0x85   : > { %v11524_v22 = vpop.permute.xlu0 %525 }
  0x86   : > { %v11520_v20 = vpop.permute.xlu1 %523 }
  0x89   : > { %v11528_v24 = vpop.permute.xlu0 %549 }
  0x8a   : > { %v11522_v21 = vpop.permute.xlu1 %547 }
  0x8d   : > { %v11532_v26 = vpop.permute.xlu0 %573 }
  0x8e   : > { %v11526_v23 = vpop.permute.xlu1 %571 }
  0x91   : > { %v11538_v29 = vpop.permute.xlu0 %597 }
  0x92   : > { %v11530_v25 = vpop.permute.xlu1 %595 }
  0x95   : > { %v11556_v34 = vpop.permute.xlu0 %529 }
  0x96   : > { %v11534_v27 = vpop.permute.xlu1 %527 }
  0x99   : > { %v11570_v39 = vpop.permute.xlu0 %621 }
  0x9a   : > { %v11546_v31 = vpop.permute.xlu1 %619 }
  0x9d   : > { %v11598_v48 = vpop.permute.xlu0 %553 }
  0x9e   : > { %v11560_v36 = vpop.permute.xlu1 %551 }
  0xa1   : > { %v11608_v50 = vpop.permute.xlu0 %645 }
  0xa2   : > { %v11578_v41 = vpop.permute.xlu1 %643 }
  0xa5   : > { %v11620_v52 = vpop.permute.xlu0 %577 }
  0xa6   : > { %v11601_v49 = vpop.permute.xlu1 %575 }
  0xa9   : > { %v11628_v54 = vpop.permute.xlu0 %669 }
  0xaa   : > { %v11614_v51 = vpop.permute.xlu1 %667  ;;  %14447 = vst [vmem:[#allocation9_spill] sm:$0xff] %v11628_v54 }
  0xad   : > { %v11640_v56 = vpop.permute.xlu0 %601 }
  0xae   : > { %v11622_v53 = vpop.permute.xlu1 %599 }
  0xb1   : > { %v11648_v58 = vpop.permute.xlu0 %533 }
  0xb2   : > { %v11634_v55 = vpop.permute.xlu1 %531 }
  0xb5   : > { %v11660_v60 = vpop.permute.xlu0 %625 }
  0xb6   : > { %v11642_v57 = vpop.permute.xlu1 %623  ;;  %14448 = vst [vmem:[#allocation10_spill] sm:$0xff] %v11660_v60 }
  0xb9   : > { %v11668_v62 = vpop.permute.xlu0 %557 }
  0xba   : > { %v11654_v59 = vpop.permute.xlu1 %555 }
  0xbd   : > { %v11680_v0 = vpop.permute.xlu0 %649 }
  0xbe   : > { %v11662_v61 = vpop.permute.xlu1 %647  ;;  %14450 = vst [vmem:[#allocation12_spill] sm:$0xff] %v11680_v0 }
  0xbf   : > { %14449 = vst [vmem:[#allocation11_spill] sm:$0xff] %v11662_v61 }
  0xc1   : > { %v11697_v13 = vpop.permute.xlu0 %581 }
  0xc2   : > { %v11674_v63 = vpop.permute.xlu1 %579  ;;  %14452 = vst [vmem:[#allocation14_spill] sm:$0xff] %v11697_v13 }
  0xc5   : > { %v11709_v15 = vpop.permute.xlu0 %673 }
  0xc6   : > { %v11688_v9 = vpop.permute.xlu1 %671  ;;  %14453 = vst [vmem:[#allocation15_spill] sm:$0xff] %v11709_v15 }
  0xc7   : > { %14451 = vst [vmem:[#allocation13_spill] sm:$0xff] %v11688_v9 }
  0xc9   : > { %v11717_v17 = vpop.permute.xlu0 %605 }
  0xca   : > { %v11703_v14 = vpop.permute.xlu1 %603  ;;  %14455 = vst [vmem:[#allocation17_spill] sm:$0xff] %v11717_v17 }
  0xcd   : > { %v11725_v19 = vpop.permute.xlu0 %537 }
  0xce   : > { %v11711_v16 = vpop.permute.xlu1 %535  ;;  %14457 = vst [vmem:[#allocation19_spill] sm:$0xff] %v11725_v19 }
  0xcf   : > { %14454 = vst [vmem:[#allocation16_spill] sm:$0xff] %v11711_v16 }
  0xd1   : > { %v11737_v43 = vpop.permute.xlu0 %629 }
  0xd2   : > { %v11723_v18 = vpop.permute.xlu1 %627  ;;  %14459 = vst [vmem:[#allocation21_spill] sm:$0xff] %v11737_v43 }
  0xd3   : > { %14456 = vst [vmem:[#allocation18_spill] sm:$0xff] %v11723_v18 }
  0xd5   : > { %v11745_v45 = vpop.permute.xlu0 %561 }
  0xd6   : > { %v11731_v42 = vpop.permute.xlu1 %559  ;;  %14461 = vst [vmem:[#allocation23_spill] sm:$0xff] %v11745_v45 }
  0xd7   : > { %14458 = vst [vmem:[#allocation20_spill] sm:$0xff] %v11731_v42 }
  0xd9   : > { %v11757_v4 = vpop.permute.xlu0 %653 }
  0xda   : > { %v11743_v44 = vpop.permute.xlu1 %651  ;;  %14463 = vst [vmem:[#allocation25_spill] sm:$0xff] %v11757_v4  ;;  %v1002_v4 = vld [vmem:[%s14294_s5] sm:$0xff] }
  0xdb   : > { %14460 = vst [vmem:[#allocation22_spill] sm:$0xff] %v11743_v44 }
  0xdd   : > { %v11765_v42 = vpop.permute.xlu0 %585 }
  0xde   : > { %v11751_v46 = vpop.permute.xlu1 %583  ;;  %14465 = vst [vmem:[#allocation27_spill] sm:$0xff] %v11765_v42  ;;  %v1003_v42 = vld [vmem:[%s14294_s5 + $0x8] sm:$0xff] }
  0xdf   : > { %14462 = vst [vmem:[#allocation24_spill] sm:$0xff] %v11751_v46 }
  0xe2   : > { %v11763_v6 = vpop.permute.xlu1 %675 }
  0xe3   : > { %14464 = vst [vmem:[#allocation26_spill] sm:$0xff] %v11763_v6  ;;  %v9576_v6 = vpack.c.bf16 %v1003_v42, %v1002_v4 }
  0xe5   : > { %9577 = vmatprep.subr.bf16.mxu1 %v9576_v6 }
  0xf8   : > { %v11536_v28 = vpop.f32.mrb[0].mxu0 }
  0xf9   : > { %796 = vrot.lane.b32.xlu1 %v11536_v28, %s11289_s22  ;;  %772 = vrot.lane.b32.xlu0 %v11536_v28, %s11288_s21  ;;  %v11544_v30 = vpop.f32.mrb[1].mxu0 }
  0xfc   : > { %v11548_v32 = vpop.f32.mrb[2].mxu0 }
  0xfd   : > { %820 = vrot.lane.b32.xlu1 %v11536_v28, %s11290_s23  ;;  %844 = vrot.lane.b32.xlu0 %v11536_v28, %s11291_s24  ;;  %v11554_v33 = vpop.f32.mrb[3].mxu0 }
 0x100   : > { %v11558_v35 = vpop.f32.mrb[4].mxu0 }
 0x101   : > { %868 = vrot.lane.b32.xlu0 %v11536_v28, %s11292_s15  ;;  %794 = vrot.lane.b32.xlu1 %v11544_v30, %s11289_s22  ;;  %v11566_v37 = vpop.f32.mrb[5].mxu0 }
 0x104   : > { %v11568_v38 = vpop.f32.mrb[6].mxu0 }
 0x105   : > { %14445 = vst [vmem:[#allocation7_spill] sm:$0xff] %v11568_v38  ;;  %892 = vrot.lane.b32.xlu0 %v11536_v28, %s11293_s26  ;;  %866 = vrot.lane.b32.xlu1 %v11544_v30, %s11292_s15  ;;  %v11576_v40 = vpop.f32.mrb[7].mxu0 }
 0x106   : > { %14446 = vst [vmem:[#allocation8_spill] sm:$0xff] %v11576_v40 }
 0x109   : > { %916 = vrot.lane.b32.xlu0 %v11536_v28, %s11294_s27  ;;  %890 = vrot.lane.b32.xlu1 %v11544_v30, %s11293_s26 }
 0x10d   : > { %914 = vrot.lane.b32.xlu1 %v11544_v30, %s11294_s27  ;;  %770 = vrot.lane.b32.xlu0 %v11544_v30, %s11288_s21 }
 0x111   : > { %818 = vrot.lane.b32.xlu0 %v11544_v30, %s11290_s23  ;;  %774 = vrot.lane.b32.xlu1 %v11554_v33, %s11288_s21 }
 0x115   : > { %842 = vrot.lane.b32.xlu0 %v11544_v30, %s11291_s24  ;;  %798 = vrot.lane.b32.xlu1 %v11554_v33, %s11289_s22 }
 0x119   : > { %776 = vrot.lane.b32.xlu0 %v11548_v32, %s11288_s21  ;;  %822 = vrot.lane.b32.xlu1 %v11554_v33, %s11290_s23 }
 0x11d   : > { %800 = vrot.lane.b32.xlu0 %v11548_v32, %s11289_s22  ;;  %846 = vrot.lane.b32.xlu1 %v11554_v33, %s11291_s24 }
 0x121   : > { %824 = vrot.lane.b32.xlu0 %v11548_v32, %s11290_s23  ;;  %870 = vrot.lane.b32.xlu1 %v11554_v33, %s11292_s15 }
 0x125   : > { %848 = vrot.lane.b32.xlu0 %v11548_v32, %s11291_s24  ;;  %894 = vrot.lane.b32.xlu1 %v11554_v33, %s11293_s26 }
 0x129   : > { %872 = vrot.lane.b32.xlu0 %v11548_v32, %s11292_s15  ;;  %918 = vrot.lane.b32.xlu1 %v11554_v33, %s11294_s27 }
 0x12d   : > { %896 = vrot.lane.b32.xlu0 %v11548_v32, %s11293_s26  ;;  %778 = vrot.lane.b32.xlu1 %v11566_v37, %s11288_s21 }
 0x131   : > { %920 = vrot.lane.b32.xlu0 %v11548_v32, %s11294_s27  ;;  %802 = vrot.lane.b32.xlu1 %v11566_v37, %s11289_s22 }
 0x135   : > { %780 = vrot.lane.b32.xlu0 %v11558_v35, %s11288_s21  ;;  %826 = vrot.lane.b32.xlu1 %v11566_v37, %s11290_s23 }
 0x139   : > { %804 = vrot.lane.b32.xlu0 %v11558_v35, %s11289_s22  ;;  %850 = vrot.lane.b32.xlu1 %v11566_v37, %s11291_s24 }
 0x13d   : > { %828 = vrot.lane.b32.xlu0 %v11558_v35, %s11290_s23  ;;  %874 = vrot.lane.b32.xlu1 %v11566_v37, %s11292_s15 }
 0x141   : > { %852 = vrot.lane.b32.xlu0 %v11558_v35, %s11291_s24  ;;  %898 = vrot.lane.b32.xlu1 %v11566_v37, %s11293_s26 }
 0x145   : > { %876 = vrot.lane.b32.xlu0 %v11558_v35, %s11292_s15  ;;  %922 = vrot.lane.b32.xlu1 %v11566_v37, %s11294_s27 }
 0x149   : > { %900 = vrot.lane.b32.xlu0 %v11558_v35, %s11293_s26  ;;  %607 = vrot.lane.b32.xlu1 %v11398_v10, %s11291_s24 }
 0x14d   : > { %924 = vrot.lane.b32.xlu0 %v11558_v35, %s11294_s27  ;;  %609 = vrot.lane.b32.xlu1 %v11400_v11, %s11291_s24 }
 0x151   : > { %677 = vrot.lane.b32.xlu0 %v11390_v8, %s11294_s27  ;;  %633 = vrot.lane.b32.xlu1 %v11400_v11, %s11292_s15 }
 0x155   : > { %631 = vrot.lane.b32.xlu0 %v11398_v10, %s11292_s15  ;;  %657 = vrot.lane.b32.xlu1 %v11400_v11, %s11293_s26 }
 0x159   : > { %655 = vrot.lane.b32.xlu0 %v11398_v10, %s11293_s26  ;;  %681 = vrot.lane.b32.xlu1 %v11400_v11, %s11294_s27 }
 0x15d   : > { %679 = vrot.lane.b32.xlu0 %v11398_v10, %s11294_s27  ;;  %784 = vrot.lane.b32.xlu1 %v11568_v38, %s11288_s21 }
 0x161   : > { %782 = vrot.lane.b32.xlu0 %v11576_v40, %s11288_s21  ;;  %808 = vrot.lane.b32.xlu1 %v11568_v38, %s11289_s22 }
 0x165   : > { %806 = vrot.lane.b32.xlu0 %v11576_v40, %s11289_s22  ;;  %832 = vrot.lane.b32.xlu1 %v11568_v38, %s11290_s23 }
 0x169   : > { %830 = vrot.lane.b32.xlu0 %v11576_v40, %s11290_s23  ;;  %856 = vrot.lane.b32.xlu1 %v11568_v38, %s11291_s24 }
 0x16b   : > { %v797_v46 = vpop.permute.xlu1 %796  ;;  %v773_v45 = vpop.permute.xlu0 %772 }
 0x16c   : > { %v939_v9 = vsel %vm691_vm1, %v11536_v28, %v773_v45 }
 0x16d   : > { %854 = vrot.lane.b32.xlu0 %v11576_v40, %s11291_s24  ;;  %880 = vrot.lane.b32.xlu1 %v11568_v38, %s11292_s15  ;;  %v947_v0 = vsel %vm700_vm2, %v939_v9, %v797_v46 }
 0x16f   : > { %v821_v43 = vpop.permute.xlu1 %820  ;;  %v845_v10 = vpop.permute.xlu0 %844 }
 0x170   : > { %v955_v13 = vsel %vm709_vm3, %v947_v0, %v821_v43 }
 0x171   : > { %878 = vrot.lane.b32.xlu0 %v11576_v40, %s11292_s15  ;;  %904 = vrot.lane.b32.xlu1 %v11568_v38, %s11293_s26  ;;  %v963_v61 = vsel %vm718_vm4, %v955_v13, %v845_v10  ;;  %v11809_v10 = vld [vmem:[%s14293_s4] sm:$0xff] }
 0x173   : > { %v869_v16 = vpop.permute.xlu0 %868  ;;  %v795_v15 = vpop.permute.xlu1 %794 }
 0x174   : > { %v971_v9 = vsel %vm727_vm5, %v963_v61, %v869_v16 }
 0x175   : > { %902 = vrot.lane.b32.xlu0 %v11576_v40, %s11293_s26  ;;  %928 = vrot.lane.b32.xlu1 %v11568_v38, %s11294_s27 }
 0x177   : > { %v893_v11 = vpop.permute.xlu0 %892  ;;  %v867_v19 = vpop.permute.xlu1 %866 }
 0x179   : > { %926 = vrot.lane.b32.xlu0 %v11576_v40, %s11294_s27  ;;  %s357_s27 = scalar_lea.vmem %s14299_s10, %s7282_s30 }
 0x17b   : > { %v917_v42 = vpop.permute.xlu0 %916  ;;  %v891_v4 = vpop.permute.xlu1 %890 }
 0x17f   : > { %v915_v44 = vpop.permute.xlu1 %914  ;;  %v771_v17 = vpop.permute.xlu0 %770 }
 0x180   : > { %v938_v38 = vsel %vm691_vm1, %v11544_v30, %v771_v17  ;;  %v979_v30 = vsel %vm736_vm6, %v971_v9, %v893_v11  ;;  %v11815_v11 = vld [vmem:[%s14293_s4 + $0x8] sm:$0xff] }
 0x181   : > { %v946_v40 = vsel %vm700_vm2, %v938_v38, %v795_v15  ;;  %v987_v17 = vsel %vm745_vm7, %v979_v30, %v917_v42 }
 0x182   : > { %v11821_v13 = vmul.f32 %v987_v17, %v11815_v11 }
 0x183   : > { %v819_v54 = vpop.permute.xlu0 %818  ;;  %v775_v18 = vpop.permute.xlu1 %774 }
 0x184   : > { %v954_v60 = vsel %vm709_vm3, %v946_v40, %v819_v54  ;;  %v940_v42 = vsel %vm691_vm1, %v11554_v33, %v775_v18 }
 0x187   : > { %v843_v28 = vpop.permute.xlu0 %842  ;;  %v799_v45 = vpop.permute.xlu1 %798 }
 0x188   : > { %v962_v46 = vsel %vm718_vm4, %v954_v60, %v843_v28 }
 0x189   : > { %v970_v0 = vsel %vm727_vm5, %v962_v46, %v867_v19  ;;  %v14304_v19 = vmov 0.0  }
 0x18a   : > { %v978_v38 = vsel %vm736_vm6, %v970_v0, %v891_v4  ;;  %v948_v4 = vsel %vm700_vm2, %v940_v42, %v799_v45 }
 0x18b   : > { %v777_v40 = vpop.permute.xlu0 %776  ;;  %v823_v54 = vpop.permute.xlu1 %822  ;;  %v986_v61 = vsel %vm745_vm7, %v978_v38, %v915_v44  ;;  %v11844_v38 = vld [vmem:[%s14293_s4 + $0x10] sm:$0xff] }
 0x18c   : > { %v11818_v60 = vmul.f32 %v986_v61, %v11809_v10  ;;  %v956_v46 = vsel %vm709_vm3, %v948_v4, %v823_v54  ;;  %v941_v45 = vsel %vm691_vm1, %v11548_v32, %v777_v40  ;;  %v11864_v40 = vld [vmem:[%s14293_s4 + $0x18] sm:$0xff] }
 0x18e   : > { %9373 = vmatprep.mubr.msk.f32.mxu1 %vm1007_vm8, %v11818_v60  ;;  %9405 = vmatprep.mubr.msk.f32.mxu0 %vm1007_vm8, %v11818_v60 }
 0x18f   : > { %9374 = vmatmul.mubr.msk.f32.vlgmr.msra.gmra.mrb[0].mxu1 %vm1007_vm8, %v11821_v13  ;;  %9406 = vmatmul.mubr.msk.f32.vlgmr.msra.gmra.mrb[8].mxu0 %vm1007_vm8, %v11821_v13  ;;  %v801_v15 = vpop.permute.xlu0 %800  ;;  %v847_v16 = vpop.permute.xlu1 %846 }
 0x190   : > { %9587 = vmatpush3.bf16.msra.mxu0 %v11694_v12  ;;  %9579 = vmatpush3.bf16.msra.mxu1 %v9576_v6  ;;  %v964_v30 = vsel %vm718_vm4, %v956_v46, %v847_v16  ;;  %v949_v54 = vsel %vm700_vm2, %v941_v45, %v801_v15  ;;  %v693_v45 = vsel %vm691_vm1, %v11376_v2, %v11524_v22 }
 0x191   : > { %9465 = vmatprep.subr.mxu0 %v14304_v19  ;;  %11138 = vmatprep.subr.bf16.mxu1 %v11596_v47 }
 0x193   : > { %v825_v43 = vpop.permute.xlu0 %824  ;;  %v871_v44 = vpop.permute.xlu1 %870 }
 0x194   : > { %v972_v12 = vsel %vm727_vm5, %v964_v30, %v871_v44  ;;  %v957_v44 = vsel %vm709_vm3, %v949_v54, %v825_v43 }
 0x197   : > { %v849_v28 = vpop.permute.xlu0 %848  ;;  %v895_v9 = vpop.permute.xlu1 %894 }
 0x198   : > { %v980_v6 = vsel %vm736_vm6, %v972_v12, %v895_v9  ;;  %v965_v42 = vsel %vm718_vm4, %v957_v44, %v849_v28 }
 0x19b   : > { %v873_v0 = vpop.permute.xlu0 %872  ;;  %v919_v17 = vpop.permute.xlu1 %918 }
 0x19c   : > { %v988_v33 = vsel %vm745_vm7, %v980_v6, %v919_v17  ;;  %v973_v4 = vsel %vm727_vm5, %v965_v42, %v873_v0  ;;  %v692_v0 = vsel %vm691_vm1, %v11374_v1, %v11520_v20  ;;  %v702_v42 = vsel %vm700_vm2, %v693_v45, %v11528_v24  ;;  %v14466_v45 = vld [vmem:[#allocation10_spill] sm:$0xff] }
 0x19d   : > { %v11848_v18 = vmul.f32 %v988_v33, %v11844_v38  ;;  %v701_v54 = vsel %vm700_vm2, %v692_v0, %v11522_v21  ;;  %v695_v21 = vsel %vm691_vm1, %v11382_v5, %v11556_v34  ;;  %v696_v24 = vsel %vm691_vm1, %v11388_v7, %v11634_v55 }
 0x19e   : > { %v710_v1 = vsel %vm709_vm3, %v701_v54, %v11526_v23  ;;  %v711_v23 = vsel %vm709_vm3, %v702_v42, %v11532_v26  ;;  %v704_v5 = vsel %vm700_vm2, %v695_v21, %v11598_v48  ;;  %v705_v55 = vsel %vm700_vm2, %v696_v24, %v11654_v59  ;;  %v11917_v26 = vld [vmem:[%s14293_s4 + $0x20] sm:$0xff] }
 0x19f   : > { %v897_v61 = vpop.permute.xlu0 %896  ;;  %9376 = vmatprep.mubr.msk.f32.mxu1 %vm1007_vm8, %v11848_v18  ;;  %9408 = vmatprep.mubr.msk.f32.mxu0 %vm1007_vm8, %v11848_v18  ;;  %v779_v16 = vpop.permute.xlu1 %778  ;;  %v720_v48 = vsel %vm718_vm4, %v711_v23, %v11538_v29  ;;  %v714_v29 = vsel %vm709_vm3, %v705_v55, %v11674_v63  ;;  %v14472_v24 = vld [vmem:[#allocation13_spill] sm:$0xff] }
 0x1a0   : > { %v981_v9 = vsel %vm736_vm6, %v973_v4, %v897_v61  ;;  %v694_v61 = vsel %vm691_vm1, %v11378_v3, %v11534_v27  ;;  %v942_v44 = vsel %vm691_vm1, %v11566_v37, %v779_v16  ;;  %v719_v37 = vsel %vm718_vm4, %v710_v1, %v11530_v25  ;;  %v14473_v23 = vld [vmem:[#allocation17_spill] sm:$0xff] }
 0x1a1   : > { %v703_v3 = vsel %vm700_vm2, %v694_v61, %v11560_v36  ;;  %v723_v0 = vsel %vm718_vm4, %v714_v29, %v11703_v14  ;;  %v14467_v14 = vld [vmem:[#allocation11_spill] sm:$0xff] }
 0x1a2   : > { %v712_v34 = vsel %vm709_vm3, %v703_v3, %v11601_v49  ;;  %v728_v49 = vsel %vm727_vm5, %v719_v37, %v11546_v31  ;;  %v14471_v3 = vld [vmem:[#allocation12_spill] sm:$0xff] }
 0x1a3   : > { %v921_v46 = vpop.permute.xlu0 %920  ;;  %v803_v32 = vpop.permute.xlu1 %802  ;;  %v721_v59 = vsel %vm718_vm4, %v712_v34, %v11622_v53  ;;  %v729_v53 = vsel %vm727_vm5, %v720_v48, %v11570_v39  ;;  %v14474_v34 = vld [vmem:[#allocation22_spill] sm:$0xff] }
 0x1a4   : > { %v989_v15 = vsel %vm745_vm7, %v981_v9, %v921_v46  ;;  %v950_v20 = vsel %vm700_vm2, %v942_v44, %v803_v32  ;;  %v713_v32 = vsel %vm709_vm3, %v704_v5, %v11620_v52  ;;  %v730_v63 = vsel %vm727_vm5, %v721_v59, %v11642_v57  ;;  %v14468_v44 = vld [vmem:[#allocation14_spill] sm:$0xff]  ;;  %v14479_v59 = vld [vmem:[#allocation5_spill] sm:$0xff] }
 0x1a5   : > { %v11868_v30 = vmul.f32 %v989_v15, %v11864_v40  ;;  %v697_v15 = vsel %vm691_vm1, %v11390_v8, %v11648_v58  ;;  %v737_v8 = vsel %vm736_vm6, %v728_v49, %v11578_v41  ;;  %v722_v58 = vsel %vm718_vm4, %v713_v32, %v11640_v56  ;;  %v374_v41 = vld [vmem:[%s14293_s4 + $0x28] sm:$0xff]  ;;  %v14478_v32 = vld [vmem:[#allocation16_spill] sm:$0xff] }
 0x1a6   : > { %v738_v56 = vsel %vm736_vm6, %v729_v53, %v11608_v50  ;;  %v746_v57 = vsel %vm745_vm7, %v737_v8, %v11614_v51  ;;  %v731_v54 = vsel %vm727_vm5, %v722_v58, %v14466_v45  ;;  %v739_v61 = vsel %vm736_vm6, %v730_v63, %v14467_v14  ;;  %v14470_v51 = vld [vmem:[#allocation9_spill] sm:$0xff]  ;;  %v14482_v8 = vld [vmem:[#allocation23_spill] sm:$0xff]  ;;  %v14483_v58 = vld [vmem:[#allocation20_spill] sm:$0xff] }
 0x1a7   : > { %9377 = vmatmul.mubr.msk.f32.gmra.mrb[2].mxu1 %vm1007_vm8, %v11868_v30  ;;  %9409 = vmatmul.mubr.msk.f32.gmra.mrb[10].mxu0 %vm1007_vm8, %v11868_v30  ;;  %v781_v43 = vpop.permute.xlu0 %780  ;;  %v827_v28 = vpop.permute.xlu1 %826  ;;  %v11980_v21 = vmul.f32 %v746_v57, %v11809_v10 }
 0x1a8   : > { %v958_v22 = vsel %vm709_vm3, %v950_v20, %v827_v28  ;;  %v943_v28 = vsel %vm691_vm1, %v11558_v35, %v781_v43  ;;  %v706_v43 = vsel %vm700_vm2, %v697_v15, %v11668_v62  ;;  %v14469_v20 = vld [vmem:[#allocation18_spill] sm:$0xff]  ;;  %v698_v15 = vsel %vm691_vm1, %v14479_v59, %v14478_v32 }
 0x1a9   : > { %v715_v42 = vsel %vm709_vm3, %v706_v43, %v14468_v44  ;;  %v732_v50 = vsel %vm727_vm5, %v723_v0, %v14469_v20  ;;  %v707_v63 = vsel %vm700_vm2, %v698_v15, %v14483_v58  ;;  %v14484_v43 = vld [vmem:[#allocation25_spill] sm:$0xff] }
 0x1aa   : > { %v724_v37 = vsel %vm718_vm4, %v715_v42, %v14473_v23  ;;  %v741_v10 = vsel %vm736_vm6, %v732_v50, %v14474_v34  ;;  %v14487_v23 = vld [vmem:[#allocation7_spill] sm:$0xff]  ;;  %v14488_v34 = vld [vmem:[#allocation8_spill] sm:$0xff] }
 0x1ab   : > { %v805_v12 = vpop.permute.xlu0 %804  ;;  %v851_v6 = vpop.permute.xlu1 %850 }
 0x1ac   : > { %v966_v27 = vsel %vm718_vm4, %v958_v22, %v851_v6  ;;  %v951_v31 = vsel %vm700_vm2, %v943_v28, %v805_v12  ;;  %v740_v22 = vsel %vm736_vm6, %v731_v54, %v14471_v3  ;;  %v14480_v28 = vld [vmem:[#allocation21_spill] sm:$0xff] }
 0x1ad   : > { %v733_v29 = vsel %vm727_vm5, %v724_v37, %v14480_v28 }
 0x1af   : > { %v829_v17 = vpop.permute.xlu0 %828  ;;  %v875_v33 = vpop.permute.xlu1 %874 }
 0x1b0   : > { %v974_v16 = vsel %vm727_vm5, %v966_v27, %v875_v33  ;;  %v959_v35 = vsel %vm709_vm3, %v951_v31, %v829_v17  ;;  %v748_v27 = vsel %vm745_vm7, %v739_v61, %v14472_v24  ;;  %v14481_v31 = vld [vmem:[#allocation26_spill] sm:$0xff] }
 0x1b1   : > { %v12005_v49 = vmul.f32 %v748_v27, %v11844_v38  ;;  %v12071_v27 = vld [vmem:[%s14290_s1] sm:$0xff] }
 0x1b3   : > { %v853_v4 = vpop.permute.xlu0 %852  ;;  %v899_v2 = vpop.permute.xlu1 %898 }
 0x1b4   : > { %v982_v36 = vsel %vm736_vm6, %v974_v16, %v899_v2  ;;  %v967_v12 = vsel %vm718_vm4, %v959_v35, %v853_v4  ;;  %v747_v2 = vsel %vm745_vm7, %v738_v56, %v14470_v51  ;;  %v14485_v56 = vld [vmem:[#allocation27_spill] sm:$0xff] }
 0x1b7   : > { %v877_v9 = vpop.permute.xlu0 %876  ;;  %v923_v7 = vpop.permute.xlu1 %922 }
 0x1b8   : > { %v990_v25 = vsel %vm745_vm7, %v982_v36, %v923_v7  ;;  %v975_v39 = vsel %vm727_vm5, %v967_v12, %v877_v9  ;;  %v11997_v36 = vmul.f32 %v747_v2, %v11815_v11  ;;  %v14475_v9 = vld [vmem:[#allocation19_spill] sm:$0xff]  ;;  %v14476_v7 = vld [vmem:[#allocation6_spill] sm:$0xff]  ;;  %v750_v11 = vsel %vm745_vm7, %v741_v10, %v14481_v31 }
 0x1b9   : > { %v11925_v46 = vmul.f32 %v990_v25, %v11917_v26  ;;  %v699_v55 = vsel %vm691_vm1, %v14476_v7, %v14475_v9  ;;  %v14477_v25 = vld [vmem:[#allocation15_spill] sm:$0xff]  ;;  %v742_v12 = vsel %vm736_vm6, %v733_v29, %v14484_v43  ;;  %v12029_v0 = vmul.f32 %v750_v11, %v11917_v26 }
 0x1ba   : > { %v749_v48 = vsel %vm745_vm7, %v740_v22, %v14477_v25  ;;  %v708_v35 = vsel %vm700_vm2, %v699_v55, %v14482_v8 }
 0x1bb   : > { %v901_v6 = vpop.permute.xlu0 %900  ;;  %9379 = vmatprep.mubr.msk.f32.mxu1 %vm1007_vm8, %v11925_v46  ;;  %9411 = vmatprep.mubr.msk.f32.mxu0 %vm1007_vm8, %v11925_v46  ;;  %v608_v52 = vpop.permute.xlu1 %607  ;;  %v12022_v38 = vmul.f32 %v749_v48, %v11864_v40  ;;  %v717_v57 = vsel %vm709_vm3, %v708_v35, %v14485_v56 }
 0x1bc   : > { %v983_v17 = vsel %vm736_vm6, %v975_v39, %v901_v6 }
 0x1bf   : > { %v925_v62 = vpop.permute.xlu0 %924  ;;  %v610_v33 = vpop.permute.xlu1 %609 }
 0x1c0   : > { %v991_v1 = vsel %vm745_vm7, %v983_v17, %v925_v62  ;;  %v14486_v62 = vld [vmem:[#allocation24_spill] sm:$0xff]  ;;  %v726_v54 = vsel %vm718_vm4, %v717_v57, %v610_v33 }
 0x1c1   : > { %v11975_v4 = vmul.f32 %v991_v1, %v374_v41  ;;  %v716_v45 = vsel %vm709_vm3, %v707_v63, %v14486_v62  ;;  %v375_v1 = vld [vmem:[%s14293_s4 + $0x30] sm:$0xff]  ;;  %v376_v33 = vld [vmem:[%s14293_s4 + $0x38] sm:$0xff] }
 0x1c2   : > { %v725_v26 = vsel %vm718_vm4, %v716_v45, %v608_v52  ;;  %v7329_v45 = vld [vmem:[%s14294_s5 + $0x40] sm:$0xff] }
 0x1c3   : > { %v678_v16 = vpop.permute.xlu0 %677  ;;  %9380 = vmatmul.mubr.msk.f32.gmra.mrb[4].mxu1 %vm1007_vm8, %v11975_v4  ;;  %9412 = vmatmul.mubr.msk.f32.gmra.mrb[12].mxu0 %vm1007_vm8, %v11975_v4  ;;  %v634_v5 = vpop.permute.xlu1 %633 }
 0x1c4   : > { %9421 = vmatprep.mubr.msk.f32.mxu0 %vm1007_vm8, %v11980_v21  ;;  %v751_v39 = vsel %vm745_vm7, %v742_v12, %v678_v16  ;;  %v735_v61 = vsel %vm727_vm5, %v726_v54, %v634_v5 }
 0x1c5   : > { %v12042_v14 = vmul.f32 %v751_v39, %v374_v41 }
 0x1c7   : > { %v632_v6 = vpop.permute.xlu0 %631  ;;  %9422 = vmatmul.mubr.msk.f32.vlgmr.msra.gmra.mrb[8].mxu0 %vm1007_vm8, %v11997_v36  ;;  %v658_v53 = vpop.permute.xlu1 %657 }
 0x1c8   : > { %9424 = vmatprep.mubr.msk.f32.mxu0 %vm1007_vm8, %v12005_v49  ;;  %9466 = vmatpush3.msra.mxu0 %v14304_v19  ;;  %v734_v44 = vsel %vm727_vm5, %v725_v26, %v632_v6  ;;  %v744_v42 = vsel %vm736_vm6, %v735_v61, %v658_v53  ;;  %v1739_v26 = vld [vmem:[%s14295_s6 + $0x80] sm:$0xff]  ;;  %v1740_v61 = vld [vmem:[%s14295_s6 + $0x88] sm:$0xff] }
 0x1cb   : > { %v656_v17 = vpop.permute.xlu0 %655  ;;  %9425 = vmatmul.mubr.msk.f32.gmra.mrb[10].mxu0 %vm1007_vm8, %v12022_v38  ;;  %v682_v40 = vpop.permute.xlu1 %681 }
 0x1cc   : > { %9427 = vmatprep.mubr.msk.f32.mxu0 %vm1007_vm8, %v12029_v0  ;;  %v743_v20 = vsel %vm736_vm6, %v734_v44, %v656_v17  ;;  %v753_v52 = vsel %vm745_vm7, %v744_v42, %v682_v40  ;;  %v7331_v17 = vld [vmem:[%s14294_s5 + $0x50] sm:$0xff]  ;;  %v7332_v40 = vld [vmem:[%s14294_s5 + $0x58] sm:$0xff]  ;;  %v12132_v44 = vpack.c.bf16 %v1740_v61, %v1739_v26  ;;  %v7401_v61 = vld [vmem:[%s14295_s6 + $0x2a0] sm:$0xff] }
 0x1cd   : > { %v12060_v3 = vmul.f32 %v753_v52, %v376_v33  ;;  %v9588_v62 = vpack.c.bf16 %v7332_v40, %v7331_v17  ;;  %v1725_v42 = vld [vmem:[%s14295_s6 + $0x10] sm:$0xff]  ;;  %v7400_v40 = vld [vmem:[%s14295_s6 + $0x298] sm:$0xff] }
 0x1ce   : > { %14489 = vst [vmem:[#allocation10_spill] sm:$0xff] %v12132_v44  ;;  %v7399_v17 = vld [vmem:[%s14295_s6 + $0x290] sm:$0xff]  ;;  %v7384_v26 = vld [vmem:[%s14295_s6 + $0x218] sm:$0xff] }
 0x1cf   : > { %v680_v41 = vpop.permute.xlu0 %679  ;;  %9428 = vmatmul.mubr.msk.f32.gmra.mrb[12].mxu0 %vm1007_vm8, %v12042_v14  ;;  %v785_v50 = vpop.permute.xlu1 %784 }
 0x1d0   : > { %v752_v51 = vsel %vm745_vm7, %v743_v20, %v680_v41  ;;  %v945_v37 = vsel %vm691_vm1, %v14487_v23, %v785_v50  ;;  %v1743_v20 = vld [vmem:[%s14295_s6 + $0xa0] sm:$0xff]  ;;  %v1728_v50 = vld [vmem:[%s14295_s6 + $0x28] sm:$0xff]  ;;  %v1730_v23 = vld [vmem:[%s14295_s6 + $0x38] sm:$0xff] }
 0x1d1   : > { %v12058_v2 = vmul.f32 %v752_v51, %v375_v1  ;;  %v1727_v41 = vld [vmem:[%s14295_s6 + $0x20] sm:$0xff] }
 0x1d2   : > { %v12204_v51 = vpack.c.bf16 %v1728_v50, %v1727_v41  ;;  %v7387_v50 = vld [vmem:[%s14295_s6 + $0x230] sm:$0xff] }
 0x1d3   : > { %9430 = vmatprep.mubr.msk.f32.mxu0 %vm1007_vm8, %v12058_v2  ;;  %v783_v22 = vpop.permute.xlu0 %782  ;;  %v809_v24 = vpop.permute.xlu1 %808 }
 0x1d4   : > { %9431 = vmatmul.mubr.msk.f32.gmra.mrb[14].mxu0 %vm1007_vm8, %v12060_v3  ;;  %v944_v10 = vsel %vm691_vm1, %v14488_v34, %v783_v22  ;;  %v953_v9 = vsel %vm700_vm2, %v945_v37, %v809_v24  ;;  %v1729_v24 = vld [vmem:[%s14295_s6 + $0x30] sm:$0xff]  ;;  %v1748_v37 = vld [vmem:[%s14295_s6 + $0xc8] sm:$0xff] }
 0x1d5   : > { %9467 = vmatprep.mubr.msk.f32.mxu0 %vm11296_vm9, %v14304_v19 }
 0x1d7   : > { %v807_v16 = vpop.permute.xlu0 %806  ;;  %v833_v5 = vpop.permute.xlu1 %832 }
 0x1d8   : > { %9468 = vmatmul.mubr.msk.f32.vlgmr.msra.gmra.mrb[16].mxu0 %vm718_vm4, %v12071_v27  ;;  %v952_v25 = vsel %vm700_vm2, %v944_v10, %v807_v16  ;;  %v961_v48 = vsel %vm709_vm3, %v953_v9, %v833_v5  ;;  %v12231_v16 = vpack.c.bf16 %v1730_v23, %v1729_v24  ;;  %v1731_v10 = vld [vmem:[%s14295_s6 + $0x40] sm:$0xff]  ;;  %v1750_v9 = vld [vmem:[%s14295_s6 + $0xd8] sm:$0xff]  ;;  %v7406_v24 = vld [vmem:[%s14295_s6 + $0x2c8] sm:$0xff] }
 0x1db   : > { %v831_v7 = vpop.permute.xlu0 %830  ;;  %v857_v55 = vpop.permute.xlu1 %856 }
 0x1dc   : > { %v960_v15 = vsel %vm709_vm3, %v952_v25, %v831_v7  ;;  %v969_v28 = vsel %vm718_vm4, %v961_v48, %v857_v55  ;;  %v1733_v25 = vld [vmem:[%s14295_s6 + $0x50] sm:$0xff]  ;;  %v1734_v48 = vld [vmem:[%s14295_s6 + $0x58] sm:$0xff] }
 0x1df   : > { %v855_v32 = vpop.permute.xlu0 %854  ;;  %v881_v59 = vpop.permute.xlu1 %880 }
 0x1e0   : > { %v968_v29 = vsel %vm718_vm4, %v960_v15, %v855_v32  ;;  %v977_v11 = vsel %vm727_vm5, %v969_v28, %v881_v59  ;;  %v1752_v32 = vld [vmem:[%s14295_s6 + $0xe8] sm:$0xff]  ;;  %v12270_v59 = vpack.c.bf16 %v1734_v48, %v1733_v25  ;;  %v1735_v28 = vld [vmem:[%s14295_s6 + $0x60] sm:$0xff]  ;;  %v7391_v25 = vld [vmem:[%s14295_s6 + $0x250] sm:$0xff] }
 0x1e1   : > { %v7392_v48 = vld [vmem:[%s14295_s6 + $0x258] sm:$0xff] }
 0x1e3   : > { %v879_v31 = vpop.permute.xlu0 %878  ;;  %v905_v6 = vpop.permute.xlu1 %904 }
 0x1e4   : > { %v976_v53 = vsel %vm727_vm5, %v968_v29, %v879_v31  ;;  %v985_v8 = vsel %vm736_vm6, %v977_v11, %v905_v6  ;;  %v1736_v29 = vld [vmem:[%s14295_s6 + $0x68] sm:$0xff]  ;;  %v1753_v31 = vld [vmem:[%s14295_s6 + $0xf0] sm:$0xff]  ;;  %v1754_v11 = vld [vmem:[%s14295_s6 + $0xf8] sm:$0xff] }
 0x1e5   : > { %v12288_v6 = vpack.c.bf16 %v1736_v29, %v1735_v28  ;;  %v12420_v28 = vpack.c.bf16 %v7392_v48, %v7391_v25  ;;  %v7371_v25 = vld [vmem:[%s14295_s6 + $0x1b0] sm:$0xff]  ;;  %v7372_v48 = vld [vmem:[%s14295_s6 + $0x1b8] sm:$0xff] }
 0x1e7   : > { %v903_v35 = vpop.permute.xlu0 %902  ;;  %v929_v58 = vpop.permute.xlu1 %928  ;;  %14498 = vst [vmem:[#allocation19_spill] sm:$0xff] %v12420_v28 }
 0x1e8   : > { %v984_v63 = vsel %vm736_vm6, %v976_v53, %v903_v35  ;;  %v993_v43 = vsel %vm745_vm7, %v985_v8, %v929_v58  ;;  %v12291_v53 = vpack.c.bf16 %v1754_v11, %v1753_v31  ;;  %v1737_v8 = vld [vmem:[%s14295_s6 + $0x70] sm:$0xff]  ;;  %v1738_v35 = vld [vmem:[%s14295_s6 + $0x78] sm:$0xff]  ;;  %v7397_v58 = vld [vmem:[%s14295_s6 + $0x280] sm:$0xff] }
 0x1e9   : > { %v1001_v56 = vmul.f32 %v993_v43, %v376_v33  ;;  %v12306_v43 = vpack.c.bf16 %v1738_v35, %v1737_v8  ;;  %v7393_v31 = vld [vmem:[%s14295_s6 + $0x260] sm:$0xff]  ;;  %v7394_v11 = vld [vmem:[%s14295_s6 + $0x268] sm:$0xff]  ;;  %v7411_v8 = vld [vmem:[%s14295_s6 + $0x2f0] sm:$0xff] }
 0x1ea   : > { %v7412_v35 = vld [vmem:[%s14295_s6 + $0x2f8] sm:$0xff] }
 0x1eb   : > { %v927_v12 = vpop.permute.xlu0 %926  ;;  %14490 = vst [vmem:[#allocation11_spill] sm:$0xff] %v12306_v43 }
 0x1ec   : > { %v992_v39 = vsel %vm745_vm7, %v984_v63, %v927_v12  ;;  %v7398_v63 = vld [vmem:[%s14295_s6 + $0x288] sm:$0xff]  ;;  %v12311_v12 = vld [vmem:[%s14292_s3] sm:$0xff] }
 0x1ed   : > { %v1000_v57 = vmul.f32 %v992_v39, %v375_v1  ;;  %v1726_v1 = vld [vmem:[%s14295_s6 + $0x18] sm:$0xff]  ;;  %v12314_v39 = vpack.c.bf16 %v7398_v63, %v7397_v58  ;;  %v12438_v58 = vpack.c.bf16 %v7394_v11, %v7393_v31  ;;  %v12441_v63 = vpack.c.bf16 %v7412_v35, %v7411_v8  ;;  %v7373_v11 = vld [vmem:[%s14295_s6 + $0x1c0] sm:$0xff]  ;;  %v7374_v8 = vld [vmem:[%s14295_s6 + $0x1c8] sm:$0xff] }
 0x1ee   : > { %v12182_v33 = vpack.c.bf16 %v1726_v1, %v1725_v42  ;;  %v7386_v42 = vld [vmem:[%s14295_s6 + $0x228] sm:$0xff]  ;;  %v7403_v1 = vld [vmem:[%s14295_s6 + $0x2b0] sm:$0xff]  ;;  %v7356_v31 = vld [vmem:[%s14295_s6 + $0x138] sm:$0xff] }
 0x1ef   : > { %9382 = vmatprep.mubr.msk.f32.mxu1 %vm1007_vm8, %v1000_v57  ;;  %14500 = vst [vmem:[#allocation15_spill] sm:$0xff] %v12438_v58  ;;  %14501 = vst [vmem:[#allocation16_spill] sm:$0xff] %v12441_v63 }
 0x1f0   : > { %9383 = vmatmul.mubr.msk.f32.gmra.mrb[6].mxu1 %vm1007_vm8, %v1001_v56 }
 0x1f1   : > { %9389 = vmatprep.mubr.msk.f32.mxu1 %vm1007_vm8, %v11980_v21 }
 0x1f4   : > { %9390 = vmatmul.mubr.msk.f32.vlgmr.msra.gmra.mrb[0].mxu1 %vm1007_vm8, %v11997_v36 }
 0x1f5   : > { %9392 = vmatprep.mubr.msk.f32.mxu1 %vm1007_vm8, %v12005_v49  ;;  %11139 = vmatpush3.bf16.msra.mxu1 %v11596_v47  ;;  %v7330_v47 = vld [vmem:[%s14294_s5 + $0x48] sm:$0xff] }
 0x1f6   : > { %9589 = vmatprep.subr.bf16.mxu1 %v9588_v62  ;;  %v9592_v54 = vpack.c.bf16 %v7330_v47, %v7329_v45  ;;  %v12333_v47 = vpack.c.bf16 %v7400_v40, %v7399_v17  ;;  %v7365_v40 = vld [vmem:[%s14295_s6 + $0x180] sm:$0xff] }
 0x1f8   : > { %9393 = vmatmul.mubr.msk.f32.gmra.mrb[2].mxu1 %vm1007_vm8, %v12022_v38 }
 0x1f9   : > { %9395 = vmatprep.mubr.msk.f32.mxu1 %vm1007_vm8, %v12029_v0 }
 0x1fc   : > { %9396 = vmatmul.mubr.msk.f32.gmra.mrb[4].mxu1 %vm1007_vm8, %v12042_v14 }
 0x1fd   : > { %9398 = vmatprep.mubr.msk.f32.mxu1 %vm1007_vm8, %v12058_v2 }
 0x200   : > { %9399 = vmatmul.mubr.msk.f32.gmra.mrb[6].mxu1 %vm1007_vm8, %v12060_v3 }
 0x201   : > { %9414 = vmatprep.mubr.msk.f32.mxu1 %vm1007_vm8, %v1000_v57 }
 0x204   : > { %9415 = vmatmul.mubr.msk.f32.vlgmr.msra.gmra.mrb[8].mxu1 %vm1007_vm8, %v1001_v56 }
 0x205   : > { %9591 = vmatpush3.bf16.msra.mxu1 %v9588_v62  ;;  %9437 = vmatprep.mubr.msk.f32.mxu1 %vm1007_vm8, %v11818_v60  ;;  %v1723_v60 = vld [vmem:[%s14295_s6] sm:$0xff]  ;;  %v1998_v62 = vmul.f32 0.0, %v12311_v12 }
 0x206   : > { %9593 = vmatprep.subr.bf16.mxu1 %v9592_v54 }
 0x208   : > { %9438 = vmatmul.mubr.msk.f32.vlgmr.msra.gmra.mrb[10].mxu1 %vm1007_vm8, %v11821_v13  ;;  %v1724_v13 = vld [vmem:[%s14295_s6 + $0x8] sm:$0xff] }
 0x209   : > { %9440 = vmatprep.mubr.msk.f32.mxu1 %vm1007_vm8, %v11848_v18  ;;  %9595 = vmatpush3.bf16.msra.mxu1 %v9592_v54  ;;  %v1741_v18 = vld [vmem:[%s14295_s6 + $0x90] sm:$0xff] }
 0x20a   : > { %9597 = vmatprep.subr.bf16.mxu1 %v12132_v44  ;;  %v7383_v54 = vld [vmem:[%s14295_s6 + $0x210] sm:$0xff] }
 0x20c   : > { %9441 = vmatmul.mubr.msk.f32.gmra.mrb[12].mxu1 %vm1007_vm8, %v11868_v30  ;;  %v1742_v30 = vld [vmem:[%s14295_s6 + $0x98] sm:$0xff] }
 0x20d   : > { %9443 = vmatprep.mubr.msk.f32.mxu1 %vm1007_vm8, %v11925_v46  ;;  %v12161_v46 = vpack.c.bf16 %v1724_v13, %v1723_v60  ;;  %v7402_v60 = vld [vmem:[%s14295_s6 + $0x2a8] sm:$0xff]  ;;  %v12348_v13 = vpack.c.bf16 %v7384_v26, %v7383_v54  ;;  %v7349_v26 = vld [vmem:[%s14295_s6 + $0x100] sm:$0xff] }
 0x20e   : > { %v7366_v54 = vld [vmem:[%s14295_s6 + $0x188] sm:$0xff] }
 0x210   : > { %9444 = vmatmul.mubr.msk.f32.gmra.mrb[14].mxu1 %vm1007_vm8, %v11975_v4  ;;  %v12163_v4 = vpack.c.bf16 %v1742_v30, %v1741_v18  ;;  %v12351_v18 = vpack.c.bf16 %v7402_v60, %v7401_v61  ;;  %v7385_v30 = vld [vmem:[%s14295_s6 + $0x220] sm:$0xff]  ;;  %v12466_v61 = vpack.c.bf16 %v7366_v54, %v7365_v40  ;;  %v7358_v40 = vld [vmem:[%s14295_s6 + $0x148] sm:$0xff]  ;;  %v7375_v54 = vld [vmem:[%s14295_s6 + $0x1d0] sm:$0xff] }
 0x211   : > { %9446 = vmatprep.mubr.msk.f32.mxu1 %vm1007_vm8, %v1000_v57  ;;  %v7382_v57 = vld [vmem:[%s14295_s6 + $0x208] sm:$0xff] }
 0x212   : > { %14491 = vst [vmem:[#allocation14_spill] sm:$0xff] %v12351_v18  ;;  %14503 = vst [vmem:[#allocation21_spill] sm:$0xff] %v12466_v61  ;;  %9629 = vmatprep.subr.bf16.mxu0 %v12466_v61 }
 0x214   : > { %9447 = vmatmul.mubr.msk.f32.gmra.mrb[16].mxu1 %vm1007_vm8, %v1001_v56  ;;  %v7381_v56 = vld [vmem:[%s14295_s6 + $0x200] sm:$0xff] }
 0x215   : > { %9453 = vmatprep.mubr.msk.f32.mxu1 %vm1007_vm8, %v11980_v21  ;;  %v1744_v21 = vld [vmem:[%s14295_s6 + $0xa8] sm:$0xff]  ;;  %v12330_v45 = vpack.c.bf16 %v7382_v57, %v7381_v56  ;;  %v7395_v56 = vld [vmem:[%s14295_s6 + $0x270] sm:$0xff]  ;;  %v7396_v57 = vld [vmem:[%s14295_s6 + $0x278] sm:$0xff] }
 0x216   : > { %v12185_v52 = vpack.c.bf16 %v1744_v21, %v1743_v20  ;;  %v7404_v20 = vld [vmem:[%s14295_s6 + $0x2b8] sm:$0xff]  ;;  %v12366_v21 = vpack.c.bf16 %v7386_v42, %v7385_v30  ;;  %v12450_v17 = vpack.c.bf16 %v7396_v57, %v7395_v56  ;;  %v7367_v30 = vld [vmem:[%s14295_s6 + $0x190] sm:$0xff]  ;;  %v12533_v56 = vpack.c.bf16 %v7374_v8, %v7373_v11  ;;  %v7357_v57 = vld [vmem:[%s14295_s6 + $0x140] sm:$0xff] }
 0x217   : > { %v12369_v41 = vpack.c.bf16 %v7404_v20, %v7403_v1  ;;  %v7368_v42 = vld [vmem:[%s14295_s6 + $0x198] sm:$0xff]  ;;  %v7351_v20 = vld [vmem:[%s14295_s6 + $0x110] sm:$0xff] }
 0x218   : > { %9454 = vmatmul.mubr.msk.f32.vlgmr.msra.gmra.mrb[10].mxu1 %vm1007_vm8, %v11997_v36  ;;  %v1745_v36 = vld [vmem:[%s14295_s6 + $0xb0] sm:$0xff]  ;;  %14492 = vst [vmem:[#allocation18_spill] sm:$0xff] %v12366_v21  ;;  %14502 = vst [vmem:[#allocation5_spill] sm:$0xff] %v12450_v17  ;;  %v12481_v1 = vpack.c.bf16 %v7368_v42, %v7367_v30 }
 0x219   : > { %9599 = vmatpush3.bf16.msra.mxu1 %v12161_v46  ;;  %9456 = vmatprep.mubr.msk.f32.mxu1 %vm1007_vm8, %v12005_v49  ;;  %v1746_v49 = vld [vmem:[%s14295_s6 + $0xb8] sm:$0xff]  ;;  %14493 = vst [vmem:[#allocation9_spill] sm:$0xff] %v12369_v41  ;;  %v7359_v42 = vld [vmem:[%s14295_s6 + $0x150] sm:$0xff] }
 0x21a   : > { %9601 = vmatprep.subr.bf16.mxu1 %v12163_v4  ;;  %v12207_v22 = vpack.c.bf16 %v1746_v49, %v1745_v36  ;;  %v7388_v36 = vld [vmem:[%s14295_s6 + $0x238] sm:$0xff]  ;;  %v7405_v49 = vld [vmem:[%s14295_s6 + $0x2c0] sm:$0xff] }
 0x21b   : > { %v12384_v23 = vpack.c.bf16 %v7388_v36, %v7387_v50  ;;  %v7352_v50 = vld [vmem:[%s14295_s6 + $0x118] sm:$0xff] }
 0x21c   : > { %9457 = vmatmul.mubr.msk.f32.gmra.mrb[12].mxu1 %vm1007_vm8, %v12022_v38  ;;  %v12218_v38 = vld [vmem:[%s14292_s3 + $0x8] sm:$0xff]  ;;  %v12489_v36 = vpack.c.bf16 %v7352_v50, %v7351_v20  ;;  %v7360_v20 = vld [vmem:[%s14295_s6 + $0x158] sm:$0xff]  ;;  %v7377_v50 = vld [vmem:[%s14295_s6 + $0x1e0] sm:$0xff] }
 0x21d   : > { %9603 = vmatpush3.bf16.msra.mxu1 %v12182_v33  ;;  %9459 = vmatprep.mubr.msk.f32.mxu1 %vm1007_vm8, %v12029_v0  ;;  %v1747_v0 = vld [vmem:[%s14295_s6 + $0xc0] sm:$0xff]  ;;  %v1999_v5 = vmul.f32 0.0, %v12218_v38  ;;  %14494 = vst [vmem:[#allocation12_spill] sm:$0xff] %v12384_v23 }
 0x21e   : > { %9605 = vmatprep.subr.bf16.mxu1 %v12185_v52  ;;  %v12235_v34 = vpack.c.bf16 %v1748_v37, %v1747_v0  ;;  %v12387_v0 = vpack.c.bf16 %v7406_v24, %v7405_v49  ;;  %v7389_v37 = vld [vmem:[%s14295_s6 + $0x240] sm:$0xff]  ;;  %v7370_v24 = vld [vmem:[%s14295_s6 + $0x1a8] sm:$0xff] }
 0x21f   : > { %v7369_v49 = vld [vmem:[%s14295_s6 + $0x1a0] sm:$0xff] }
 0x220   : > { %9460 = vmatmul.mubr.msk.f32.gmra.mrb[14].mxu1 %vm1007_vm8, %v12042_v14  ;;  %v1732_v14 = vld [vmem:[%s14295_s6 + $0x48] sm:$0xff]  ;;  %14495 = vst [vmem:[#allocation13_spill] sm:$0xff] %v12387_v0 }
 0x221   : > { %9607 = vmatpush3.bf16.msra.mxu1 %v12204_v51  ;;  %9462 = vmatprep.mubr.msk.f32.mxu1 %vm1007_vm8, %v12058_v2  ;;  %v1749_v2 = vld [vmem:[%s14295_s6 + $0xd0] sm:$0xff]  ;;  %v12252_v7 = vpack.c.bf16 %v1732_v14, %v1731_v10  ;;  %v7408_v14 = vld [vmem:[%s14295_s6 + $0x2d8] sm:$0xff] }
 0x222   : > { %9609 = vmatprep.subr.bf16.mxu1 %v12207_v22  ;;  %v12255_v55 = vpack.c.bf16 %v1750_v9, %v1749_v2  ;;  %v7407_v10 = vld [vmem:[%s14295_s6 + $0x2d0] sm:$0xff] }
 0x223   : > { %v12405_v9 = vpack.c.bf16 %v7408_v14, %v7407_v10  ;;  %v7354_v10 = vld [vmem:[%s14295_s6 + $0x128] sm:$0xff] }
 0x224   : > { %9463 = vmatmul.mubr.msk.f32.gmra.mrb[16].mxu1 %vm1007_vm8, %v12060_v3  ;;  %v1751_v3 = vld [vmem:[%s14295_s6 + $0xe0] sm:$0xff] }
 0x225   : > { %9611 = vmatpush3.bf16.msra.mxu1 %v12231_v16  ;;  %2082 = vmatprep.mubr.f32.mxu1 %v1999_v5  ;;  %v12273_v15 = vpack.c.bf16 %v1752_v32, %v1751_v3  ;;  %14497 = vst [vmem:[#allocation22_spill] sm:$0xff] %v12405_v9  ;;  %v7409_v3 = vld [vmem:[%s14295_s6 + $0x2e0] sm:$0xff]  ;;  %v7410_v32 = vld [vmem:[%s14295_s6 + $0x2e8] sm:$0xff] }
 0x226   : > { %9613 = vmatprep.subr.bf16.mxu1 %v12235_v34  ;;  %v12423_v29 = vpack.c.bf16 %v7410_v32, %v7409_v3  ;;  %v7355_v3 = vld [vmem:[%s14295_s6 + $0x130] sm:$0xff]  ;;  %v12520_v32 = vpack.c.bf16 %v7372_v48, %v7371_v25  ;;  %v7361_v48 = vld [vmem:[%s14295_s6 + $0x160] sm:$0xff] }
 0x227   : > { %v12531_v35 = vpack.c.bf16 %v7356_v31, %v7355_v3  ;;  %v7362_v3 = vld [vmem:[%s14295_s6 + $0x168] sm:$0xff] }
 0x228   : > { %14499 = vst [vmem:[#allocation6_spill] sm:$0xff] %v12423_v29  ;;  %v12582_v11 = vpack.c.bf16 %v7362_v3, %v7361_v48 }
 0x229   : > { %9615 = vmatpush3.bf16.msra.mxu1 %v12252_v7 }
 0x22a   : > { %9617 = vmatprep.subr.bf16.mxu1 %v12255_v55 }
 0x22d   : > { %9619 = vmatpush3.bf16.msra.mxu1 %v12270_v59 }
 0x22e   : > { %9621 = vmatprep.subr.bf16.mxu1 %v12273_v15 }
 0x231   : > { %9623 = vmatpush3.bf16.msra.mxu1 %v12288_v6 }
 0x232   : > { %9625 = vmatprep.subr.bf16.mxu1 %v12291_v53 }
 0x235   : > { %9627 = vmatpush3.bf16.msra.mxu1 %v12306_v43 }
 0x236   : > { %9661 = vmatprep.subr.bf16.mxu1 %v12314_v39 }
 0x238   : > { %2083 = vmatmul.mubr.f32.vlgmr.msra.gmra.mrb[18].mxu1 %v1998_v62 }
 0x239   : > { %9663 = vmatpush3.bf16.msra.mxu1 %v12330_v45  ;;  %2232 = vmatprep.mubr.f32.mxu1 %v1999_v5  ;;  %v7390_v5 = vld [vmem:[%s14295_s6 + $0x248] sm:$0xff] }
 0x23a   : > { %9665 = vmatprep.subr.bf16.mxu1 %v12333_v47  ;;  %v12402_v2 = vpack.c.bf16 %v7390_v5, %v7389_v37  ;;  %v12499_v37 = vpack.c.bf16 %v7370_v24, %v7369_v49  ;;  %v7353_v5 = vld [vmem:[%s14295_s6 + $0x120] sm:$0xff]  ;;  %v7378_v49 = vld [vmem:[%s14295_s6 + $0x1e8] sm:$0xff]  ;;  %v12567_v24 = vpack.c.bf16 %v7360_v20, %v7359_v42  ;;  %v7364_v42 = vld [vmem:[%s14295_s6 + $0x178] sm:$0xff] }
 0x23b   : > { %v12507_v14 = vpack.c.bf16 %v7354_v10, %v7353_v5  ;;  %v12570_v5 = vpack.c.bf16 %v7378_v49, %v7377_v50 }
 0x23c   : > { %14496 = vst [vmem:[#allocation17_spill] sm:$0xff] %v12402_v2 }
 0x23d   : > { %9667 = vmatpush3.bf16.msra.mxu1 %v12348_v13 }
 0x23e   : > { %9669 = vmatprep.subr.bf16.mxu1 %v12351_v18 }
 0x241   : > { %9671 = vmatpush3.bf16.msra.mxu1 %v12366_v21 }
 0x242   : > { %9673 = vmatprep.subr.bf16.mxu1 %v12369_v41 }
 0x245   : > { %9675 = vmatpush3.bf16.msra.mxu1 %v12384_v23 }
 0x246   : > { %9677 = vmatprep.subr.bf16.mxu1 %v12387_v0 }
 0x249   : > { %9679 = vmatpush3.bf16.msra.mxu1 %v12402_v2 }
 0x24a   : > { %9681 = vmatprep.subr.bf16.mxu1 %v12405_v9 }
 0x24d   : > { %9683 = vmatpush3.bf16.msra.mxu1 %v12420_v28 }
 0x24e   : > { %9685 = vmatprep.subr.bf16.mxu1 %v12423_v29  ;;  %v7437_v29 = vld [vmem:[%s14295_s6 + $0x3c0] sm:$0xff] }
 0x251   : > { %9687 = vmatpush3.bf16.msra.mxu1 %v12438_v58  ;;  %v7420_v58 = vld [vmem:[%s14295_s6 + $0x338] sm:$0xff] }
 0x252   : > { %9689 = vmatprep.subr.bf16.mxu1 %v12441_v63 }
 0x255   : > { %9691 = vmatpush3.bf16.msra.mxu1 %v12450_v17 }
 0x256   : > { %9470 = vmatprep.subr.mxu1 %v14304_v19 }
 0x258   : > { %2233 = vmatmul.mubr.f32.vlgmr.msra.gmra.mrb[20].mxu1 %v1998_v62  ;;  %v7350_v62 = vld [vmem:[%s14295_s6 + $0x108] sm:$0xff] }
 0x259   : > { %9472 = vmatprep.mubr.msk.f32.mxu1 %vm11296_vm9, %v14304_v19  ;;  %v12471_v60 = vpack.c.bf16 %v7350_v62, %v7349_v26  ;;  %v7376_v26 = vld [vmem:[%s14295_s6 + $0x1d8] sm:$0xff]  ;;  %v12549_v62 = vpack.c.bf16 %v7358_v40, %v7357_v57  ;;  %v7379_v57 = vld [vmem:[%s14295_s6 + $0x1f0] sm:$0xff] }
 0x25a   : > { %v12552_v30 = vpack.c.bf16 %v7376_v26, %v7375_v54  ;;  %v7380_v40 = vld [vmem:[%s14295_s6 + $0x1f8] sm:$0xff]  ;;  %v7363_v26 = vld [vmem:[%s14295_s6 + $0x170] sm:$0xff] }
 0x25b   : > { %9631 = vmatpush3.bf16.msra.mxu0 %v12471_v60  ;;  %v12593_v54 = vpack.c.bf16 %v7380_v40, %v7379_v57  ;;  %v12602_v50 = vpack.c.bf16 %v7364_v42, %v7363_v26 }
 0x25c   : > { %9633 = vmatprep.subr.bf16.mxu0 %v12481_v1 }
 0x25f   : > { %9635 = vmatpush3.bf16.msra.mxu0 %v12489_v36 }
 0x260   : > { %9637 = vmatprep.subr.bf16.mxu0 %v12499_v37 }
 0x263   : > { %9639 = vmatpush3.bf16.msra.mxu0 %v12507_v14 }
 0x264   : > { %9641 = vmatprep.subr.bf16.mxu0 %v12520_v32 }
 0x267   : > { %9643 = vmatpush3.bf16.msra.mxu0 %v12531_v35 }
 0x268   : > { %9645 = vmatprep.subr.bf16.mxu0 %v12533_v56 }
 0x26b   : > { %9647 = vmatpush3.bf16.msra.mxu0 %v12549_v62 }
 0x26c   : > { %9649 = vmatprep.subr.bf16.mxu0 %v12552_v30 }
 0x26f   : > { %9651 = vmatpush3.bf16.msra.mxu0 %v12567_v24 }
 0x270   : > { %9653 = vmatprep.subr.bf16.mxu0 %v12570_v5 }
 0x273   : > { %9655 = vmatpush3.bf16.msra.mxu0 %v12582_v11 }
 0x274   : > { %9657 = vmatprep.subr.bf16.mxu0 %v12593_v54 }
 0x277   : > { %9659 = vmatpush3.bf16.msra.mxu0 %v12602_v50 }
 0x29a   : > { %v9423_v10 = vpop.f32.mrb[8].mxu0 }
 0x29b   : > { %1492 = vst.msk [vmem:[#allocation3 + $0x8] sm:$0xff] %vm1266_vm10, %v9423_v10  ;;  %v1452_v25 = vpop.f32.mrb[9].mxu0  ;;  %v7429_v10 = vld [vmem:[%s14295_s6 + $0x380] sm:$0xff] }
 0x29c   : > { %1491 = vst.msk [vmem:[#allocation3] sm:$0xff] %vm1266_vm10, %v1452_v25  ;;  %v7430_v25 = vld [vmem:[%s14295_s6 + $0x388] sm:$0xff] }
 0x29d   : > { %v12613_v48 = vpack.c.bf16 %v7430_v25, %v7429_v10 }
 0x29e   : > { %v9426_v31 = vpop.f32.mrb[10].mxu0 }
 0x29f   : > { %1494 = vst.msk [vmem:[#allocation3 + $0x18] sm:$0xff] %vm1266_vm10, %v9426_v31  ;;  %v1462_v8 = vpop.f32.mrb[11].mxu0  ;;  %14504 = vst [vmem:[#allocation26_spill] sm:$0xff] %v12613_v48  ;;  %9693 = vmatprep.subr.bf16.mxu0 %v12613_v48 }
 0x2a0   : > { %1493 = vst.msk [vmem:[#allocation3 + $0x10] sm:$0xff] %vm1266_vm10, %v1462_v8 }
 0x2a2   : > { %v9429_v20 = vpop.f32.mrb[12].mxu0 }
 0x2a3   : > { %1496 = vst.msk [vmem:[#allocation3 + $0x28] sm:$0xff] %vm1266_vm10, %v9429_v20  ;;  %v1472_v49 = vpop.f32.mrb[13].mxu0 }
 0x2a4   : > { %1495 = vst.msk [vmem:[#allocation3 + $0x20] sm:$0xff] %vm1266_vm10, %v1472_v49 }
 0x2a7   : > { %v9432_v3 = vpop.f32.mrb[14].mxu0 }
 0x2a8   : > { %v1482_v31 = vpop.f32.mrb[15].mxu0 }
 0x2ab   : > { %v1994_v8 = vpop.f32.mrb[16].mxu0 }
 0x2ac   : > { %2004 = vrot.lane.b32.xlu1 %v1994_v8, %s11297_s19  ;;  %2001 = vrot.lane.b32.xlu0 %v1994_v8, %s11298_s20  ;;  %v9469_v57 = vpop.f32.mrb[17].mxu0 }
 0x2b0   : > { %2007 = vrot.lane.b32.xlu0 %v1994_v8, %s11299_s25 }
 0x2c7   : > { %v9391_v40 = vpop.f32.mrb[0].mxu1 }
 0x2c8   : > { %1268 = vst.msk [vmem:[#allocation2 + $0x8] sm:$0xff] %vm1266_vm10, %v9391_v40  ;;  %v1227_v26 = vpop.f32.mrb[1].mxu1 }
 0x2c9   : > { %1267 = vst.msk [vmem:[#allocation2] sm:$0xff] %vm1266_vm10, %v1227_v26 }
 0x2cb   : > { %v9394_v42 = vpop.f32.mrb[2].mxu1 }
 0x2cc   : > { %1270 = vst.msk [vmem:[#allocation2 + $0x18] sm:$0xff] %vm1266_vm10, %v9394_v42  ;;  %v1237_v20 = vpop.f32.mrb[3].mxu1 }
 0x2cd   : > { %1269 = vst.msk [vmem:[#allocation2 + $0x10] sm:$0xff] %vm1266_vm10, %v1237_v20 }
 0x2cf   : > { %v9397_v49 = vpop.f32.mrb[4].mxu1 }
 0x2d0   : > { %1272 = vst.msk [vmem:[#allocation2 + $0x28] sm:$0xff] %vm1266_vm10, %v9397_v49  ;;  %v1247_v10 = vpop.f32.mrb[5].mxu1 }
 0x2d1   : > { %1271 = vst.msk [vmem:[#allocation2 + $0x20] sm:$0xff] %vm1266_vm10, %v1247_v10 }
 0x2d3   : > { %v9400_v25 = vpop.f32.mrb[6].mxu1 }
 0x2d4   : > { %1274 = vst.msk [vmem:[#allocation2 + $0x38] sm:$0xff] %vm1266_vm10, %v9400_v25  ;;  %v1257_v57 = vpop.f32.mrb[7].mxu1 }
 0x2d5   : > { %1273 = vst.msk [vmem:[#allocation2 + $0x30] sm:$0xff] %vm1266_vm10, %v1257_v57 }
 0x2d7   : > { %v9416_v40 = vpop.f32.mrb[8].mxu1 }
 0x2d8   : > { %v1488_v26 = vadd.f32 %v9432_v3, %v9416_v40  ;;  %v1377_v19 = vpop.f32.mrb[9].mxu1 }
 0x2d9   : > { %v1483_v17 = vadd.f32 %v1482_v31, %v1377_v19 }
 0x2da   : > { %1498 = vst.msk [vmem:[#allocation3 + $0x38] sm:$0xff] %vm1266_vm10, %v1488_v26 }
 0x2db   : > { %1497 = vst.msk [vmem:[#allocation3 + $0x30] sm:$0xff] %vm1266_vm10, %v1483_v17 }
 0x2eb   : > { %v9455_v42 = vpop.f32.mrb[10].mxu1 }
 0x2ec   : > { %1716 = vst.msk [vmem:[#allocation4 + $0x8] sm:$0xff] %vm1266_vm10, %v9455_v42  ;;  %v1676_v20 = vpop.f32.mrb[11].mxu1 }
 0x2ed   : > { %1715 = vst.msk [vmem:[#allocation4] sm:$0xff] %vm1266_vm10, %v1676_v20 }
 0x2ef   : > { %v9458_v49 = vpop.f32.mrb[12].mxu1 }
 0x2f0   : > { %1718 = vst.msk [vmem:[#allocation4 + $0x18] sm:$0xff] %vm1266_vm10, %v9458_v49  ;;  %v1686_v10 = vpop.f32.mrb[13].mxu1  ;;  %v7413_v49 = vld [vmem:[%s14295_s6 + $0x300] sm:$0xff] }
 0x2f1   : > { %1717 = vst.msk [vmem:[#allocation4 + $0x10] sm:$0xff] %vm1266_vm10, %v1686_v10  ;;  %v7414_v10 = vld [vmem:[%s14295_s6 + $0x308] sm:$0xff] }
 0x2f3   : > { %v9461_v25 = vpop.f32.mrb[14].mxu1 }
 0x2f4   : > { %1720 = vst.msk [vmem:[#allocation4 + $0x28] sm:$0xff] %vm1266_vm10, %v9461_v25  ;;  %v1696_v19 = vpop.f32.mrb[15].mxu1 }
 0x2f5   : > { %1719 = vst.msk [vmem:[#allocation4 + $0x20] sm:$0xff] %vm1266_vm10, %v1696_v19 }
 0x2f7   : > { %v9464_v3 = vpop.f32.mrb[16].mxu1 }
 0x2f8   : > { %1722 = vst.msk [vmem:[#allocation4 + $0x38] sm:$0xff] %vm1266_vm10, %v9464_v3  ;;  %v1706_v17 = vpop.f32.mrb[17].mxu1  ;;  %v7431_v3 = vld [vmem:[%s14295_s6 + $0x390] sm:$0xff] }
 0x2f9   : > { %1721 = vst.msk [vmem:[#allocation4 + $0x30] sm:$0xff] %vm1266_vm10, %v1706_v17 }
 0x30b   : > { %v7658_v31 = vpop.f32.mrb[18].mxu1 }
 0x30c   : > { %v7659_v57 = vpop.f32.mrb[19].mxu1 }
 0x30d   : > { %v12637_v40 = vadd.f32 %v7659_v57, %v7658_v31 }
 0x31e   : > { %v2002_v26 = vpop.permute.xlu0 %2001  ;;  %v2005_v42 = vpop.permute.xlu1 %2004 }
 0x31f   : > { %v2010_v20 = vsel %vm1266_vm10, %v1994_v8, %v2002_v26  ;;  %v7432_v8 = vld [vmem:[%s14295_s6 + $0x398] sm:$0xff]  ;;  %v12658_v26 = vpack.c.bf16 %v7414_v10, %v7413_v49  ;;  %v7434_v49 = vld [vmem:[%s14295_s6 + $0x3a8] sm:$0xff] }
 0x320   : > { %v2011_v25 = vsel %vm385_vm0, %v2010_v20, %v2005_v42  ;;  %v12660_v63 = vpack.c.bf16 %v7432_v8, %v7431_v3  ;;  %v7415_v42 = vld [vmem:[%s14295_s6 + $0x310] sm:$0xff]  ;;  %v7416_v20 = vld [vmem:[%s14295_s6 + $0x318] sm:$0xff]  ;;  %v7417_v3 = vld [vmem:[%s14295_s6 + $0x320] sm:$0xff] }
 0x321   : > { %14505 = vst [vmem:[#allocation23_spill] sm:$0xff] %v12658_v26  ;;  %v12676_v10 = vpack.c.bf16 %v7416_v20, %v7415_v42  ;;  %v7418_v8 = vld [vmem:[%s14295_s6 + $0x328] sm:$0xff] }
 0x322   : > { %v2008_v19 = vpop.permute.xlu0 %2007  ;;  %14506 = vst [vmem:[#allocation20_spill] sm:$0xff] %v12660_v63 }
 0x323   : > { %v2013_v17 = vsel %vm2012_vm11, %v2011_v25, %v2008_v19  ;;  %v7433_v25 = vld [vmem:[%s14295_s6 + $0x3a0] sm:$0xff]  ;;  %14507 = vst [vmem:[#allocation25_spill] sm:$0xff] %v12676_v10 }
 0x324   : > { %v12655_v31 = vmul.f32 %v2013_v17, %v12311_v12  ;;  %v2015_v57 = vmul.f32 %v2013_v17, %v12218_v38  ;;  %v12679_v19 = vpack.c.bf16 %v7434_v49, %v7433_v25  ;;  %v7435_v17 = vld [vmem:[%s14295_s6 + $0x3b0] sm:$0xff]  ;;  %v12694_v25 = vpack.c.bf16 %v7418_v8, %v7417_v3  ;;  %v7438_v3 = vld [vmem:[%s14295_s6 + $0x3c8] sm:$0xff] }
 0x326   : > { %2153 = vmatprep.mubr.f32.mxu0 %v2015_v57  ;;  %14508 = vst [vmem:[#allocation27_spill] sm:$0xff] %v12679_v19  ;;  %14509 = vst [vmem:[#allocation24_spill] sm:$0xff] %v12694_v25 }
 0x327   : > { %2154 = vmatmul.mubr.f32.vlgmr.msra.gmra.mrb[18].mxu0 %v12655_v31 }
 0x328   : > { %9695 = vmatpush3.bf16.msra.mxu0 %v12658_v26  ;;  %2303 = vmatprep.mubr.f32.mxu0 %v2015_v57  ;;  %v7436_v57 = vld [vmem:[%s14295_s6 + $0x3b8] sm:$0xff]  ;;  %v7419_v26 = vld [vmem:[%s14295_s6 + $0x330] sm:$0xff] }
 0x329   : > { %9697 = vmatprep.subr.bf16.mxu0 %v12660_v63  ;;  %v12697_v63 = vpack.c.bf16 %v7436_v57, %v7435_v17  ;;  %v12712_v8 = vpack.c.bf16 %v7420_v58, %v7419_v26  ;;  %v12715_v17 = vpack.c.bf16 %v7438_v3, %v7437_v29  ;;  %v7421_v57 = vld [vmem:[%s14295_s6 + $0x340] sm:$0xff]  ;;  %v7440_v58 = vld [vmem:[%s14295_s6 + $0x3d8] sm:$0xff]  ;;  %v7423_v3 = vld [vmem:[%s14295_s6 + $0x350] sm:$0xff] }
 0x32b   : > { %v7728_v42 = vpop.f32.mrb[20].mxu1  ;;  %14510 = vst [vmem:[#allocation7_spill] sm:$0xff] %v12697_v63  ;;  %14511 = vst [vmem:[#allocation8_spill] sm:$0xff] %v12712_v8 }
 0x32c   : > { %v7729_v20 = vpop.f32.mrb[21].mxu1  ;;  %9699 = vmatpush3.bf16.msra.mxu0 %v12676_v10  ;;  %14512 = vst [vmem:[#allocation28_spill] sm:$0xff] %v12715_v17 }
 0x32d   : > { %v7730_v49 = vadd.f32 %v7729_v20, %v7728_v42  ;;  %9701 = vmatprep.subr.bf16.mxu0 %v12679_v19  ;;  %v7422_v42 = vld [vmem:[%s14295_s6 + $0x348] sm:$0xff]  ;;  %v7439_v20 = vld [vmem:[%s14295_s6 + $0x3d0] sm:$0xff] }
 0x32e   : > { %v12730_v29 = vpack.c.bf16 %v7422_v42, %v7421_v57  ;;  %v12733_v26 = vpack.c.bf16 %v7440_v58, %v7439_v20  ;;  %v7442_v57 = vld [vmem:[%s14295_s6 + $0x3e8] sm:$0xff]  ;;  %v7425_v58 = vld [vmem:[%s14295_s6 + $0x360] sm:$0xff] }
 0x330   : > { %9703 = vmatpush3.bf16.msra.mxu0 %v12694_v25  ;;  %14513 = vst [vmem:[#allocation29_spill] sm:$0xff] %v12730_v29  ;;  %14514 = vst [vmem:[#allocation30_spill] sm:$0xff] %v12733_v26  ;;  %v7441_v25 = vld [vmem:[%s14295_s6 + $0x3e0] sm:$0xff] }
 0x331   : > { %9705 = vmatprep.subr.bf16.mxu0 %v12697_v63  ;;  %v7424_v63 = vld [vmem:[%s14295_s6 + $0x358] sm:$0xff]  ;;  %v12751_v20 = vpack.c.bf16 %v7442_v57, %v7441_v25  ;;  %v7427_v57 = vld [vmem:[%s14295_s6 + $0x370] sm:$0xff] }
 0x332   : > { %v12748_v42 = vpack.c.bf16 %v7424_v63, %v7423_v3  ;;  %v7444_v63 = vld [vmem:[%s14295_s6 + $0x3f8] sm:$0xff] }
 0x333   : > { %14516 = vst [vmem:[#allocation32_spill] sm:$0xff] %v12751_v20 }
 0x334   : > { %9707 = vmatpush3.bf16.msra.mxu0 %v12712_v8  ;;  %14515 = vst [vmem:[#allocation31_spill] sm:$0xff] %v12748_v42  ;;  %v7443_v8 = vld [vmem:[%s14295_s6 + $0x3f0] sm:$0xff] }
 0x335   : > { %9709 = vmatprep.subr.bf16.mxu0 %v12715_v17  ;;  %v7426_v17 = vld [vmem:[%s14295_s6 + $0x368] sm:$0xff]  ;;  %v12769_v3 = vpack.c.bf16 %v7444_v63, %v7443_v8  ;;  %v12786_v8 = vld [vmem:[%s14296_s7] sm:$0xff] }
 0x336   : > { %v12766_v25 = vpack.c.bf16 %v7426_v17, %v7425_v58  ;;  %14520 = vst [vmem:[#allocation36_spill] sm:$0xff] %v12786_v8  ;;  %v2016_v17 = vld [vmem:[#allocation2] sm:$0xff] }
 0x337   : > { %14518 = vst [vmem:[#allocation34_spill] sm:$0xff] %v12769_v3  ;;  %v2017_v58 = vadd.f32 %v2016_v17, %v12786_v8 }
 0x338   : > { %9711 = vmatpush3.bf16.msra.mxu0 %v12730_v29  ;;  %14517 = vst [vmem:[#allocation33_spill] sm:$0xff] %v12766_v25 }
 0x339   : > { %9713 = vmatprep.subr.bf16.mxu0 %v12733_v26  ;;  %v7428_v26 = vld [vmem:[%s14295_s6 + $0x378] sm:$0xff] }
 0x33a   : > { %v12778_v29 = vpack.c.bf16 %v7428_v26, %v7427_v57 }
 0x33c   : > { %9715 = vmatpush3.bf16.msra.mxu0 %v12748_v42  ;;  %14519 = vst [vmem:[#allocation35_spill] sm:$0xff] %v12778_v29 }
 0x33d   : > { %9717 = vmatprep.subr.bf16.mxu0 %v12751_v20 }
 0x340   : > { %9719 = vmatpush3.bf16.msra.mxu0 %v12766_v25  ;;  %v2088_v25 = vadd.f32 %v12637_v40, %v2017_v58  ;;  %v7445_v58 = vld [vmem:[%s14295_s6 + $0x400] sm:$0xff] }
 0x341   : > { %9721 = vmatprep.subr.bf16.mxu0 %v12769_v3 }
 0x344   : > { %9723 = vmatpush3.bf16.msra.mxu0 %v12778_v29  ;;  %v12795_v29 = vld [vmem:[%s14296_s7 + $0x8] sm:$0xff] }
 0x347   : > { %2304 = vmatmul.mubr.f32.vlgmr.msra.gmra.mrb[20].mxu0 %v12655_v31  ;;  %v2166_v31 = vld [vmem:[#allocation3] sm:$0xff] }
 0x348   : > { %v2167_v3 = vadd.f32 %v12795_v29, %v2166_v31  ;;  %v7465_v31 = vld [vmem:[%s14295_s6 + $0x4a0] sm:$0xff] }
 0x34a   : > { %v2238_v10 = vadd.f32 %v7730_v49, %v2167_v3 }
 0x3fa   : > { %v7693_v63 = vpop.f32.mrb[18].mxu0 }
 0x3fb   : > { %v7694_v20 = vpop.f32.mrb[19].mxu0 }
 0x3fc   : > { %v7695_v26 = vadd.f32 %v7694_v20, %v7693_v63  ;;  %v7461_v20 = vld [vmem:[%s14295_s6 + $0x480] sm:$0xff]  ;;  %v7447_v63 = vld [vmem:[%s14295_s6 + $0x410] sm:$0xff] }
 0x3fe   : > { %v12790_v57 = vadd.f32 %v7695_v26, %v2088_v25  ;;  %v7462_v25 = vld [vmem:[%s14295_s6 + $0x488] sm:$0xff]  ;;  %v7448_v26 = vld [vmem:[%s14295_s6 + $0x418] sm:$0xff] }
 0x41a   : > { %v7763_v42 = vpop.f32.mrb[20].mxu0 }
 0x41b   : > { %v7764_v19 = vpop.f32.mrb[21].mxu0 }
 0x41c   : > { %v7765_v28 = vadd.f32 %v7764_v19, %v7763_v42  ;;  %v7464_v19 = vld [vmem:[%s14295_s6 + $0x498] sm:$0xff]  ;;  %v12818_v42 = vpack.c.bf16 %v7462_v25, %v7461_v20  ;;  %v7449_v25 = vld [vmem:[%s14295_s6 + $0x420] sm:$0xff] }
 0x41e   : > { %v2309_v17 = vadd.f32 %v7765_v28, %v2238_v10  ;;  %v7446_v28 = vld [vmem:[%s14295_s6 + $0x408] sm:$0xff]  ;;  %14521 = vst [vmem:[#allocation37_spill] sm:$0xff] %v12818_v42 }
 0x41f   : > { %v12820_v3 = vpack.c.bf16 %v7446_v28, %v7445_v58  ;;  %v7467_v58 = vld [vmem:[%s14295_s6 + $0x4b0] sm:$0xff]  ;;  %v7468_v28 = vld [vmem:[%s14295_s6 + $0x4b8] sm:$0xff] }
 0x420   : > { %v7513_v8 = vmul.f32 -1.442695, %v2309_v17  ;;  %v7466_v17 = vld [vmem:[%s14295_s6 + $0x4a8] sm:$0xff] }
 0x421   : > { %14522 = vst [vmem:[#allocation38_spill] sm:$0xff] %v12820_v3  ;;  %v12850_v20 = vpack.c.bf16 %v7466_v17, %v7465_v31  ;;  %v7470_v31 = vld [vmem:[%s14295_s6 + $0x4c8] sm:$0xff] }
 0x422   : > { %11185 = vpow2.f32 %v7513_v8 }
 0x423   : > { %14525 = vst [vmem:[#allocation41_spill] sm:$0xff] %v12850_v20 }
 0x42c   : > { %v11186_v9 = vpop.eup %11185 }
 0x42d   : > { %v2313_v40 = vadd.f32 1.0, %v11186_v9  ;;  %v7463_v9 = vld [vmem:[%s14295_s6 + $0x490] sm:$0xff] }
 0x42e   : > { %v12826_v8 = vpack.c.bf16 %v7464_v19, %v7463_v9  ;;  %v12868_v9 = vpack.c.bf16 %v7468_v28, %v7467_v58  ;;  %v7451_v19 = vld [vmem:[%s14295_s6 + $0x430] sm:$0xff]  ;;  %v7454_v58 = vld [vmem:[%s14295_s6 + $0x448] sm:$0xff] }
 0x42f   : > { %11187 = vrcp.f32 %v2313_v40  ;;  %v12845_v40 = vpack.c.bf16 %v7448_v26, %v7447_v63  ;;  %v7452_v63 = vld [vmem:[%s14295_s6 + $0x438] sm:$0xff]  ;;  %v7469_v26 = vld [vmem:[%s14295_s6 + $0x4c0] sm:$0xff]  ;;  %v7471_v28 = vld [vmem:[%s14295_s6 + $0x4d0] sm:$0xff] }
 0x430   : > { %14523 = vst [vmem:[#allocation39_spill] sm:$0xff] %v12826_v8  ;;  %14527 = vst [vmem:[#allocation43_spill] sm:$0xff] %v12868_v9  ;;  %v12883_v17 = vpack.c.bf16 %v7452_v63, %v7451_v19  ;;  %v7472_v19 = vld [vmem:[%s14295_s6 + $0x4d8] sm:$0xff] }
 0x431   : > { %14524 = vst [vmem:[#allocation40_spill] sm:$0xff] %v12845_v40 }
 0x432   : > { %14528 = vst [vmem:[#allocation44_spill] sm:$0xff] %v12883_v17 }
 0x439   : > { %v11188_v10 = vpop.eup %11187 }
 0x43a   : > { %v12816_v49 = vmul.f32 0.0, %v11188_v10 }
 0x43c   : > { %2391 = vrot.lane.b32.xlu0 %v12816_v49, %s11297_s19  ;;  %2388 = vrot.lane.b32.xlu1 %v12816_v49, %s11298_s20 }
 0x43d   : > { %9471 = vmatpush3.msra.mxu1 %v12816_v49 }
 0x43e   : > { %9473 = vmatmul.mubr.msk.f32.vlgmr.msra.gmra.mrb[22].mxu1 %vm718_vm4, %v12071_v27  ;;  %9725 = vmatprep.subr.bf16.mxu1 %v12818_v42  ;;  %v7450_v27 = vld [vmem:[%s14295_s6 + $0x428] sm:$0xff] }
 0x43f   : > { %9727 = vmatpush3.bf16.msra.mxu1 %v12820_v3  ;;  %v12865_v10 = vpack.c.bf16 %v7450_v27, %v7449_v25  ;;  %v12886_v25 = vpack.c.bf16 %v7470_v31, %v7469_v26  ;;  %v7453_v27 = vld [vmem:[%s14295_s6 + $0x440] sm:$0xff]  ;;  %v12904_v26 = vpack.c.bf16 %v7472_v19, %v7471_v28  ;;  %v7455_v31 = vld [vmem:[%s14295_s6 + $0x450] sm:$0xff] }
 0x440   : > { %2394 = vrot.lane.b32.xlu1 %v12816_v49, %s11299_s25  ;;  %9729 = vmatprep.subr.bf16.mxu1 %v12826_v8  ;;  %v12901_v63 = vpack.c.bf16 %v7454_v58, %v7453_v27  ;;  %v7474_v27 = vld [vmem:[%s14295_s6 + $0x4e8] sm:$0xff]  ;;  %v7457_v19 = vld [vmem:[%s14295_s6 + $0x460] sm:$0xff] }
 0x441   : > { %14526 = vst [vmem:[#allocation42_spill] sm:$0xff] %v12865_v10  ;;  %14529 = vst [vmem:[#allocation45_spill] sm:$0xff] %v12886_v25 }
 0x442   : > { %14530 = vst [vmem:[#allocation46_spill] sm:$0xff] %v12901_v63  ;;  %14531 = vst [vmem:[#allocation47_spill] sm:$0xff] %v12904_v26 }
 0x443   : > { %9731 = vmatpush3.bf16.msra.mxu1 %v12845_v40 }
 0x444   : > { %9733 = vmatprep.subr.bf16.mxu1 %v12850_v20  ;;  %v7499_v20 = vld [vmem:[%s14295_s6 + $0x5b0] sm:$0xff] }
 0x447   : > { %9735 = vmatpush3.bf16.msra.mxu1 %v12865_v10  ;;  %v7473_v10 = vld [vmem:[%s14295_s6 + $0x4e0] sm:$0xff] }
 0x448   : > { %9737 = vmatprep.subr.bf16.mxu1 %v12868_v9  ;;  %v7456_v9 = vld [vmem:[%s14295_s6 + $0x458] sm:$0xff]  ;;  %v12922_v28 = vpack.c.bf16 %v7474_v27, %v7473_v10  ;;  %v7459_v27 = vld [vmem:[%s14295_s6 + $0x470] sm:$0xff] }
 0x449   : > { %v12919_v58 = vpack.c.bf16 %v7456_v9, %v7455_v31  ;;  %v7476_v9 = vld [vmem:[%s14295_s6 + $0x4f8] sm:$0xff] }
 0x44a   : > { %14533 = vst [vmem:[#allocation49_spill] sm:$0xff] %v12922_v28 }
 0x44b   : > { %9739 = vmatpush3.bf16.msra.mxu1 %v12883_v17  ;;  %14532 = vst [vmem:[#allocation48_spill] sm:$0xff] %v12919_v58  ;;  %v7475_v17 = vld [vmem:[%s14295_s6 + $0x4f0] sm:$0xff] }
 0x44c   : > { %9741 = vmatprep.subr.bf16.mxu1 %v12886_v25  ;;  %v7458_v25 = vld [vmem:[%s14295_s6 + $0x468] sm:$0xff]  ;;  %v12940_v31 = vpack.c.bf16 %v7476_v9, %v7475_v17  ;;  %v7493_v17 = vld [vmem:[%s14295_s6 + $0x580] sm:$0xff] }
 0x44d   : > { %v12937_v10 = vpack.c.bf16 %v7458_v25, %v7457_v19  ;;  %v14537_v25 = vmov 0.0   ;;  %v7494_v19 = vld [vmem:[%s14295_s6 + $0x588] sm:$0xff]  ;;  %v7477_v9 = vld [vmem:[%s14295_s6 + $0x500] sm:$0xff] }
 0x44e   : > { %14535 = vst [vmem:[#allocation51_spill] sm:$0xff] %v12940_v31 }
 0x44f   : > { %9743 = vmatpush3.bf16.msra.mxu1 %v12901_v63  ;;  %14534 = vst [vmem:[#allocation50_spill] sm:$0xff] %v12937_v10 }
 0x450   : > { %9745 = vmatprep.subr.bf16.mxu1 %v12904_v26  ;;  %v7460_v26 = vld [vmem:[%s14295_s6 + $0x478] sm:$0xff] }
 0x451   : > { %v12949_v63 = vpack.c.bf16 %v7460_v26, %v7459_v27  ;;  %v12963_v26 = vpack.c.bf16 %v7494_v19, %v7493_v17  ;;  %v7478_v27 = vld [vmem:[%s14295_s6 + $0x508] sm:$0xff]  ;;  %v7479_v17 = vld [vmem:[%s14295_s6 + $0x510] sm:$0xff]  ;;  %v7480_v19 = vld [vmem:[%s14295_s6 + $0x518] sm:$0xff] }
 0x453   : > { %9747 = vmatpush3.bf16.msra.mxu1 %v12919_v58  ;;  %14536 = vst [vmem:[#allocation52_spill] sm:$0xff] %v12949_v63  ;;  %14538 = vst [vmem:[#allocation53_spill] sm:$0xff] %v12963_v26  ;;  %v7497_v58 = vld [vmem:[%s14295_s6 + $0x5a0] sm:$0xff]  ;;  %9757 = vmatprep.subr.bf16.mxu0 %v12963_v26  ;;  %v7482_v26 = vld [vmem:[%s14295_s6 + $0x528] sm:$0xff] }
 0x454   : > { %9749 = vmatprep.subr.bf16.mxu1 %v12922_v28 }
 0x457   : > { %9751 = vmatpush3.bf16.msra.mxu1 %v12937_v10  ;;  %v12974_v10 = vpack.c.bf16 %v7478_v27, %v7477_v9  ;;  %v7498_v9 = vld [vmem:[%s14295_s6 + $0x5a8] sm:$0xff]  ;;  %v7481_v27 = vld [vmem:[%s14295_s6 + $0x520] sm:$0xff] }
 0x458   : > { %9753 = vmatprep.subr.bf16.mxu1 %v12940_v31  ;;  %v7496_v31 = vld [vmem:[%s14295_s6 + $0x598] sm:$0xff] }
 0x459   : > { %14539 = vst [vmem:[#allocation54_spill] sm:$0xff] %v12974_v10  ;;  %9759 = vmatpush3.bf16.msra.mxu0 %v12974_v10  ;;  %v7501_v10 = vld [vmem:[%s14295_s6 + $0x5c0] sm:$0xff] }
 0x45b   : > { %9755 = vmatpush3.bf16.msra.mxu1 %v12949_v63  ;;  %v7495_v63 = vld [vmem:[%s14295_s6 + $0x590] sm:$0xff] }
 0x45c   : > { %9475 = vmatprep.subr.mxu1 %v14537_v25  ;;  %v12976_v28 = vpack.c.bf16 %v7496_v31, %v7495_v63  ;;  %v12992_v63 = vpack.c.bf16 %v7480_v19, %v7479_v17  ;;  %v12995_v31 = vpack.c.bf16 %v7498_v9, %v7497_v58  ;;  %v7500_v17 = vld [vmem:[%s14295_s6 + $0x5b8] sm:$0xff]  ;;  %v13010_v58 = vpack.c.bf16 %v7482_v26, %v7481_v27  ;;  %v7483_v9 = vld [vmem:[%s14295_s6 + $0x530] sm:$0xff]  ;;  %v7502_v26 = vld [vmem:[%s14295_s6 + $0x5c8] sm:$0xff] }
 0x45d   : > { %v13013_v19 = vpack.c.bf16 %v7500_v17, %v7499_v20  ;;  %v13031_v27 = vpack.c.bf16 %v7502_v26, %v7501_v10  ;;  %v7485_v17 = vld [vmem:[%s14295_s6 + $0x540] sm:$0xff]  ;;  %v7487_v26 = vld [vmem:[%s14295_s6 + $0x550] sm:$0xff] }
 0x45e   : > { %14540 = vst [vmem:[#allocation55_spill] sm:$0xff] %v12976_v28  ;;  %14541 = vst [vmem:[#allocation56_spill] sm:$0xff] %v12992_v63  ;;  %9761 = vmatprep.subr.bf16.mxu0 %v12976_v28  ;;  %v7484_v28 = vld [vmem:[%s14295_s6 + $0x538] sm:$0xff] }
 0x45f   : > { %14542 = vst [vmem:[#allocation57_spill] sm:$0xff] %v12995_v31  ;;  %9763 = vmatpush3.bf16.msra.mxu0 %v12992_v63  ;;  %14543 = vst [vmem:[#allocation58_spill] sm:$0xff] %v13010_v58  ;;  %v13028_v20 = vpack.c.bf16 %v7484_v28, %v7483_v9  ;;  %v7503_v63 = vld [vmem:[%s14295_s6 + $0x5d0] sm:$0xff]  ;;  %v7504_v28 = vld [vmem:[%s14295_s6 + $0x5d8] sm:$0xff] }
 0x460   : > { %9765 = vmatprep.subr.bf16.mxu0 %v12995_v31  ;;  %14544 = vst [vmem:[#allocation59_spill] sm:$0xff] %v13013_v19  ;;  %14546 = vst [vmem:[#allocation61_spill] sm:$0xff] %v13031_v27  ;;  %v7486_v31 = vld [vmem:[%s14295_s6 + $0x548] sm:$0xff]  ;;  %v13049_v9 = vpack.c.bf16 %v7504_v28, %v7503_v63 }
 0x461   : > { %14545 = vst [vmem:[#allocation60_spill] sm:$0xff] %v13028_v20  ;;  %v13046_v10 = vpack.c.bf16 %v7486_v31, %v7485_v17 }
 0x462   : > { %14548 = vst [vmem:[#allocation63_spill] sm:$0xff] %v13049_v9 }
 0x463   : > { %9767 = vmatpush3.bf16.msra.mxu0 %v13010_v58  ;;  %14547 = vst [vmem:[#allocation62_spill] sm:$0xff] %v13046_v10 }
 0x464   : > { %9769 = vmatprep.subr.bf16.mxu0 %v13013_v19  ;;  %v7488_v19 = vld [vmem:[%s14295_s6 + $0x558] sm:$0xff] }
 0x465   : > { %v13058_v58 = vpack.c.bf16 %v7488_v19, %v7487_v26  ;;  %v7505_v19 = vld [vmem:[%s14295_s6 + $0x5e0] sm:$0xff] }
 0x467   : > { %9771 = vmatpush3.bf16.msra.mxu0 %v13028_v20  ;;  %14549 = vst [vmem:[#allocation64_spill] sm:$0xff] %v13058_v58 }
 0x468   : > { %9773 = vmatprep.subr.bf16.mxu0 %v13031_v27 }
 0x46b   : > { %9775 = vmatpush3.bf16.msra.mxu0 %v13046_v10 }
 0x46c   : > { %9777 = vmatprep.subr.bf16.mxu0 %v13049_v9 }
 0x46f   : > { %9779 = vmatpush3.bf16.msra.mxu0 %v13058_v58 }
 0x4ae   : > { %v2389_v31 = vpop.permute.xlu1 %2388  ;;  %v2392_v17 = vpop.permute.xlu0 %2391 }
 0x4af   : > { %v2397_v63 = vsel %vm1266_vm10, %v12816_v49, %v2389_v31  ;;  %v7506_v49 = vld [vmem:[%s14295_s6 + $0x5e8] sm:$0xff]  ;;  %v7508_v31 = vld [vmem:[%s14295_s6 + $0x5f8] sm:$0xff] }
 0x4b0   : > { %v2398_v28 = vsel %vm385_vm0, %v2397_v63, %v2392_v17  ;;  %v13076_v26 = vpack.c.bf16 %v7506_v49, %v7505_v19  ;;  %v7491_v63 = vld [vmem:[%s14295_s6 + $0x570] sm:$0xff] }
 0x4b2   : > { %v2395_v27 = vpop.permute.xlu1 %2394  ;;  %14550 = vst [vmem:[#allocation65_spill] sm:$0xff] %v13076_v26  ;;  %9781 = vmatprep.subr.bf16.mxu0 %v13076_v26 }
 0x4b3   : > { %v2399_v20 = vsel %vm2012_vm11, %v2398_v28, %v2395_v27  ;;  %v7489_v27 = vld [vmem:[%s14295_s6 + $0x560] sm:$0xff]  ;;  %v7492_v28 = vld [vmem:[%s14295_s6 + $0x578] sm:$0xff] }
 0x4b4   : > { %v2400_v40 = vmul.f32 %v2399_v20, %v12311_v12  ;;  %v2401_v10 = vmul.f32 %v2399_v20, %v12218_v38  ;;  %v13102_v19 = vpack.c.bf16 %v7492_v28, %v7491_v63 }
 0x4b6   : > { %2483 = vmatprep.mubr.f32.mxu1 %v2401_v10  ;;  %v7507_v10 = vld [vmem:[%s14295_s6 + $0x5f0] sm:$0xff]  ;;  %14553 = vst [vmem:[#allocation68_spill] sm:$0xff] %v13102_v19 }
 0x4b7   : > { %2484 = vmatmul.mubr.f32.vlgmr.msra.gmra.mrb[24].mxu1 %v2400_v40  ;;  %v7490_v40 = vld [vmem:[%s14295_s6 + $0x568] sm:$0xff]  ;;  %v13094_v17 = vpack.c.bf16 %v7508_v31, %v7507_v10 }
 0x4b8   : > { %9477 = vmatprep.mubr.msk.f32.mxu1 %vm11296_vm9, %v14537_v25  ;;  %v13084_v20 = vpack.c.bf16 %v7490_v40, %v7489_v27 }
 0x4b9   : > { %14552 = vst [vmem:[#allocation67_spill] sm:$0xff] %v13094_v17 }
 0x4ba   : > { %14551 = vst [vmem:[#allocation66_spill] sm:$0xff] %v13084_v20  ;;  %9783 = vmatpush3.bf16.msra.mxu0 %v13084_v20 }
 0x4bb   : > { %9785 = vmatprep.subr.bf16.mxu0 %v13094_v17 }
 0x4be   : > { %9787 = vmatpush3.bf16.msra.mxu0 %v13102_v19 }
 0x4bf   : > { %9821 = vmatprep.subr.bf16.mxu0 %v12466_v61 }
 0x511   : > { %v2383_v49 = vpop.f32.mrb[22].mxu1 }
 0x512   : > { %2406 = vrot.lane.b32.xlu1 %v2383_v49, %s11297_s19  ;;  %2403 = vrot.lane.b32.xlu0 %v2383_v49, %s11298_s20  ;;  %v9474_v27 = vpop.f32.mrb[23].mxu1 }
 0x516   : > { %2409 = vrot.lane.b32.xlu0 %v2383_v49, %s11299_s25 }
 0x584   : > { %v2404_v40 = vpop.permute.xlu0 %2403  ;;  %v2407_v10 = vpop.permute.xlu1 %2406 }
 0x585   : > { %v2412_v31 = vsel %vm1266_vm10, %v2383_v49, %v2404_v40 }
 0x586   : > { %v2413_v63 = vsel %vm385_vm0, %v2412_v31, %v2407_v10 }
 0x588   : > { %v2410_v28 = vpop.permute.xlu0 %2409 }
 0x589   : > { %v2414_v17 = vsel %vm2012_vm11, %v2413_v63, %v2410_v28 }
 0x58a   : > { %v2415_v19 = vmul.f32 %v2414_v17, %v12311_v12  ;;  %v2416_v61 = vmul.f32 %v2414_v17, %v12218_v38  ;;  %v7800_v20 = vpop.f32.mrb[24].mxu1  ;;  %v7512_v38 = vmul.f32 -1.442695, %v12790_v57 }
 0x58b   : > { %v7801_v26 = vpop.f32.mrb[25].mxu1 }
 0x58c   : > { %v7802_v58 = vadd.f32 %v7801_v26, %v7800_v20  ;;  %2554 = vmatprep.mubr.f32.mxu0 %v2416_v61  ;;  %11189 = vpow2.f32 %v7512_v38  ;;  %v13135_v61 = vld [vmem:[%s14296_s7 + $0x10] sm:$0xff]  ;;  %v2417_v26 = vld [vmem:[#allocation4] sm:$0xff] }
 0x58d   : > { %2555 = vmatmul.mubr.f32.vlgmr.msra.gmra.mrb[22].mxu0 %v2415_v19  ;;  %v2418_v17 = vadd.f32 %v13135_v61, %v2417_v26 }
 0x58e   : > { %9823 = vmatpush3.bf16.msra.mxu0 %v12471_v60 }
 0x58f   : > { %9825 = vmatprep.subr.bf16.mxu0 %v12481_v1  ;;  %v2489_v27 = vadd.f32 %v7802_v58, %v2418_v17  ;;  %v13148_v58 = vld [vmem:[%s14290_s1] sm:$0xff] }
 0x592   : > { %9827 = vmatpush3.bf16.msra.mxu0 %v12489_v36 }
 0x593   : > { %9829 = vmatprep.subr.bf16.mxu0 %v12499_v37 }
 0x596   : > { %9831 = vmatpush3.bf16.msra.mxu0 %v12507_v14  ;;  %v11190_v12 = vpop.eup %11189 }
 0x597   : > { %9833 = vmatprep.subr.bf16.mxu0 %v12520_v32  ;;  %v2163_v20 = vadd.f32 1.0, %v11190_v12 }
 0x599   : > { %11191 = vrcp.f32 %v2163_v20 }
 0x59a   : > { %9835 = vmatpush3.bf16.msra.mxu0 %v12531_v35 }
 0x59b   : > { %9837 = vmatprep.subr.bf16.mxu0 %v12533_v56 }
 0x59e   : > { %9839 = vmatpush3.bf16.msra.mxu0 %v12549_v62 }
 0x59f   : > { %9841 = vmatprep.subr.bf16.mxu0 %v12552_v30 }
 0x5a2   : > { %9843 = vmatpush3.bf16.msra.mxu0 %v12567_v24 }
 0x5a3   : > { %9845 = vmatprep.subr.bf16.mxu0 %v12570_v5  ;;  %v11192_v31 = vpop.eup %11191 }
 0x5a4   : > { %v2563_v57 = vsub.f32 1.0, %v11192_v31  ;;  %v2562_v28 = vmul.f32 0.0, %v11192_v31 }
 0x5a6   : > { %9847 = vmatpush3.bf16.msra.mxu0 %v12582_v11 }
 0x5a7   : > { %9849 = vmatprep.subr.bf16.mxu0 %v12593_v54 }
 0x5aa   : > { %9851 = vmatpush3.bf16.msra.mxu0 %v12602_v50 }
 0x5ab   : > { %9885 = vmatprep.subr.bf16.mxu0 %v12613_v48 }
 0x660   : > { %v7835_v19 = vpop.f32.mrb[22].mxu0 }
 0x661   : > { %v7836_v49 = vpop.f32.mrb[23].mxu0 }
 0x662   : > { %v7837_v40 = vadd.f32 %v7836_v49, %v7835_v19 }
 0x664   : > { %v2560_v10 = vadd.f32 %v7837_v40, %v2489_v27  ;;  %v13178_v27 = vld [vmem:[%s14292_s3] sm:$0xff] }
 0x666   : > { %11193 = vtanh.f32 %v2560_v10  ;;  %v13184_v10 = vld [vmem:[%s14292_s3 + $0x8] sm:$0xff] }
 0x670   : > { %v11194_v63 = vpop.eup %11193 }
 0x671   : > { %v2564_v38 = vmul.f32 %v11194_v63, %v2563_v57  ;;  %v14554_v57 = vld [vmem:[#allocation22_spill] sm:$0xff]  ;;  %v14555_v63 = vld [vmem:[#allocation19_spill] sm:$0xff] }
 0x673   : > { %v13138_v48 = vadd.f32 %v2564_v38, %v2562_v28  ;;  %v14556_v28 = vld [vmem:[#allocation6_spill] sm:$0xff]  ;;  %v14557_v38 = vld [vmem:[#allocation15_spill] sm:$0xff] }
 0x675   : > { %2640 = vrot.lane.b32.xlu0 %v13138_v48, %s11297_s19  ;;  %2637 = vrot.lane.b32.xlu1 %v13138_v48, %s11298_s20 }
 0x676   : > { %9476 = vmatpush3.msra.mxu1 %v13138_v48 }
 0x677   : > { %9478 = vmatmul.mubr.msk.f32.vlgmr.msra.gmra.mrb[26].mxu1 %vm718_vm4, %v13148_v58  ;;  %9789 = vmatprep.subr.bf16.mxu1 %v12132_v44 }
 0x678   : > { %9791 = vmatpush3.bf16.msra.mxu1 %v12161_v46 }
 0x679   : > { %2643 = vrot.lane.b32.xlu1 %v13138_v48, %s11299_s25  ;;  %9793 = vmatprep.subr.bf16.mxu1 %v12163_v4 }
 0x67c   : > { %9795 = vmatpush3.bf16.msra.mxu1 %v12182_v33 }
 0x67d   : > { %9797 = vmatprep.subr.bf16.mxu1 %v12185_v52 }
 0x680   : > { %9799 = vmatpush3.bf16.msra.mxu1 %v12204_v51 }
 0x681   : > { %9801 = vmatprep.subr.bf16.mxu1 %v12207_v22 }
 0x684   : > { %9803 = vmatpush3.bf16.msra.mxu1 %v12231_v16 }
 0x685   : > { %9805 = vmatprep.subr.bf16.mxu1 %v12235_v34 }
 0x688   : > { %9807 = vmatpush3.bf16.msra.mxu1 %v12252_v7 }
 0x689   : > { %9809 = vmatprep.subr.bf16.mxu1 %v12255_v55 }
 0x68c   : > { %9811 = vmatpush3.bf16.msra.mxu1 %v12270_v59 }
 0x68d   : > { %9813 = vmatprep.subr.bf16.mxu1 %v12273_v15 }
 0x690   : > { %9815 = vmatpush3.bf16.msra.mxu1 %v12288_v6 }
 0x691   : > { %9817 = vmatprep.subr.bf16.mxu1 %v12291_v53 }
 0x694   : > { %9819 = vmatpush3.bf16.msra.mxu1 %v12306_v43 }
 0x695   : > { %9853 = vmatprep.subr.bf16.mxu1 %v12314_v39 }
 0x6e7   : > { %v2638_v12 = vpop.permute.xlu1 %2637  ;;  %v2641_v26 = vpop.permute.xlu0 %2640 }
 0x6e8   : > { %v2646_v20 = vsel %vm1266_vm10, %v13138_v48, %v2638_v12  ;;  %v14558_v12 = vld [vmem:[#allocation16_spill] sm:$0xff] }
 0x6e9   : > { %v2647_v17 = vsel %vm385_vm0, %v2646_v20, %v2641_v26  ;;  %v14559_v26 = vld [vmem:[#allocation5_spill] sm:$0xff] }
 0x6eb   : > { %v2644_v19 = vpop.permute.xlu1 %2643 }
 0x6ec   : > { %v2648_v49 = vsel %vm2012_vm11, %v2647_v17, %v2644_v19 }
 0x6ed   : > { %v2649_v40 = vmul.f32 %v13178_v27, %v2648_v49  ;;  %v2650_v31 = vmul.f32 %v13184_v10, %v2648_v49 }
 0x6ef   : > { %2733 = vmatprep.mubr.f32.mxu1 %v2650_v31 }
 0x6f0   : > { %2734 = vmatmul.mubr.f32.vlgmr.msra.gmra.mrb[28].mxu1 %v2649_v40 }
 0x6f1   : > { %9855 = vmatpush3.bf16.msra.mxu1 %v12330_v45  ;;  %2884 = vmatprep.mubr.f32.mxu1 %v2650_v31 }
 0x6f2   : > { %9857 = vmatprep.subr.bf16.mxu1 %v12333_v47 }
 0x6f5   : > { %9859 = vmatpush3.bf16.msra.mxu1 %v12348_v13 }
 0x6f6   : > { %9861 = vmatprep.subr.bf16.mxu1 %v12351_v18 }
 0x6f9   : > { %9863 = vmatpush3.bf16.msra.mxu1 %v12366_v21  ;;  %v14561_v21 = vld [vmem:[#allocation23_spill] sm:$0xff] }
 0x6fa   : > { %9865 = vmatprep.subr.bf16.mxu1 %v12369_v41 }
 0x6fd   : > { %9867 = vmatpush3.bf16.msra.mxu1 %v12384_v23 }
 0x6fe   : > { %9869 = vmatprep.subr.bf16.mxu1 %v12387_v0  ;;  %v14560_v0 = vld [vmem:[#allocation36_spill] sm:$0xff] }
 0x701   : > { %9871 = vmatpush3.bf16.msra.mxu1 %v12402_v2 }
 0x702   : > { %9873 = vmatprep.subr.bf16.mxu1 %v14554_v57 }
 0x705   : > { %9875 = vmatpush3.bf16.msra.mxu1 %v14555_v63 }
 0x706   : > { %9877 = vmatprep.subr.bf16.mxu1 %v14556_v28 }
 0x709   : > { %9879 = vmatpush3.bf16.msra.mxu1 %v14557_v38  ;;  %v2667_v38 = vld [vmem:[#allocation2 + $0x8] sm:$0xff] }
 0x70a   : > { %9881 = vmatprep.subr.bf16.mxu1 %v14558_v12 }
 0x70d   : > { %9883 = vmatpush3.bf16.msra.mxu1 %v14559_v26 }
 0x70e   : > { %9480 = vmatprep.subr.mxu1 %v14537_v25 }
 0x710   : > { %2885 = vmatmul.mubr.f32.vlgmr.msra.gmra.mrb[30].mxu1 %v2649_v40 }
 0x711   : > { %9482 = vmatprep.mubr.msk.f32.mxu1 %vm11296_vm9, %v14537_v25 }
 0x74a   : > { %v2632_v20 = vpop.f32.mrb[26].mxu1 }
 0x74b   : > { %2655 = vrot.lane.b32.xlu1 %v2632_v20, %s11297_s19  ;;  %2652 = vrot.lane.b32.xlu0 %v2632_v20, %s11298_s20  ;;  %v9479_v17 = vpop.f32.mrb[27].mxu1 }
 0x74c   : > { %v2668_v17 = vadd.f32 %v2667_v38, %v14560_v0  ;;  %v14568_v38 = vld [vmem:[#allocation28_spill] sm:$0xff] }
 0x74f   : > { %2658 = vrot.lane.b32.xlu0 %v2632_v20, %s11299_s25 }
 0x7bd   : > { %v2653_v19 = vpop.permute.xlu0 %2652  ;;  %v2656_v49 = vpop.permute.xlu1 %2655 }
 0x7be   : > { %v2661_v31 = vsel %vm1266_vm10, %v2632_v20, %v2653_v19  ;;  %v14562_v20 = vld [vmem:[#allocation20_spill] sm:$0xff]  ;;  %v14563_v19 = vld [vmem:[#allocation25_spill] sm:$0xff] }
 0x7bf   : > { %v2662_v26 = vsel %vm385_vm0, %v2661_v31, %v2656_v49  ;;  %v14566_v49 = vld [vmem:[#allocation7_spill] sm:$0xff]  ;;  %v14567_v31 = vld [vmem:[#allocation8_spill] sm:$0xff] }
 0x7c1   : > { %v2659_v12 = vpop.permute.xlu0 %2658 }
 0x7c2   : > { %v2663_v40 = vsel %vm2012_vm11, %v2662_v26, %v2659_v12  ;;  %v14564_v12 = vld [vmem:[#allocation27_spill] sm:$0xff]  ;;  %v14565_v26 = vld [vmem:[#allocation24_spill] sm:$0xff] }
 0x7c3   : > { %v2664_v28 = vmul.f32 %v13178_v27, %v2663_v40  ;;  %v2665_v63 = vmul.f32 %v13184_v10, %v2663_v40  ;;  %v7872_v57 = vpop.f32.mrb[28].mxu1  ;;  %v14573_v40 = vld [vmem:[#allocation33_spill] sm:$0xff] }
 0x7c4   : > { %v7873_v2 = vpop.f32.mrb[29].mxu1 }
 0x7c5   : > { %v7874_v23 = vadd.f32 %v7873_v2, %v7872_v57  ;;  %2804 = vmatprep.mubr.f32.mxu0 %v2665_v63  ;;  %v14569_v2 = vld [vmem:[#allocation29_spill] sm:$0xff]  ;;  %v14571_v57 = vld [vmem:[#allocation31_spill] sm:$0xff] }
 0x7c6   : > { %2805 = vmatmul.mubr.f32.vlgmr.msra.gmra.mrb[24].mxu0 %v2664_v28 }
 0x7c7   : > { %v2739_v41 = vadd.f32 %v7874_v23, %v2668_v17  ;;  %9887 = vmatpush3.bf16.msra.mxu0 %v14561_v21  ;;  %2955 = vmatprep.mubr.f32.mxu0 %v2665_v63  ;;  %v14570_v23 = vld [vmem:[#allocation30_spill] sm:$0xff]  ;;  %v14572_v63 = vld [vmem:[#allocation32_spill] sm:$0xff] }
 0x7c8   : > { %9889 = vmatprep.subr.bf16.mxu0 %v14562_v20  ;;  %v14574_v17 = vld [vmem:[#allocation34_spill] sm:$0xff] }
 0x7cb   : > { %9891 = vmatpush3.bf16.msra.mxu0 %v14563_v19 }
 0x7cc   : > { %9893 = vmatprep.subr.bf16.mxu0 %v14564_v12  ;;  %v2818_v12 = vld [vmem:[#allocation3 + $0x8] sm:$0xff] }
 0x7cf   : > { %9895 = vmatpush3.bf16.msra.mxu0 %v14565_v26  ;;  %v14575_v26 = vld [vmem:[#allocation35_spill] sm:$0xff] }
 0x7d0   : > { %9897 = vmatprep.subr.bf16.mxu0 %v14566_v49 }
 0x7d3   : > { %9899 = vmatpush3.bf16.msra.mxu0 %v14567_v31 }
 0x7d4   : > { %9901 = vmatprep.subr.bf16.mxu0 %v14568_v38  ;;  %v2819_v38 = vadd.f32 %v12795_v29, %v2818_v12  ;;  %v14582_v29 = vld [vmem:[#allocation46_spill] sm:$0xff]  ;;  %v14585_v12 = vld [vmem:[#allocation49_spill] sm:$0xff] }
 0x7d7   : > { %9903 = vmatpush3.bf16.msra.mxu0 %v14569_v2 }
 0x7d8   : > { %9905 = vmatprep.subr.bf16.mxu0 %v14570_v23 }
 0x7db   : > { %9907 = vmatpush3.bf16.msra.mxu0 %v14571_v57  ;;  %v14580_v57 = vld [vmem:[#allocation44_spill] sm:$0xff] }
 0x7dc   : > { %9909 = vmatprep.subr.bf16.mxu0 %v14572_v63  ;;  %v14576_v63 = vld [vmem:[#allocation40_spill] sm:$0xff] }
 0x7df   : > { %9911 = vmatpush3.bf16.msra.mxu0 %v14573_v40  ;;  %v14577_v40 = vld [vmem:[#allocation41_spill] sm:$0xff] }
 0x7e0   : > { %9913 = vmatprep.subr.bf16.mxu0 %v14574_v17  ;;  %v14578_v17 = vld [vmem:[#allocation42_spill] sm:$0xff] }
 0x7e3   : > { %9915 = vmatpush3.bf16.msra.mxu0 %v14575_v26  ;;  %v7942_v49 = vpop.f32.mrb[30].mxu1  ;;  %v14579_v26 = vld [vmem:[#allocation43_spill] sm:$0xff] }
 0x7e4   : > { %v7943_v19 = vpop.f32.mrb[31].mxu1  ;;  %9917 = vmatprep.subr.bf16.mxu0 %v12818_v42  ;;  %v14581_v42 = vld [vmem:[#allocation45_spill] sm:$0xff] }
 0x7e5   : > { %v7944_v2 = vadd.f32 %v7943_v19, %v7942_v49  ;;  %v14584_v19 = vld [vmem:[#allocation48_spill] sm:$0xff]  ;;  %v14586_v49 = vld [vmem:[#allocation50_spill] sm:$0xff] }
 0x7e6   : > { %2956 = vmatmul.mubr.f32.vlgmr.msra.gmra.mrb[26].mxu0 %v2664_v28  ;;  %v14583_v28 = vld [vmem:[#allocation47_spill] sm:$0xff] }
 0x7e7   : > { %v2890_v23 = vadd.f32 %v7944_v2, %v2819_v38  ;;  %9919 = vmatpush3.bf16.msra.mxu0 %v12820_v3  ;;  %v14587_v38 = vld [vmem:[#allocation51_spill] sm:$0xff]  ;;  %v14588_v2 = vld [vmem:[#allocation52_spill] sm:$0xff] }
 0x7e8   : > { %9921 = vmatprep.subr.bf16.mxu0 %v12826_v8 }
 0x7eb   : > { %9923 = vmatpush3.bf16.msra.mxu0 %v14576_v63 }
 0x7ec   : > { %9925 = vmatprep.subr.bf16.mxu0 %v14577_v40 }
 0x7ef   : > { %9927 = vmatpush3.bf16.msra.mxu0 %v14578_v17 }
 0x7f0   : > { %9929 = vmatprep.subr.bf16.mxu0 %v14579_v26 }
 0x7f3   : > { %9931 = vmatpush3.bf16.msra.mxu0 %v14580_v57 }
 0x7f4   : > { %9933 = vmatprep.subr.bf16.mxu0 %v14581_v42 }
 0x7f7   : > { %9935 = vmatpush3.bf16.msra.mxu0 %v14582_v29 }
 0x7f8   : > { %9937 = vmatprep.subr.bf16.mxu0 %v14583_v28 }
 0x7fb   : > { %9939 = vmatpush3.bf16.msra.mxu0 %v14584_v19 }
 0x7fc   : > { %9941 = vmatprep.subr.bf16.mxu0 %v14585_v12 }
 0x7ff   : > { %9943 = vmatpush3.bf16.msra.mxu0 %v14586_v49 }
 0x800   : > { %9945 = vmatprep.subr.bf16.mxu0 %v14587_v38 }
 0x803   : > { %9947 = vmatpush3.bf16.msra.mxu0 %v14588_v2 }
 0x804   : > { %9485 = vmatprep.subr.mxu0 %v14537_v25 }
 0x899   : > { %v7907_v26 = vpop.f32.mrb[24].mxu0 }
 0x89a   : > { %v7908_v57 = vpop.f32.mrb[25].mxu0 }
 0x89b   : > { %v7909_v17 = vadd.f32 %v7908_v57, %v7907_v26  ;;  %v14590_v26 = vld [vmem:[#allocation54_spill] sm:$0xff]  ;;  %v14593_v57 = vld [vmem:[#allocation57_spill] sm:$0xff] }
 0x89d   : > { %v13247_v42 = vadd.f32 %v7909_v17, %v2739_v41  ;;  %v14589_v41 = vld [vmem:[#allocation53_spill] sm:$0xff]  ;;  %v14596_v17 = vld [vmem:[#allocation60_spill] sm:$0xff] }
 0x8b9   : > { %v7977_v29 = vpop.f32.mrb[26].mxu0 }
 0x8ba   : > { %v7978_v40 = vpop.f32.mrb[27].mxu0 }
 0x8bb   : > { %v7979_v28 = vadd.f32 %v7978_v40, %v7977_v29  ;;  %v14595_v40 = vld [vmem:[#allocation59_spill] sm:$0xff]  ;;  %v14597_v29 = vld [vmem:[#allocation61_spill] sm:$0xff] }
 0x8bd   : > { %v2961_v63 = vadd.f32 %v7979_v28, %v2890_v23  ;;  %v14591_v23 = vld [vmem:[#allocation55_spill] sm:$0xff]  ;;  %v14598_v28 = vld [vmem:[#allocation62_spill] sm:$0xff] }
 0x8bf   : > { %v7517_v19 = vmul.f32 -1.442695, %v2961_v63  ;;  %v14594_v63 = vld [vmem:[#allocation58_spill] sm:$0xff] }
 0x8c1   : > { %11195 = vpow2.f32 %v7517_v19  ;;  %v14599_v19 = vld [vmem:[#allocation64_spill] sm:$0xff] }
 0x8cb   : > { %v11196_v12 = vpop.eup %11195 }
 0x8cc   : > { %v2965_v8 = vadd.f32 1.0, %v11196_v12  ;;  %v14600_v12 = vld [vmem:[#allocation65_spill] sm:$0xff] }
 0x8ce   : > { %11197 = vrcp.f32 %v2965_v8  ;;  %v14592_v8 = vld [vmem:[#allocation56_spill] sm:$0xff] }
 0x8d8   : > { %v11198_v49 = vpop.eup %11197 }
 0x8d9   : > { %v2968_v38 = vmul.f32 %v11198_v49, %v13138_v48  ;;  %v14601_v49 = vld [vmem:[#allocation66_spill] sm:$0xff] }
 0x8db   : > { %3043 = vrot.lane.b32.xlu0 %v2968_v38, %s11297_s19  ;;  %3040 = vrot.lane.b32.xlu1 %v2968_v38, %s11298_s20 }
 0x8dc   : > { %9481 = vmatpush3.msra.mxu1 %v2968_v38 }
 0x8dd   : > { %9483 = vmatmul.mubr.msk.f32.vlgmr.msra.gmra.mrb[32].mxu1 %vm718_vm4, %v13148_v58  ;;  %9949 = vmatprep.subr.bf16.mxu1 %v14589_v41 }
 0x8de   : > { %9951 = vmatpush3.bf16.msra.mxu1 %v14590_v26 }
 0x8df   : > { %3046 = vrot.lane.b32.xlu1 %v2968_v38, %s11299_s25  ;;  %9953 = vmatprep.subr.bf16.mxu1 %v14591_v23 }
 0x8e2   : > { %9955 = vmatpush3.bf16.msra.mxu1 %v14592_v8  ;;  %v14602_v8 = vld [vmem:[#allocation67_spill] sm:$0xff] }
 0x8e3   : > { %9957 = vmatprep.subr.bf16.mxu1 %v14593_v57  ;;  %v14603_v57 = vld [vmem:[#allocation68_spill] sm:$0xff] }
 0x8e6   : > { %9959 = vmatpush3.bf16.msra.mxu1 %v14594_v63 }
 0x8e7   : > { %9961 = vmatprep.subr.bf16.mxu1 %v14595_v40 }
 0x8ea   : > { %9963 = vmatpush3.bf16.msra.mxu1 %v14596_v17 }
 0x8eb   : > { %9965 = vmatprep.subr.bf16.mxu1 %v14597_v29 }
 0x8ee   : > { %9967 = vmatpush3.bf16.msra.mxu1 %v14598_v28 }
 0x8ef   : > { %9969 = vmatprep.subr.bf16.mxu1 %v13049_v9 }
 0x8f2   : > { %9971 = vmatpush3.bf16.msra.mxu1 %v14599_v19 }
 0x8f3   : > { %9973 = vmatprep.subr.bf16.mxu1 %v14600_v12 }
 0x8f6   : > { %9975 = vmatpush3.bf16.msra.mxu1 %v14601_v49 }
 0x8f7   : > { %9977 = vmatprep.subr.bf16.mxu1 %v14602_v8 }
 0x8fa   : > { %9979 = vmatpush3.bf16.msra.mxu1 %v14603_v57 }
 0x8fb   : > { %9981 = vmatprep.subr.bf16.mxu1 %v12132_v44 }
 0x94d   : > { %v3041_v40 = vpop.permute.xlu1 %3040  ;;  %v3044_v17 = vpop.permute.xlu0 %3043 }
 0x94e   : > { %v3049_v29 = vsel %vm1266_vm10, %v2968_v38, %v3041_v40 }
 0x94f   : > { %v3050_v28 = vsel %vm385_vm0, %v3049_v29, %v3044_v17 }
 0x951   : > { %v3047_v63 = vpop.permute.xlu1 %3046 }
 0x952   : > { %v3051_v9 = vsel %vm2012_vm11, %v3050_v28, %v3047_v63 }
 0x953   : > { %v3052_v19 = vmul.f32 %v13178_v27, %v3051_v9  ;;  %v3053_v12 = vmul.f32 %v13184_v10, %v3051_v9 }
 0x955   : > { %3136 = vmatprep.mubr.f32.mxu0 %v3053_v12 }
 0x956   : > { %3137 = vmatmul.mubr.f32.vlgmr.msra.gmra.mrb[28].mxu0 %v3052_v19  ;;  %v3070_v19 = vld [vmem:[#allocation4 + $0x8] sm:$0xff] }
 0x957   : > { %9487 = vmatprep.mubr.msk.f32.mxu0 %vm11296_vm9, %v14537_v25 }
 0x9b0   : > { %v3035_v57 = vpop.f32.mrb[32].mxu1 }
 0x9b1   : > { %3058 = vrot.lane.b32.xlu1 %v3035_v57, %s11297_s19  ;;  %3055 = vrot.lane.b32.xlu0 %v3035_v57, %s11298_s20  ;;  %v9484_v38 = vpop.f32.mrb[33].mxu1 }
 0x9b2   : > { %v3071_v38 = vadd.f32 %v13135_v61, %v3070_v19 }
 0x9b5   : > { %3061 = vrot.lane.b32.xlu0 %v3035_v57, %s11299_s25 }
 0xa23   : > { %v3056_v40 = vpop.permute.xlu0 %3055  ;;  %v3059_v17 = vpop.permute.xlu1 %3058 }
 0xa24   : > { %v3064_v63 = vsel %vm1266_vm10, %v3035_v57, %v3056_v40 }
 0xa25   : > { %v3065_v29 = vsel %vm385_vm0, %v3064_v63, %v3059_v17 }
 0xa27   : > { %v3062_v9 = vpop.permute.xlu0 %3061 }
 0xa28   : > { %v3066_v28 = vsel %vm2012_vm11, %v3065_v29, %v3062_v9 }
 0xa29   : > { %v3067_v12 = vmul.f32 %v13178_v27, %v3066_v28  ;;  %v3068_v44 = vmul.f32 %v13184_v10, %v3066_v28  ;;  %v8014_v8 = vpop.f32.mrb[28].mxu0 }
 0xa2a   : > { %v8015_v49 = vpop.f32.mrb[29].mxu0 }
 0xa2b   : > { %v8016_v23 = vadd.f32 %v8015_v49, %v8014_v8  ;;  %3207 = vmatprep.mubr.f32.mxu1 %v3068_v44  ;;  %v7516_v44 = vmul.f32 -1.442695, %v13247_v42  ;;  %v14604_v42 = vld [vmem:[#allocation21_spill] sm:$0xff] }
 0xa2c   : > { %3208 = vmatmul.mubr.f32.vlgmr.msra.gmra.mrb[34].mxu1 %v3067_v12 }
 0xa2d   : > { %v3142_v26 = vadd.f32 %v8016_v23, %v3071_v38  ;;  %9983 = vmatpush3.bf16.msra.mxu1 %v12161_v46  ;;  %11199 = vpow2.f32 %v7516_v44 }
 0xa2e   : > { %9985 = vmatprep.subr.bf16.mxu1 %v12163_v4 }
 0xa31   : > { %9987 = vmatpush3.bf16.msra.mxu1 %v12182_v33 }
 0xa32   : > { %9989 = vmatprep.subr.bf16.mxu1 %v12185_v52 }
 0xa35   : > { %9991 = vmatpush3.bf16.msra.mxu1 %v12204_v51 }
 0xa36   : > { %9993 = vmatprep.subr.bf16.mxu1 %v12207_v22 }
 0xa37   : > { %v11200_v23 = vpop.eup %11199 }
 0xa38   : > { %v2814_v8 = vadd.f32 1.0, %v11200_v23 }
 0xa39   : > { %9995 = vmatpush3.bf16.msra.mxu1 %v12231_v16 }
 0xa3a   : > { %9997 = vmatprep.subr.bf16.mxu1 %v12235_v34  ;;  %11201 = vrcp.f32 %v2814_v8 }
 0xa3d   : > { %9999 = vmatpush3.bf16.msra.mxu1 %v12252_v7 }
 0xa3e   : > { %10001 = vmatprep.subr.bf16.mxu1 %v12255_v55 }
 0xa41   : > { %10003 = vmatpush3.bf16.msra.mxu1 %v12270_v59 }
 0xa42   : > { %10005 = vmatprep.subr.bf16.mxu1 %v12273_v15 }
 0xa44   : > { %v11202_v63 = vpop.eup %11201 }
 0xa45   : > { %10007 = vmatpush3.bf16.msra.mxu1 %v12288_v6  ;;  %v3216_v29 = vsub.f32 1.0, %v11202_v63  ;;  %v3215_v28 = vmul.f32 %v11202_v63, %v13138_v48  ;;  %v14605_v48 = vld [vmem:[#allocation26_spill] sm:$0xff]  ;;  %v14607_v63 = vld [vmem:[#allocation9_spill] sm:$0xff] }
 0xa46   : > { %10009 = vmatprep.subr.bf16.mxu1 %v12291_v53 }
 0xa49   : > { %10011 = vmatpush3.bf16.msra.mxu1 %v12306_v43 }
 0xa4a   : > { %10045 = vmatprep.subr.bf16.mxu1 %v12314_v39 }
 0xaff   : > { %v8049_v57 = vpop.f32.mrb[34].mxu1 }
 0xb00   : > { %v8050_v49 = vpop.f32.mrb[35].mxu1 }
 0xb01   : > { %v8051_v40 = vadd.f32 %v8050_v49, %v8049_v57 }
 0xb03   : > { %v3213_v17 = vadd.f32 %v8051_v40, %v3142_v26 }
 0xb05   : > { %11203 = vtanh.f32 %v3213_v17  ;;  %v14606_v17 = vld [vmem:[#allocation18_spill] sm:$0xff] }
 0xb0f   : > { %v11204_v9 = vpop.eup %11203 }
 0xb10   : > { %v3217_v19 = vmul.f32 %v11204_v9, %v3216_v29  ;;  %v14608_v29 = vld [vmem:[#allocation12_spill] sm:$0xff]  ;;  %v14609_v9 = vld [vmem:[#allocation13_spill] sm:$0xff] }
 0xb12   : > { %v13306_v12 = vadd.f32 %v3217_v19, %v3215_v28  ;;  %v14610_v28 = vld [vmem:[#allocation17_spill] sm:$0xff]  ;;  %v14611_v19 = vld [vmem:[#allocation22_spill] sm:$0xff] }
 0xb14   : > { %3293 = vrot.lane.b32.xlu0 %v13306_v12, %s11297_s19  ;;  %3290 = vrot.lane.b32.xlu1 %v13306_v12, %s11298_s20 }
 0xb15   : > { %9486 = vmatpush3.msra.mxu0 %v13306_v12 }
 0xb16   : > { %9488 = vmatmul.mubr.msk.f32.vlgmr.msra.gmra.mrb[30].mxu0 %vm718_vm4, %v13148_v58  ;;  %10013 = vmatprep.subr.bf16.mxu0 %v14604_v42 }
 0xb17   : > { %10015 = vmatpush3.bf16.msra.mxu0 %v12471_v60 }
 0xb18   : > { %3296 = vrot.lane.b32.xlu1 %v13306_v12, %s11299_s25  ;;  %10017 = vmatprep.subr.bf16.mxu0 %v12481_v1 }
 0xb1b   : > { %10019 = vmatpush3.bf16.msra.mxu0 %v12489_v36 }
 0xb1c   : > { %10021 = vmatprep.subr.bf16.mxu0 %v12499_v37 }
 0xb1f   : > { %10023 = vmatpush3.bf16.msra.mxu0 %v12507_v14 }
 0xb20   : > { %10025 = vmatprep.subr.bf16.mxu0 %v12520_v32 }
 0xb23   : > { %10027 = vmatpush3.bf16.msra.mxu0 %v12531_v35 }
 0xb24   : > { %10029 = vmatprep.subr.bf16.mxu0 %v12533_v56 }
 0xb27   : > { %10031 = vmatpush3.bf16.msra.mxu0 %v12549_v62 }
 0xb28   : > { %10033 = vmatprep.subr.bf16.mxu0 %v12552_v30 }
 0xb2b   : > { %10035 = vmatpush3.bf16.msra.mxu0 %v12567_v24 }
 0xb2c   : > { %10037 = vmatprep.subr.bf16.mxu0 %v12570_v5 }
 0xb2f   : > { %10039 = vmatpush3.bf16.msra.mxu0 %v12582_v11 }
 0xb30   : > { %10041 = vmatprep.subr.bf16.mxu0 %v12593_v54 }
 0xb33   : > { %10043 = vmatpush3.bf16.msra.mxu0 %v12602_v50 }
 0xb34   : > { %10077 = vmatprep.subr.bf16.mxu0 %v14605_v48 }
 0xb86   : > { %v3291_v26 = vpop.permute.xlu1 %3290  ;;  %v3294_v38 = vpop.permute.xlu0 %3293 }
 0xb87   : > { %v3299_v44 = vsel %vm1266_vm10, %v13306_v12, %v3291_v26  ;;  %v14612_v26 = vld [vmem:[#allocation19_spill] sm:$0xff] }
 0xb88   : > { %v3300_v23 = vsel %vm385_vm0, %v3299_v44, %v3294_v38  ;;  %v14613_v38 = vld [vmem:[#allocation6_spill] sm:$0xff]  ;;  %v14614_v44 = vld [vmem:[#allocation15_spill] sm:$0xff] }
 0xb8a   : > { %v3297_v8 = vpop.permute.xlu1 %3296 }
 0xb8b   : > { %v3301_v57 = vsel %vm2012_vm11, %v3300_v23, %v3297_v8  ;;  %v14615_v23 = vld [vmem:[#allocation16_spill] sm:$0xff]  ;;  %v14616_v8 = vld [vmem:[#allocation5_spill] sm:$0xff] }
 0xb8c   : > { %v3302_v49 = vmul.f32 %v13178_v27, %v3301_v57  ;;  %v3303_v40 = vmul.f32 %v13184_v10, %v3301_v57 }
 0xb8e   : > { %3386 = vmatprep.mubr.f32.mxu1 %v3303_v40 }
 0xb8f   : > { %3387 = vmatmul.mubr.f32.vlgmr.msra.gmra.mrb[36].mxu1 %v3302_v49 }
 0xb90   : > { %10047 = vmatpush3.bf16.msra.mxu1 %v12330_v45  ;;  %3537 = vmatprep.mubr.f32.mxu1 %v3303_v40 }
 0xb91   : > { %10049 = vmatprep.subr.bf16.mxu1 %v12333_v47 }
 0xb94   : > { %10051 = vmatpush3.bf16.msra.mxu1 %v12348_v13 }
 0xb95   : > { %10053 = vmatprep.subr.bf16.mxu1 %v12351_v18 }
 0xb98   : > { %10055 = vmatpush3.bf16.msra.mxu1 %v14606_v17 }
 0xb99   : > { %10057 = vmatprep.subr.bf16.mxu1 %v14607_v63 }
 0xb9c   : > { %10059 = vmatpush3.bf16.msra.mxu1 %v14608_v29 }
 0xb9d   : > { %10061 = vmatprep.subr.bf16.mxu1 %v14609_v9 }
 0xba0   : > { %10063 = vmatpush3.bf16.msra.mxu1 %v14610_v28 }
 0xba1   : > { %10065 = vmatprep.subr.bf16.mxu1 %v14611_v19  ;;  %v3320_v19 = vld [vmem:[#allocation2 + $0x10] sm:$0xff] }
 0xba4   : > { %10067 = vmatpush3.bf16.msra.mxu1 %v14612_v26 }
 0xba5   : > { %10069 = vmatprep.subr.bf16.mxu1 %v14613_v38 }
 0xba8   : > { %10071 = vmatpush3.bf16.msra.mxu1 %v14614_v44 }
 0xba9   : > { %10073 = vmatprep.subr.bf16.mxu1 %v14615_v23 }
 0xbac   : > { %10075 = vmatpush3.bf16.msra.mxu1 %v14616_v8 }
 0xbad   : > { %9490 = vmatprep.subr.mxu1 %v14537_v25 }
 0xbaf   : > { %3538 = vmatmul.mubr.f32.vlgmr.msra.gmra.mrb[38].mxu1 %v3302_v49 }
 0xbb0   : > { %9492 = vmatprep.mubr.msk.f32.mxu1 %vm11296_vm9, %v14537_v25 }
 0xbe9   : > { %v3285_v57 = vpop.f32.mrb[30].mxu0 }
 0xbea   : > { %3308 = vrot.lane.b32.xlu1 %v3285_v57, %s11297_s19  ;;  %3305 = vrot.lane.b32.xlu0 %v3285_v57, %s11298_s20  ;;  %v9489_v40 = vpop.f32.mrb[31].mxu0 }
 0xbeb   : > { %v3321_v40 = vadd.f32 %v3320_v19, %v14560_v0  ;;  %v14621_v0 = vld [vmem:[#allocation28_spill] sm:$0xff]  ;;  %v14626_v19 = vld [vmem:[#allocation33_spill] sm:$0xff] }
 0xbee   : > { %3311 = vrot.lane.b32.xlu0 %v3285_v57, %s11299_s25 }
 0xc5c   : > { %v3306_v38 = vpop.permute.xlu0 %3305  ;;  %v3309_v44 = vpop.permute.xlu1 %3308 }
 0xc5d   : > { %v3314_v23 = vsel %vm1266_vm10, %v3285_v57, %v3306_v38  ;;  %v14617_v38 = vld [vmem:[#allocation25_spill] sm:$0xff]  ;;  %v3471_v57 = vld [vmem:[#allocation3 + $0x10] sm:$0xff] }
 0xc5e   : > { %v3315_v8 = vsel %vm385_vm0, %v3314_v23, %v3309_v44  ;;  %v14619_v44 = vld [vmem:[#allocation24_spill] sm:$0xff]  ;;  %v14620_v23 = vld [vmem:[#allocation7_spill] sm:$0xff] }
 0xc60   : > { %v3312_v26 = vpop.permute.xlu0 %3311 }
 0xc61   : > { %v3316_v49 = vsel %vm2012_vm11, %v3315_v8, %v3312_v26  ;;  %v14618_v26 = vld [vmem:[#allocation27_spill] sm:$0xff]  ;;  %v14627_v8 = vld [vmem:[#allocation34_spill] sm:$0xff] }
 0xc62   : > { %v3317_v28 = vmul.f32 %v13178_v27, %v3316_v49  ;;  %v3318_v9 = vmul.f32 %v13184_v10, %v3316_v49  ;;  %v8086_v29 = vpop.f32.mrb[36].mxu1  ;;  %v14628_v49 = vld [vmem:[#allocation35_spill] sm:$0xff] }
 0xc63   : > { %v8087_v63 = vpop.f32.mrb[37].mxu1 }
 0xc64   : > { %v8088_v17 = vadd.f32 %v8087_v63, %v8086_v29  ;;  %3457 = vmatprep.mubr.f32.mxu0 %v3318_v9  ;;  %v14622_v63 = vld [vmem:[#allocation29_spill] sm:$0xff]  ;;  %v14624_v29 = vld [vmem:[#allocation31_spill] sm:$0xff] }
 0xc65   : > { %3458 = vmatmul.mubr.f32.vlgmr.msra.gmra.mrb[32].mxu0 %v3317_v28 }
 0xc66   : > { %v3392_v18 = vadd.f32 %v8088_v17, %v3321_v40  ;;  %10079 = vmatpush3.bf16.msra.mxu0 %v14561_v21  ;;  %3608 = vmatprep.mubr.f32.mxu0 %v3318_v9  ;;  %v14623_v17 = vld [vmem:[#allocation30_spill] sm:$0xff]  ;;  %v14625_v9 = vld [vmem:[#allocation32_spill] sm:$0xff] }
 0xc67   : > { %10081 = vmatprep.subr.bf16.mxu0 %v14562_v20 }
 0xc6a   : > { %10083 = vmatpush3.bf16.msra.mxu0 %v14617_v38 }
 0xc6b   : > { %10085 = vmatprep.subr.bf16.mxu0 %v14618_v26  ;;  %v14637_v26 = vld [vmem:[#allocation45_spill] sm:$0xff] }
 0xc6e   : > { %10087 = vmatpush3.bf16.msra.mxu0 %v14619_v44  ;;  %v14636_v44 = vld [vmem:[#allocation44_spill] sm:$0xff] }
 0xc6f   : > { %10089 = vmatprep.subr.bf16.mxu0 %v14620_v23 }
 0xc72   : > { %10091 = vmatpush3.bf16.msra.mxu0 %v14567_v31  ;;  %v14629_v31 = vld [vmem:[#allocation37_spill] sm:$0xff] }
 0xc73   : > { %10093 = vmatprep.subr.bf16.mxu0 %v14621_v0  ;;  %v14634_v0 = vld [vmem:[#allocation42_spill] sm:$0xff] }
 0xc76   : > { %10095 = vmatpush3.bf16.msra.mxu0 %v14622_v63  ;;  %v13386_v63 = vld [vmem:[%s14296_s7 + $0x8] sm:$0xff] }
 0xc77   : > { %10097 = vmatprep.subr.bf16.mxu0 %v14623_v17  ;;  %14630 = vst [vmem:[#allocation36_spill] sm:$0xff] %v13386_v63 }
 0xc7a   : > { %10099 = vmatpush3.bf16.msra.mxu0 %v14624_v29  ;;  %v3472_v29 = vadd.f32 %v13386_v63, %v3471_v57  ;;  %v14638_v57 = vld [vmem:[#allocation46_spill] sm:$0xff] }
 0xc7b   : > { %10101 = vmatprep.subr.bf16.mxu0 %v14625_v9 }
 0xc7e   : > { %10103 = vmatpush3.bf16.msra.mxu0 %v14626_v19  ;;  %v14632_v19 = vld [vmem:[#allocation40_spill] sm:$0xff] }
 0xc7f   : > { %10105 = vmatprep.subr.bf16.mxu0 %v14627_v8  ;;  %v14631_v8 = vld [vmem:[#allocation39_spill] sm:$0xff] }
 0xc82   : > { %10107 = vmatpush3.bf16.msra.mxu0 %v14628_v49  ;;  %v8156_v40 = vpop.f32.mrb[38].mxu1  ;;  %v14633_v49 = vld [vmem:[#allocation41_spill] sm:$0xff] }
 0xc83   : > { %v8157_v23 = vpop.f32.mrb[39].mxu1  ;;  %10109 = vmatprep.subr.bf16.mxu0 %v14629_v31  ;;  %v14635_v31 = vld [vmem:[#allocation43_spill] sm:$0xff] }
 0xc84   : > { %v8158_v17 = vadd.f32 %v8157_v23, %v8156_v40  ;;  %v14640_v23 = vld [vmem:[#allocation48_spill] sm:$0xff]  ;;  %v14643_v40 = vld [vmem:[#allocation51_spill] sm:$0xff] }
 0xc85   : > { %3609 = vmatmul.mubr.f32.vlgmr.msra.gmra.mrb[34].mxu0 %v3317_v28  ;;  %v14639_v28 = vld [vmem:[#allocation47_spill] sm:$0xff] }
 0xc86   : > { %v3543_v9 = vadd.f32 %v8158_v17, %v3472_v29  ;;  %10111 = vmatpush3.bf16.msra.mxu0 %v12820_v3  ;;  %v14641_v17 = vld [vmem:[#allocation49_spill] sm:$0xff]  ;;  %v14642_v29 = vld [vmem:[#allocation50_spill] sm:$0xff] }
 0xc87   : > { %10113 = vmatprep.subr.bf16.mxu0 %v14631_v8 }
 0xc8a   : > { %10115 = vmatpush3.bf16.msra.mxu0 %v14632_v19 }
 0xc8b   : > { %10117 = vmatprep.subr.bf16.mxu0 %v14633_v49 }
 0xc8e   : > { %10119 = vmatpush3.bf16.msra.mxu0 %v14634_v0 }
 0xc8f   : > { %10121 = vmatprep.subr.bf16.mxu0 %v14635_v31 }
 0xc92   : > { %10123 = vmatpush3.bf16.msra.mxu0 %v14636_v44 }
 0xc93   : > { %10125 = vmatprep.subr.bf16.mxu0 %v14637_v26 }
 0xc96   : > { %10127 = vmatpush3.bf16.msra.mxu0 %v14638_v57 }
 0xc97   : > { %10129 = vmatprep.subr.bf16.mxu0 %v14639_v28 }
 0xc9a   : > { %10131 = vmatpush3.bf16.msra.mxu0 %v14640_v23 }
 0xc9b   : > { %10133 = vmatprep.subr.bf16.mxu0 %v14641_v17 }
 0xc9e   : > { %10135 = vmatpush3.bf16.msra.mxu0 %v14642_v29 }
 0xc9f   : > { %10137 = vmatprep.subr.bf16.mxu0 %v14643_v40 }
 0xca2   : > { %10139 = vmatpush3.bf16.msra.mxu0 %v14588_v2 }
 0xca3   : > { %9495 = vmatprep.subr.mxu0 %v14537_v25 }
 0xd38   : > { %v8121_v31 = vpop.f32.mrb[32].mxu0 }
 0xd39   : > { %v8122_v44 = vpop.f32.mrb[33].mxu0 }
 0xd3a   : > { %v8123_v0 = vadd.f32 %v8122_v44, %v8121_v31  ;;  %v14645_v31 = vld [vmem:[#allocation55_spill] sm:$0xff]  ;;  %v14646_v44 = vld [vmem:[#allocation56_spill] sm:$0xff] }
 0xd3c   : > { %v13405_v26 = vadd.f32 %v8123_v0, %v3392_v18  ;;  %v14644_v18 = vld [vmem:[#allocation54_spill] sm:$0xff]  ;;  %v14647_v0 = vld [vmem:[#allocation57_spill] sm:$0xff] }
 0xd58   : > { %v8191_v57 = vpop.f32.mrb[34].mxu0 }
 0xd59   : > { %v8192_v49 = vpop.f32.mrb[35].mxu0 }
 0xd5a   : > { %v8193_v28 = vadd.f32 %v8192_v49, %v8191_v57  ;;  %v14651_v49 = vld [vmem:[#allocation61_spill] sm:$0xff]  ;;  %v14652_v57 = vld [vmem:[#allocation62_spill] sm:$0xff] }
 0xd5c   : > { %v3614_v19 = vadd.f32 %v8193_v28, %v3543_v9  ;;  %v14648_v9 = vld [vmem:[#allocation58_spill] sm:$0xff]  ;;  %v14653_v28 = vld [vmem:[#allocation63_spill] sm:$0xff] }
 0xd5e   : > { %v7521_v23 = vmul.f32 -1.442695, %v3614_v19  ;;  %v14649_v19 = vld [vmem:[#allocation59_spill] sm:$0xff] }
 0xd60   : > { %11205 = vpow2.f32 %v7521_v23  ;;  %v14654_v23 = vld [vmem:[#allocation64_spill] sm:$0xff] }
 0xd6a   : > { %v11206_v17 = vpop.eup %11205 }
 0xd6b   : > { %v3618_v8 = vadd.f32 1.0, %v11206_v17  ;;  %v14655_v17 = vld [vmem:[#allocation65_spill] sm:$0xff] }
 0xd6d   : > { %11207 = vrcp.f32 %v3618_v8  ;;  %v14650_v8 = vld [vmem:[#allocation60_spill] sm:$0xff] }
 0xd77   : > { %v11208_v29 = vpop.eup %11207 }
 0xd78   : > { %v3621_v40 = vmul.f32 %v11208_v29, %v13306_v12  ;;  %v14656_v29 = vld [vmem:[#allocation66_spill] sm:$0xff] }
 0xd7a   : > { %3696 = vrot.lane.b32.xlu0 %v3621_v40, %s11297_s19  ;;  %3693 = vrot.lane.b32.xlu1 %v3621_v40, %s11298_s20 }
 0xd7b   : > { %9491 = vmatpush3.msra.mxu1 %v3621_v40 }
 0xd7c   : > { %9493 = vmatmul.mubr.msk.f32.vlgmr.msra.gmra.mrb[40].mxu1 %vm718_vm4, %v13148_v58  ;;  %10141 = vmatprep.subr.bf16.mxu1 %v14589_v41 }
 0xd7d   : > { %10143 = vmatpush3.bf16.msra.mxu1 %v14644_v18 }
 0xd7e   : > { %3699 = vrot.lane.b32.xlu1 %v3621_v40, %s11299_s25  ;;  %10145 = vmatprep.subr.bf16.mxu1 %v14645_v31 }
 0xd81   : > { %10147 = vmatpush3.bf16.msra.mxu1 %v14646_v44  ;;  %v14657_v44 = vld [vmem:[#allocation67_spill] sm:$0xff] }
 0xd82   : > { %10149 = vmatprep.subr.bf16.mxu1 %v14647_v0  ;;  %v14658_v0 = vld [vmem:[#allocation68_spill] sm:$0xff] }
 0xd85   : > { %10151 = vmatpush3.bf16.msra.mxu1 %v14648_v9  ;;  %v14659_v9 = vld [vmem:[#allocation10_spill] sm:$0xff] }
 0xd86   : > { %10153 = vmatprep.subr.bf16.mxu1 %v14649_v19 }
 0xd89   : > { %10155 = vmatpush3.bf16.msra.mxu1 %v14650_v8 }
 0xd8a   : > { %10157 = vmatprep.subr.bf16.mxu1 %v14651_v49 }
 0xd8d   : > { %10159 = vmatpush3.bf16.msra.mxu1 %v14652_v57 }
 0xd8e   : > { %10161 = vmatprep.subr.bf16.mxu1 %v14653_v28 }
 0xd91   : > { %10163 = vmatpush3.bf16.msra.mxu1 %v14654_v23 }
 0xd92   : > { %10165 = vmatprep.subr.bf16.mxu1 %v14655_v17 }
 0xd95   : > { %10167 = vmatpush3.bf16.msra.mxu1 %v14656_v29 }
 0xd96   : > { %10169 = vmatprep.subr.bf16.mxu1 %v14657_v44 }
 0xd99   : > { %10171 = vmatpush3.bf16.msra.mxu1 %v14658_v0 }
 0xd9a   : > { %10173 = vmatprep.subr.bf16.mxu1 %v14659_v9 }
 0xdec   : > { %v3694_v19 = vpop.permute.xlu1 %3693  ;;  %v3697_v8 = vpop.permute.xlu0 %3696 }
 0xded   : > { %v3702_v49 = vsel %vm1266_vm10, %v3621_v40, %v3694_v19 }
 0xdee   : > { %v3703_v57 = vsel %vm385_vm0, %v3702_v49, %v3697_v8 }
 0xdf0   : > { %v3700_v31 = vpop.permute.xlu1 %3699 }
 0xdf1   : > { %v3704_v28 = vsel %vm2012_vm11, %v3703_v57, %v3700_v31 }
 0xdf2   : > { %v3705_v23 = vmul.f32 %v13178_v27, %v3704_v28  ;;  %v3706_v17 = vmul.f32 %v13184_v10, %v3704_v28 }
 0xdf4   : > { %3789 = vmatprep.mubr.f32.mxu0 %v3706_v17 }
 0xdf5   : > { %3790 = vmatmul.mubr.f32.vlgmr.msra.gmra.mrb[36].mxu0 %v3705_v23  ;;  %v3723_v23 = vld [vmem:[#allocation4 + $0x10] sm:$0xff] }
 0xdf6   : > { %9497 = vmatprep.mubr.msk.f32.mxu0 %vm11296_vm9, %v14537_v25 }
 0xe4f   : > { %v3688_v0 = vpop.f32.mrb[40].mxu1 }
 0xe50   : > { %3711 = vrot.lane.b32.xlu1 %v3688_v0, %s11297_s19  ;;  %3708 = vrot.lane.b32.xlu0 %v3688_v0, %s11298_s20  ;;  %v9494_v40 = vpop.f32.mrb[41].mxu1 }
 0xe51   : > { %v3724_v40 = vadd.f32 %v13135_v61, %v3723_v23  ;;  %v7520_v61 = vmul.f32 -1.442695, %v13405_v26 }
 0xe53   : > { %11209 = vpow2.f32 %v7520_v61 }
 0xe54   : > { %3714 = vrot.lane.b32.xlu0 %v3688_v0, %s11299_s25 }
 0xec2   : > { %v3709_v19 = vpop.permute.xlu0 %3708  ;;  %v3712_v8 = vpop.permute.xlu1 %3711 }
 0xec3   : > { %v3717_v31 = vsel %vm1266_vm10, %v3688_v0, %v3709_v19 }
 0xec4   : > { %v3718_v49 = vsel %vm385_vm0, %v3717_v31, %v3712_v8 }
 0xec6   : > { %v3715_v57 = vpop.permute.xlu0 %3714 }
 0xec7   : > { %v3719_v28 = vsel %vm2012_vm11, %v3718_v49, %v3715_v57 }
 0xec8   : > { %v3720_v17 = vmul.f32 %v13178_v27, %v3719_v28  ;;  %v3721_v9 = vmul.f32 %v13184_v10, %v3719_v28  ;;  %v8228_v44 = vpop.f32.mrb[36].mxu0 }
 0xec9   : > { %v8229_v29 = vpop.f32.mrb[37].mxu0 }
 0xeca   : > { %v8230_v18 = vadd.f32 %v8229_v29, %v8228_v44  ;;  %3860 = vmatprep.mubr.f32.mxu1 %v3721_v9 }
 0xecb   : > { %3861 = vmatmul.mubr.f32.vlgmr.msra.gmra.mrb[42].mxu1 %v3720_v17 }
 0xecc   : > { %v3795_v41 = vadd.f32 %v8230_v18, %v3724_v40  ;;  %10175 = vmatpush3.bf16.msra.mxu1 %v12161_v46  ;;  %v11210_v18 = vpop.eup %11209 }
 0xecd   : > { %10177 = vmatprep.subr.bf16.mxu1 %v12163_v4  ;;  %v3467_v44 = vadd.f32 1.0, %v11210_v18 }
 0xecf   : > { %11211 = vrcp.f32 %v3467_v44  ;;  %v14660_v44 = vld [vmem:[#allocation14_spill] sm:$0xff] }
 0xed0   : > { %10179 = vmatpush3.bf16.msra.mxu1 %v12182_v33 }
 0xed1   : > { %10181 = vmatprep.subr.bf16.mxu1 %v12185_v52 }
 0xed4   : > { %10183 = vmatpush3.bf16.msra.mxu1 %v12204_v51 }
 0xed5   : > { %10185 = vmatprep.subr.bf16.mxu1 %v12207_v22 }
 0xed8   : > { %10187 = vmatpush3.bf16.msra.mxu1 %v12231_v16 }
 0xed9   : > { %10189 = vmatprep.subr.bf16.mxu1 %v12235_v34  ;;  %v11212_v8 = vpop.eup %11211 }
 0xeda   : > { %v3869_v31 = vsub.f32 1.0, %v11212_v8  ;;  %v3868_v57 = vmul.f32 %v11212_v8, %v13306_v12  ;;  %v14665_v8 = vld [vmem:[#allocation17_spill] sm:$0xff] }
 0xedc   : > { %10191 = vmatpush3.bf16.msra.mxu1 %v12252_v7 }
 0xedd   : > { %10193 = vmatprep.subr.bf16.mxu1 %v12255_v55 }
 0xee0   : > { %10195 = vmatpush3.bf16.msra.mxu1 %v12270_v59 }
 0xee1   : > { %10197 = vmatprep.subr.bf16.mxu1 %v12273_v15 }
 0xee4   : > { %10199 = vmatpush3.bf16.msra.mxu1 %v12288_v6 }
 0xee5   : > { %10201 = vmatprep.subr.bf16.mxu1 %v12291_v53 }
 0xee8   : > { %10203 = vmatpush3.bf16.msra.mxu1 %v12306_v43 }
 0xee9   : > { %10237 = vmatprep.subr.bf16.mxu1 %v12314_v39 }
 0xf9e   : > { %v8263_v0 = vpop.f32.mrb[42].mxu1 }
 0xf9f   : > { %v8264_v9 = vpop.f32.mrb[43].mxu1 }
 0xfa0   : > { %v8265_v29 = vadd.f32 %v8264_v9, %v8263_v0  ;;  %v14661_v0 = vld [vmem:[#allocation18_spill] sm:$0xff]  ;;  %v14662_v9 = vld [vmem:[#allocation9_spill] sm:$0xff] }
 0xfa2   : > { %v3866_v19 = vadd.f32 %v8265_v29, %v3795_v41  ;;  %v14663_v29 = vld [vmem:[#allocation12_spill] sm:$0xff] }
 0xfa4   : > { %11213 = vtanh.f32 %v3866_v19  ;;  %v14664_v19 = vld [vmem:[#allocation13_spill] sm:$0xff] }
 0xfae   : > { %v11214_v49 = vpop.eup %11213 }
 0xfaf   : > { %v3870_v28 = vmul.f32 %v11214_v49, %v3869_v31  ;;  %v14666_v31 = vld [vmem:[#allocation22_spill] sm:$0xff]  ;;  %v14667_v49 = vld [vmem:[#allocation19_spill] sm:$0xff] }
 0xfb1   : > { %v13464_v23 = vadd.f32 %v3870_v28, %v3868_v57  ;;  %v14668_v57 = vld [vmem:[#allocation6_spill] sm:$0xff]  ;;  %v14669_v28 = vld [vmem:[#allocation15_spill] sm:$0xff] }
 0xfb3   : > { %3946 = vrot.lane.b32.xlu0 %v13464_v23, %s11297_s19  ;;  %3943 = vrot.lane.b32.xlu1 %v13464_v23, %s11298_s20 }
 0xfb4   : > { %9496 = vmatpush3.msra.mxu0 %v13464_v23 }
 0xfb5   : > { %9498 = vmatmul.mubr.msk.f32.vlgmr.msra.gmra.mrb[38].mxu0 %vm718_vm4, %v13148_v58  ;;  %10205 = vmatprep.subr.bf16.mxu0 %v14604_v42 }
 0xfb6   : > { %10207 = vmatpush3.bf16.msra.mxu0 %v12471_v60 }
 0xfb7   : > { %3949 = vrot.lane.b32.xlu1 %v13464_v23, %s11299_s25  ;;  %10209 = vmatprep.subr.bf16.mxu0 %v12481_v1 }
 0xfba   : > { %10211 = vmatpush3.bf16.msra.mxu0 %v12489_v36 }
 0xfbb   : > { %10213 = vmatprep.subr.bf16.mxu0 %v12499_v37 }
 0xfbe   : > { %10215 = vmatpush3.bf16.msra.mxu0 %v12507_v14 }
 0xfbf   : > { %10217 = vmatprep.subr.bf16.mxu0 %v12520_v32 }
 0xfc2   : > { %10219 = vmatpush3.bf16.msra.mxu0 %v12531_v35 }
 0xfc3   : > { %10221 = vmatprep.subr.bf16.mxu0 %v12533_v56 }
 0xfc6   : > { %10223 = vmatpush3.bf16.msra.mxu0 %v12549_v62 }
 0xfc7   : > { %10225 = vmatprep.subr.bf16.mxu0 %v12552_v30 }
 0xfca   : > { %10227 = vmatpush3.bf16.msra.mxu0 %v12567_v24 }
 0xfcb   : > { %10229 = vmatprep.subr.bf16.mxu0 %v12570_v5 }
 0xfce   : > { %10231 = vmatpush3.bf16.msra.mxu0 %v12582_v11 }
 0xfcf   : > { %10233 = vmatprep.subr.bf16.mxu0 %v12593_v54 }
 0xfd2   : > { %10235 = vmatpush3.bf16.msra.mxu0 %v12602_v50 }
 0xfd3   : > { %10269 = vmatprep.subr.bf16.mxu0 %v14605_v48 }
0x1025   : > { %v3944_v58 = vpop.permute.xlu1 %3943  ;;  %v3947_v41 = vpop.permute.xlu0 %3946 }
0x1026   : > { %v3952_v12 = vsel %vm1266_vm10, %v13464_v23, %v3944_v58  ;;  %v14670_v58 = vld [vmem:[#allocation16_spill] sm:$0xff] }
0x1027   : > { %v3953_v26 = vsel %vm385_vm0, %v3952_v12, %v3947_v41  ;;  %v14671_v41 = vld [vmem:[#allocation5_spill] sm:$0xff] }
0x1029   : > { %v3950_v17 = vpop.permute.xlu1 %3949 }
0x102a   : > { %v3954_v40 = vsel %vm2012_vm11, %v3953_v26, %v3950_v17 }
0x102b   : > { %v3955_v61 = vmul.f32 %v13178_v27, %v3954_v40  ;;  %v3956_v18 = vmul.f32 %v13184_v10, %v3954_v40 }
0x102d   : > { %4039 = vmatprep.mubr.f32.mxu1 %v3956_v18 }
0x102e   : > { %4040 = vmatmul.mubr.f32.vlgmr.msra.gmra.mrb[44].mxu1 %v3955_v61 }
0x102f   : > { %10239 = vmatpush3.bf16.msra.mxu1 %v12330_v45  ;;  %4190 = vmatprep.mubr.f32.mxu1 %v3956_v18 }
0x1030   : > { %10241 = vmatprep.subr.bf16.mxu1 %v12333_v47 }
0x1033   : > { %10243 = vmatpush3.bf16.msra.mxu1 %v12348_v13 }
0x1034   : > { %10245 = vmatprep.subr.bf16.mxu1 %v14660_v44 }
0x1037   : > { %10247 = vmatpush3.bf16.msra.mxu1 %v14661_v0 }
0x1038   : > { %10249 = vmatprep.subr.bf16.mxu1 %v14662_v9 }
0x103b   : > { %10251 = vmatpush3.bf16.msra.mxu1 %v14663_v29 }
0x103c   : > { %10253 = vmatprep.subr.bf16.mxu1 %v14664_v19 }
0x103f   : > { %10255 = vmatpush3.bf16.msra.mxu1 %v14665_v8 }
0x1040   : > { %10257 = vmatprep.subr.bf16.mxu1 %v14666_v31 }
0x1043   : > { %10259 = vmatpush3.bf16.msra.mxu1 %v14667_v49 }
0x1044   : > { %10261 = vmatprep.subr.bf16.mxu1 %v14668_v57 }
0x1047   : > { %10263 = vmatpush3.bf16.msra.mxu1 %v14669_v28  ;;  %v3973_v28 = vld [vmem:[#allocation2 + $0x18] sm:$0xff] }
0x1048   : > { %10265 = vmatprep.subr.bf16.mxu1 %v14670_v58 }
0x104b   : > { %10267 = vmatpush3.bf16.msra.mxu1 %v14671_v41 }
0x104c   : > { %9500 = vmatprep.subr.mxu1 %v14537_v25 }
0x104e   : > { %4191 = vmatmul.mubr.f32.vlgmr.msra.gmra.mrb[46].mxu1 %v3955_v61 }
0x104f   : > { %9502 = vmatprep.mubr.msk.f32.mxu1 %vm11296_vm9, %v14537_v25 }
0x1088   : > { %v3938_v12 = vpop.f32.mrb[38].mxu0 }
0x1089   : > { %3961 = vrot.lane.b32.xlu1 %v3938_v12, %s11297_s19  ;;  %3958 = vrot.lane.b32.xlu0 %v3938_v12, %s11298_s20  ;;  %v9499_v26 = vpop.f32.mrb[39].mxu0 }
0x108a   : > { %v13527_v26 = vld [vmem:[%s14296_s7] sm:$0xff] }
0x108b   : > { %v3974_v19 = vadd.f32 %v13527_v26, %v3973_v28  ;;  %v14676_v28 = vld [vmem:[#allocation28_spill] sm:$0xff] }
0x108d   : > { %3964 = vrot.lane.b32.xlu0 %v3938_v12, %s11299_s25 }
0x10fb   : > { %v3959_v17 = vpop.permute.xlu0 %3958  ;;  %v3962_v40 = vpop.permute.xlu1 %3961 }
0x10fc   : > { %v3967_v18 = vsel %vm1266_vm10, %v3938_v12, %v3959_v17 }
0x10fd   : > { %v3968_v41 = vsel %vm385_vm0, %v3967_v18, %v3962_v40  ;;  %v14681_v40 = vld [vmem:[#allocation33_spill] sm:$0xff]  ;;  %v14682_v18 = vld [vmem:[#allocation34_spill] sm:$0xff] }
0x10ff   : > { %v3965_v58 = vpop.permute.xlu0 %3964 }
0x1100   : > { %v3969_v61 = vsel %vm2012_vm11, %v3968_v41, %v3965_v58  ;;  %v14674_v58 = vld [vmem:[#allocation7_spill] sm:$0xff]  ;;  %v14675_v41 = vld [vmem:[#allocation8_spill] sm:$0xff] }
0x1101   : > { %v3970_v57 = vmul.f32 %v13178_v27, %v3969_v61  ;;  %v3971_v49 = vmul.f32 %v13184_v10, %v3969_v61  ;;  %v8300_v31 = vpop.f32.mrb[44].mxu1  ;;  %v14672_v27 = vld [vmem:[#allocation27_spill] sm:$0xff]  ;;  %v14673_v10 = vld [vmem:[#allocation24_spill] sm:$0xff] }
0x1102   : > { %v8301_v8 = vpop.f32.mrb[45].mxu1  ;;  %v4124_v61 = vld [vmem:[#allocation3 + $0x18] sm:$0xff] }
0x1103   : > { %v8302_v12 = vadd.f32 %v8301_v8, %v8300_v31  ;;  %4110 = vmatprep.mubr.f32.mxu0 %v3971_v49  ;;  %v14677_v8 = vld [vmem:[#allocation29_spill] sm:$0xff]  ;;  %v14679_v31 = vld [vmem:[#allocation31_spill] sm:$0xff] }
0x1104   : > { %4111 = vmatmul.mubr.f32.vlgmr.msra.gmra.mrb[40].mxu0 %v3970_v57 }
0x1105   : > { %v4045_v17 = vadd.f32 %v8302_v12, %v3974_v19  ;;  %10271 = vmatpush3.bf16.msra.mxu0 %v14561_v21  ;;  %4261 = vmatprep.mubr.f32.mxu0 %v3971_v49  ;;  %v14678_v19 = vld [vmem:[#allocation30_spill] sm:$0xff]  ;;  %v14680_v49 = vld [vmem:[#allocation32_spill] sm:$0xff]  ;;  %v14683_v12 = vld [vmem:[#allocation35_spill] sm:$0xff] }
0x1106   : > { %10273 = vmatprep.subr.bf16.mxu0 %v14562_v20 }
0x1109   : > { %10275 = vmatpush3.bf16.msra.mxu0 %v14617_v38 }
0x110a   : > { %10277 = vmatprep.subr.bf16.mxu0 %v14672_v27  ;;  %v14690_v27 = vld [vmem:[#allocation44_spill] sm:$0xff] }
0x110d   : > { %10279 = vmatpush3.bf16.msra.mxu0 %v14673_v10 }
0x110e   : > { %10281 = vmatprep.subr.bf16.mxu0 %v14674_v58 }
0x1111   : > { %10283 = vmatpush3.bf16.msra.mxu0 %v14675_v41  ;;  %v14684_v41 = vld [vmem:[#allocation37_spill] sm:$0xff] }
0x1112   : > { %10285 = vmatprep.subr.bf16.mxu0 %v14676_v28  ;;  %v4125_v28 = vadd.f32 %v13386_v63, %v4124_v61  ;;  %v14692_v61 = vld [vmem:[#allocation46_spill] sm:$0xff] }
0x1115   : > { %10287 = vmatpush3.bf16.msra.mxu0 %v14677_v8 }
0x1116   : > { %10289 = vmatprep.subr.bf16.mxu0 %v14678_v19 }
0x1119   : > { %10291 = vmatpush3.bf16.msra.mxu0 %v14679_v31  ;;  %v14685_v31 = vld [vmem:[#allocation39_spill] sm:$0xff] }
0x111a   : > { %10293 = vmatprep.subr.bf16.mxu0 %v14680_v49  ;;  %v14686_v49 = vld [vmem:[#allocation40_spill] sm:$0xff] }
0x111d   : > { %10295 = vmatpush3.bf16.msra.mxu0 %v14681_v40  ;;  %v14687_v40 = vld [vmem:[#allocation41_spill] sm:$0xff] }
0x111e   : > { %10297 = vmatprep.subr.bf16.mxu0 %v14682_v18  ;;  %v14688_v18 = vld [vmem:[#allocation42_spill] sm:$0xff] }
0x1121   : > { %10299 = vmatpush3.bf16.msra.mxu0 %v14683_v12  ;;  %v8370_v58 = vpop.f32.mrb[46].mxu1  ;;  %v14689_v12 = vld [vmem:[#allocation43_spill] sm:$0xff] }
0x1122   : > { %v8371_v10 = vpop.f32.mrb[47].mxu1  ;;  %10301 = vmatprep.subr.bf16.mxu0 %v14684_v41  ;;  %v14691_v41 = vld [vmem:[#allocation45_spill] sm:$0xff] }
0x1123   : > { %v8372_v8 = vadd.f32 %v8371_v10, %v8370_v58  ;;  %v14694_v10 = vld [vmem:[#allocation48_spill] sm:$0xff]  ;;  %v14695_v58 = vld [vmem:[#allocation49_spill] sm:$0xff] }
0x1124   : > { %4262 = vmatmul.mubr.f32.vlgmr.msra.gmra.mrb[42].mxu0 %v3970_v57  ;;  %v14693_v57 = vld [vmem:[#allocation47_spill] sm:$0xff] }
0x1125   : > { %v4196_v19 = vadd.f32 %v8372_v8, %v4125_v28  ;;  %10303 = vmatpush3.bf16.msra.mxu0 %v12820_v3  ;;  %v14696_v28 = vld [vmem:[#allocation50_spill] sm:$0xff]  ;;  %v14697_v8 = vld [vmem:[#allocation51_spill] sm:$0xff] }
0x1126   : > { %10305 = vmatprep.subr.bf16.mxu0 %v14685_v31 }
0x1129   : > { %10307 = vmatpush3.bf16.msra.mxu0 %v14686_v49 }
0x112a   : > { %10309 = vmatprep.subr.bf16.mxu0 %v14687_v40 }
0x112d   : > { %10311 = vmatpush3.bf16.msra.mxu0 %v14688_v18 }
0x112e   : > { %10313 = vmatprep.subr.bf16.mxu0 %v14689_v12 }
0x1131   : > { %10315 = vmatpush3.bf16.msra.mxu0 %v14690_v27 }
0x1132   : > { %10317 = vmatprep.subr.bf16.mxu0 %v14691_v41 }
0x1135   : > { %10319 = vmatpush3.bf16.msra.mxu0 %v14692_v61 }
0x1136   : > { %10321 = vmatprep.subr.bf16.mxu0 %v14693_v57 }
0x1139   : > { %10323 = vmatpush3.bf16.msra.mxu0 %v14694_v10 }
0x113a   : > { %10325 = vmatprep.subr.bf16.mxu0 %v14695_v58 }
0x113d   : > { %10327 = vmatpush3.bf16.msra.mxu0 %v14696_v28 }
0x113e   : > { %10329 = vmatprep.subr.bf16.mxu0 %v14697_v8 }
0x1141   : > { %10331 = vmatpush3.bf16.msra.mxu0 %v14588_v2 }
0x1142   : > { %9505 = vmatprep.subr.mxu0 %v14537_v25 }
0x11d7   : > { %v8335_v12 = vpop.f32.mrb[40].mxu0 }
0x11d8   : > { %v8336_v27 = vpop.f32.mrb[41].mxu0 }
0x11d9   : > { %v8337_v18 = vadd.f32 %v8336_v27, %v8335_v12  ;;  %v14698_v27 = vld [vmem:[#allocation53_spill] sm:$0xff]  ;;  %v14704_v12 = vld [vmem:[#allocation59_spill] sm:$0xff] }
0x11db   : > { %v13563_v41 = vadd.f32 %v8337_v18, %v4045_v17  ;;  %v13571_v17 = vld [vmem:[%s14290_s1] sm:$0xff]  ;;  %v14703_v18 = vld [vmem:[#allocation58_spill] sm:$0xff] }
0x11f7   : > { %v8405_v61 = vpop.f32.mrb[42].mxu0 }
0x11f8   : > { %v8406_v40 = vpop.f32.mrb[43].mxu0 }
0x11f9   : > { %v8407_v57 = vadd.f32 %v8406_v40, %v8405_v61  ;;  %v14702_v40 = vld [vmem:[#allocation57_spill] sm:$0xff]  ;;  %v14705_v61 = vld [vmem:[#allocation60_spill] sm:$0xff] }
0x11fb   : > { %v4267_v49 = vadd.f32 %v8407_v57, %v4196_v19  ;;  %v14699_v19 = vld [vmem:[#allocation54_spill] sm:$0xff]  ;;  %v14706_v57 = vld [vmem:[#allocation61_spill] sm:$0xff] }
0x11fd   : > { %v7525_v10 = vmul.f32 -1.442695, %v4267_v49  ;;  %v14701_v49 = vld [vmem:[#allocation56_spill] sm:$0xff] }
0x11ff   : > { %11215 = vpow2.f32 %v7525_v10  ;;  %v14707_v10 = vld [vmem:[#allocation62_spill] sm:$0xff] }
0x1209   : > { %v11216_v58 = vpop.eup %11215 }
0x120a   : > { %v4271_v31 = vadd.f32 1.0, %v11216_v58  ;;  %v14708_v58 = vld [vmem:[#allocation63_spill] sm:$0xff] }
0x120c   : > { %11217 = vrcp.f32 %v4271_v31  ;;  %v14700_v31 = vld [vmem:[#allocation55_spill] sm:$0xff] }
0x1216   : > { %v11218_v28 = vpop.eup %11217 }
0x1217   : > { %v4274_v8 = vmul.f32 %v11218_v28, %v13464_v23  ;;  %v14709_v28 = vld [vmem:[#allocation64_spill] sm:$0xff] }
0x1219   : > { %4349 = vrot.lane.b32.xlu0 %v4274_v8, %s11297_s19  ;;  %4346 = vrot.lane.b32.xlu1 %v4274_v8, %s11298_s20 }
0x121a   : > { %9501 = vmatpush3.msra.mxu1 %v4274_v8 }
0x121b   : > { %9503 = vmatmul.mubr.msk.f32.vlgmr.msra.gmra.mrb[48].mxu1 %vm718_vm4, %v13571_v17  ;;  %10333 = vmatprep.subr.bf16.mxu1 %v14698_v27 }
0x121c   : > { %10335 = vmatpush3.bf16.msra.mxu1 %v14699_v19  ;;  %v14710_v19 = vld [vmem:[#allocation65_spill] sm:$0xff] }
0x121d   : > { %4352 = vrot.lane.b32.xlu1 %v4274_v8, %s11299_s25  ;;  %10337 = vmatprep.subr.bf16.mxu1 %v14700_v31  ;;  %v14711_v31 = vld [vmem:[#allocation66_spill] sm:$0xff] }
0x1220   : > { %10339 = vmatpush3.bf16.msra.mxu1 %v14701_v49  ;;  %v14712_v49 = vld [vmem:[#allocation67_spill] sm:$0xff] }
0x1221   : > { %10341 = vmatprep.subr.bf16.mxu1 %v14702_v40  ;;  %v14713_v40 = vld [vmem:[#allocation68_spill] sm:$0xff] }
0x1224   : > { %10343 = vmatpush3.bf16.msra.mxu1 %v14703_v18  ;;  %v14714_v18 = vld [vmem:[#allocation10_spill] sm:$0xff] }
0x1225   : > { %10345 = vmatprep.subr.bf16.mxu1 %v14704_v12 }
0x1228   : > { %10347 = vmatpush3.bf16.msra.mxu1 %v14705_v61 }
0x1229   : > { %10349 = vmatprep.subr.bf16.mxu1 %v14706_v57 }
0x122c   : > { %10351 = vmatpush3.bf16.msra.mxu1 %v14707_v10 }
0x122d   : > { %10353 = vmatprep.subr.bf16.mxu1 %v14708_v58 }
0x1230   : > { %10355 = vmatpush3.bf16.msra.mxu1 %v14709_v28 }
0x1231   : > { %10357 = vmatprep.subr.bf16.mxu1 %v14710_v19  ;;  %v13599_v19 = vld [vmem:[%s14292_s3] sm:$0xff] }
0x1234   : > { %10359 = vmatpush3.bf16.msra.mxu1 %v14711_v31 }
0x1235   : > { %10361 = vmatprep.subr.bf16.mxu1 %v14712_v49 }
0x1238   : > { %10363 = vmatpush3.bf16.msra.mxu1 %v14713_v40 }
0x1239   : > { %10365 = vmatprep.subr.bf16.mxu1 %v14714_v18  ;;  %v13605_v18 = vld [vmem:[%s14292_s3 + $0x8] sm:$0xff] }
0x128b   : > { %v4347_v12 = vpop.permute.xlu1 %4346  ;;  %v4350_v61 = vpop.permute.xlu0 %4349 }
0x128c   : > { %v4355_v57 = vsel %vm1266_vm10, %v4274_v8, %v4347_v12 }
0x128d   : > { %v4356_v10 = vsel %vm385_vm0, %v4355_v57, %v4350_v61 }
0x128f   : > { %v4353_v27 = vpop.permute.xlu1 %4352 }
0x1290   : > { %v4357_v58 = vsel %vm2012_vm11, %v4356_v10, %v4353_v27 }
0x1291   : > { %v4358_v49 = vmul.f32 %v13599_v19, %v4357_v58  ;;  %v4359_v40 = vmul.f32 %v13605_v18, %v4357_v58 }
0x1293   : > { %4442 = vmatprep.mubr.f32.mxu0 %v4359_v40  ;;  %v4376_v40 = vld [vmem:[#allocation4 + $0x18] sm:$0xff] }
0x1294   : > { %4443 = vmatmul.mubr.f32.vlgmr.msra.gmra.mrb[44].mxu0 %v4358_v49 }
0x1295   : > { %9507 = vmatprep.mubr.msk.f32.mxu0 %vm11296_vm9, %v14537_v25 }
0x12ee   : > { %v4341_v8 = vpop.f32.mrb[48].mxu1 }
0x12ef   : > { %4364 = vrot.lane.b32.xlu1 %v4341_v8, %s11297_s19  ;;  %4361 = vrot.lane.b32.xlu0 %v4341_v8, %s11298_s20  ;;  %v9504_v27 = vpop.f32.mrb[49].mxu1 }
0x12f0   : > { %v13621_v27 = vld [vmem:[%s14296_s7 + $0x10] sm:$0xff] }
0x12f1   : > { %v4377_v63 = vadd.f32 %v13621_v27, %v4376_v40 }
0x12f3   : > { %4367 = vrot.lane.b32.xlu0 %v4341_v8, %s11299_s25 }
0x1361   : > { %v4362_v12 = vpop.permute.xlu0 %4361  ;;  %v4365_v61 = vpop.permute.xlu1 %4364 }
0x1362   : > { %v4370_v57 = vsel %vm1266_vm10, %v4341_v8, %v4362_v12 }
0x1363   : > { %v4371_v10 = vsel %vm385_vm0, %v4370_v57, %v4365_v61 }
0x1365   : > { %v4368_v58 = vpop.permute.xlu0 %4367 }
0x1366   : > { %v4372_v49 = vsel %vm2012_vm11, %v4371_v10, %v4368_v58 }
0x1367   : > { %v4373_v31 = vmul.f32 %v13599_v19, %v4372_v49  ;;  %v4374_v28 = vmul.f32 %v13605_v18, %v4372_v49  ;;  %v8442_v2 = vpop.f32.mrb[44].mxu0 }
0x1368   : > { %v8443_v3 = vpop.f32.mrb[45].mxu0 }
0x1369   : > { %v8444_v8 = vadd.f32 %v8443_v3, %v8442_v2  ;;  %4513 = vmatprep.mubr.f32.mxu1 %v4374_v28  ;;  %v7524_v3 = vmul.f32 -1.442695, %v13563_v41 }
0x136a   : > { %4514 = vmatmul.mubr.f32.vlgmr.msra.gmra.mrb[50].mxu1 %v4373_v31 }
0x136b   : > { %v4448_v12 = vadd.f32 %v8444_v8, %v4377_v63  ;;  %10367 = vmatpush3.bf16.msra.mxu1 %v12161_v46  ;;  %11219 = vpow2.f32 %v7524_v3 }
0x136c   : > { %10369 = vmatprep.subr.bf16.mxu1 %v12163_v4 }
0x136f   : > { %10371 = vmatpush3.bf16.msra.mxu1 %v12182_v33 }
0x1370   : > { %10373 = vmatprep.subr.bf16.mxu1 %v12185_v52 }
0x1373   : > { %10375 = vmatpush3.bf16.msra.mxu1 %v12204_v51 }
0x1374   : > { %10377 = vmatprep.subr.bf16.mxu1 %v12207_v22 }
0x1375   : > { %v11220_v2 = vpop.eup %11219 }
0x1376   : > { %v4120_v63 = vadd.f32 1.0, %v11220_v2 }
0x1377   : > { %10379 = vmatpush3.bf16.msra.mxu1 %v12231_v16 }
0x1378   : > { %10381 = vmatprep.subr.bf16.mxu1 %v12235_v34  ;;  %11221 = vrcp.f32 %v4120_v63 }
0x137b   : > { %10383 = vmatpush3.bf16.msra.mxu1 %v12252_v7 }
0x137c   : > { %10385 = vmatprep.subr.bf16.mxu1 %v12255_v55 }
0x137f   : > { %10387 = vmatpush3.bf16.msra.mxu1 %v12270_v59 }
0x1380   : > { %10389 = vmatprep.subr.bf16.mxu1 %v12273_v15 }
0x1382   : > { %v11222_v10 = vpop.eup %11221 }
0x1383   : > { %10391 = vmatpush3.bf16.msra.mxu1 %v12288_v6  ;;  %v4522_v58 = vsub.f32 1.0, %v11222_v10  ;;  %v4521_v40 = vmul.f32 %v11222_v10, %v13464_v23  ;;  %v14717_v10 = vld [vmem:[#allocation22_spill] sm:$0xff] }
0x1384   : > { %10393 = vmatprep.subr.bf16.mxu1 %v12291_v53 }
0x1387   : > { %10395 = vmatpush3.bf16.msra.mxu1 %v12306_v43 }
0x1388   : > { %10429 = vmatprep.subr.bf16.mxu1 %v12314_v39 }
0x143d   : > { %v8477_v31 = vpop.f32.mrb[50].mxu1 }
0x143e   : > { %v8478_v28 = vpop.f32.mrb[51].mxu1 }
0x143f   : > { %v8479_v61 = vadd.f32 %v8478_v28, %v8477_v31 }
0x1441   : > { %v4519_v57 = vadd.f32 %v8479_v61, %v4448_v12  ;;  %v14715_v61 = vld [vmem:[#allocation13_spill] sm:$0xff] }
0x1443   : > { %11223 = vtanh.f32 %v4519_v57  ;;  %v14716_v57 = vld [vmem:[#allocation17_spill] sm:$0xff] }
0x144d   : > { %v11224_v49 = vpop.eup %11223 }
0x144e   : > { %v4523_v8 = vmul.f32 %v11224_v49, %v4522_v58  ;;  %v14718_v58 = vld [vmem:[#allocation19_spill] sm:$0xff]  ;;  %v14719_v49 = vld [vmem:[#allocation6_spill] sm:$0xff] }
0x1450   : > { %v13642_v43 = vadd.f32 %v4523_v8, %v4521_v40  ;;  %v14720_v40 = vld [vmem:[#allocation15_spill] sm:$0xff]  ;;  %v14721_v8 = vld [vmem:[#allocation16_spill] sm:$0xff] }
0x1452   : > { %4599 = vrot.lane.b32.xlu0 %v13642_v43, %s11297_s19  ;;  %4596 = vrot.lane.b32.xlu1 %v13642_v43, %s11298_s20 }
0x1453   : > { %9506 = vmatpush3.msra.mxu0 %v13642_v43 }
0x1454   : > { %9508 = vmatmul.mubr.msk.f32.vlgmr.msra.gmra.mrb[46].mxu0 %vm718_vm4, %v13571_v17  ;;  %10397 = vmatprep.subr.bf16.mxu0 %v14604_v42 }
0x1455   : > { %10399 = vmatpush3.bf16.msra.mxu0 %v12471_v60 }
0x1456   : > { %4602 = vrot.lane.b32.xlu1 %v13642_v43, %s11299_s25  ;;  %10401 = vmatprep.subr.bf16.mxu0 %v12481_v1 }
0x1459   : > { %10403 = vmatpush3.bf16.msra.mxu0 %v12489_v36 }
0x145a   : > { %10405 = vmatprep.subr.bf16.mxu0 %v12499_v37 }
0x145d   : > { %10407 = vmatpush3.bf16.msra.mxu0 %v12507_v14 }
0x145e   : > { %10409 = vmatprep.subr.bf16.mxu0 %v12520_v32 }
0x1461   : > { %10411 = vmatpush3.bf16.msra.mxu0 %v12531_v35 }
0x1462   : > { %10413 = vmatprep.subr.bf16.mxu0 %v12533_v56 }
0x1465   : > { %10415 = vmatpush3.bf16.msra.mxu0 %v12549_v62 }
0x1466   : > { %10417 = vmatprep.subr.bf16.mxu0 %v12552_v30 }
0x1469   : > { %10419 = vmatpush3.bf16.msra.mxu0 %v12567_v24 }
0x146a   : > { %10421 = vmatprep.subr.bf16.mxu0 %v12570_v5 }
0x146d   : > { %10423 = vmatpush3.bf16.msra.mxu0 %v12582_v11 }
0x146e   : > { %10425 = vmatprep.subr.bf16.mxu0 %v12593_v54 }
0x1471   : > { %10427 = vmatpush3.bf16.msra.mxu0 %v12602_v50 }
0x1472   : > { %10461 = vmatprep.subr.bf16.mxu0 %v14605_v48 }
0x14c4   : > { %v4597_v23 = vpop.permute.xlu1 %4596  ;;  %v4600_v41 = vpop.permute.xlu0 %4599 }
0x14c5   : > { %v4605_v12 = vsel %vm1266_vm10, %v13642_v43, %v4597_v23  ;;  %v14722_v23 = vld [vmem:[#allocation5_spill] sm:$0xff] }
0x14c6   : > { %v4606_v3 = vsel %vm385_vm0, %v4605_v12, %v4600_v41 }
0x14c8   : > { %v4603_v2 = vpop.permute.xlu1 %4602 }
0x14c9   : > { %v4607_v63 = vsel %vm2012_vm11, %v4606_v3, %v4603_v2 }
0x14ca   : > { %v4608_v31 = vmul.f32 %v13599_v19, %v4607_v63  ;;  %v4609_v28 = vmul.f32 %v13605_v18, %v4607_v63 }
0x14cc   : > { %4692 = vmatprep.mubr.f32.mxu1 %v4609_v28 }
0x14cd   : > { %4693 = vmatmul.mubr.f32.vlgmr.msra.gmra.mrb[52].mxu1 %v4608_v31 }
0x14ce   : > { %10431 = vmatpush3.bf16.msra.mxu1 %v12330_v45  ;;  %4843 = vmatprep.mubr.f32.mxu1 %v4609_v28 }
0x14cf   : > { %10433 = vmatprep.subr.bf16.mxu1 %v12333_v47 }
0x14d2   : > { %10435 = vmatpush3.bf16.msra.mxu1 %v12348_v13 }
0x14d3   : > { %10437 = vmatprep.subr.bf16.mxu1 %v14660_v44 }
0x14d6   : > { %10439 = vmatpush3.bf16.msra.mxu1 %v14661_v0 }
0x14d7   : > { %10441 = vmatprep.subr.bf16.mxu1 %v14662_v9 }
0x14da   : > { %10443 = vmatpush3.bf16.msra.mxu1 %v14663_v29 }
0x14db   : > { %10445 = vmatprep.subr.bf16.mxu1 %v14715_v61 }
0x14de   : > { %10447 = vmatpush3.bf16.msra.mxu1 %v14716_v57 }
0x14df   : > { %10449 = vmatprep.subr.bf16.mxu1 %v14717_v10 }
0x14e2   : > { %10451 = vmatpush3.bf16.msra.mxu1 %v14718_v58 }
0x14e3   : > { %10453 = vmatprep.subr.bf16.mxu1 %v14719_v49 }
0x14e6   : > { %10455 = vmatpush3.bf16.msra.mxu1 %v14720_v40 }
0x14e7   : > { %10457 = vmatprep.subr.bf16.mxu1 %v14721_v8  ;;  %v4626_v8 = vld [vmem:[#allocation2 + $0x20] sm:$0xff] }
0x14ea   : > { %10459 = vmatpush3.bf16.msra.mxu1 %v14722_v23 }
0x14eb   : > { %9510 = vmatprep.subr.mxu1 %v14537_v25 }
0x14ed   : > { %4844 = vmatmul.mubr.f32.vlgmr.msra.gmra.mrb[54].mxu1 %v4608_v31 }
0x14ee   : > { %9512 = vmatprep.mubr.msk.f32.mxu1 %vm11296_vm9, %v14537_v25 }
0x1527   : > { %v4591_v41 = vpop.f32.mrb[46].mxu0 }
0x1528   : > { %4614 = vrot.lane.b32.xlu1 %v4591_v41, %s11297_s19  ;;  %4611 = vrot.lane.b32.xlu0 %v4591_v41, %s11298_s20  ;;  %v9509_v12 = vpop.f32.mrb[47].mxu0 }
0x1529   : > { %v4627_v12 = vadd.f32 %v13527_v26, %v4626_v8  ;;  %v14727_v8 = vld [vmem:[#allocation28_spill] sm:$0xff] }
0x152c   : > { %4617 = vrot.lane.b32.xlu0 %v4591_v41, %s11299_s25 }
0x159a   : > { %v4612_v3 = vpop.permute.xlu0 %4611  ;;  %v4615_v2 = vpop.permute.xlu1 %4614 }
0x159b   : > { %v4620_v63 = vsel %vm1266_vm10, %v4591_v41, %v4612_v3  ;;  %v14724_v41 = vld [vmem:[#allocation24_spill] sm:$0xff]  ;;  %v14725_v3 = vld [vmem:[#allocation7_spill] sm:$0xff] }
0x159c   : > { %v4621_v28 = vsel %vm385_vm0, %v4620_v63, %v4615_v2  ;;  %v14726_v2 = vld [vmem:[#allocation8_spill] sm:$0xff]  ;;  %v14732_v63 = vld [vmem:[#allocation33_spill] sm:$0xff] }
0x159e   : > { %v4618_v23 = vpop.permute.xlu0 %4617 }
0x159f   : > { %v4622_v31 = vsel %vm2012_vm11, %v4621_v28, %v4618_v23  ;;  %v14723_v23 = vld [vmem:[#allocation27_spill] sm:$0xff]  ;;  %v14733_v28 = vld [vmem:[#allocation34_spill] sm:$0xff] }
0x15a0   : > { %v4623_v40 = vmul.f32 %v13599_v19, %v4622_v31  ;;  %v4624_v49 = vmul.f32 %v13605_v18, %v4622_v31  ;;  %v8514_v58 = vpop.f32.mrb[52].mxu1  ;;  %v4777_v31 = vld [vmem:[#allocation3 + $0x20] sm:$0xff] }
0x15a1   : > { %v8515_v10 = vpop.f32.mrb[53].mxu1 }
0x15a2   : > { %v8516_v57 = vadd.f32 %v8515_v10, %v8514_v58  ;;  %4763 = vmatprep.mubr.f32.mxu0 %v4624_v49  ;;  %v14728_v10 = vld [vmem:[#allocation29_spill] sm:$0xff]  ;;  %v14730_v58 = vld [vmem:[#allocation31_spill] sm:$0xff] }
0x15a3   : > { %4764 = vmatmul.mubr.f32.vlgmr.msra.gmra.mrb[48].mxu0 %v4623_v40 }
0x15a4   : > { %v4698_v61 = vadd.f32 %v8516_v57, %v4627_v12  ;;  %10463 = vmatpush3.bf16.msra.mxu0 %v14561_v21  ;;  %4914 = vmatprep.mubr.f32.mxu0 %v4624_v49  ;;  %v14729_v57 = vld [vmem:[#allocation30_spill] sm:$0xff]  ;;  %v14731_v49 = vld [vmem:[#allocation32_spill] sm:$0xff]  ;;  %v14734_v12 = vld [vmem:[#allocation35_spill] sm:$0xff] }
0x15a5   : > { %10465 = vmatprep.subr.bf16.mxu0 %v14562_v20  ;;  %v14743_v20 = vld [vmem:[#allocation44_spill] sm:$0xff] }
0x15a8   : > { %10467 = vmatpush3.bf16.msra.mxu0 %v14617_v38  ;;  %v14737_v38 = vld [vmem:[#allocation38_spill] sm:$0xff] }
0x15a9   : > { %10469 = vmatprep.subr.bf16.mxu0 %v14723_v23 }
0x15ac   : > { %10471 = vmatpush3.bf16.msra.mxu0 %v14724_v41 }
0x15ad   : > { %10473 = vmatprep.subr.bf16.mxu0 %v14725_v3 }
0x15b0   : > { %10475 = vmatpush3.bf16.msra.mxu0 %v14726_v2  ;;  %v14735_v2 = vld [vmem:[#allocation37_spill] sm:$0xff] }
0x15b1   : > { %10477 = vmatprep.subr.bf16.mxu0 %v14727_v8  ;;  %v14736_v8 = vld [vmem:[#allocation36_spill] sm:$0xff] }
0x15b2   : > { %v4778_v23 = vadd.f32 %v14736_v8, %v4777_v31  ;;  %v14745_v8 = vld [vmem:[#allocation46_spill] sm:$0xff]  ;;  %v14751_v31 = vld [vmem:[#allocation52_spill] sm:$0xff] }
0x15b4   : > { %10479 = vmatpush3.bf16.msra.mxu0 %v14728_v10 }
0x15b5   : > { %10481 = vmatprep.subr.bf16.mxu0 %v14729_v57 }
0x15b8   : > { %10483 = vmatpush3.bf16.msra.mxu0 %v14730_v58  ;;  %v14738_v58 = vld [vmem:[#allocation39_spill] sm:$0xff] }
0x15b9   : > { %10485 = vmatprep.subr.bf16.mxu0 %v14731_v49  ;;  %v14739_v49 = vld [vmem:[#allocation40_spill] sm:$0xff] }
0x15bc   : > { %10487 = vmatpush3.bf16.msra.mxu0 %v14732_v63  ;;  %v14740_v63 = vld [vmem:[#allocation41_spill] sm:$0xff] }
0x15bd   : > { %10489 = vmatprep.subr.bf16.mxu0 %v14733_v28  ;;  %v14741_v28 = vld [vmem:[#allocation42_spill] sm:$0xff] }
0x15c0   : > { %10491 = vmatpush3.bf16.msra.mxu0 %v14734_v12  ;;  %v8584_v3 = vpop.f32.mrb[54].mxu1  ;;  %v14742_v12 = vld [vmem:[#allocation43_spill] sm:$0xff] }
0x15c1   : > { %v8585_v41 = vpop.f32.mrb[55].mxu1  ;;  %10493 = vmatprep.subr.bf16.mxu0 %v14735_v2  ;;  %v14744_v2 = vld [vmem:[#allocation45_spill] sm:$0xff] }
0x15c2   : > { %v8586_v10 = vadd.f32 %v8585_v41, %v8584_v3  ;;  %v14748_v41 = vld [vmem:[#allocation49_spill] sm:$0xff]  ;;  %v14749_v3 = vld [vmem:[#allocation50_spill] sm:$0xff] }
0x15c3   : > { %4915 = vmatmul.mubr.f32.vlgmr.msra.gmra.mrb[50].mxu0 %v4623_v40  ;;  %v14746_v40 = vld [vmem:[#allocation47_spill] sm:$0xff] }
0x15c4   : > { %v4849_v57 = vadd.f32 %v8586_v10, %v4778_v23  ;;  %10495 = vmatpush3.bf16.msra.mxu0 %v14737_v38  ;;  %v14747_v23 = vld [vmem:[#allocation48_spill] sm:$0xff]  ;;  %v14750_v10 = vld [vmem:[#allocation51_spill] sm:$0xff] }
0x15c5   : > { %10497 = vmatprep.subr.bf16.mxu0 %v14738_v58 }
0x15c8   : > { %10499 = vmatpush3.bf16.msra.mxu0 %v14739_v49 }
0x15c9   : > { %10501 = vmatprep.subr.bf16.mxu0 %v14740_v63 }
0x15cc   : > { %10503 = vmatpush3.bf16.msra.mxu0 %v14741_v28 }
0x15cd   : > { %10505 = vmatprep.subr.bf16.mxu0 %v14742_v12 }
0x15d0   : > { %10507 = vmatpush3.bf16.msra.mxu0 %v14743_v20 }
0x15d1   : > { %10509 = vmatprep.subr.bf16.mxu0 %v14744_v2 }
0x15d4   : > { %10511 = vmatpush3.bf16.msra.mxu0 %v14745_v8 }
0x15d5   : > { %10513 = vmatprep.subr.bf16.mxu0 %v14746_v40 }
0x15d8   : > { %10515 = vmatpush3.bf16.msra.mxu0 %v14747_v23 }
0x15d9   : > { %10517 = vmatprep.subr.bf16.mxu0 %v14748_v41 }
0x15dc   : > { %10519 = vmatpush3.bf16.msra.mxu0 %v14749_v3 }
0x15dd   : > { %10521 = vmatprep.subr.bf16.mxu0 %v14750_v10 }
0x15e0   : > { %10523 = vmatpush3.bf16.msra.mxu0 %v14751_v31 }
0x15e1   : > { %9515 = vmatprep.subr.mxu0 %v14537_v25 }
0x1676   : > { %v8549_v12 = vpop.f32.mrb[48].mxu0 }
0x1677   : > { %v8550_v20 = vpop.f32.mrb[49].mxu0 }
0x1678   : > { %v8551_v28 = vadd.f32 %v8550_v20, %v8549_v12  ;;  %v14752_v20 = vld [vmem:[#allocation53_spill] sm:$0xff]  ;;  %v14759_v12 = vld [vmem:[#allocation60_spill] sm:$0xff] }
0x167a   : > { %v13736_v2 = vadd.f32 %v8551_v28, %v4698_v61  ;;  %v14753_v61 = vld [vmem:[#allocation54_spill] sm:$0xff]  ;;  %v14758_v28 = vld [vmem:[#allocation59_spill] sm:$0xff] }
0x1696   : > { %v8619_v8 = vpop.f32.mrb[50].mxu0 }
0x1697   : > { %v8620_v63 = vpop.f32.mrb[51].mxu0 }
0x1698   : > { %v8621_v40 = vadd.f32 %v8620_v63, %v8619_v8  ;;  %v14757_v63 = vld [vmem:[#allocation58_spill] sm:$0xff]  ;;  %v14760_v8 = vld [vmem:[#allocation61_spill] sm:$0xff] }
0x169a   : > { %v4920_v49 = vadd.f32 %v8621_v40, %v4849_v57  ;;  %v14754_v57 = vld [vmem:[#allocation55_spill] sm:$0xff]  ;;  %v14761_v40 = vld [vmem:[#allocation62_spill] sm:$0xff] }
0x169c   : > { %v7529_v23 = vmul.f32 -1.442695, %v4920_v49  ;;  %v14756_v49 = vld [vmem:[#allocation57_spill] sm:$0xff] }
0x169e   : > { %11225 = vpow2.f32 %v7529_v23  ;;  %v14762_v23 = vld [vmem:[#allocation63_spill] sm:$0xff] }
0x16a8   : > { %v11226_v41 = vpop.eup %11225 }
0x16a9   : > { %v4924_v58 = vadd.f32 1.0, %v11226_v41  ;;  %v14763_v41 = vld [vmem:[#allocation64_spill] sm:$0xff] }
0x16ab   : > { %11227 = vrcp.f32 %v4924_v58  ;;  %v14755_v58 = vld [vmem:[#allocation56_spill] sm:$0xff] }
0x16b5   : > { %v11228_v3 = vpop.eup %11227 }
0x16b6   : > { %v4927_v10 = vmul.f32 %v11228_v3, %v13642_v43  ;;  %v14764_v3 = vld [vmem:[#allocation65_spill] sm:$0xff] }
0x16b8   : > { %5002 = vrot.lane.b32.xlu0 %v4927_v10, %s11297_s19  ;;  %4999 = vrot.lane.b32.xlu1 %v4927_v10, %s11298_s20 }
0x16b9   : > { %9511 = vmatpush3.msra.mxu1 %v4927_v10 }
0x16ba   : > { %9513 = vmatmul.mubr.msk.f32.vlgmr.msra.gmra.mrb[56].mxu1 %vm718_vm4, %v13571_v17  ;;  %10525 = vmatprep.subr.bf16.mxu1 %v14752_v20 }
0x16bb   : > { %10527 = vmatpush3.bf16.msra.mxu1 %v14753_v61 }
0x16bc   : > { %5005 = vrot.lane.b32.xlu1 %v4927_v10, %s11299_s25  ;;  %10529 = vmatprep.subr.bf16.mxu1 %v14754_v57  ;;  %v14765_v57 = vld [vmem:[#allocation66_spill] sm:$0xff] }
0x16bf   : > { %10531 = vmatpush3.bf16.msra.mxu1 %v14755_v58  ;;  %v14766_v58 = vld [vmem:[#allocation67_spill] sm:$0xff] }
0x16c0   : > { %10533 = vmatprep.subr.bf16.mxu1 %v14756_v49  ;;  %v14767_v49 = vld [vmem:[#allocation68_spill] sm:$0xff] }
0x16c3   : > { %10535 = vmatpush3.bf16.msra.mxu1 %v14757_v63  ;;  %v14768_v63 = vld [vmem:[#allocation10_spill] sm:$0xff] }
0x16c4   : > { %10537 = vmatprep.subr.bf16.mxu1 %v14758_v28 }
0x16c7   : > { %10539 = vmatpush3.bf16.msra.mxu1 %v14759_v12 }
0x16c8   : > { %10541 = vmatprep.subr.bf16.mxu1 %v14760_v8 }
0x16cb   : > { %10543 = vmatpush3.bf16.msra.mxu1 %v14761_v40 }
0x16cc   : > { %10545 = vmatprep.subr.bf16.mxu1 %v14762_v23 }
0x16cf   : > { %10547 = vmatpush3.bf16.msra.mxu1 %v14763_v41 }
0x16d0   : > { %10549 = vmatprep.subr.bf16.mxu1 %v14764_v3 }
0x16d3   : > { %10551 = vmatpush3.bf16.msra.mxu1 %v14765_v57 }
0x16d4   : > { %10553 = vmatprep.subr.bf16.mxu1 %v14766_v58 }
0x16d7   : > { %10555 = vmatpush3.bf16.msra.mxu1 %v14767_v49 }
0x16d8   : > { %10557 = vmatprep.subr.bf16.mxu1 %v14768_v63 }
0x172a   : > { %v5000_v28 = vpop.permute.xlu1 %4999  ;;  %v5003_v12 = vpop.permute.xlu0 %5002 }
0x172b   : > { %v5008_v8 = vsel %vm1266_vm10, %v4927_v10, %v5000_v28 }
0x172c   : > { %v5009_v40 = vsel %vm385_vm0, %v5008_v8, %v5003_v12 }
0x172e   : > { %v5006_v61 = vpop.permute.xlu1 %5005 }
0x172f   : > { %v5010_v23 = vsel %vm2012_vm11, %v5009_v40, %v5006_v61 }
0x1730   : > { %v5011_v41 = vmul.f32 %v13599_v19, %v5010_v23  ;;  %v5012_v3 = vmul.f32 %v13605_v18, %v5010_v23 }
0x1732   : > { %5095 = vmatprep.mubr.f32.mxu0 %v5012_v3 }
0x1733   : > { %5096 = vmatmul.mubr.f32.vlgmr.msra.gmra.mrb[52].mxu0 %v5011_v41  ;;  %v5029_v41 = vld [vmem:[#allocation4 + $0x20] sm:$0xff] }
0x1734   : > { %9517 = vmatprep.mubr.msk.f32.mxu0 %vm11296_vm9, %v14537_v25 }
0x178d   : > { %v4994_v49 = vpop.f32.mrb[56].mxu1 }
0x178e   : > { %5017 = vrot.lane.b32.xlu1 %v4994_v49, %s11297_s19  ;;  %5014 = vrot.lane.b32.xlu0 %v4994_v49, %s11298_s20  ;;  %v9514_v10 = vpop.f32.mrb[57].mxu1 }
0x178f   : > { %v5030_v10 = vadd.f32 %v13621_v27, %v5029_v41 }
0x1792   : > { %5020 = vrot.lane.b32.xlu0 %v4994_v49, %s11299_s25 }
0x1800   : > { %v5015_v28 = vpop.permute.xlu0 %5014  ;;  %v5018_v12 = vpop.permute.xlu1 %5017 }
0x1801   : > { %v5023_v61 = vsel %vm1266_vm10, %v4994_v49, %v5015_v28 }
0x1802   : > { %v5024_v8 = vsel %vm385_vm0, %v5023_v61, %v5018_v12 }
0x1804   : > { %v5021_v40 = vpop.permute.xlu0 %5020 }
0x1805   : > { %v5025_v23 = vsel %vm2012_vm11, %v5024_v8, %v5021_v40 }
0x1806   : > { %v5026_v3 = vmul.f32 %v13599_v19, %v5025_v23  ;;  %v5027_v63 = vmul.f32 %v13605_v18, %v5025_v23  ;;  %v8656_v58 = vpop.f32.mrb[52].mxu0 }
0x1807   : > { %v8657_v57 = vpop.f32.mrb[53].mxu0 }
0x1808   : > { %v8658_v20 = vadd.f32 %v8657_v57, %v8656_v58  ;;  %5166 = vmatprep.mubr.f32.mxu1 %v5027_v63  ;;  %v7528_v57 = vmul.f32 -1.442695, %v13736_v2 }
0x1809   : > { %5167 = vmatmul.mubr.f32.vlgmr.msra.gmra.mrb[58].mxu1 %v5026_v3 }
0x180a   : > { %v5101_v31 = vadd.f32 %v8658_v20, %v5030_v10  ;;  %10559 = vmatpush3.bf16.msra.mxu1 %v12161_v46  ;;  %v14769_v20 = vld [vmem:[#allocation11_spill] sm:$0xff]  ;;  %11229 = vpow2.f32 %v7528_v57 }
0x180b   : > { %10561 = vmatprep.subr.bf16.mxu1 %v12163_v4 }
0x180e   : > { %10563 = vmatpush3.bf16.msra.mxu1 %v12182_v33 }
0x180f   : > { %10565 = vmatprep.subr.bf16.mxu1 %v12185_v52 }
0x1812   : > { %10567 = vmatpush3.bf16.msra.mxu1 %v12204_v51 }
0x1813   : > { %10569 = vmatprep.subr.bf16.mxu1 %v12207_v22 }
0x1814   : > { %v11230_v58 = vpop.eup %11229 }
0x1815   : > { %v4773_v49 = vadd.f32 1.0, %v11230_v58 }
0x1816   : > { %10571 = vmatpush3.bf16.msra.mxu1 %v12231_v16 }
0x1817   : > { %10573 = vmatprep.subr.bf16.mxu1 %v12235_v34  ;;  %11231 = vrcp.f32 %v4773_v49 }
0x181a   : > { %10575 = vmatpush3.bf16.msra.mxu1 %v12252_v7 }
0x181b   : > { %10577 = vmatprep.subr.bf16.mxu1 %v12255_v55 }
0x181e   : > { %10579 = vmatpush3.bf16.msra.mxu1 %v12270_v59 }
0x181f   : > { %10581 = vmatprep.subr.bf16.mxu1 %v12273_v15 }
0x1821   : > { %v11232_v8 = vpop.eup %11231 }
0x1822   : > { %10583 = vmatpush3.bf16.msra.mxu1 %v12288_v6  ;;  %v5175_v40 = vsub.f32 1.0, %v11232_v8  ;;  %v5174_v41 = vmul.f32 %v11232_v8, %v13642_v43  ;;  %v14772_v8 = vld [vmem:[#allocation22_spill] sm:$0xff] }
0x1823   : > { %10585 = vmatprep.subr.bf16.mxu1 %v12291_v53 }
0x1826   : > { %10587 = vmatpush3.bf16.msra.mxu1 %v14769_v20 }
0x1827   : > { %10621 = vmatprep.subr.bf16.mxu1 %v12314_v39 }
0x18dc   : > { %v8691_v63 = vpop.f32.mrb[58].mxu1 }
0x18dd   : > { %v8692_v28 = vpop.f32.mrb[59].mxu1 }
0x18de   : > { %v8693_v12 = vadd.f32 %v8692_v28, %v8691_v63 }
0x18e0   : > { %v5172_v61 = vadd.f32 %v8693_v12, %v5101_v31  ;;  %v14770_v12 = vld [vmem:[#allocation13_spill] sm:$0xff] }
0x18e2   : > { %11233 = vtanh.f32 %v5172_v61  ;;  %v14771_v61 = vld [vmem:[#allocation17_spill] sm:$0xff] }
0x18ec   : > { %v11234_v23 = vpop.eup %11233 }
0x18ed   : > { %v5176_v3 = vmul.f32 %v11234_v23, %v5175_v40  ;;  %v14773_v40 = vld [vmem:[#allocation19_spill] sm:$0xff]  ;;  %v14774_v23 = vld [vmem:[#allocation6_spill] sm:$0xff] }
0x18ef   : > { %v13795_v10 = vadd.f32 %v5176_v3, %v5174_v41  ;;  %v14775_v41 = vld [vmem:[#allocation15_spill] sm:$0xff]  ;;  %v14776_v3 = vld [vmem:[#allocation16_spill] sm:$0xff] }
0x18f1   : > { %5252 = vrot.lane.b32.xlu0 %v13795_v10, %s11297_s19  ;;  %5249 = vrot.lane.b32.xlu1 %v13795_v10, %s11298_s20 }
0x18f2   : > { %9516 = vmatpush3.msra.mxu0 %v13795_v10 }
0x18f3   : > { %9518 = vmatmul.mubr.msk.f32.vlgmr.msra.gmra.mrb[54].mxu0 %vm718_vm4, %v13571_v17  ;;  %10589 = vmatprep.subr.bf16.mxu0 %v14604_v42 }
0x18f4   : > { %10591 = vmatpush3.bf16.msra.mxu0 %v12471_v60 }
0x18f5   : > { %5255 = vrot.lane.b32.xlu1 %v13795_v10, %s11299_s25  ;;  %10593 = vmatprep.subr.bf16.mxu0 %v12481_v1 }
0x18f8   : > { %10595 = vmatpush3.bf16.msra.mxu0 %v12489_v36 }
0x18f9   : > { %10597 = vmatprep.subr.bf16.mxu0 %v12499_v37 }
0x18fc   : > { %10599 = vmatpush3.bf16.msra.mxu0 %v12507_v14 }
0x18fd   : > { %10601 = vmatprep.subr.bf16.mxu0 %v12520_v32 }
0x1900   : > { %10603 = vmatpush3.bf16.msra.mxu0 %v12531_v35 }
0x1901   : > { %10605 = vmatprep.subr.bf16.mxu0 %v12533_v56 }
0x1904   : > { %10607 = vmatpush3.bf16.msra.mxu0 %v12549_v62 }
0x1905   : > { %10609 = vmatprep.subr.bf16.mxu0 %v12552_v30 }
0x1908   : > { %10611 = vmatpush3.bf16.msra.mxu0 %v12567_v24 }
0x1909   : > { %10613 = vmatprep.subr.bf16.mxu0 %v12570_v5 }
0x190c   : > { %10615 = vmatpush3.bf16.msra.mxu0 %v12582_v11 }
0x190d   : > { %10617 = vmatprep.subr.bf16.mxu0 %v12593_v54 }
0x1910   : > { %10619 = vmatpush3.bf16.msra.mxu0 %v12602_v50 }
0x1911   : > { %10653 = vmatprep.subr.bf16.mxu0 %v14605_v48 }
0x1963   : > { %v5250_v43 = vpop.permute.xlu1 %5249  ;;  %v5253_v2 = vpop.permute.xlu0 %5252 }
0x1964   : > { %v5258_v31 = vsel %vm1266_vm10, %v13795_v10, %v5250_v43  ;;  %v14777_v43 = vld [vmem:[#allocation5_spill] sm:$0xff] }
0x1965   : > { %v5259_v57 = vsel %vm385_vm0, %v5258_v31, %v5253_v2 }
0x1967   : > { %v5256_v58 = vpop.permute.xlu1 %5255 }
0x1968   : > { %v5260_v49 = vsel %vm2012_vm11, %v5259_v57, %v5256_v58 }
0x1969   : > { %v5261_v63 = vmul.f32 %v13599_v19, %v5260_v49  ;;  %v5262_v28 = vmul.f32 %v13605_v18, %v5260_v49 }
0x196b   : > { %5345 = vmatprep.mubr.f32.mxu1 %v5262_v28 }
0x196c   : > { %5346 = vmatmul.mubr.f32.vlgmr.msra.gmra.mrb[60].mxu1 %v5261_v63 }
0x196d   : > { %10623 = vmatpush3.bf16.msra.mxu1 %v12330_v45  ;;  %5496 = vmatprep.mubr.f32.mxu1 %v5262_v28 }
0x196e   : > { %10625 = vmatprep.subr.bf16.mxu1 %v12333_v47 }
0x1971   : > { %10627 = vmatpush3.bf16.msra.mxu1 %v12348_v13 }
0x1972   : > { %10629 = vmatprep.subr.bf16.mxu1 %v14660_v44 }
0x1975   : > { %10631 = vmatpush3.bf16.msra.mxu1 %v14661_v0 }
0x1976   : > { %10633 = vmatprep.subr.bf16.mxu1 %v14662_v9 }
0x1979   : > { %10635 = vmatpush3.bf16.msra.mxu1 %v14663_v29 }
0x197a   : > { %10637 = vmatprep.subr.bf16.mxu1 %v14770_v12 }
0x197d   : > { %10639 = vmatpush3.bf16.msra.mxu1 %v14771_v61 }
0x197e   : > { %10641 = vmatprep.subr.bf16.mxu1 %v14772_v8 }
0x1981   : > { %10643 = vmatpush3.bf16.msra.mxu1 %v14773_v40 }
0x1982   : > { %10645 = vmatprep.subr.bf16.mxu1 %v14774_v23 }
0x1985   : > { %10647 = vmatpush3.bf16.msra.mxu1 %v14775_v41 }
0x1986   : > { %10649 = vmatprep.subr.bf16.mxu1 %v14776_v3  ;;  %v5279_v3 = vld [vmem:[#allocation2 + $0x28] sm:$0xff] }
0x1989   : > { %10651 = vmatpush3.bf16.msra.mxu1 %v14777_v43 }
0x198a   : > { %9520 = vmatprep.subr.mxu1 %v14537_v25 }
0x198c   : > { %5497 = vmatmul.mubr.f32.vlgmr.msra.gmra.mrb[62].mxu1 %v5261_v63 }
0x198d   : > { %9522 = vmatprep.mubr.msk.f32.mxu1 %vm11296_vm9, %v14537_v25 }
0x19c6   : > { %v5244_v2 = vpop.f32.mrb[54].mxu0 }
0x19c7   : > { %5267 = vrot.lane.b32.xlu1 %v5244_v2, %s11297_s19  ;;  %5264 = vrot.lane.b32.xlu0 %v5244_v2, %s11298_s20  ;;  %v9519_v31 = vpop.f32.mrb[55].mxu0 }
0x19c8   : > { %v5280_v31 = vadd.f32 %v13527_v26, %v5279_v3  ;;  %v14784_v26 = vld [vmem:[#allocation28_spill] sm:$0xff]  ;;  %v14789_v3 = vld [vmem:[#allocation33_spill] sm:$0xff] }
0x19cb   : > { %5270 = vrot.lane.b32.xlu0 %v5244_v2, %s11299_s25 }
0x1a39   : > { %v5265_v57 = vpop.permute.xlu0 %5264  ;;  %v5268_v58 = vpop.permute.xlu1 %5267 }
0x1a3a   : > { %v5273_v49 = vsel %vm1266_vm10, %v5244_v2, %v5265_v57  ;;  %v14778_v2 = vld [vmem:[#allocation20_spill] sm:$0xff]  ;;  %v14779_v57 = vld [vmem:[#allocation25_spill] sm:$0xff] }
0x1a3b   : > { %v5274_v28 = vsel %vm385_vm0, %v5273_v49, %v5268_v58  ;;  %v14781_v58 = vld [vmem:[#allocation24_spill] sm:$0xff]  ;;  %v14782_v49 = vld [vmem:[#allocation7_spill] sm:$0xff] }
0x1a3d   : > { %v5271_v43 = vpop.permute.xlu0 %5270 }
0x1a3e   : > { %v5275_v63 = vsel %vm2012_vm11, %v5274_v28, %v5271_v43  ;;  %v14780_v43 = vld [vmem:[#allocation27_spill] sm:$0xff]  ;;  %v14783_v28 = vld [vmem:[#allocation8_spill] sm:$0xff] }
0x1a3f   : > { %v5276_v41 = vmul.f32 %v13599_v19, %v5275_v63  ;;  %v5277_v23 = vmul.f32 %v13605_v18, %v5275_v63  ;;  %v8728_v40 = vpop.f32.mrb[60].mxu1  ;;  %v14790_v63 = vld [vmem:[#allocation34_spill] sm:$0xff] }
0x1a40   : > { %v8729_v8 = vpop.f32.mrb[61].mxu1 }
0x1a41   : > { %v8730_v61 = vadd.f32 %v8729_v8, %v8728_v40  ;;  %5416 = vmatprep.mubr.f32.mxu0 %v5277_v23  ;;  %v14785_v8 = vld [vmem:[#allocation29_spill] sm:$0xff]  ;;  %v14787_v40 = vld [vmem:[#allocation31_spill] sm:$0xff] }
0x1a42   : > { %5417 = vmatmul.mubr.f32.vlgmr.msra.gmra.mrb[56].mxu0 %v5276_v41 }
0x1a43   : > { %v5351_v12 = vadd.f32 %v8730_v61, %v5280_v31  ;;  %10655 = vmatpush3.bf16.msra.mxu0 %v14561_v21  ;;  %5567 = vmatprep.mubr.f32.mxu0 %v5277_v23  ;;  %v14786_v61 = vld [vmem:[#allocation30_spill] sm:$0xff]  ;;  %v14788_v23 = vld [vmem:[#allocation32_spill] sm:$0xff] }
0x1a44   : > { %10657 = vmatprep.subr.bf16.mxu0 %v14778_v2  ;;  %v5430_v31 = vld [vmem:[#allocation3 + $0x28] sm:$0xff]  ;;  %v14799_v2 = vld [vmem:[#allocation45_spill] sm:$0xff] }
0x1a47   : > { %10659 = vmatpush3.bf16.msra.mxu0 %v14779_v57  ;;  %v14798_v57 = vld [vmem:[#allocation44_spill] sm:$0xff] }
0x1a48   : > { %10661 = vmatprep.subr.bf16.mxu0 %v14780_v43 }
0x1a4b   : > { %10663 = vmatpush3.bf16.msra.mxu0 %v14781_v58  ;;  %v14791_v58 = vld [vmem:[#allocation35_spill] sm:$0xff] }
0x1a4c   : > { %10665 = vmatprep.subr.bf16.mxu0 %v14782_v49 }
0x1a4f   : > { %10667 = vmatpush3.bf16.msra.mxu0 %v14783_v28  ;;  %v14792_v28 = vld [vmem:[#allocation37_spill] sm:$0xff] }
0x1a50   : > { %10669 = vmatprep.subr.bf16.mxu0 %v14784_v26  ;;  %v14796_v26 = vld [vmem:[#allocation42_spill] sm:$0xff] }
0x1a53   : > { %10671 = vmatpush3.bf16.msra.mxu0 %v14785_v8  ;;  %v13875_v8 = vld [vmem:[%s14296_s7 + $0x8] sm:$0xff] }
0x1a54   : > { %10673 = vmatprep.subr.bf16.mxu0 %v14786_v61 }
0x1a57   : > { %10675 = vmatpush3.bf16.msra.mxu0 %v14787_v40  ;;  %v5431_v40 = vadd.f32 %v13875_v8, %v5430_v31  ;;  %v14800_v31 = vld [vmem:[#allocation46_spill] sm:$0xff] }
0x1a58   : > { %10677 = vmatprep.subr.bf16.mxu0 %v14788_v23 }
0x1a5b   : > { %10679 = vmatpush3.bf16.msra.mxu0 %v14789_v3  ;;  %v14794_v3 = vld [vmem:[#allocation40_spill] sm:$0xff] }
0x1a5c   : > { %10681 = vmatprep.subr.bf16.mxu0 %v14790_v63  ;;  %v14793_v63 = vld [vmem:[#allocation39_spill] sm:$0xff] }
0x1a5f   : > { %10683 = vmatpush3.bf16.msra.mxu0 %v14791_v58  ;;  %v8798_v49 = vpop.f32.mrb[62].mxu1  ;;  %v14795_v58 = vld [vmem:[#allocation41_spill] sm:$0xff] }
0x1a60   : > { %v8799_v43 = vpop.f32.mrb[63].mxu1  ;;  %10685 = vmatprep.subr.bf16.mxu0 %v14792_v28  ;;  %v14797_v28 = vld [vmem:[#allocation43_spill] sm:$0xff] }
0x1a61   : > { %v8800_v61 = vadd.f32 %v8799_v43, %v8798_v49  ;;  %v14802_v43 = vld [vmem:[#allocation48_spill] sm:$0xff]  ;;  %v14803_v49 = vld [vmem:[#allocation49_spill] sm:$0xff] }
0x1a62   : > { %5568 = vmatmul.mubr.f32.vlgmr.msra.gmra.mrb[58].mxu0 %v5276_v41  ;;  %v14801_v41 = vld [vmem:[#allocation47_spill] sm:$0xff] }
0x1a63   : > { %v5502_v23 = vadd.f32 %v8800_v61, %v5431_v40  ;;  %10687 = vmatpush3.bf16.msra.mxu0 %v14737_v38  ;;  %v14804_v61 = vld [vmem:[#allocation50_spill] sm:$0xff]  ;;  %v14805_v40 = vld [vmem:[#allocation51_spill] sm:$0xff] }
0x1a64   : > { %10689 = vmatprep.subr.bf16.mxu0 %v14793_v63 }
0x1a67   : > { %10691 = vmatpush3.bf16.msra.mxu0 %v14794_v3 }
0x1a68   : > { %10693 = vmatprep.subr.bf16.mxu0 %v14795_v58  ;;  %v14806_v58 = vld [vmem:[#allocation52_spill] sm:$0xff] }
0x1a6b   : > { %10695 = vmatpush3.bf16.msra.mxu0 %v14796_v26 }
0x1a6c   : > { %10697 = vmatprep.subr.bf16.mxu0 %v14797_v28 }
0x1a6f   : > { %10699 = vmatpush3.bf16.msra.mxu0 %v14798_v57 }
0x1a70   : > { %10701 = vmatprep.subr.bf16.mxu0 %v14799_v2 }
0x1a73   : > { %10703 = vmatpush3.bf16.msra.mxu0 %v14800_v31 }
0x1a74   : > { %10705 = vmatprep.subr.bf16.mxu0 %v14801_v41 }
0x1a77   : > { %10707 = vmatpush3.bf16.msra.mxu0 %v14802_v43 }
0x1a78   : > { %10709 = vmatprep.subr.bf16.mxu0 %v14803_v49 }
0x1a7b   : > { %10711 = vmatpush3.bf16.msra.mxu0 %v14804_v61 }
0x1a7c   : > { %10713 = vmatprep.subr.bf16.mxu0 %v14805_v40 }
0x1a7f   : > { %10715 = vmatpush3.bf16.msra.mxu0 %v14806_v58 }
0x1a80   : > { %9525 = vmatprep.subr.mxu0 %v14537_v25 }
0x1b15   : > { %v8763_v28 = vpop.f32.mrb[56].mxu0 }
0x1b16   : > { %v8764_v57 = vpop.f32.mrb[57].mxu0 }
0x1b17   : > { %v8765_v26 = vadd.f32 %v8764_v57, %v8763_v28  ;;  %v14808_v57 = vld [vmem:[#allocation54_spill] sm:$0xff]  ;;  %v14809_v28 = vld [vmem:[#allocation55_spill] sm:$0xff] }
0x1b19   : > { %v13894_v2 = vadd.f32 %v8765_v26, %v5351_v12  ;;  %v14807_v12 = vld [vmem:[#allocation53_spill] sm:$0xff] }
0x1b1a   : > { %v14811_v26 = vld [vmem:[#allocation57_spill] sm:$0xff] }
0x1b35   : > { %v8833_v31 = vpop.f32.mrb[58].mxu0 }
0x1b36   : > { %v8834_v3 = vpop.f32.mrb[59].mxu0 }
0x1b37   : > { %v8835_v41 = vadd.f32 %v8834_v3, %v8833_v31  ;;  %v14813_v3 = vld [vmem:[#allocation59_spill] sm:$0xff]  ;;  %v14815_v31 = vld [vmem:[#allocation61_spill] sm:$0xff] }
0x1b39   : > { %v5573_v63 = vadd.f32 %v8835_v41, %v5502_v23  ;;  %v14812_v23 = vld [vmem:[#allocation58_spill] sm:$0xff]  ;;  %v14817_v41 = vld [vmem:[#allocation63_spill] sm:$0xff] }
0x1b3b   : > { %v7533_v43 = vmul.f32 -1.442695, %v5573_v63  ;;  %v14814_v63 = vld [vmem:[#allocation60_spill] sm:$0xff] }
0x1b3d   : > { %11235 = vpow2.f32 %v7533_v43  ;;  %v14818_v43 = vld [vmem:[#allocation64_spill] sm:$0xff] }
0x1b47   : > { %v11236_v49 = vpop.eup %11235 }
0x1b48   : > { %v5577_v38 = vadd.f32 1.0, %v11236_v49  ;;  %v14819_v49 = vld [vmem:[#allocation65_spill] sm:$0xff] }
0x1b4a   : > { %11237 = vrcp.f32 %v5577_v38  ;;  %v14810_v38 = vld [vmem:[#allocation56_spill] sm:$0xff] }
0x1b54   : > { %v11238_v61 = vpop.eup %11237 }
0x1b55   : > { %v5580_v40 = vmul.f32 %v11238_v61, %v13795_v10  ;;  %v14820_v61 = vld [vmem:[#allocation66_spill] sm:$0xff] }
0x1b57   : > { %5655 = vrot.lane.b32.xlu0 %v5580_v40, %s11297_s19  ;;  %5652 = vrot.lane.b32.xlu1 %v5580_v40, %s11298_s20 }
0x1b58   : > { %9521 = vmatpush3.msra.mxu1 %v5580_v40 }
0x1b59   : > { %9523 = vmatmul.mubr.msk.f32.vlgmr.msra.gmra.mrb[64].mxu1 %vm718_vm4, %v13571_v17  ;;  %10717 = vmatprep.subr.bf16.mxu1 %v14807_v12  ;;  %v14816_v17 = vld [vmem:[#allocation62_spill] sm:$0xff] }
0x1b5a   : > { %10719 = vmatpush3.bf16.msra.mxu1 %v14808_v57 }
0x1b5b   : > { %5658 = vrot.lane.b32.xlu1 %v5580_v40, %s11299_s25  ;;  %10721 = vmatprep.subr.bf16.mxu1 %v14809_v28 }
0x1b5e   : > { %10723 = vmatpush3.bf16.msra.mxu1 %v14810_v38  ;;  %v14821_v38 = vld [vmem:[#allocation67_spill] sm:$0xff] }
0x1b5f   : > { %10725 = vmatprep.subr.bf16.mxu1 %v14811_v26  ;;  %v14822_v26 = vld [vmem:[#allocation68_spill] sm:$0xff] }
0x1b62   : > { %10727 = vmatpush3.bf16.msra.mxu1 %v14812_v23  ;;  %v14823_v23 = vld [vmem:[#allocation10_spill] sm:$0xff] }
0x1b63   : > { %10729 = vmatprep.subr.bf16.mxu1 %v14813_v3 }
0x1b66   : > { %10731 = vmatpush3.bf16.msra.mxu1 %v14814_v63 }
0x1b67   : > { %10733 = vmatprep.subr.bf16.mxu1 %v14815_v31 }
0x1b6a   : > { %10735 = vmatpush3.bf16.msra.mxu1 %v14816_v17 }
0x1b6b   : > { %10737 = vmatprep.subr.bf16.mxu1 %v14817_v41 }
0x1b6e   : > { %10739 = vmatpush3.bf16.msra.mxu1 %v14818_v43 }
0x1b6f   : > { %10741 = vmatprep.subr.bf16.mxu1 %v14819_v49 }
0x1b72   : > { %10743 = vmatpush3.bf16.msra.mxu1 %v14820_v61 }
0x1b73   : > { %10745 = vmatprep.subr.bf16.mxu1 %v14821_v38 }
0x1b76   : > { %10747 = vmatpush3.bf16.msra.mxu1 %v14822_v26 }
0x1b77   : > { %10749 = vmatprep.subr.bf16.mxu1 %v14823_v23 }
0x1bc9   : > { %v5653_v3 = vpop.permute.xlu1 %5652  ;;  %v5656_v63 = vpop.permute.xlu0 %5655 }
0x1bca   : > { %v5661_v31 = vsel %vm1266_vm10, %v5580_v40, %v5653_v3 }
0x1bcb   : > { %v5662_v17 = vsel %vm385_vm0, %v5661_v31, %v5656_v63 }
0x1bcd   : > { %v5659_v28 = vpop.permute.xlu1 %5658 }
0x1bce   : > { %v5663_v41 = vsel %vm2012_vm11, %v5662_v17, %v5659_v28 }
0x1bcf   : > { %v5664_v43 = vmul.f32 %v13599_v19, %v5663_v41  ;;  %v5665_v49 = vmul.f32 %v13605_v18, %v5663_v41 }
0x1bd1   : > { %5748 = vmatprep.mubr.f32.mxu0 %v5665_v49 }
0x1bd2   : > { %5749 = vmatmul.mubr.f32.vlgmr.msra.gmra.mrb[60].mxu0 %v5664_v43  ;;  %v5682_v43 = vld [vmem:[#allocation4 + $0x28] sm:$0xff] }
0x1bd3   : > { %9527 = vmatprep.mubr.msk.f32.mxu0 %vm11296_vm9, %v14537_v25 }
0x1c2c   : > { %v5647_v26 = vpop.f32.mrb[64].mxu1 }
0x1c2d   : > { %5670 = vrot.lane.b32.xlu1 %v5647_v26, %s11297_s19  ;;  %5667 = vrot.lane.b32.xlu0 %v5647_v26, %s11298_s20  ;;  %v9524_v40 = vpop.f32.mrb[65].mxu1 }
0x1c2e   : > { %v5683_v40 = vadd.f32 %v13621_v27, %v5682_v43 }
0x1c31   : > { %5673 = vrot.lane.b32.xlu0 %v5647_v26, %s11299_s25 }
0x1c9f   : > { %v5668_v3 = vpop.permute.xlu0 %5667  ;;  %v5671_v63 = vpop.permute.xlu1 %5670 }
0x1ca0   : > { %v5676_v28 = vsel %vm1266_vm10, %v5647_v26, %v5668_v3 }
0x1ca1   : > { %v5677_v31 = vsel %vm385_vm0, %v5676_v28, %v5671_v63 }
0x1ca3   : > { %v5674_v17 = vpop.permute.xlu0 %5673 }
0x1ca4   : > { %v5678_v41 = vsel %vm2012_vm11, %v5677_v31, %v5674_v17 }
0x1ca5   : > { %v5679_v49 = vmul.f32 %v13599_v19, %v5678_v41  ;;  %v5680_v23 = vmul.f32 %v13605_v18, %v5678_v41  ;;  %v8870_v38 = vpop.f32.mrb[60].mxu0  ;;  %v7532_v19 = vmul.f32 -1.442695, %v13894_v2  ;;  %v13963_v2 = vld [vmem:[%s14290_s1] sm:$0xff] }
0x1ca6   : > { %v8871_v61 = vpop.f32.mrb[61].mxu0 }
0x1ca7   : > { %v8872_v57 = vadd.f32 %v8871_v61, %v8870_v38  ;;  %5819 = vmatprep.mubr.f32.mxu1 %v5680_v23  ;;  %11239 = vpow2.f32 %v7532_v19  ;;  %v13993_v19 = vld [vmem:[%s14292_s3] sm:$0xff] }
0x1ca8   : > { %5820 = vmatmul.mubr.f32.vlgmr.msra.gmra.mrb[66].mxu1 %v5679_v49 }
0x1ca9   : > { %v5754_v12 = vadd.f32 %v8872_v57, %v5683_v40  ;;  %10751 = vmatpush3.bf16.msra.mxu1 %v12161_v46 }
0x1caa   : > { %10753 = vmatprep.subr.bf16.mxu1 %v12163_v4 }
0x1cad   : > { %10755 = vmatpush3.bf16.msra.mxu1 %v12182_v33 }
0x1cae   : > { %10757 = vmatprep.subr.bf16.mxu1 %v12185_v52 }
0x1cb1   : > { %10759 = vmatpush3.bf16.msra.mxu1 %v12204_v51  ;;  %v11240_v18 = vpop.eup %11239 }
0x1cb2   : > { %10761 = vmatprep.subr.bf16.mxu1 %v12207_v22  ;;  %v5426_v27 = vadd.f32 1.0, %v11240_v18 }
0x1cb4   : > { %11241 = vrcp.f32 %v5426_v27  ;;  %v13999_v27 = vld [vmem:[%s14292_s3 + $0x8] sm:$0xff] }
0x1cb5   : > { %10763 = vmatpush3.bf16.msra.mxu1 %v12231_v16 }
0x1cb6   : > { %10765 = vmatprep.subr.bf16.mxu1 %v12235_v34 }
0x1cb9   : > { %10767 = vmatpush3.bf16.msra.mxu1 %v12252_v7 }
0x1cba   : > { %10769 = vmatprep.subr.bf16.mxu1 %v12255_v55 }
0x1cbd   : > { %10771 = vmatpush3.bf16.msra.mxu1 %v12270_v59 }
0x1cbe   : > { %10773 = vmatprep.subr.bf16.mxu1 %v12273_v15  ;;  %v11242_v61 = vpop.eup %11241 }
0x1cbf   : > { %v5828_v3 = vsub.f32 1.0, %v11242_v61  ;;  %v5827_v28 = vmul.f32 %v11242_v61, %v13795_v10  ;;  %v14827_v61 = vld [vmem:[#allocation19_spill] sm:$0xff] }
0x1cc1   : > { %10775 = vmatpush3.bf16.msra.mxu1 %v12288_v6 }
0x1cc2   : > { %10777 = vmatprep.subr.bf16.mxu1 %v12291_v53 }
0x1cc5   : > { %10779 = vmatpush3.bf16.msra.mxu1 %v14769_v20 }
0x1cc6   : > { %10813 = vmatprep.subr.bf16.mxu1 %v12314_v39 }
0x1d7b   : > { %v8905_v57 = vpop.f32.mrb[66].mxu1 }
0x1d7c   : > { %v8906_v38 = vpop.f32.mrb[67].mxu1 }
0x1d7d   : > { %v8907_v26 = vadd.f32 %v8906_v38, %v8905_v57  ;;  %v14824_v38 = vld [vmem:[#allocation13_spill] sm:$0xff] }
0x1d7f   : > { %v5825_v23 = vadd.f32 %v8907_v26, %v5754_v12  ;;  %v14825_v26 = vld [vmem:[#allocation17_spill] sm:$0xff] }
0x1d81   : > { %11243 = vtanh.f32 %v5825_v23  ;;  %v14826_v23 = vld [vmem:[#allocation22_spill] sm:$0xff] }
0x1d8b   : > { %v11244_v63 = vpop.eup %11243 }
0x1d8c   : > { %v5829_v31 = vmul.f32 %v11244_v63, %v5828_v3  ;;  %v14828_v3 = vld [vmem:[#allocation6_spill] sm:$0xff]  ;;  %v14829_v63 = vld [vmem:[#allocation15_spill] sm:$0xff] }
0x1d8e   : > { %v13953_v17 = vadd.f32 %v5829_v31, %v5827_v28  ;;  %v14830_v28 = vld [vmem:[#allocation16_spill] sm:$0xff]  ;;  %v14831_v31 = vld [vmem:[#allocation5_spill] sm:$0xff] }
0x1d90   : > { %5905 = vrot.lane.b32.xlu0 %v13953_v17, %s11297_s19  ;;  %5902 = vrot.lane.b32.xlu1 %v13953_v17, %s11298_s20 }
0x1d91   : > { %9526 = vmatpush3.msra.mxu0 %v13953_v17 }
0x1d92   : > { %9528 = vmatmul.mubr.msk.f32.vlgmr.msra.gmra.mrb[62].mxu0 %vm718_vm4, %v13963_v2  ;;  %10781 = vmatprep.subr.bf16.mxu0 %v14604_v42 }
0x1d93   : > { %10783 = vmatpush3.bf16.msra.mxu0 %v12471_v60 }
0x1d94   : > { %5908 = vrot.lane.b32.xlu1 %v13953_v17, %s11299_s25  ;;  %10785 = vmatprep.subr.bf16.mxu0 %v12481_v1 }
0x1d97   : > { %10787 = vmatpush3.bf16.msra.mxu0 %v12489_v36 }
0x1d98   : > { %10789 = vmatprep.subr.bf16.mxu0 %v12499_v37 }
0x1d9b   : > { %10791 = vmatpush3.bf16.msra.mxu0 %v12507_v14 }
0x1d9c   : > { %10793 = vmatprep.subr.bf16.mxu0 %v12520_v32 }
0x1d9f   : > { %10795 = vmatpush3.bf16.msra.mxu0 %v12531_v35 }
0x1da0   : > { %10797 = vmatprep.subr.bf16.mxu0 %v12533_v56 }
0x1da3   : > { %10799 = vmatpush3.bf16.msra.mxu0 %v12549_v62 }
0x1da4   : > { %10801 = vmatprep.subr.bf16.mxu0 %v12552_v30 }
0x1da7   : > { %10803 = vmatpush3.bf16.msra.mxu0 %v12567_v24 }
0x1da8   : > { %10805 = vmatprep.subr.bf16.mxu0 %v12570_v5 }
0x1dab   : > { %10807 = vmatpush3.bf16.msra.mxu0 %v12582_v11 }
0x1dac   : > { %10809 = vmatprep.subr.bf16.mxu0 %v12593_v54 }
0x1daf   : > { %10811 = vmatpush3.bf16.msra.mxu0 %v12602_v50 }
0x1db0   : > { %10845 = vmatprep.subr.bf16.mxu0 %v14605_v48 }
0x1e02   : > { %v5903_v10 = vpop.permute.xlu1 %5902  ;;  %v5906_v12 = vpop.permute.xlu0 %5905 }
0x1e03   : > { %v5911_v41 = vsel %vm1266_vm10, %v13953_v17, %v5903_v10 }
0x1e04   : > { %v5912_v43 = vsel %vm385_vm0, %v5911_v41, %v5906_v12 }
0x1e06   : > { %v5909_v49 = vpop.permute.xlu1 %5908 }
0x1e07   : > { %v5913_v40 = vsel %vm2012_vm11, %v5912_v43, %v5909_v49 }
0x1e08   : > { %v5914_v18 = vmul.f32 %v13993_v19, %v5913_v40  ;;  %v5915_v57 = vmul.f32 %v13999_v27, %v5913_v40 }
0x1e0a   : > { %5998 = vmatprep.mubr.f32.mxu1 %v5915_v57 }
0x1e0b   : > { %5999 = vmatmul.mubr.f32.vlgmr.msra.gmra.mrb[68].mxu1 %v5914_v18 }
0x1e0c   : > { %10815 = vmatpush3.bf16.msra.mxu1 %v12330_v45  ;;  %6149 = vmatprep.mubr.f32.mxu1 %v5915_v57 }
0x1e0d   : > { %10817 = vmatprep.subr.bf16.mxu1 %v12333_v47 }
0x1e10   : > { %10819 = vmatpush3.bf16.msra.mxu1 %v12348_v13 }
0x1e11   : > { %10821 = vmatprep.subr.bf16.mxu1 %v14660_v44 }
0x1e14   : > { %10823 = vmatpush3.bf16.msra.mxu1 %v14661_v0 }
0x1e15   : > { %10825 = vmatprep.subr.bf16.mxu1 %v14662_v9 }
0x1e18   : > { %10827 = vmatpush3.bf16.msra.mxu1 %v14663_v29 }
0x1e19   : > { %10829 = vmatprep.subr.bf16.mxu1 %v14824_v38 }
0x1e1c   : > { %10831 = vmatpush3.bf16.msra.mxu1 %v14825_v26  ;;  %v14838_v26 = vld [vmem:[#allocation8_spill] sm:$0xff] }
0x1e1d   : > { %10833 = vmatprep.subr.bf16.mxu1 %v14826_v23 }
0x1e20   : > { %10835 = vmatpush3.bf16.msra.mxu1 %v14827_v61 }
0x1e21   : > { %10837 = vmatprep.subr.bf16.mxu1 %v14828_v3 }
0x1e24   : > { %10839 = vmatpush3.bf16.msra.mxu1 %v14829_v63 }
0x1e25   : > { %10841 = vmatprep.subr.bf16.mxu1 %v14830_v28 }
0x1e28   : > { %10843 = vmatpush3.bf16.msra.mxu1 %v14831_v31  ;;  %v5932_v31 = vld [vmem:[#allocation2 + $0x30] sm:$0xff] }
0x1e29   : > { %9530 = vmatprep.subr.mxu1 %v14537_v25 }
0x1e2b   : > { %6150 = vmatmul.mubr.f32.vlgmr.msra.gmra.mrb[70].mxu1 %v5914_v18 }
0x1e2c   : > { %9532 = vmatprep.mubr.msk.f32.mxu1 %vm11296_vm9, %v14537_v25 }
0x1e65   : > { %v5897_v10 = vpop.f32.mrb[62].mxu0 }
0x1e66   : > { %5920 = vrot.lane.b32.xlu1 %v5897_v10, %s11297_s19  ;;  %5917 = vrot.lane.b32.xlu0 %v5897_v10, %s11298_s20  ;;  %v9529_v12 = vpop.f32.mrb[63].mxu0 }
0x1e67   : > { %v14031_v12 = vld [vmem:[%s14296_s7] sm:$0xff] }
0x1e68   : > { %14832 = vst [vmem:[#allocation21_spill] sm:$0xff] %v14031_v12  ;;  %v5933_v23 = vadd.f32 %v14031_v12, %v5932_v31  ;;  %v14839_v31 = vld [vmem:[#allocation28_spill] sm:$0xff] }
0x1e69   : > { %v14854_v12 = vld [vmem:[#allocation44_spill] sm:$0xff] }
0x1e6a   : > { %5923 = vrot.lane.b32.xlu0 %v5897_v10, %s11299_s25 }
0x1ed8   : > { %v5918_v41 = vpop.permute.xlu0 %5917  ;;  %v5921_v43 = vpop.permute.xlu1 %5920 }
0x1ed9   : > { %v5926_v49 = vsel %vm1266_vm10, %v5897_v10, %v5918_v41 }
0x1eda   : > { %v5927_v40 = vsel %vm385_vm0, %v5926_v49, %v5921_v43  ;;  %v14833_v43 = vld [vmem:[#allocation20_spill] sm:$0xff]  ;;  %v14834_v49 = vld [vmem:[#allocation25_spill] sm:$0xff] }
0x1edc   : > { %v5924_v57 = vpop.permute.xlu0 %5923 }
0x1edd   : > { %v5928_v18 = vsel %vm2012_vm11, %v5927_v40, %v5924_v57  ;;  %v14835_v40 = vld [vmem:[#allocation27_spill] sm:$0xff]  ;;  %v14836_v57 = vld [vmem:[#allocation24_spill] sm:$0xff] }
0x1ede   : > { %v5929_v28 = vmul.f32 %v13993_v19, %v5928_v18  ;;  %v5930_v63 = vmul.f32 %v13999_v27, %v5928_v18  ;;  %v8942_v3 = vpop.f32.mrb[68].mxu1  ;;  %v14837_v18 = vld [vmem:[#allocation7_spill] sm:$0xff] }
0x1edf   : > { %v8943_v61 = vpop.f32.mrb[69].mxu1 }
0x1ee0   : > { %v8944_v10 = vadd.f32 %v8943_v61, %v8942_v3  ;;  %6069 = vmatprep.mubr.f32.mxu0 %v5930_v63  ;;  %v14840_v61 = vld [vmem:[#allocation29_spill] sm:$0xff]  ;;  %v14842_v3 = vld [vmem:[#allocation31_spill] sm:$0xff] }
0x1ee1   : > { %6070 = vmatmul.mubr.f32.vlgmr.msra.gmra.mrb[64].mxu0 %v5929_v28 }
0x1ee2   : > { %v6004_v41 = vadd.f32 %v8944_v10, %v5933_v23  ;;  %10847 = vmatpush3.bf16.msra.mxu0 %v14561_v21  ;;  %6220 = vmatprep.mubr.f32.mxu0 %v5930_v63  ;;  %v14841_v23 = vld [vmem:[#allocation30_spill] sm:$0xff]  ;;  %v14843_v63 = vld [vmem:[#allocation32_spill] sm:$0xff]  ;;  %v14844_v10 = vld [vmem:[#allocation33_spill] sm:$0xff] }
0x1ee3   : > { %10849 = vmatprep.subr.bf16.mxu0 %v14833_v43  ;;  %v14848_v21 = vld [vmem:[#allocation38_spill] sm:$0xff] }
0x1ee6   : > { %10851 = vmatpush3.bf16.msra.mxu0 %v14834_v49  ;;  %v14845_v49 = vld [vmem:[#allocation34_spill] sm:$0xff] }
0x1ee7   : > { %10853 = vmatprep.subr.bf16.mxu0 %v14835_v40  ;;  %v6083_v40 = vld [vmem:[#allocation3 + $0x30] sm:$0xff] }
0x1eea   : > { %10855 = vmatpush3.bf16.msra.mxu0 %v14836_v57  ;;  %v14846_v57 = vld [vmem:[#allocation35_spill] sm:$0xff] }
0x1eeb   : > { %10857 = vmatprep.subr.bf16.mxu0 %v14837_v18 }
0x1eee   : > { %10859 = vmatpush3.bf16.msra.mxu0 %v14838_v26  ;;  %v14847_v26 = vld [vmem:[#allocation37_spill] sm:$0xff] }
0x1eef   : > { %10861 = vmatprep.subr.bf16.mxu0 %v14839_v31  ;;  %v6084_v31 = vadd.f32 %v13875_v8, %v6083_v40  ;;  %v14856_v40 = vld [vmem:[#allocation46_spill] sm:$0xff] }
0x1ef2   : > { %10863 = vmatpush3.bf16.msra.mxu0 %v14840_v61 }
0x1ef3   : > { %10865 = vmatprep.subr.bf16.mxu0 %v14841_v23 }
0x1ef6   : > { %10867 = vmatpush3.bf16.msra.mxu0 %v14842_v3  ;;  %v14849_v3 = vld [vmem:[#allocation39_spill] sm:$0xff] }
0x1ef7   : > { %10869 = vmatprep.subr.bf16.mxu0 %v14843_v63  ;;  %v14850_v63 = vld [vmem:[#allocation40_spill] sm:$0xff] }
0x1efa   : > { %10871 = vmatpush3.bf16.msra.mxu0 %v14844_v10  ;;  %v14851_v10 = vld [vmem:[#allocation41_spill] sm:$0xff] }
0x1efb   : > { %10873 = vmatprep.subr.bf16.mxu0 %v14845_v49  ;;  %v14852_v49 = vld [vmem:[#allocation42_spill] sm:$0xff] }
0x1efe   : > { %10875 = vmatpush3.bf16.msra.mxu0 %v14846_v57  ;;  %v9012_v18 = vpop.f32.mrb[70].mxu1  ;;  %v14853_v57 = vld [vmem:[#allocation43_spill] sm:$0xff] }
0x1eff   : > { %v9013_v43 = vpop.f32.mrb[71].mxu1  ;;  %10877 = vmatprep.subr.bf16.mxu0 %v14847_v26  ;;  %v14855_v26 = vld [vmem:[#allocation45_spill] sm:$0xff] }
0x1f00   : > { %v9014_v61 = vadd.f32 %v9013_v43, %v9012_v18  ;;  %v14858_v43 = vld [vmem:[#allocation48_spill] sm:$0xff]  ;;  %v14859_v18 = vld [vmem:[#allocation49_spill] sm:$0xff] }
0x1f01   : > { %6221 = vmatmul.mubr.f32.vlgmr.msra.gmra.mrb[66].mxu0 %v5929_v28  ;;  %v14857_v28 = vld [vmem:[#allocation47_spill] sm:$0xff] }
0x1f02   : > { %v6155_v23 = vadd.f32 %v9014_v61, %v6084_v31  ;;  %10879 = vmatpush3.bf16.msra.mxu0 %v14848_v21  ;;  %v14860_v31 = vld [vmem:[#allocation50_spill] sm:$0xff]  ;;  %v14861_v61 = vld [vmem:[#allocation51_spill] sm:$0xff] }
0x1f03   : > { %10881 = vmatprep.subr.bf16.mxu0 %v14849_v3 }
0x1f06   : > { %10883 = vmatpush3.bf16.msra.mxu0 %v14850_v63 }
0x1f07   : > { %10885 = vmatprep.subr.bf16.mxu0 %v14851_v10 }
0x1f0a   : > { %10887 = vmatpush3.bf16.msra.mxu0 %v14852_v49 }
0x1f0b   : > { %10889 = vmatprep.subr.bf16.mxu0 %v14853_v57 }
0x1f0e   : > { %10891 = vmatpush3.bf16.msra.mxu0 %v14854_v12 }
0x1f0f   : > { %10893 = vmatprep.subr.bf16.mxu0 %v14855_v26 }
0x1f12   : > { %10895 = vmatpush3.bf16.msra.mxu0 %v14856_v40 }
0x1f13   : > { %10897 = vmatprep.subr.bf16.mxu0 %v14857_v28 }
0x1f16   : > { %10899 = vmatpush3.bf16.msra.mxu0 %v14858_v43 }
0x1f17   : > { %10901 = vmatprep.subr.bf16.mxu0 %v14859_v18 }
0x1f1a   : > { %10903 = vmatpush3.bf16.msra.mxu0 %v14860_v31 }
0x1f1b   : > { %10905 = vmatprep.subr.bf16.mxu0 %v14861_v61 }
0x1f1e   : > { %10907 = vmatpush3.bf16.msra.mxu0 %v14806_v58 }
0x1f1f   : > { %9535 = vmatprep.subr.mxu0 %v14537_v25 }
0x1fb4   : > { %v8977_v57 = vpop.f32.mrb[64].mxu0 }
0x1fb5   : > { %v8978_v12 = vpop.f32.mrb[65].mxu0 }
0x1fb6   : > { %v8979_v49 = vadd.f32 %v8978_v12, %v8977_v57  ;;  %v14862_v12 = vld [vmem:[#allocation53_spill] sm:$0xff]  ;;  %v14865_v57 = vld [vmem:[#allocation56_spill] sm:$0xff] }
0x1fb8   : > { %v14067_v26 = vadd.f32 %v8979_v49, %v6004_v41  ;;  %v14863_v41 = vld [vmem:[#allocation54_spill] sm:$0xff]  ;;  %v14864_v49 = vld [vmem:[#allocation55_spill] sm:$0xff] }
0x1fd4   : > { %v9047_v40 = vpop.f32.mrb[66].mxu0 }
0x1fd5   : > { %v9048_v10 = vpop.f32.mrb[67].mxu0 }
0x1fd6   : > { %v9049_v28 = vadd.f32 %v9048_v10, %v9047_v40  ;;  %v14869_v10 = vld [vmem:[#allocation60_spill] sm:$0xff]  ;;  %v14870_v40 = vld [vmem:[#allocation61_spill] sm:$0xff] }
0x1fd8   : > { %v6226_v63 = vadd.f32 %v9049_v28, %v6155_v23  ;;  %v14866_v23 = vld [vmem:[#allocation57_spill] sm:$0xff]  ;;  %v14871_v28 = vld [vmem:[#allocation62_spill] sm:$0xff] }
0x1fda   : > { %v7537_v43 = vmul.f32 -1.442695, %v6226_v63  ;;  %v14868_v63 = vld [vmem:[#allocation59_spill] sm:$0xff] }
0x1fdc   : > { %11245 = vpow2.f32 %v7537_v43  ;;  %v14872_v43 = vld [vmem:[#allocation63_spill] sm:$0xff] }
0x1fe6   : > { %v11246_v18 = vpop.eup %11245 }
0x1fe7   : > { %v6230_v3 = vadd.f32 1.0, %v11246_v18  ;;  %v14873_v18 = vld [vmem:[#allocation64_spill] sm:$0xff] }
0x1fe9   : > { %11247 = vrcp.f32 %v6230_v3  ;;  %v14867_v3 = vld [vmem:[#allocation58_spill] sm:$0xff] }
0x1ff3   : > { %v11248_v31 = vpop.eup %11247 }
0x1ff4   : > { %v6233_v61 = vmul.f32 %v11248_v31, %v13953_v17  ;;  %v14874_v31 = vld [vmem:[#allocation65_spill] sm:$0xff] }
0x1ff6   : > { %6308 = vrot.lane.b32.xlu0 %v6233_v61, %s11297_s19  ;;  %6305 = vrot.lane.b32.xlu1 %v6233_v61, %s11298_s20 }
0x1ff7   : > { %9531 = vmatpush3.msra.mxu1 %v6233_v61 }
0x1ff8   : > { %9533 = vmatmul.mubr.msk.f32.vlgmr.msra.gmra.mrb[72].mxu1 %vm718_vm4, %v13963_v2  ;;  %10909 = vmatprep.subr.bf16.mxu1 %v14862_v12 }
0x1ff9   : > { %10911 = vmatpush3.bf16.msra.mxu1 %v14863_v41 }
0x1ffa   : > { %6311 = vrot.lane.b32.xlu1 %v6233_v61, %s11299_s25  ;;  %10913 = vmatprep.subr.bf16.mxu1 %v14864_v49  ;;  %v14875_v49 = vld [vmem:[#allocation66_spill] sm:$0xff] }
0x1ffd   : > { %10915 = vmatpush3.bf16.msra.mxu1 %v14865_v57  ;;  %v14876_v57 = vld [vmem:[#allocation67_spill] sm:$0xff] }
0x1ffe   : > { %10917 = vmatprep.subr.bf16.mxu1 %v14866_v23  ;;  %v14877_v23 = vld [vmem:[#allocation68_spill] sm:$0xff] }
0x2001   : > { %10919 = vmatpush3.bf16.msra.mxu1 %v14867_v3  ;;  %v14878_v3 = vld [vmem:[#allocation10_spill] sm:$0xff] }
0x2002   : > { %10921 = vmatprep.subr.bf16.mxu1 %v14868_v63 }
0x2005   : > { %10923 = vmatpush3.bf16.msra.mxu1 %v14869_v10 }
0x2006   : > { %10925 = vmatprep.subr.bf16.mxu1 %v14870_v40 }
0x2009   : > { %10927 = vmatpush3.bf16.msra.mxu1 %v14871_v28 }
0x200a   : > { %10929 = vmatprep.subr.bf16.mxu1 %v14872_v43 }
0x200d   : > { %10931 = vmatpush3.bf16.msra.mxu1 %v14873_v18 }
0x200e   : > { %10933 = vmatprep.subr.bf16.mxu1 %v14874_v31 }
0x2011   : > { %10935 = vmatpush3.bf16.msra.mxu1 %v14875_v49 }
0x2012   : > { %10937 = vmatprep.subr.bf16.mxu1 %v14876_v57 }
0x2015   : > { %10939 = vmatpush3.bf16.msra.mxu1 %v14877_v23 }
0x2016   : > { %10941 = vmatprep.subr.bf16.mxu1 %v14878_v3 }
0x2068   : > { %v6306_v63 = vpop.permute.xlu1 %6305  ;;  %v6309_v10 = vpop.permute.xlu0 %6308 }
0x2069   : > { %v6314_v40 = vsel %vm1266_vm10, %v6233_v61, %v6306_v63 }
0x206a   : > { %v6315_v28 = vsel %vm385_vm0, %v6314_v40, %v6309_v10 }
0x206c   : > { %v6312_v41 = vpop.permute.xlu1 %6311 }
0x206d   : > { %v6316_v43 = vsel %vm2012_vm11, %v6315_v28, %v6312_v41 }
0x206e   : > { %v6317_v18 = vmul.f32 %v13993_v19, %v6316_v43  ;;  %v6318_v31 = vmul.f32 %v13999_v27, %v6316_v43  ;;  %v6335_v43 = vld [vmem:[#allocation4 + $0x30] sm:$0xff] }
0x2070   : > { %6401 = vmatprep.mubr.f32.mxu0 %v6318_v31 }
0x2071   : > { %6402 = vmatmul.mubr.f32.vlgmr.msra.gmra.mrb[68].mxu0 %v6317_v18 }
0x2072   : > { %9537 = vmatprep.mubr.msk.f32.mxu0 %vm11296_vm9, %v14537_v25 }
0x20cb   : > { %v6300_v23 = vpop.f32.mrb[72].mxu1 }
0x20cc   : > { %6323 = vrot.lane.b32.xlu1 %v6300_v23, %s11297_s19  ;;  %6320 = vrot.lane.b32.xlu0 %v6300_v23, %s11298_s20  ;;  %v9534_v61 = vpop.f32.mrb[73].mxu1 }
0x20cd   : > { %v14110_v61 = vld [vmem:[%s14296_s7 + $0x10] sm:$0xff] }
0x20ce   : > { %v6336_v12 = vadd.f32 %v14110_v61, %v6335_v43  ;;  %v14893_v43 = vld [vmem:[#allocation8_spill] sm:$0xff] }
0x20d0   : > { %6326 = vrot.lane.b32.xlu0 %v6300_v23, %s11299_s25 }
0x213e   : > { %v6321_v3 = vpop.permute.xlu0 %6320  ;;  %v6324_v63 = vpop.permute.xlu1 %6323 }
0x213f   : > { %v6329_v41 = vsel %vm1266_vm10, %v6300_v23, %v6321_v3 }
0x2140   : > { %v6330_v10 = vsel %vm385_vm0, %v6329_v41, %v6324_v63  ;;  %v14888_v63 = vld [vmem:[#allocation20_spill] sm:$0xff]  ;;  %v14889_v41 = vld [vmem:[#allocation25_spill] sm:$0xff] }
0x2142   : > { %v6327_v40 = vpop.permute.xlu0 %6326 }
0x2143   : > { %v6331_v28 = vsel %vm2012_vm11, %v6330_v10, %v6327_v40  ;;  %v14890_v10 = vld [vmem:[#allocation27_spill] sm:$0xff]  ;;  %v14891_v40 = vld [vmem:[#allocation24_spill] sm:$0xff] }
0x2144   : > { %v6332_v18 = vmul.f32 %v13993_v19, %v6331_v28  ;;  %v6333_v31 = vmul.f32 %v13999_v27, %v6331_v28  ;;  %v9084_v57 = vpop.f32.mrb[68].mxu0  ;;  %v14892_v28 = vld [vmem:[#allocation7_spill] sm:$0xff] }
0x2145   : > { %v9085_v49 = vpop.f32.mrb[69].mxu0 }
0x2146   : > { %v9086_v23 = vadd.f32 %v9085_v49, %v9084_v57  ;;  %6472 = vmatprep.mubr.f32.mxu1 %v6333_v31  ;;  %v14887_v57 = vld [vmem:[#allocation23_spill] sm:$0xff]  ;;  %v14895_v31 = vld [vmem:[#allocation29_spill] sm:$0xff] }
0x2147   : > { %6473 = vmatmul.mubr.f32.vlgmr.msra.gmra.mrb[74].mxu1 %v6332_v18  ;;  %v14894_v18 = vld [vmem:[#allocation28_spill] sm:$0xff] }
0x2148   : > { %v6407_v3 = vadd.f32 %v9086_v23, %v6336_v12  ;;  %10943 = vmatpush3.bf16.msra.mxu1 %v12161_v46  ;;  %v7536_v46 = vmul.f32 -1.442695, %v14067_v26  ;;  %v14896_v23 = vld [vmem:[#allocation30_spill] sm:$0xff] }
0x2149   : > { %10945 = vmatprep.subr.bf16.mxu1 %v12163_v4 }
0x214a   : > { %11249 = vpow2.f32 %v7536_v46  ;;  %v14898_v46 = vld [vmem:[#allocation32_spill] sm:$0xff] }
0x214c   : > { %10947 = vmatpush3.bf16.msra.mxu1 %v12182_v33 }
0x214d   : > { %10949 = vmatprep.subr.bf16.mxu1 %v12185_v52 }
0x2150   : > { %10951 = vmatpush3.bf16.msra.mxu1 %v12204_v51 }
0x2151   : > { %10953 = vmatprep.subr.bf16.mxu1 %v12207_v22 }
0x2154   : > { %10955 = vmatpush3.bf16.msra.mxu1 %v12231_v16  ;;  %v11250_v4 = vpop.eup %11249 }
0x2155   : > { %10957 = vmatprep.subr.bf16.mxu1 %v12235_v34  ;;  %v6079_v33 = vadd.f32 1.0, %v11250_v4  ;;  %v14899_v4 = vld [vmem:[#allocation33_spill] sm:$0xff] }
0x2157   : > { %11251 = vrcp.f32 %v6079_v33  ;;  %v14900_v33 = vld [vmem:[#allocation34_spill] sm:$0xff] }
0x2158   : > { %10959 = vmatpush3.bf16.msra.mxu1 %v12252_v7 }
0x2159   : > { %10961 = vmatprep.subr.bf16.mxu1 %v12255_v55 }
0x215c   : > { %10963 = vmatpush3.bf16.msra.mxu1 %v12270_v59 }
0x215d   : > { %10965 = vmatprep.subr.bf16.mxu1 %v12273_v15 }
0x2160   : > { %10967 = vmatpush3.bf16.msra.mxu1 %v12288_v6 }
0x2161   : > { %10969 = vmatprep.subr.bf16.mxu1 %v12291_v53  ;;  %v11252_v34 = vpop.eup %11251 }
0x2162   : > { %v6481_v7 = vsub.f32 1.0, %v11252_v34  ;;  %v6480_v59 = vmul.f32 %v11252_v34, %v13953_v17  ;;  %v14902_v34 = vld [vmem:[#allocation37_spill] sm:$0xff] }
0x2164   : > { %10971 = vmatpush3.bf16.msra.mxu1 %v14769_v20 }
0x2165   : > { %11005 = vmatprep.subr.bf16.mxu1 %v12314_v39 }
0x221a   : > { %v9119_v52 = vpop.f32.mrb[74].mxu1 }
0x221b   : > { %v9120_v51 = vpop.f32.mrb[75].mxu1 }
0x221c   : > { %v9121_v22 = vadd.f32 %v9120_v51, %v9119_v52  ;;  %v6736_v52 = vld [vmem:[#allocation3 + $0x38] sm:$0xff]  ;;  %v14901_v51 = vld [vmem:[#allocation35_spill] sm:$0xff] }
0x221e   : > { %v6478_v16 = vadd.f32 %v9121_v22, %v6407_v3  ;;  %v14897_v3 = vld [vmem:[#allocation31_spill] sm:$0xff] }
0x2220   : > { %11253 = vtanh.f32 %v6478_v16 }
0x222a   : > { %v11254_v55 = vpop.eup %11253 }
0x222b   : > { %v6482_v15 = vmul.f32 %v11254_v55, %v6481_v7  ;;  %v6737_v7 = vadd.f32 %v13875_v8, %v6736_v52  ;;  %v14910_v8 = vld [vmem:[#allocation46_spill] sm:$0xff] }
0x222d   : > { %v14131_v6 = vadd.f32 %v6482_v15, %v6480_v59  ;;  %v14903_v15 = vld [vmem:[#allocation39_spill] sm:$0xff] }
0x222f   : > { %6558 = vrot.lane.b32.xlu0 %v14131_v6, %s11297_s19  ;;  %6555 = vrot.lane.b32.xlu1 %v14131_v6, %s11298_s20 }
0x2230   : > { %9536 = vmatpush3.msra.mxu0 %v14131_v6 }
0x2231   : > { %9538 = vmatmul.mubr.msk.f32.vlgmr.msra.gmra.mrb[70].mxu0 %vm718_vm4, %v13963_v2  ;;  %10973 = vmatprep.subr.bf16.mxu0 %v14604_v42 }
0x2232   : > { %10975 = vmatpush3.bf16.msra.mxu0 %v12471_v60 }
0x2233   : > { %6561 = vrot.lane.b32.xlu1 %v14131_v6, %s11299_s25  ;;  %10977 = vmatprep.subr.bf16.mxu0 %v12481_v1 }
0x2236   : > { %10979 = vmatpush3.bf16.msra.mxu0 %v12489_v36 }
0x2237   : > { %10981 = vmatprep.subr.bf16.mxu0 %v12499_v37 }
0x223a   : > { %10983 = vmatpush3.bf16.msra.mxu0 %v12507_v14 }
0x223b   : > { %10985 = vmatprep.subr.bf16.mxu0 %v12520_v32 }
0x223e   : > { %10987 = vmatpush3.bf16.msra.mxu0 %v12531_v35  ;;  %v14879_v35 = vld [vmem:[#allocation17_spill] sm:$0xff] }
0x223f   : > { %10989 = vmatprep.subr.bf16.mxu0 %v12533_v56  ;;  %v14880_v56 = vld [vmem:[#allocation22_spill] sm:$0xff] }
0x2242   : > { %10991 = vmatpush3.bf16.msra.mxu0 %v12549_v62  ;;  %v14882_v62 = vld [vmem:[#allocation6_spill] sm:$0xff] }
0x2243   : > { %10993 = vmatprep.subr.bf16.mxu0 %v12552_v30  ;;  %v14885_v30 = vld [vmem:[#allocation5_spill] sm:$0xff] }
0x2246   : > { %10995 = vmatpush3.bf16.msra.mxu0 %v12567_v24 }
0x2247   : > { %10997 = vmatprep.subr.bf16.mxu0 %v12570_v5 }
0x224a   : > { %10999 = vmatpush3.bf16.msra.mxu0 %v12582_v11 }
0x224b   : > { %11001 = vmatprep.subr.bf16.mxu0 %v12593_v54 }
0x224e   : > { %11003 = vmatpush3.bf16.msra.mxu0 %v12602_v50 }
0x224f   : > { %11037 = vmatprep.subr.bf16.mxu0 %v14605_v48 }
0x22a1   : > { %v6556_v53 = vpop.permute.xlu1 %6555  ;;  %v6559_v39 = vpop.permute.xlu0 %6558 }
0x22a2   : > { %v6564_v60 = vsel %vm1266_vm10, %v14131_v6, %v6556_v53  ;;  %v14904_v53 = vld [vmem:[#allocation40_spill] sm:$0xff] }
0x22a3   : > { %v6565_v1 = vsel %vm385_vm0, %v6564_v60, %v6559_v39  ;;  %v14905_v39 = vld [vmem:[#allocation41_spill] sm:$0xff]  ;;  %v14906_v60 = vld [vmem:[#allocation42_spill] sm:$0xff] }
0x22a5   : > { %v6562_v36 = vpop.permute.xlu1 %6561 }
0x22a6   : > { %v6566_v37 = vsel %vm2012_vm11, %v6565_v1, %v6562_v36  ;;  %v14907_v1 = vld [vmem:[#allocation43_spill] sm:$0xff]  ;;  %v14908_v36 = vld [vmem:[#allocation44_spill] sm:$0xff] }
0x22a7   : > { %v6567_v14 = vmul.f32 %v13993_v19, %v6566_v37  ;;  %v6568_v32 = vmul.f32 %v13999_v27, %v6566_v37  ;;  %v14909_v37 = vld [vmem:[#allocation45_spill] sm:$0xff] }
0x22a9   : > { %6651 = vmatprep.mubr.f32.mxu1 %v6568_v32 }
0x22aa   : > { %6652 = vmatmul.mubr.f32.vlgmr.msra.gmra.mrb[76].mxu1 %v6567_v14 }
0x22ab   : > { %11007 = vmatpush3.bf16.msra.mxu1 %v12330_v45  ;;  %6802 = vmatprep.mubr.f32.mxu1 %v6568_v32  ;;  %v14881_v45 = vld [vmem:[#allocation19_spill] sm:$0xff]  ;;  %v14912_v32 = vld [vmem:[#allocation48_spill] sm:$0xff] }
0x22ac   : > { %11009 = vmatprep.subr.bf16.mxu1 %v12333_v47  ;;  %v14883_v47 = vld [vmem:[#allocation15_spill] sm:$0xff] }
0x22af   : > { %11011 = vmatpush3.bf16.msra.mxu1 %v12348_v13  ;;  %v14884_v13 = vld [vmem:[#allocation16_spill] sm:$0xff] }
0x22b0   : > { %11013 = vmatprep.subr.bf16.mxu1 %v14660_v44 }
0x22b3   : > { %11015 = vmatpush3.bf16.msra.mxu1 %v14661_v0  ;;  %v6585_v0 = vld [vmem:[#allocation2 + $0x38] sm:$0xff] }
0x22b4   : > { %11017 = vmatprep.subr.bf16.mxu1 %v14662_v9 }
0x22b7   : > { %11019 = vmatpush3.bf16.msra.mxu1 %v14663_v29 }
0x22b8   : > { %11021 = vmatprep.subr.bf16.mxu1 %v14824_v38  ;;  %v14886_v38 = vld [vmem:[#allocation21_spill] sm:$0xff] }
0x22b9   : > { %v6586_v26 = vadd.f32 %v14886_v38, %v6585_v0  ;;  %v14917_v0 = vld [vmem:[#allocation54_spill] sm:$0xff]  ;;  %v14922_v38 = vld [vmem:[#allocation59_spill] sm:$0xff] }
0x22bb   : > { %11023 = vmatpush3.bf16.msra.mxu1 %v14879_v35  ;;  %v14914_v35 = vld [vmem:[#allocation50_spill] sm:$0xff] }
0x22bc   : > { %11025 = vmatprep.subr.bf16.mxu1 %v14880_v56  ;;  %v14915_v56 = vld [vmem:[#allocation51_spill] sm:$0xff] }
0x22bf   : > { %11027 = vmatpush3.bf16.msra.mxu1 %v14881_v45 }
0x22c0   : > { %11029 = vmatprep.subr.bf16.mxu1 %v14882_v62 }
0x22c3   : > { %11031 = vmatpush3.bf16.msra.mxu1 %v14883_v47 }
0x22c4   : > { %11033 = vmatprep.subr.bf16.mxu1 %v14884_v13 }
0x22c7   : > { %11035 = vmatpush3.bf16.msra.mxu1 %v14885_v30 }
0x22c8   : > { %9540 = vmatprep.subr.mxu1 %v14537_v25 }
0x22ca   : > { %6803 = vmatmul.mubr.f32.vlgmr.msra.gmra.mrb[78].mxu1 %v6567_v14  ;;  %v14911_v14 = vld [vmem:[#allocation47_spill] sm:$0xff] }
0x22cb   : > { %9542 = vmatprep.mubr.msk.f32.mxu1 %vm11296_vm9, %v14537_v25 }
0x2304   : > { %v6550_v24 = vpop.f32.mrb[70].mxu0 }
0x2305   : > { %6573 = vrot.lane.b32.xlu1 %v6550_v24, %s11297_s19  ;;  %6570 = vrot.lane.b32.xlu0 %v6550_v24, %s11298_s20  ;;  %v9539_v5 = vpop.f32.mrb[71].mxu0 }
0x2309   : > { %6576 = vrot.lane.b32.xlu0 %v6550_v24, %s11299_s25 }
0x2377   : > { %v6571_v11 = vpop.permute.xlu0 %6570  ;;  %v6574_v54 = vpop.permute.xlu1 %6573 }
0x2378   : > { %v6579_v50 = vsel %vm1266_vm10, %v6550_v24, %v6571_v11 }
0x2379   : > { %v6580_v42 = vsel %vm385_vm0, %v6579_v50, %v6574_v54 }
0x237b   : > { %v6577_v48 = vpop.permute.xlu0 %6576 }
0x237c   : > { %v6581_v44 = vsel %vm2012_vm11, %v6580_v42, %v6577_v48 }
0x237d   : > { %v6582_v9 = vmul.f32 %v13993_v19, %v6581_v44  ;;  %v6583_v29 = vmul.f32 %v13999_v27, %v6581_v44  ;;  %v9156_v20 = vpop.f32.mrb[76].mxu1 }
0x237e   : > { %v9157_v17 = vpop.f32.mrb[77].mxu1 }
0x237f   : > { %v9158_v12 = vadd.f32 %v9157_v17, %v9156_v20  ;;  %6722 = vmatprep.mubr.f32.mxu0 %v6583_v29  ;;  %v14920_v20 = vld [vmem:[#allocation57_spill] sm:$0xff]  ;;  %v14921_v17 = vld [vmem:[#allocation58_spill] sm:$0xff] }
0x2380   : > { %6723 = vmatmul.mubr.f32.vlgmr.msra.gmra.mrb[72].mxu0 %v6582_v9 }
0x2381   : > { %v6657_v49 = vadd.f32 %v9158_v12, %v6586_v26  ;;  %11039 = vmatpush3.bf16.msra.mxu0 %v14887_v57  ;;  %6873 = vmatprep.mubr.f32.mxu0 %v6583_v29  ;;  %v14919_v29 = vld [vmem:[#allocation56_spill] sm:$0xff]  ;;  %v14924_v12 = vld [vmem:[#allocation61_spill] sm:$0xff] }
0x2382   : > { %11041 = vmatprep.subr.bf16.mxu0 %v14888_v63  ;;  %v14923_v26 = vld [vmem:[#allocation60_spill] sm:$0xff]  ;;  %v14928_v63 = vld [vmem:[#allocation65_spill] sm:$0xff] }
0x2383   : > { %v14927_v57 = vld [vmem:[#allocation64_spill] sm:$0xff] }
0x2385   : > { %11043 = vmatpush3.bf16.msra.mxu0 %v14889_v41  ;;  %v14929_v41 = vld [vmem:[#allocation66_spill] sm:$0xff] }
0x2386   : > { %11045 = vmatprep.subr.bf16.mxu0 %v14890_v10  ;;  %v14930_v10 = vld [vmem:[#allocation67_spill] sm:$0xff] }
0x2389   : > { %11047 = vmatpush3.bf16.msra.mxu0 %v14891_v40  ;;  %v14931_v40 = vld [vmem:[#allocation68_spill] sm:$0xff] }
0x238a   : > { %11049 = vmatprep.subr.bf16.mxu0 %v14892_v28 }
0x238d   : > { %11051 = vmatpush3.bf16.msra.mxu0 %v14893_v43 }
0x238e   : > { %11053 = vmatprep.subr.bf16.mxu0 %v14894_v18 }
0x2391   : > { %11055 = vmatpush3.bf16.msra.mxu0 %v14895_v31 }
0x2392   : > { %11057 = vmatprep.subr.bf16.mxu0 %v14896_v23 }
0x2395   : > { %11059 = vmatpush3.bf16.msra.mxu0 %v14897_v3 }
0x2396   : > { %11061 = vmatprep.subr.bf16.mxu0 %v14898_v46 }
0x2399   : > { %11063 = vmatpush3.bf16.msra.mxu0 %v14899_v4 }
0x239a   : > { %11065 = vmatprep.subr.bf16.mxu0 %v14900_v33 }
0x239d   : > { %11067 = vmatpush3.bf16.msra.mxu0 %v14901_v51  ;;  %v9226_v22 = vpop.f32.mrb[78].mxu1 }
0x239e   : > { %v9227_v16 = vpop.f32.mrb[79].mxu1  ;;  %11069 = vmatprep.subr.bf16.mxu0 %v14902_v34 }
0x239f   : > { %v9228_v55 = vadd.f32 %v9227_v16, %v9226_v22 }
0x23a0   : > { %6874 = vmatmul.mubr.f32.vlgmr.msra.gmra.mrb[74].mxu0 %v6582_v9  ;;  %v14918_v9 = vld [vmem:[#allocation55_spill] sm:$0xff] }
0x23a1   : > { %v6808_v59 = vadd.f32 %v9228_v55, %v6737_v7  ;;  %11071 = vmatpush3.bf16.msra.mxu0 %v14848_v21  ;;  %v14913_v21 = vld [vmem:[#allocation49_spill] sm:$0xff] }
0x23a2   : > { %11073 = vmatprep.subr.bf16.mxu0 %v14903_v15 }
0x23a5   : > { %11075 = vmatpush3.bf16.msra.mxu0 %v14904_v53 }
0x23a6   : > { %11077 = vmatprep.subr.bf16.mxu0 %v14905_v39 }
0x23a9   : > { %11079 = vmatpush3.bf16.msra.mxu0 %v14906_v60 }
0x23aa   : > { %11081 = vmatprep.subr.bf16.mxu0 %v14907_v1 }
0x23ad   : > { %11083 = vmatpush3.bf16.msra.mxu0 %v14908_v36 }
0x23ae   : > { %11085 = vmatprep.subr.bf16.mxu0 %v14909_v37  ;;  %v7137_v37 = vld [vmem:[%s14297_s8] sm:$0xff] }
0x23b1   : > { %11087 = vmatpush3.bf16.msra.mxu0 %v14910_v8  ;;  %v7138_v8 = vld [vmem:[%s14297_s8 + $0x8] sm:$0xff] }
0x23b2   : > { %11089 = vmatprep.subr.bf16.mxu0 %v14911_v14  ;;  %v11133_v14 = vpack.c.bf16 %v7138_v8, %v7137_v37 }
0x23b5   : > { %11091 = vmatpush3.bf16.msra.mxu0 %v14912_v32 }
0x23b6   : > { %11093 = vmatprep.subr.bf16.mxu0 %v14913_v21 }
0x23b9   : > { %11095 = vmatpush3.bf16.msra.mxu0 %v14914_v35 }
0x23ba   : > { %11097 = vmatprep.subr.bf16.mxu0 %v14915_v56 }
0x23bd   : > { %11099 = vmatpush3.bf16.msra.mxu0 %v14806_v58  ;;  %v14916_v58 = vld [vmem:[#allocation53_spill] sm:$0xff] }
0x2453   : > { %v9191_v45 = vpop.f32.mrb[72].mxu0 }
0x2454   : > { %v9192_v62 = vpop.f32.mrb[73].mxu0 }
0x2455   : > { %v9193_v47 = vadd.f32 %v9192_v62, %v9191_v45 }
0x2457   : > { %v14224_v13 = vadd.f32 %v9193_v47, %v6657_v49  ;;  %v14926_v49 = vld [vmem:[#allocation63_spill] sm:$0xff] }
0x2459   : > { %v7540_v21 = vmul.f32 -1.442695, %v14224_v13  ;;  %v7543_v13 = vld [vmem:[%s14298_s9] ss:$0 sm:$0xff] }
0x2473   : > { %v9261_v30 = vpop.f32.mrb[74].mxu0 }
0x2474   : > { %v9262_v24 = vpop.f32.mrb[75].mxu0 }
0x2475   : > { %v9263_v5 = vadd.f32 %v9262_v24, %v9261_v30 }
0x2477   : > { %v6879_v11 = vadd.f32 %v9263_v5, %v6808_v59  ;;  %v6988_v59 = vld [vmem:[#allocation4 + $0x38] sm:$0xff] }
0x2478   : > { %v6989_v60 = vadd.f32 %v14110_v61, %v6988_v59  ;;  %v7140_v61 = vld [vmem:[%s14297_s8 + $0x18] sm:$0xff] }
0x2479   : > { %v7541_v54 = vmul.f32 -1.442695, %v6879_v11 }
0x247b   : > { %11255 = vpow2.f32 %v7541_v54 }
0x2485   : > { %v11256_v50 = vpop.eup %11255 }
0x2486   : > { %v6883_v42 = vadd.f32 1.0, %v11256_v50 }
0x2488   : > { %11257 = vrcp.f32 %v6883_v42 }
0x2489   : > { %11259 = vpow2.f32 %v7540_v21 }
0x2492   : > { %v11258_v48 = vpop.eup %11257 }
0x2493   : > { %v6886_v44 = vmul.f32 %v11258_v48, %v14131_v6  ;;  %v11260_v35 = vpop.eup %11259 }
0x2494   : > { %v6732_v56 = vadd.f32 1.0, %v11260_v35 }
0x2495   : > { %6961 = vrot.lane.b32.xlu0 %v6886_v44, %s11297_s19  ;;  %6958 = vrot.lane.b32.xlu1 %v6886_v44, %s11298_s20 }
0x2496   : > { %9541 = vmatpush3.msra.mxu1 %v6886_v44  ;;  %11261 = vrcp.f32 %v6732_v56 }
0x2497   : > { %9543 = vmatmul.mubr.msk.f32.vlgmr.msra.gmra.mrb[80].mxu1 %vm718_vm4, %v13963_v2  ;;  %11101 = vmatprep.subr.bf16.mxu1 %v14916_v58  ;;  %v14925_v2 = vld [vmem:[#allocation62_spill] sm:$0xff] }
0x2498   : > { %11103 = vmatpush3.bf16.msra.mxu1 %v14917_v0 }
0x2499   : > { %6964 = vrot.lane.b32.xlu1 %v6886_v44, %s11299_s25  ;;  %11105 = vmatprep.subr.bf16.mxu1 %v14918_v9 }
0x249c   : > { %11107 = vmatpush3.bf16.msra.mxu1 %v14919_v29 }
0x249d   : > { %11109 = vmatprep.subr.bf16.mxu1 %v14920_v20 }
0x24a0   : > { %11111 = vmatpush3.bf16.msra.mxu1 %v14921_v17  ;;  %v11262_v24 = vpop.eup %11261 }
0x24a1   : > { %11113 = vmatprep.subr.bf16.mxu1 %v14922_v38  ;;  %v7134_v5 = vsub.f32 1.0, %v11262_v24  ;;  %v7133_v54 = vmul.f32 %v11262_v24, %v14131_v6 }
0x24a4   : > { %11115 = vmatpush3.bf16.msra.mxu1 %v14923_v26 }
0x24a5   : > { %11117 = vmatprep.subr.bf16.mxu1 %v14924_v12 }
0x24a8   : > { %11119 = vmatpush3.bf16.msra.mxu1 %v14925_v2 }
0x24a9   : > { %11121 = vmatprep.subr.bf16.mxu1 %v14926_v49 }
0x24ac   : > { %11123 = vmatpush3.bf16.msra.mxu1 %v14927_v57 }
0x24ad   : > { %11125 = vmatprep.subr.bf16.mxu1 %v14928_v63 }
0x24b0   : > { %11127 = vmatpush3.bf16.msra.mxu1 %v14929_v41 }
0x24b1   : > { %11129 = vmatprep.subr.bf16.mxu1 %v14930_v10 }
0x24b4   : > { %11131 = vmatpush3.bf16.msra.mxu1 %v14931_v40 }
0x2507   : > { %v6959_v28 = vpop.permute.xlu1 %6958  ;;  %v6962_v43 = vpop.permute.xlu0 %6961 }
0x2508   : > { %v6967_v18 = vsel %vm1266_vm10, %v6886_v44, %v6959_v28 }
0x2509   : > { %v6968_v31 = vsel %vm385_vm0, %v6967_v18, %v6962_v43 }
0x250b   : > { %v6965_v23 = vpop.permute.xlu1 %6964 }
0x250c   : > { %v6969_v3 = vsel %vm2012_vm11, %v6968_v31, %v6965_v23 }
0x250d   : > { %v6970_v46 = vmul.f32 %v13993_v19, %v6969_v3  ;;  %v6971_v4 = vmul.f32 %v13999_v27, %v6969_v3 }
0x250f   : > { %7054 = vmatprep.mubr.f32.mxu0 %v6971_v4 }
0x2510   : > { %7055 = vmatmul.mubr.f32.vlgmr.msra.gmra.mrb[76].mxu0 %v6970_v46 }
0x2511   : > { %9553 = vmatprep.mubr.msk.f32.mxu0 %vm11296_vm9, %v14537_v25 }
0x256a   : > { %v6953_v33 = vpop.f32.mrb[80].mxu1 }
0x256b   : > { %6973 = vrot.lane.b32.xlu0 %v6953_v33, %s11298_s20  ;;  %6976 = vrot.lane.b32.xlu1 %v6953_v33, %s11297_s19  ;;  %v9544_v52 = vpop.f32.mrb[81].mxu1 }
0x256f   : > { %6979 = vrot.lane.b32.xlu0 %v6953_v33, %s11299_s25 }
0x25dd   : > { %v6974_v51 = vpop.permute.xlu0 %6973  ;;  %v6977_v16 = vpop.permute.xlu1 %6976 }
0x25de   : > { %v6982_v22 = vsel %vm1266_vm10, %v6953_v33, %v6974_v51 }
0x25df   : > { %v6983_v34 = vsel %vm385_vm0, %v6982_v22, %v6977_v16 }
0x25e1   : > { %v6980_v7 = vpop.permute.xlu0 %6979 }
0x25e2   : > { %v6984_v55 = vsel %vm2012_vm11, %v6983_v34, %v6980_v7 }
0x25e3   : > { %v6985_v25 = vmul.f32 %v13993_v19, %v6984_v55  ;;  %v6986_v15 = vmul.f32 %v13999_v27, %v6984_v55  ;;  %v9298_v53 = vpop.f32.mrb[76].mxu0  ;;  %v7139_v19 = vld [vmem:[%s14297_s8 + $0x10] sm:$0xff]  ;;  %v11300_v27 = vmov 0.0|0.0  }
0x25e4   : > { %v9299_v39 = vpop.f32.mrb[77].mxu0  ;;  %11132 = vmatprep.subr.bf16.mxu0 %v11300_v27  ;;  %v11136_v32 = vpack.c.bf16 %v7140_v61, %v7139_v19 }
0x25e5   : > { %v9300_v1 = vadd.f32 %v9299_v39, %v9298_v53  ;;  %7125 = vmatprep.mubr.f32.mxu1 %v6986_v15  ;;  %11134 = vmatpush3.bf16.msra.mxu0 %v11133_v14 }
0x25e6   : > { %7126 = vmatmul.mubr.f32.vlgmr.msra.gmra.mrb[82].mxu1 %v6985_v25  ;;  %11135 = vmatprep.subr.bf16.mxu0 %v11300_v27 }
0x25e7   : > { %v7060_v36 = vadd.f32 %v9300_v1, %v6989_v60 }
0x25e9   : > { %11137 = vmatpush3.bf16.msra.mxu0 %v11136_v32 }
0x26b9   : > { %v9333_v45 = vpop.f32.mrb[82].mxu1 }
0x26ba   : > { %v9334_v62 = vpop.f32.mrb[83].mxu1 }
0x26bb   : > { %v9335_v47 = vadd.f32 %v9334_v62, %v9333_v45 }
0x26bd   : > { %v7131_v30 = vadd.f32 %v9335_v47, %v7060_v36 }
0x26bf   : > { %11263 = vtanh.f32 %v7131_v30 }
0x26c9   : > { %v11264_v11 = vpop.eup %11263 }
0x26ca   : > { %v7135_v50 = vmul.f32 %v11264_v11, %v7134_v5 }
0x26cc   : > { %v7136_v42 = vadd.f32 %v7135_v50, %v7133_v54 }
0x26ce   : > { %9554 = vmatmul.mubr.msk.f32.vlgmr.msra.gmra.mrb[78].mxu0 %vm1266_vm10, %v7136_v42 }
0x27a1   : > { %v7217_v48 = vpop.f32.mrb[78].mxu0 }
0x27a2   : > { %v7218_v44 = vadd.f32 %v7543_v13, %v7217_v48  ;;  %v9555_v58 = vpop.f32.mrb[79].mxu0 }
0x27a4   : > { %7221 = vst [vmem:[%s357_s27] sm:$0xff] %v7218_v44 }
0x27a5 PF: > { %s20_s13 = sadd.s32 1, %s11286_s13  }
0x27a6   : > { %p17_p4 = scmp.ge.s32.totalorder %s20_s13, 4  }
0x27a8   :  { %19 = sbr.rel (!%p17_p4) target bundleno = 1 (0x1), region = 123 }

</bundles_post_ra>
